<compile_context>
chip_gen: v6e
topology: v6e:2x2x1
jax: 0.10.0
libtpu: 0.0.40
codegen_flags: <defaults>
</compile_context>

<pallas_src>
import functools

import jax
import jax.numpy as jnp
from jax.experimental import pallas as pl
from jax.experimental.pallas import tpu as pltpu

INPUT_DIM = 115   # fixed by the module: wnn is Linear(115, 230) -> Linear(230, 115)
LANES = 128       # lane-padded feature width
HIDDEN = 32       # encoder hidden width
CODE_DIM = 5      # encoder output width
P1, P2, P3, P4 = 64, 256, 64, 2   # predictor widths
ROW_BLOCK = 32    # rows per vreg-resident encoder sub-block


def _default_compute_dtype():
    """bf16 on v6e/v7x (packed bf16 VALU), f32 on v5e and older (no bf16 VALU)."""
    try:
        kind = jax.devices()[0].device_kind.lower()
    except Exception:
        return jnp.float32
    if "v6" in kind or "v7" in kind:
        return jnp.bfloat16
    return jnp.float32


def mymodel_kernel(x_ref, encw_ref, eb2_ref, wts_ref, pw1_ref, pb1_ref,
                   pw2_ref, pb2_ref, pw3_ref, pb3_ref, pw4_ref, pb4_ref,
                   out_ref, a1_ref, *, hidden, code_dim, rows, fast_epilogue):
    f32 = jnp.float32
    H, C, R = hidden, code_dim, rows
    bt, dp = x_ref.shape

    # Loop-invariant operands hoisted out of the sub-block loop (no per-iter
    # broadcast_in_dim inside the loop).
    wts = wts_ref[...]                     # (R, 128) f32, exactly 0 in padded lanes
    pb1 = pb1_ref[...]                     # (R, P1)  f32

    def sub_block(sb, carry):
        r0 = pl.multiple_of(sb * R, R)
        xr = x_ref[pl.ds(r0, R), :]                              # (R, 128) compute dtype

        # ---- 115 per-feature encoders; accumulators stay vreg-resident (f32) ----
        # acc_j[r, i] = sum_k ReLU(x[r,i]*W1[i,k] + b1[i,k]) * W2[i,k,j]
        accs = [jnp.zeros((R, dp), f32) for _ in range(C)]
        for k in range(H):
            h_k = jnp.maximum(xr * encw_ref[k] + encw_ref[H + k], 0.0)   # (R, 128)
            for j in range(C):
                accs[j] = accs[j] + (h_k * encw_ref[2 * H + j * H + k]).astype(f32)

        # ---- summary fused directly into the first predictor layer ----
        # a1 = ReLU(sum_j s_j * pw1[j] + pb1),  s_j = sum_i ReLU(acc_j + b2_j)_i * w_i
        a = pb1
        for j in range(C):
            c_j = jnp.maximum(accs[j] + eb2_ref[j], 0.0)          # codes[:, :, j]
            s_j = jnp.sum(c_j * wts, axis=-1, keepdims=True)      # (R, 1) lane reduce
            a = a + s_j * pw1_ref[j]                              # (R, P1)
        a1_ref[pl.ds(r0, R), :] = jnp.maximum(a, 0.0)
        return carry

    jax.lax.fori_loop(0, bt // R, sub_block, 0)

    # ---------------- rest of predictor MLP (MXU) + softmax(dim=1) ----------------
    a1 = a1_ref[...]
    a2 = jnp.maximum(jnp.dot(a1.astype(pw2_ref.dtype), pw2_ref[...],
                             preferred_element_type=f32) + pb2_ref[...], 0.0)
    a3 = jnp.maximum(jnp.dot(a2.astype(pw3_ref.dtype), pw3_ref[...],
                             preferred_element_type=f32) + pb3_ref[...], 0.0)
    logits = jnp.dot(a3.astype(pw4_ref.dtype), pw4_ref[...],
                     preferred_element_type=f32) + pb4_ref[...]       # (Bt, 2)
    z = logits - jnp.max(logits, axis=-1, keepdims=True)
    e = jnp.exp(z)
    denom = jnp.sum(e, axis=-1, keepdims=True)
    if fast_epilogue:
        probs = e * pl.reciprocal(denom, approx=True)   # EUP slot; bf16 fast path
    else:
        probs = e / denom                               # exact; f32 reference path
    out_ref[...] = probs.astype(out_ref.dtype)


def mymodel_forward(x, p, *, training=False, compute_dtype=None,
                    batch_tile=1024, row_block=ROW_BLOCK):
    """compute_dtype=None picks bf16 on v6e/v7x and f32 on v5e automatically."""
    f32 = jnp.float32
    cdt = jnp.dtype(compute_dtype if compute_dtype is not None
                    else _default_compute_dtype())
    B, D = x.shape
    H = p["ew1"].shape[1]
    C = p["ew2"].shape[2]
    Dp = LANES
    R = row_block
    assert D <= Dp

    # ---- hoisted wnn (input-independent): final mixing weights in plain JAX ----
    hw = jax.nn.relu(p["wpar"] @ p["ww1"] + p["wb1"])
    w = hw @ p["ww2"] + p["wb2"]                        # (D,)
    if not training:
        wa = jnp.abs(w)
        m = jnp.mean(wa)                                # mean over the 115 REAL features
        w = jnp.where(wa > m, w, 0.0)                   # Threshold(m, 0)(|w|) * sgn(w)
    wts = jnp.pad(w, (0, Dp - D)).astype(f32)           # padded lanes exactly 0

    # ---- encoder params: transpose, lane-pad, pre-broadcast to R sublanes ----
    def pad_lanes(a):
        return jnp.pad(a, [(0, 0)] * (a.ndim - 1) + [(0, Dp - D)])

    def bcast_rows(a2d, dtype):
        return jnp.broadcast_to(a2d[:, None, :],
                                (a2d.shape[0], R, a2d.shape[1])).astype(dtype)

    enc_rows = jnp.concatenate([
        p["ew1"].T,                                             # rows [0, H)
        p["eb1"].T,                                             # rows [H, 2H)
        jnp.transpose(p["ew2"], (2, 1, 0)).reshape(C * H, D),   # row 2H + j*H + k
    ], axis=0)
    encw = bcast_rows(pad_lanes(enc_rows), cdt)                 # (2H+C*H, R, 128)
    eb2b = bcast_rows(pad_lanes(p["eb2"].T), f32)               # (C, R, 128)
    wtsb = jnp.broadcast_to(wts[None, :], (R, Dp)).astype(f32)  # (R, 128)

    pw1b = jnp.broadcast_to(p["pw1"][:, None, :], (C, R, P1)).astype(f32)  # (C, R, 64)
    pb1b = jnp.broadcast_to(p["pb1"][None, :], (R, P1)).astype(f32)        # (R, 64)
    pw2 = p["pw2"].astype(cdt); pb2 = p["pb2"].reshape(1, -1).astype(f32)
    pw3 = p["pw3"].astype(cdt); pb3 = p["pb3"].reshape(1, -1).astype(f32)
    pw4 = p["pw4"].astype(cdt); pb4 = p["pb4"].reshape(1, -1).astype(f32)

    # ---- batch tiling: multiples of the row sub-block; guarantee >=2 grid steps
    #      whenever the batch allows it so v7x shards the batch over both TCs ----
    bt_cap = R * max(1, int(pl.cdiv(B, 2 * R)))
    Bt = int(pl.cdiv(max(R, min(batch_tile, bt_cap)), R)) * R
    Bp = int(pl.cdiv(B, Bt)) * Bt
    xp = jnp.pad(x, ((0, Bp - B), (0, Dp - D))).astype(cdt)

    weight_args = (encw, eb2b, wtsb, pw1b, pb1b, pw2, pb2, pw3, pb3, pw4, pb4)

    def const_spec(a):
        nd = a.ndim
        return pl.BlockSpec(a.shape, lambda i, _nd=nd: (0,) * _nd)  # VMEM-resident

    kernel = functools.partial(
        mymodel_kernel, hidden=H, code_dim=C, rows=R,
        fast_epilogue=(cdt != jnp.float32))

    out = pl.pallas_call(
        kernel,
        out_shape=jax.ShapeDtypeStruct((Bp, P4), jnp.float32),
        grid=(Bp // Bt,),
        in_specs=[pl.BlockSpec((Bt, Dp), lambda i: (i, 0))]
                 + [const_spec(a) for a in weight_args],
        out_specs=pl.BlockSpec((Bt, P4), lambda i: (i, 0)),
        scratch_shapes=[pltpu.VMEM((Bt, P1), jnp.float32)],
        compiler_params=pltpu.CompilerParams(
            dimension_semantics=("parallel",),          # megacore-shard the batch
            vmem_limit_bytes=32 * 1024 * 1024),
    )(xp, *weight_args)
    return out[:B]


def init_params(key, input_dim=INPUT_DIM, hidden=HIDDEN, code_dim=CODE_DIM):
    ks = jax.random.split(key, 16)
    s = 0.1
    n = lambda k, shape: (jax.random.normal(k, shape, jnp.float32) * s)
    return {
        # per-feature encoders (stacked over the 115 features)
        "ew1": n(ks[0], (input_dim, hidden)),
        "eb1": n(ks[1], (input_dim, hidden)),
        "ew2": n(ks[2], (input_dim, hidden, code_dim)),
        "eb2": n(ks[3], (input_dim, code_dim)),
        # self.weight = torch.ones(input_dim)
        "wpar": jnp.ones((input_dim,), jnp.float32),
        # wnn: 115 -> 230 -> 115
        "ww1": n(ks[4], (input_dim, 2 * input_dim)),
        "wb1": n(ks[5], (2 * input_dim,)),
        "ww2": n(ks[6], (2 * input_dim, input_dim)),
        "wb2": n(ks[7], (input_dim,)),
        # predictor: 5 -> 64 -> 256 -> 64 -> 2
        "pw1": n(ks[8], (code_dim, P1)), "pb1": n(ks[9], (P1,)),
        "pw2": n(ks[10], (P1, P2)),      "pb2": n(ks[11], (P2,)),
        "pw3": n(ks[12], (P2, P3)),      "pb3": n(ks[13], (P3,)),
        "pw4": n(ks[14], (P3, P4)),      "pb4": n(ks[15], (P4,)),
    }


def reference(x, p, *, training=False):
    """Pure-JAX reference mirroring the PyTorch forward."""
    h = jax.nn.relu(x[:, :, None] * p["ew1"][None] + p["eb1"][None])                  # (B, D, H)
    codes = jax.nn.relu(jnp.einsum("bik,ikj->bij", h, p["ew2"]) + p["eb2"][None])     # (B, D, C)
    hw = jax.nn.relu(p["wpar"] @ p["ww1"] + p["wb1"])
    w = hw @ p["ww2"] + p["wb2"]
    if not training:
        wa = jnp.abs(w)
        m = jnp.mean(wa)
        w = jnp.where(wa > m, w, 0.0)          # Threshold(m, 0)(|w|) * sgn(w)
    summary = jnp.einsum("bij,i->bj", codes, w)
    a = jax.nn.relu(summary @ p["pw1"] + p["pb1"])
    a = jax.nn.relu(a @ p["pw2"] + p["pb2"])
    a = jax.nn.relu(a @ p["pw3"] + p["pb3"])
    logits = a @ p["pw4"] + p["pb4"]
    return jax.nn.softmax(logits, axis=1)      # nn.Softmax() -> dim=1 for 2-D input


if __name__ == "__main__":
    key = jax.random.PRNGKey(0)
    kp, kx = jax.random.split(key)
    params = init_params(kp)

    # Small batch (single grid step, single sub-block), f32 path — tight check.
    B = 8
    x = jax.random.normal(kx, (B, INPUT_DIM), jnp.float32)
    out = jax.block_until_ready(
        mymodel_forward(x, params, training=False, compute_dtype=jnp.float32))
    ref = reference(x, params, training=False)
    assert out.shape == (B, P4), out.shape
    assert jnp.allclose(out, ref, atol=1e-4, rtol=1e-4), (out, ref)

    # Larger batch exercising multiple grid steps + row padding, f32 path.
    B2 = 300
    x2 = jax.random.normal(jax.random.PRNGKey(1), (B2, INPUT_DIM), jnp.float32)
    out2 = jax.block_until_ready(
        mymodel_forward(x2, params, compute_dtype=jnp.float32, batch_tile=128))
    ref2 = reference(x2, params)
    assert out2.shape == (B2, P4)
    assert jnp.allclose(out2, ref2, atol=1e-4, rtol=1e-4)

    # Explicit bf16 fast path (f32 accumulators in-kernel); looser tolerance.
    out_bf = jax.block_until_ready(
        mymodel_forward(x2, params, compute_dtype=jnp.bfloat16, batch_tile=128))
    assert out_bf.shape == (B2, P4)
    assert jnp.allclose(out_bf, ref2, atol=5e-2, rtol=5e-2)

    # Auto-selected compute dtype (bf16 on v6e/v7x, f32 on v5e), default tiling.
    out_auto = jax.block_until_ready(mymodel_forward(x2, params))
    assert out_auto.shape == (B2, P4)
    assert jnp.allclose(out_auto, ref2, atol=5e-2, rtol=5e-2)

    print("KERNEL_OK")
</pallas_src>

<mosaic_0001>
module attributes {stable_mosaic.version = 11 : i64} {
  func.func @mymodel_kernel(%arg0: i32, %arg1: memref<32x128xf32, #tpu.memory_space<vmem>>, %arg2: memref<224x32x128xf32, #tpu.memory_space<vmem>>, %arg3: memref<5x32x128xf32, #tpu.memory_space<vmem>>, %arg4: memref<32x128xf32, #tpu.memory_space<vmem>>, %arg5: memref<5x32x64xf32, #tpu.memory_space<vmem>>, %arg6: memref<32x64xf32, #tpu.memory_space<vmem>>, %arg7: memref<64x256xf32, #tpu.memory_space<vmem>>, %arg8: memref<1x256xf32, #tpu.memory_space<vmem>>, %arg9: memref<256x64xf32, #tpu.memory_space<vmem>>, %arg10: memref<1x64xf32, #tpu.memory_space<vmem>>, %arg11: memref<64x2xf32, #tpu.memory_space<vmem>>, %arg12: memref<1x2xf32, #tpu.memory_space<vmem>>, %arg13: memref<32x2xf32, #tpu.memory_space<vmem>>, %arg14: memref<32x64xf32, #tpu.memory_space<vmem>>) attributes {dimension_semantics = [#tpu.dimension_semantics<parallel>], iteration_bounds = array<i64: 1>, scalar_prefetch = 0 : i64, scratch_operands = 1 : i64, tpu.core_type = #tpu.core_type<tc>, window_params = [{transform_indices = @transform_0, window_bounds = array<i64: 32, 128>}, {pipeline_mode = #tpu.pipeline_mode<synchronous>, transform_indices = @transform_1, window_bounds = array<i64: 224, 32, 128>}, {pipeline_mode = #tpu.pipeline_mode<synchronous>, transform_indices = @transform_2, window_bounds = array<i64: 5, 32, 128>}, {pipeline_mode = #tpu.pipeline_mode<synchronous>, transform_indices = @transform_3, window_bounds = array<i64: 32, 128>}, {pipeline_mode = #tpu.pipeline_mode<synchronous>, transform_indices = @transform_4, window_bounds = array<i64: 5, 32, 64>}, {pipeline_mode = #tpu.pipeline_mode<synchronous>, transform_indices = @transform_5, window_bounds = array<i64: 32, 64>}, {pipeline_mode = #tpu.pipeline_mode<synchronous>, transform_indices = @transform_6, window_bounds = array<i64: 64, 256>}, {pipeline_mode = #tpu.pipeline_mode<synchronous>, transform_indices = @transform_7, window_bounds = array<i64: 1, 256>}, {pipeline_mode = #tpu.pipeline_mode<synchronous>, transform_indices = @transform_8, window_bounds = array<i64: 256, 64>}, {pipeline_mode = #tpu.pipeline_mode<synchronous>, transform_indices = @transform_9, window_bounds = array<i64: 1, 64>}, {pipeline_mode = #tpu.pipeline_mode<synchronous>, transform_indices = @transform_10, window_bounds = array<i64: 64, 2>}, {pipeline_mode = #tpu.pipeline_mode<synchronous>, transform_indices = @transform_11, window_bounds = array<i64: 1, 2>}, {transform_indices = @transform_12, window_bounds = array<i64: 32, 2>}]} {
    %c0 = arith.constant 0 : index
    %c0_0 = arith.constant 0 : index
    %0 = vector.load %arg4[%c0, %c0_0] : memref<32x128xf32, #tpu.memory_space<vmem>>, vector<32x128xf32>
    %c0_1 = arith.constant 0 : index
    %c0_2 = arith.constant 0 : index
    %1 = vector.load %arg6[%c0_1, %c0_2] : memref<32x64xf32, #tpu.memory_space<vmem>>, vector<32x64xf32>
    %c0_i32 = arith.constant 0 : i32
    %c32_i32 = arith.constant 32 : i32
    %2 = arith.muli %c0_i32, %c32_i32 : i32
    %3 = tpu.assume_multiple %2, 32 : i32
    %4 = arith.index_cast %3 : i32 to index
    %c0_3 = arith.constant 0 : index
    %5 = vector.load %arg1[%4, %c0_3] : memref<32x128xf32, #tpu.memory_space<vmem>>, vector<32x128xf32>
    %cst = arith.constant 0.000000e+00 : f32
    %6 = vector.broadcast %cst : f32 to vector<32x128xf32>
    %cst_4 = arith.constant 0.000000e+00 : f32
    %7 = vector.broadcast %cst_4 : f32 to vector<32x128xf32>
    %cst_5 = arith.constant 0.000000e+00 : f32
    %8 = vector.broadcast %cst_5 : f32 to vector<32x128xf32>
    %cst_6 = arith.constant 0.000000e+00 : f32
    %9 = vector.broadcast %cst_6 : f32 to vector<32x128xf32>
    %cst_7 = arith.constant 0.000000e+00 : f32
    %10 = vector.broadcast %cst_7 : f32 to vector<32x128xf32>
    %c0_8 = arith.constant 0 : index
    %c0_9 = arith.constant 0 : index
    %c0_10 = arith.constant 0 : index
    %11 = vector.load %arg2[%c0_8, %c0_9, %c0_10] : memref<224x32x128xf32, #tpu.memory_space<vmem>>, vector<1x32x128xf32>
    %12 = vector.shape_cast %11 : vector<1x32x128xf32> to vector<32x128xf32>
    %13 = arith.mulf %5, %12 : vector<32x128xf32>
    %c32 = arith.constant 32 : index
    %c0_11 = arith.constant 0 : index
    %c0_12 = arith.constant 0 : index
    %14 = vector.load %arg2[%c32, %c0_11, %c0_12] : memref<224x32x128xf32, #tpu.memory_space<vmem>>, vector<1x32x128xf32>
    %15 = vector.shape_cast %14 : vector<1x32x128xf32> to vector<32x128xf32>
    %16 = arith.addf %13, %15 : vector<32x128xf32>
    %cst_13 = arith.constant 0.000000e+00 : f32
    %17 = vector.broadcast %cst_13 : f32 to vector<32x128xf32>
    %18 = arith.maximumf %16, %17 : vector<32x128xf32>
    %c64 = arith.constant 64 : index
    %c0_14 = arith.constant 0 : index
    %c0_15 = arith.constant 0 : index
    %19 = vector.load %arg2[%c64, %c0_14, %c0_15] : memref<224x32x128xf32, #tpu.memory_space<vmem>>, vector<1x32x128xf32>
    %20 = vector.shape_cast %19 : vector<1x32x128xf32> to vector<32x128xf32>
    %21 = arith.mulf %18, %20 : vector<32x128xf32>
    %22 = arith.addf %6, %21 : vector<32x128xf32>
    %c96 = arith.constant 96 : index
    %c0_16 = arith.constant 0 : index
    %c0_17 = arith.constant 0 : index
    %23 = vector.load %arg2[%c96, %c0_16, %c0_17] : memref<224x32x128xf32, #tpu.memory_space<vmem>>, vector<1x32x128xf32>
    %24 = vector.shape_cast %23 : vector<1x32x128xf32> to vector<32x128xf32>
    %25 = arith.mulf %18, %24 : vector<32x128xf32>
    %26 = arith.addf %7, %25 : vector<32x128xf32>
    %c128 = arith.constant 128 : index
    %c0_18 = arith.constant 0 : index
    %c0_19 = arith.constant 0 : index
    %27 = vector.load %arg2[%c128, %c0_18, %c0_19] : memref<224x32x128xf32, #tpu.memory_space<vmem>>, vector<1x32x128xf32>
    %28 = vector.shape_cast %27 : vector<1x32x128xf32> to vector<32x128xf32>
    %29 = arith.mulf %18, %28 : vector<32x128xf32>
    %30 = arith.addf %8, %29 : vector<32x128xf32>
    %c160 = arith.constant 160 : index
    %c0_20 = arith.constant 0 : index
    %c0_21 = arith.constant 0 : index
    %31 = vector.load %arg2[%c160, %c0_20, %c0_21] : memref<224x32x128xf32, #tpu.memory_space<vmem>>, vector<1x32x128xf32>
    %32 = vector.shape_cast %31 : vector<1x32x128xf32> to vector<32x128xf32>
    %33 = arith.mulf %18, %32 : vector<32x128xf32>
    %34 = arith.addf %9, %33 : vector<32x128xf32>
    %c192 = arith.constant 192 : index
    %c0_22 = arith.constant 0 : index
    %c0_23 = arith.constant 0 : index
    %35 = vector.load %arg2[%c192, %c0_22, %c0_23] : memref<224x32x128xf32, #tpu.memory_space<vmem>>, vector<1x32x128xf32>
    %36 = vector.shape_cast %35 : vector<1x32x128xf32> to vector<32x128xf32>
    %37 = arith.mulf %18, %36 : vector<32x128xf32>
    %38 = arith.addf %10, %37 : vector<32x128xf32>
    %c1 = arith.constant 1 : index
    %c0_24 = arith.constant 0 : index
    %c0_25 = arith.constant 0 : index
    %39 = vector.load %arg2[%c1, %c0_24, %c0_25] : memref<224x32x128xf32, #tpu.memory_space<vmem>>, vector<1x32x128xf32>
    %40 = vector.shape_cast %39 : vector<1x32x128xf32> to vector<32x128xf32>
    %41 = arith.mulf %5, %40 : vector<32x128xf32>
    %c33 = arith.constant 33 : index
    %c0_26 = arith.constant 0 : index
    %c0_27 = arith.constant 0 : index
    %42 = vector.load %arg2[%c33, %c0_26, %c0_27] : memref<224x32x128xf32, #tpu.memory_space<vmem>>, vector<1x32x128xf32>
    %43 = vector.shape_cast %42 : vector<1x32x128xf32> to vector<32x128xf32>
    %44 = arith.addf %41, %43 : vector<32x128xf32>
    %cst_28 = arith.constant 0.000000e+00 : f32
    %45 = vector.broadcast %cst_28 : f32 to vector<32x128xf32>
    %46 = arith.maximumf %44, %45 : vector<32x128xf32>
    %c65 = arith.constant 65 : index
    %c0_29 = arith.constant 0 : index
    %c0_30 = arith.constant 0 : index
    %47 = vector.load %arg2[%c65, %c0_29, %c0_30] : memref<224x32x128xf32, #tpu.memory_space<vmem>>, vector<1x32x128xf32>
    %48 = vector.shape_cast %47 : vector<1x32x128xf32> to vector<32x128xf32>
    %49 = arith.mulf %46, %48 : vector<32x128xf32>
    %50 = arith.addf %22, %49 : vector<32x128xf32>
    %c97 = arith.constant 97 : index
    %c0_31 = arith.constant 0 : index
    %c0_32 = arith.constant 0 : index
    %51 = vector.load %arg2[%c97, %c0_31, %c0_32] : memref<224x32x128xf32, #tpu.memory_space<vmem>>, vector<1x32x128xf32>
    %52 = vector.shape_cast %51 : vector<1x32x128xf32> to vector<32x128xf32>
    %53 = arith.mulf %46, %52 : vector<32x128xf32>
    %54 = arith.addf %26, %53 : vector<32x128xf32>
    %c129 = arith.constant 129 : index
    %c0_33 = arith.constant 0 : index
    %c0_34 = arith.constant 0 : index
    %55 = vector.load %arg2[%c129, %c0_33, %c0_34] : memref<224x32x128xf32, #tpu.memory_space<vmem>>, vector<1x32x128xf32>
    %56 = vector.shape_cast %55 : vector<1x32x128xf32> to vector<32x128xf32>
    %57 = arith.mulf %46, %56 : vector<32x128xf32>
    %58 = arith.addf %30, %57 : vector<32x128xf32>
    %c161 = arith.constant 161 : index
    %c0_35 = arith.constant 0 : index
    %c0_36 = arith.constant 0 : index
    %59 = vector.load %arg2[%c161, %c0_35, %c0_36] : memref<224x32x128xf32, #tpu.memory_space<vmem>>, vector<1x32x128xf32>
    %60 = vector.shape_cast %59 : vector<1x32x128xf32> to vector<32x128xf32>
    %61 = arith.mulf %46, %60 : vector<32x128xf32>
    %62 = arith.addf %34, %61 : vector<32x128xf32>
    %c193 = arith.constant 193 : index
    %c0_37 = arith.constant 0 : index
    %c0_38 = arith.constant 0 : index
    %63 = vector.load %arg2[%c193, %c0_37, %c0_38] : memref<224x32x128xf32, #tpu.memory_space<vmem>>, vector<1x32x128xf32>
    %64 = vector.shape_cast %63 : vector<1x32x128xf32> to vector<32x128xf32>
    %65 = arith.mulf %46, %64 : vector<32x128xf32>
    %66 = arith.addf %38, %65 : vector<32x128xf32>
    %c2 = arith.constant 2 : index
    %c0_39 = arith.constant 0 : index
    %c0_40 = arith.constant 0 : index
    %67 = vector.load %arg2[%c2, %c0_39, %c0_40] : memref<224x32x128xf32, #tpu.memory_space<vmem>>, vector<1x32x128xf32>
    %68 = vector.shape_cast %67 : vector<1x32x128xf32> to vector<32x128xf32>
    %69 = arith.mulf %5, %68 : vector<32x128xf32>
    %c34 = arith.constant 34 : index
    %c0_41 = arith.constant 0 : index
    %c0_42 = arith.constant 0 : index
    %70 = vector.load %arg2[%c34, %c0_41, %c0_42] : memref<224x32x128xf32, #tpu.memory_space<vmem>>, vector<1x32x128xf32>
    %71 = vector.shape_cast %70 : vector<1x32x128xf32> to vector<32x128xf32>
    %72 = arith.addf %69, %71 : vector<32x128xf32>
    %cst_43 = arith.constant 0.000000e+00 : f32
    %73 = vector.broadcast %cst_43 : f32 to vector<32x128xf32>
    %74 = arith.maximumf %72, %73 : vector<32x128xf32>
    %c66 = arith.constant 66 : index
    %c0_44 = arith.constant 0 : index
    %c0_45 = arith.constant 0 : index
    %75 = vector.load %arg2[%c66, %c0_44, %c0_45] : memref<224x32x128xf32, #tpu.memory_space<vmem>>, vector<1x32x128xf32>
    %76 = vector.shape_cast %75 : vector<1x32x128xf32> to vector<32x128xf32>
    %77 = arith.mulf %74, %76 : vector<32x128xf32>
    %78 = arith.addf %50, %77 : vector<32x128xf32>
    %c98 = arith.constant 98 : index
    %c0_46 = arith.constant 0 : index
    %c0_47 = arith.constant 0 : index
    %79 = vector.load %arg2[%c98, %c0_46, %c0_47] : memref<224x32x128xf32, #tpu.memory_space<vmem>>, vector<1x32x128xf32>
    %80 = vector.shape_cast %79 : vector<1x32x128xf32> to vector<32x128xf32>
    %81 = arith.mulf %74, %80 : vector<32x128xf32>
    %82 = arith.addf %54, %81 : vector<32x128xf32>
    %c130 = arith.constant 130 : index
    %c0_48 = arith.constant 0 : index
    %c0_49 = arith.constant 0 : index
    %83 = vector.load %arg2[%c130, %c0_48, %c0_49] : memref<224x32x128xf32, #tpu.memory_space<vmem>>, vector<1x32x128xf32>
    %84 = vector.shape_cast %83 : vector<1x32x128xf32> to vector<32x128xf32>
    %85 = arith.mulf %74, %84 : vector<32x128xf32>
    %86 = arith.addf %58, %85 : vector<32x128xf32>
    %c162 = arith.constant 162 : index
    %c0_50 = arith.constant 0 : index
    %c0_51 = arith.constant 0 : index
    %87 = vector.load %arg2[%c162, %c0_50, %c0_51] : memref<224x32x128xf32, #tpu.memory_space<vmem>>, vector<1x32x128xf32>
    %88 = vector.shape_cast %87 : vector<1x32x128xf32> to vector<32x128xf32>
    %89 = arith.mulf %74, %88 : vector<32x128xf32>
    %90 = arith.addf %62, %89 : vector<32x128xf32>
    %c194 = arith.constant 194 : index
    %c0_52 = arith.constant 0 : index
    %c0_53 = arith.constant 0 : index
    %91 = vector.load %arg2[%c194, %c0_52, %c0_53] : memref<224x32x128xf32, #tpu.memory_space<vmem>>, vector<1x32x128xf32>
    %92 = vector.shape_cast %91 : vector<1x32x128xf32> to vector<32x128xf32>
    %93 = arith.mulf %74, %92 : vector<32x128xf32>
    %94 = arith.addf %66, %93 : vector<32x128xf32>
    %c3 = arith.constant 3 : index
    %c0_54 = arith.constant 0 : index
    %c0_55 = arith.constant 0 : index
    %95 = vector.load %arg2[%c3, %c0_54, %c0_55] : memref<224x32x128xf32, #tpu.memory_space<vmem>>, vector<1x32x128xf32>
    %96 = vector.shape_cast %95 : vector<1x32x128xf32> to vector<32x128xf32>
    %97 = arith.mulf %5, %96 : vector<32x128xf32>
    %c35 = arith.constant 35 : index
    %c0_56 = arith.constant 0 : index
    %c0_57 = arith.constant 0 : index
    %98 = vector.load %arg2[%c35, %c0_56, %c0_57] : memref<224x32x128xf32, #tpu.memory_space<vmem>>, vector<1x32x128xf32>
    %99 = vector.shape_cast %98 : vector<1x32x128xf32> to vector<32x128xf32>
    %100 = arith.addf %97, %99 : vector<32x128xf32>
    %cst_58 = arith.constant 0.000000e+00 : f32
    %101 = vector.broadcast %cst_58 : f32 to vector<32x128xf32>
    %102 = arith.maximumf %100, %101 : vector<32x128xf32>
    %c67 = arith.constant 67 : index
    %c0_59 = arith.constant 0 : index
    %c0_60 = arith.constant 0 : index
    %103 = vector.load %arg2[%c67, %c0_59, %c0_60] : memref<224x32x128xf32, #tpu.memory_space<vmem>>, vector<1x32x128xf32>
    %104 = vector.shape_cast %103 : vector<1x32x128xf32> to vector<32x128xf32>
    %105 = arith.mulf %102, %104 : vector<32x128xf32>
    %106 = arith.addf %78, %105 : vector<32x128xf32>
    %c99 = arith.constant 99 : index
    %c0_61 = arith.constant 0 : index
    %c0_62 = arith.constant 0 : index
    %107 = vector.load %arg2[%c99, %c0_61, %c0_62] : memref<224x32x128xf32, #tpu.memory_space<vmem>>, vector<1x32x128xf32>
    %108 = vector.shape_cast %107 : vector<1x32x128xf32> to vector<32x128xf32>
    %109 = arith.mulf %102, %108 : vector<32x128xf32>
    %110 = arith.addf %82, %109 : vector<32x128xf32>
    %c131 = arith.constant 131 : index
    %c0_63 = arith.constant 0 : index
    %c0_64 = arith.constant 0 : index
    %111 = vector.load %arg2[%c131, %c0_63, %c0_64] : memref<224x32x128xf32, #tpu.memory_space<vmem>>, vector<1x32x128xf32>
    %112 = vector.shape_cast %111 : vector<1x32x128xf32> to vector<32x128xf32>
    %113 = arith.mulf %102, %112 : vector<32x128xf32>
    %114 = arith.addf %86, %113 : vector<32x128xf32>
    %c163 = arith.constant 163 : index
    %c0_65 = arith.constant 0 : index
    %c0_66 = arith.constant 0 : index
    %115 = vector.load %arg2[%c163, %c0_65, %c0_66] : memref<224x32x128xf32, #tpu.memory_space<vmem>>, vector<1x32x128xf32>
    %116 = vector.shape_cast %115 : vector<1x32x128xf32> to vector<32x128xf32>
    %117 = arith.mulf %102, %116 : vector<32x128xf32>
    %118 = arith.addf %90, %117 : vector<32x128xf32>
    %c195 = arith.constant 195 : index
    %c0_67 = arith.constant 0 : index
    %c0_68 = arith.constant 0 : index
    %119 = vector.load %arg2[%c195, %c0_67, %c0_68] : memref<224x32x128xf32, #tpu.memory_space<vmem>>, vector<1x32x128xf32>
    %120 = vector.shape_cast %119 : vector<1x32x128xf32> to vector<32x128xf32>
    %121 = arith.mulf %102, %120 : vector<32x128xf32>
    %122 = arith.addf %94, %121 : vector<32x128xf32>
    %c4 = arith.constant 4 : index
    %c0_69 = arith.constant 0 : index
    %c0_70 = arith.constant 0 : index
    %123 = vector.load %arg2[%c4, %c0_69, %c0_70] : memref<224x32x128xf32, #tpu.memory_space<vmem>>, vector<1x32x128xf32>
    %124 = vector.shape_cast %123 : vector<1x32x128xf32> to vector<32x128xf32>
    %125 = arith.mulf %5, %124 : vector<32x128xf32>
    %c36 = arith.constant 36 : index
    %c0_71 = arith.constant 0 : index
    %c0_72 = arith.constant 0 : index
    %126 = vector.load %arg2[%c36, %c0_71, %c0_72] : memref<224x32x128xf32, #tpu.memory_space<vmem>>, vector<1x32x128xf32>
    %127 = vector.shape_cast %126 : vector<1x32x128xf32> to vector<32x128xf32>
    %128 = arith.addf %125, %127 : vector<32x128xf32>
    %cst_73 = arith.constant 0.000000e+00 : f32
    %129 = vector.broadcast %cst_73 : f32 to vector<32x128xf32>
    %130 = arith.maximumf %128, %129 : vector<32x128xf32>
    %c68 = arith.constant 68 : index
    %c0_74 = arith.constant 0 : index
    %c0_75 = arith.constant 0 : index
    %131 = vector.load %arg2[%c68, %c0_74, %c0_75] : memref<224x32x128xf32, #tpu.memory_space<vmem>>, vector<1x32x128xf32>
    %132 = vector.shape_cast %131 : vector<1x32x128xf32> to vector<32x128xf32>
    %133 = arith.mulf %130, %132 : vector<32x128xf32>
    %134 = arith.addf %106, %133 : vector<32x128xf32>
    %c100 = arith.constant 100 : index
    %c0_76 = arith.constant 0 : index
    %c0_77 = arith.constant 0 : index
    %135 = vector.load %arg2[%c100, %c0_76, %c0_77] : memref<224x32x128xf32, #tpu.memory_space<vmem>>, vector<1x32x128xf32>
    %136 = vector.shape_cast %135 : vector<1x32x128xf32> to vector<32x128xf32>
    %137 = arith.mulf %130, %136 : vector<32x128xf32>
    %138 = arith.addf %110, %137 : vector<32x128xf32>
    %c132 = arith.constant 132 : index
    %c0_78 = arith.constant 0 : index
    %c0_79 = arith.constant 0 : index
    %139 = vector.load %arg2[%c132, %c0_78, %c0_79] : memref<224x32x128xf32, #tpu.memory_space<vmem>>, vector<1x32x128xf32>
    %140 = vector.shape_cast %139 : vector<1x32x128xf32> to vector<32x128xf32>
    %141 = arith.mulf %130, %140 : vector<32x128xf32>
    %142 = arith.addf %114, %141 : vector<32x128xf32>
    %c164 = arith.constant 164 : index
    %c0_80 = arith.constant 0 : index
    %c0_81 = arith.constant 0 : index
    %143 = vector.load %arg2[%c164, %c0_80, %c0_81] : memref<224x32x128xf32, #tpu.memory_space<vmem>>, vector<1x32x128xf32>
    %144 = vector.shape_cast %143 : vector<1x32x128xf32> to vector<32x128xf32>
    %145 = arith.mulf %130, %144 : vector<32x128xf32>
    %146 = arith.addf %118, %145 : vector<32x128xf32>
    %c196 = arith.constant 196 : index
    %c0_82 = arith.constant 0 : index
    %c0_83 = arith.constant 0 : index
    %147 = vector.load %arg2[%c196, %c0_82, %c0_83] : memref<224x32x128xf32, #tpu.memory_space<vmem>>, vector<1x32x128xf32>
    %148 = vector.shape_cast %147 : vector<1x32x128xf32> to vector<32x128xf32>
    %149 = arith.mulf %130, %148 : vector<32x128xf32>
    %150 = arith.addf %122, %149 : vector<32x128xf32>
    %c5 = arith.constant 5 : index
    %c0_84 = arith.constant 0 : index
    %c0_85 = arith.constant 0 : index
    %151 = vector.load %arg2[%c5, %c0_84, %c0_85] : memref<224x32x128xf32, #tpu.memory_space<vmem>>, vector<1x32x128xf32>
    %152 = vector.shape_cast %151 : vector<1x32x128xf32> to vector<32x128xf32>
    %153 = arith.mulf %5, %152 : vector<32x128xf32>
    %c37 = arith.constant 37 : index
    %c0_86 = arith.constant 0 : index
    %c0_87 = arith.constant 0 : index
    %154 = vector.load %arg2[%c37, %c0_86, %c0_87] : memref<224x32x128xf32, #tpu.memory_space<vmem>>, vector<1x32x128xf32>
    %155 = vector.shape_cast %154 : vector<1x32x128xf32> to vector<32x128xf32>
    %156 = arith.addf %153, %155 : vector<32x128xf32>
    %cst_88 = arith.constant 0.000000e+00 : f32
    %157 = vector.broadcast %cst_88 : f32 to vector<32x128xf32>
    %158 = arith.maximumf %156, %157 : vector<32x128xf32>
    %c69 = arith.constant 69 : index
    %c0_89 = arith.constant 0 : index
    %c0_90 = arith.constant 0 : index
    %159 = vector.load %arg2[%c69, %c0_89, %c0_90] : memref<224x32x128xf32, #tpu.memory_space<vmem>>, vector<1x32x128xf32>
    %160 = vector.shape_cast %159 : vector<1x32x128xf32> to vector<32x128xf32>
    %161 = arith.mulf %158, %160 : vector<32x128xf32>
    %162 = arith.addf %134, %161 : vector<32x128xf32>
    %c101 = arith.constant 101 : index
    %c0_91 = arith.constant 0 : index
    %c0_92 = arith.constant 0 : index
    %163 = vector.load %arg2[%c101, %c0_91, %c0_92] : memref<224x32x128xf32, #tpu.memory_space<vmem>>, vector<1x32x128xf32>
    %164 = vector.shape_cast %163 : vector<1x32x128xf32> to vector<32x128xf32>
    %165 = arith.mulf %158, %164 : vector<32x128xf32>
    %166 = arith.addf %138, %165 : vector<32x128xf32>
    %c133 = arith.constant 133 : index
    %c0_93 = arith.constant 0 : index
    %c0_94 = arith.constant 0 : index
    %167 = vector.load %arg2[%c133, %c0_93, %c0_94] : memref<224x32x128xf32, #tpu.memory_space<vmem>>, vector<1x32x128xf32>
    %168 = vector.shape_cast %167 : vector<1x32x128xf32> to vector<32x128xf32>
    %169 = arith.mulf %158, %168 : vector<32x128xf32>
    %170 = arith.addf %142, %169 : vector<32x128xf32>
    %c165 = arith.constant 165 : index
    %c0_95 = arith.constant 0 : index
    %c0_96 = arith.constant 0 : index
    %171 = vector.load %arg2[%c165, %c0_95, %c0_96] : memref<224x32x128xf32, #tpu.memory_space<vmem>>, vector<1x32x128xf32>
    %172 = vector.shape_cast %171 : vector<1x32x128xf32> to vector<32x128xf32>
    %173 = arith.mulf %158, %172 : vector<32x128xf32>
    %174 = arith.addf %146, %173 : vector<32x128xf32>
    %c197 = arith.constant 197 : index
    %c0_97 = arith.constant 0 : index
    %c0_98 = arith.constant 0 : index
    %175 = vector.load %arg2[%c197, %c0_97, %c0_98] : memref<224x32x128xf32, #tpu.memory_space<vmem>>, vector<1x32x128xf32>
    %176 = vector.shape_cast %175 : vector<1x32x128xf32> to vector<32x128xf32>
    %177 = arith.mulf %158, %176 : vector<32x128xf32>
    %178 = arith.addf %150, %177 : vector<32x128xf32>
    %c6 = arith.constant 6 : index
    %c0_99 = arith.constant 0 : index
    %c0_100 = arith.constant 0 : index
    %179 = vector.load %arg2[%c6, %c0_99, %c0_100] : memref<224x32x128xf32, #tpu.memory_space<vmem>>, vector<1x32x128xf32>
    %180 = vector.shape_cast %179 : vector<1x32x128xf32> to vector<32x128xf32>
    %181 = arith.mulf %5, %180 : vector<32x128xf32>
    %c38 = arith.constant 38 : index
    %c0_101 = arith.constant 0 : index
    %c0_102 = arith.constant 0 : index
    %182 = vector.load %arg2[%c38, %c0_101, %c0_102] : memref<224x32x128xf32, #tpu.memory_space<vmem>>, vector<1x32x128xf32>
    %183 = vector.shape_cast %182 : vector<1x32x128xf32> to vector<32x128xf32>
    %184 = arith.addf %181, %183 : vector<32x128xf32>
    %cst_103 = arith.constant 0.000000e+00 : f32
    %185 = vector.broadcast %cst_103 : f32 to vector<32x128xf32>
    %186 = arith.maximumf %184, %185 : vector<32x128xf32>
    %c70 = arith.constant 70 : index
    %c0_104 = arith.constant 0 : index
    %c0_105 = arith.constant 0 : index
    %187 = vector.load %arg2[%c70, %c0_104, %c0_105] : memref<224x32x128xf32, #tpu.memory_space<vmem>>, vector<1x32x128xf32>
    %188 = vector.shape_cast %187 : vector<1x32x128xf32> to vector<32x128xf32>
    %189 = arith.mulf %186, %188 : vector<32x128xf32>
    %190 = arith.addf %162, %189 : vector<32x128xf32>
    %c102 = arith.constant 102 : index
    %c0_106 = arith.constant 0 : index
    %c0_107 = arith.constant 0 : index
    %191 = vector.load %arg2[%c102, %c0_106, %c0_107] : memref<224x32x128xf32, #tpu.memory_space<vmem>>, vector<1x32x128xf32>
    %192 = vector.shape_cast %191 : vector<1x32x128xf32> to vector<32x128xf32>
    %193 = arith.mulf %186, %192 : vector<32x128xf32>
    %194 = arith.addf %166, %193 : vector<32x128xf32>
    %c134 = arith.constant 134 : index
    %c0_108 = arith.constant 0 : index
    %c0_109 = arith.constant 0 : index
    %195 = vector.load %arg2[%c134, %c0_108, %c0_109] : memref<224x32x128xf32, #tpu.memory_space<vmem>>, vector<1x32x128xf32>
    %196 = vector.shape_cast %195 : vector<1x32x128xf32> to vector<32x128xf32>
    %197 = arith.mulf %186, %196 : vector<32x128xf32>
    %198 = arith.addf %170, %197 : vector<32x128xf32>
    %c166 = arith.constant 166 : index
    %c0_110 = arith.constant 0 : index
    %c0_111 = arith.constant 0 : index
    %199 = vector.load %arg2[%c166, %c0_110, %c0_111] : memref<224x32x128xf32, #tpu.memory_space<vmem>>, vector<1x32x128xf32>
    %200 = vector.shape_cast %199 : vector<1x32x128xf32> to vector<32x128xf32>
    %201 = arith.mulf %186, %200 : vector<32x128xf32>
    %202 = arith.addf %174, %201 : vector<32x128xf32>
    %c198 = arith.constant 198 : index
    %c0_112 = arith.constant 0 : index
    %c0_113 = arith.constant 0 : index
    %203 = vector.load %arg2[%c198, %c0_112, %c0_113] : memref<224x32x128xf32, #tpu.memory_space<vmem>>, vector<1x32x128xf32>
    %204 = vector.shape_cast %203 : vector<1x32x128xf32> to vector<32x128xf32>
    %205 = arith.mulf %186, %204 : vector<32x128xf32>
    %206 = arith.addf %178, %205 : vector<32x128xf32>
    %c7 = arith.constant 7 : index
    %c0_114 = arith.constant 0 : index
    %c0_115 = arith.constant 0 : index
    %207 = vector.load %arg2[%c7, %c0_114, %c0_115] : memref<224x32x128xf32, #tpu.memory_space<vmem>>, vector<1x32x128xf32>
    %208 = vector.shape_cast %207 : vector<1x32x128xf32> to vector<32x128xf32>
    %209 = arith.mulf %5, %208 : vector<32x128xf32>
    %c39 = arith.constant 39 : index
    %c0_116 = arith.constant 0 : index
    %c0_117 = arith.constant 0 : index
    %210 = vector.load %arg2[%c39, %c0_116, %c0_117] : memref<224x32x128xf32, #tpu.memory_space<vmem>>, vector<1x32x128xf32>
    %211 = vector.shape_cast %210 : vector<1x32x128xf32> to vector<32x128xf32>
    %212 = arith.addf %209, %211 : vector<32x128xf32>
    %cst_118 = arith.constant 0.000000e+00 : f32
    %213 = vector.broadcast %cst_118 : f32 to vector<32x128xf32>
    %214 = arith.maximumf %212, %213 : vector<32x128xf32>
    %c71 = arith.constant 71 : index
    %c0_119 = arith.constant 0 : index
    %c0_120 = arith.constant 0 : index
    %215 = vector.load %arg2[%c71, %c0_119, %c0_120] : memref<224x32x128xf32, #tpu.memory_space<vmem>>, vector<1x32x128xf32>
    %216 = vector.shape_cast %215 : vector<1x32x128xf32> to vector<32x128xf32>
    %217 = arith.mulf %214, %216 : vector<32x128xf32>
    %218 = arith.addf %190, %217 : vector<32x128xf32>
    %c103 = arith.constant 103 : index
    %c0_121 = arith.constant 0 : index
    %c0_122 = arith.constant 0 : index
    %219 = vector.load %arg2[%c103, %c0_121, %c0_122] : memref<224x32x128xf32, #tpu.memory_space<vmem>>, vector<1x32x128xf32>
    %220 = vector.shape_cast %219 : vector<1x32x128xf32> to vector<32x128xf32>
    %221 = arith.mulf %214, %220 : vector<32x128xf32>
    %222 = arith.addf %194, %221 : vector<32x128xf32>
    %c135 = arith.constant 135 : index
    %c0_123 = arith.constant 0 : index
    %c0_124 = arith.constant 0 : index
    %223 = vector.load %arg2[%c135, %c0_123, %c0_124] : memref<224x32x128xf32, #tpu.memory_space<vmem>>, vector<1x32x128xf32>
    %224 = vector.shape_cast %223 : vector<1x32x128xf32> to vector<32x128xf32>
    %225 = arith.mulf %214, %224 : vector<32x128xf32>
    %226 = arith.addf %198, %225 : vector<32x128xf32>
    %c167 = arith.constant 167 : index
    %c0_125 = arith.constant 0 : index
    %c0_126 = arith.constant 0 : index
    %227 = vector.load %arg2[%c167, %c0_125, %c0_126] : memref<224x32x128xf32, #tpu.memory_space<vmem>>, vector<1x32x128xf32>
    %228 = vector.shape_cast %227 : vector<1x32x128xf32> to vector<32x128xf32>
    %229 = arith.mulf %214, %228 : vector<32x128xf32>
    %230 = arith.addf %202, %229 : vector<32x128xf32>
    %c199 = arith.constant 199 : index
    %c0_127 = arith.constant 0 : index
    %c0_128 = arith.constant 0 : index
    %231 = vector.load %arg2[%c199, %c0_127, %c0_128] : memref<224x32x128xf32, #tpu.memory_space<vmem>>, vector<1x32x128xf32>
    %232 = vector.shape_cast %231 : vector<1x32x128xf32> to vector<32x128xf32>
    %233 = arith.mulf %214, %232 : vector<32x128xf32>
    %234 = arith.addf %206, %233 : vector<32x128xf32>
    %c8 = arith.constant 8 : index
    %c0_129 = arith.constant 0 : index
    %c0_130 = arith.constant 0 : index
    %235 = vector.load %arg2[%c8, %c0_129, %c0_130] : memref<224x32x128xf32, #tpu.memory_space<vmem>>, vector<1x32x128xf32>
    %236 = vector.shape_cast %235 : vector<1x32x128xf32> to vector<32x128xf32>
    %237 = arith.mulf %5, %236 : vector<32x128xf32>
    %c40 = arith.constant 40 : index
    %c0_131 = arith.constant 0 : index
    %c0_132 = arith.constant 0 : index
    %238 = vector.load %arg2[%c40, %c0_131, %c0_132] : memref<224x32x128xf32, #tpu.memory_space<vmem>>, vector<1x32x128xf32>
    %239 = vector.shape_cast %238 : vector<1x32x128xf32> to vector<32x128xf32>
    %240 = arith.addf %237, %239 : vector<32x128xf32>
    %cst_133 = arith.constant 0.000000e+00 : f32
    %241 = vector.broadcast %cst_133 : f32 to vector<32x128xf32>
    %242 = arith.maximumf %240, %241 : vector<32x128xf32>
    %c72 = arith.constant 72 : index
    %c0_134 = arith.constant 0 : index
    %c0_135 = arith.constant 0 : index
    %243 = vector.load %arg2[%c72, %c0_134, %c0_135] : memref<224x32x128xf32, #tpu.memory_space<vmem>>, vector<1x32x128xf32>
    %244 = vector.shape_cast %243 : vector<1x32x128xf32> to vector<32x128xf32>
    %245 = arith.mulf %242, %244 : vector<32x128xf32>
    %246 = arith.addf %218, %245 : vector<32x128xf32>
    %c104 = arith.constant 104 : index
    %c0_136 = arith.constant 0 : index
    %c0_137 = arith.constant 0 : index
    %247 = vector.load %arg2[%c104, %c0_136, %c0_137] : memref<224x32x128xf32, #tpu.memory_space<vmem>>, vector<1x32x128xf32>
    %248 = vector.shape_cast %247 : vector<1x32x128xf32> to vector<32x128xf32>
    %249 = arith.mulf %242, %248 : vector<32x128xf32>
    %250 = arith.addf %222, %249 : vector<32x128xf32>
    %c136 = arith.constant 136 : index
    %c0_138 = arith.constant 0 : index
    %c0_139 = arith.constant 0 : index
    %251 = vector.load %arg2[%c136, %c0_138, %c0_139] : memref<224x32x128xf32, #tpu.memory_space<vmem>>, vector<1x32x128xf32>
    %252 = vector.shape_cast %251 : vector<1x32x128xf32> to vector<32x128xf32>
    %253 = arith.mulf %242, %252 : vector<32x128xf32>
    %254 = arith.addf %226, %253 : vector<32x128xf32>
    %c168 = arith.constant 168 : index
    %c0_140 = arith.constant 0 : index
    %c0_141 = arith.constant 0 : index
    %255 = vector.load %arg2[%c168, %c0_140, %c0_141] : memref<224x32x128xf32, #tpu.memory_space<vmem>>, vector<1x32x128xf32>
    %256 = vector.shape_cast %255 : vector<1x32x128xf32> to vector<32x128xf32>
    %257 = arith.mulf %242, %256 : vector<32x128xf32>
    %258 = arith.addf %230, %257 : vector<32x128xf32>
    %c200 = arith.constant 200 : index
    %c0_142 = arith.constant 0 : index
    %c0_143 = arith.constant 0 : index
    %259 = vector.load %arg2[%c200, %c0_142, %c0_143] : memref<224x32x128xf32, #tpu.memory_space<vmem>>, vector<1x32x128xf32>
    %260 = vector.shape_cast %259 : vector<1x32x128xf32> to vector<32x128xf32>
    %261 = arith.mulf %242, %260 : vector<32x128xf32>
    %262 = arith.addf %234, %261 : vector<32x128xf32>
    %c9 = arith.constant 9 : index
    %c0_144 = arith.constant 0 : index
    %c0_145 = arith.constant 0 : index
    %263 = vector.load %arg2[%c9, %c0_144, %c0_145] : memref<224x32x128xf32, #tpu.memory_space<vmem>>, vector<1x32x128xf32>
    %264 = vector.shape_cast %263 : vector<1x32x128xf32> to vector<32x128xf32>
    %265 = arith.mulf %5, %264 : vector<32x128xf32>
    %c41 = arith.constant 41 : index
    %c0_146 = arith.constant 0 : index
    %c0_147 = arith.constant 0 : index
    %266 = vector.load %arg2[%c41, %c0_146, %c0_147] : memref<224x32x128xf32, #tpu.memory_space<vmem>>, vector<1x32x128xf32>
    %267 = vector.shape_cast %266 : vector<1x32x128xf32> to vector<32x128xf32>
    %268 = arith.addf %265, %267 : vector<32x128xf32>
    %cst_148 = arith.constant 0.000000e+00 : f32
    %269 = vector.broadcast %cst_148 : f32 to vector<32x128xf32>
    %270 = arith.maximumf %268, %269 : vector<32x128xf32>
    %c73 = arith.constant 73 : index
    %c0_149 = arith.constant 0 : index
    %c0_150 = arith.constant 0 : index
    %271 = vector.load %arg2[%c73, %c0_149, %c0_150] : memref<224x32x128xf32, #tpu.memory_space<vmem>>, vector<1x32x128xf32>
    %272 = vector.shape_cast %271 : vector<1x32x128xf32> to vector<32x128xf32>
    %273 = arith.mulf %270, %272 : vector<32x128xf32>
    %274 = arith.addf %246, %273 : vector<32x128xf32>
    %c105 = arith.constant 105 : index
    %c0_151 = arith.constant 0 : index
    %c0_152 = arith.constant 0 : index
    %275 = vector.load %arg2[%c105, %c0_151, %c0_152] : memref<224x32x128xf32, #tpu.memory_space<vmem>>, vector<1x32x128xf32>
    %276 = vector.shape_cast %275 : vector<1x32x128xf32> to vector<32x128xf32>
    %277 = arith.mulf %270, %276 : vector<32x128xf32>
    %278 = arith.addf %250, %277 : vector<32x128xf32>
    %c137 = arith.constant 137 : index
    %c0_153 = arith.constant 0 : index
    %c0_154 = arith.constant 0 : index
    %279 = vector.load %arg2[%c137, %c0_153, %c0_154] : memref<224x32x128xf32, #tpu.memory_space<vmem>>, vector<1x32x128xf32>
    %280 = vector.shape_cast %279 : vector<1x32x128xf32> to vector<32x128xf32>
    %281 = arith.mulf %270, %280 : vector<32x128xf32>
    %282 = arith.addf %254, %281 : vector<32x128xf32>
    %c169 = arith.constant 169 : index
    %c0_155 = arith.constant 0 : index
    %c0_156 = arith.constant 0 : index
    %283 = vector.load %arg2[%c169, %c0_155, %c0_156] : memref<224x32x128xf32, #tpu.memory_space<vmem>>, vector<1x32x128xf32>
    %284 = vector.shape_cast %283 : vector<1x32x128xf32> to vector<32x128xf32>
    %285 = arith.mulf %270, %284 : vector<32x128xf32>
    %286 = arith.addf %258, %285 : vector<32x128xf32>
    %c201 = arith.constant 201 : index
    %c0_157 = arith.constant 0 : index
    %c0_158 = arith.constant 0 : index
    %287 = vector.load %arg2[%c201, %c0_157, %c0_158] : memref<224x32x128xf32, #tpu.memory_space<vmem>>, vector<1x32x128xf32>
    %288 = vector.shape_cast %287 : vector<1x32x128xf32> to vector<32x128xf32>
    %289 = arith.mulf %270, %288 : vector<32x128xf32>
    %290 = arith.addf %262, %289 : vector<32x128xf32>
    %c10 = arith.constant 10 : index
    %c0_159 = arith.constant 0 : index
    %c0_160 = arith.constant 0 : index
    %291 = vector.load %arg2[%c10, %c0_159, %c0_160] : memref<224x32x128xf32, #tpu.memory_space<vmem>>, vector<1x32x128xf32>
    %292 = vector.shape_cast %291 : vector<1x32x128xf32> to vector<32x128xf32>
    %293 = arith.mulf %5, %292 : vector<32x128xf32>
    %c42 = arith.constant 42 : index
    %c0_161 = arith.constant 0 : index
    %c0_162 = arith.constant 0 : index
    %294 = vector.load %arg2[%c42, %c0_161, %c0_162] : memref<224x32x128xf32, #tpu.memory_space<vmem>>, vector<1x32x128xf32>
    %295 = vector.shape_cast %294 : vector<1x32x128xf32> to vector<32x128xf32>
    %296 = arith.addf %293, %295 : vector<32x128xf32>
    %cst_163 = arith.constant 0.000000e+00 : f32
    %297 = vector.broadcast %cst_163 : f32 to vector<32x128xf32>
    %298 = arith.maximumf %296, %297 : vector<32x128xf32>
    %c74 = arith.constant 74 : index
    %c0_164 = arith.constant 0 : index
    %c0_165 = arith.constant 0 : index
    %299 = vector.load %arg2[%c74, %c0_164, %c0_165] : memref<224x32x128xf32, #tpu.memory_space<vmem>>, vector<1x32x128xf32>
    %300 = vector.shape_cast %299 : vector<1x32x128xf32> to vector<32x128xf32>
    %301 = arith.mulf %298, %300 : vector<32x128xf32>
    %302 = arith.addf %274, %301 : vector<32x128xf32>
    %c106 = arith.constant 106 : index
    %c0_166 = arith.constant 0 : index
    %c0_167 = arith.constant 0 : index
    %303 = vector.load %arg2[%c106, %c0_166, %c0_167] : memref<224x32x128xf32, #tpu.memory_space<vmem>>, vector<1x32x128xf32>
    %304 = vector.shape_cast %303 : vector<1x32x128xf32> to vector<32x128xf32>
    %305 = arith.mulf %298, %304 : vector<32x128xf32>
    %306 = arith.addf %278, %305 : vector<32x128xf32>
    %c138 = arith.constant 138 : index
    %c0_168 = arith.constant 0 : index
    %c0_169 = arith.constant 0 : index
    %307 = vector.load %arg2[%c138, %c0_168, %c0_169] : memref<224x32x128xf32, #tpu.memory_space<vmem>>, vector<1x32x128xf32>
    %308 = vector.shape_cast %307 : vector<1x32x128xf32> to vector<32x128xf32>
    %309 = arith.mulf %298, %308 : vector<32x128xf32>
    %310 = arith.addf %282, %309 : vector<32x128xf32>
    %c170 = arith.constant 170 : index
    %c0_170 = arith.constant 0 : index
    %c0_171 = arith.constant 0 : index
    %311 = vector.load %arg2[%c170, %c0_170, %c0_171] : memref<224x32x128xf32, #tpu.memory_space<vmem>>, vector<1x32x128xf32>
    %312 = vector.shape_cast %311 : vector<1x32x128xf32> to vector<32x128xf32>
    %313 = arith.mulf %298, %312 : vector<32x128xf32>
    %314 = arith.addf %286, %313 : vector<32x128xf32>
    %c202 = arith.constant 202 : index
    %c0_172 = arith.constant 0 : index
    %c0_173 = arith.constant 0 : index
    %315 = vector.load %arg2[%c202, %c0_172, %c0_173] : memref<224x32x128xf32, #tpu.memory_space<vmem>>, vector<1x32x128xf32>
    %316 = vector.shape_cast %315 : vector<1x32x128xf32> to vector<32x128xf32>
    %317 = arith.mulf %298, %316 : vector<32x128xf32>
    %318 = arith.addf %290, %317 : vector<32x128xf32>
    %c11 = arith.constant 11 : index
    %c0_174 = arith.constant 0 : index
    %c0_175 = arith.constant 0 : index
    %319 = vector.load %arg2[%c11, %c0_174, %c0_175] : memref<224x32x128xf32, #tpu.memory_space<vmem>>, vector<1x32x128xf32>
    %320 = vector.shape_cast %319 : vector<1x32x128xf32> to vector<32x128xf32>
    %321 = arith.mulf %5, %320 : vector<32x128xf32>
    %c43 = arith.constant 43 : index
    %c0_176 = arith.constant 0 : index
    %c0_177 = arith.constant 0 : index
    %322 = vector.load %arg2[%c43, %c0_176, %c0_177] : memref<224x32x128xf32, #tpu.memory_space<vmem>>, vector<1x32x128xf32>
    %323 = vector.shape_cast %322 : vector<1x32x128xf32> to vector<32x128xf32>
    %324 = arith.addf %321, %323 : vector<32x128xf32>
    %cst_178 = arith.constant 0.000000e+00 : f32
    %325 = vector.broadcast %cst_178 : f32 to vector<32x128xf32>
    %326 = arith.maximumf %324, %325 : vector<32x128xf32>
    %c75 = arith.constant 75 : index
    %c0_179 = arith.constant 0 : index
    %c0_180 = arith.constant 0 : index
    %327 = vector.load %arg2[%c75, %c0_179, %c0_180] : memref<224x32x128xf32, #tpu.memory_space<vmem>>, vector<1x32x128xf32>
    %328 = vector.shape_cast %327 : vector<1x32x128xf32> to vector<32x128xf32>
    %329 = arith.mulf %326, %328 : vector<32x128xf32>
    %330 = arith.addf %302, %329 : vector<32x128xf32>
    %c107 = arith.constant 107 : index
    %c0_181 = arith.constant 0 : index
    %c0_182 = arith.constant 0 : index
    %331 = vector.load %arg2[%c107, %c0_181, %c0_182] : memref<224x32x128xf32, #tpu.memory_space<vmem>>, vector<1x32x128xf32>
    %332 = vector.shape_cast %331 : vector<1x32x128xf32> to vector<32x128xf32>
    %333 = arith.mulf %326, %332 : vector<32x128xf32>
    %334 = arith.addf %306, %333 : vector<32x128xf32>
    %c139 = arith.constant 139 : index
    %c0_183 = arith.constant 0 : index
    %c0_184 = arith.constant 0 : index
    %335 = vector.load %arg2[%c139, %c0_183, %c0_184] : memref<224x32x128xf32, #tpu.memory_space<vmem>>, vector<1x32x128xf32>
    %336 = vector.shape_cast %335 : vector<1x32x128xf32> to vector<32x128xf32>
    %337 = arith.mulf %326, %336 : vector<32x128xf32>
    %338 = arith.addf %310, %337 : vector<32x128xf32>
    %c171 = arith.constant 171 : index
    %c0_185 = arith.constant 0 : index
    %c0_186 = arith.constant 0 : index
    %339 = vector.load %arg2[%c171, %c0_185, %c0_186] : memref<224x32x128xf32, #tpu.memory_space<vmem>>, vector<1x32x128xf32>
    %340 = vector.shape_cast %339 : vector<1x32x128xf32> to vector<32x128xf32>
    %341 = arith.mulf %326, %340 : vector<32x128xf32>
    %342 = arith.addf %314, %341 : vector<32x128xf32>
    %c203 = arith.constant 203 : index
    %c0_187 = arith.constant 0 : index
    %c0_188 = arith.constant 0 : index
    %343 = vector.load %arg2[%c203, %c0_187, %c0_188] : memref<224x32x128xf32, #tpu.memory_space<vmem>>, vector<1x32x128xf32>
    %344 = vector.shape_cast %343 : vector<1x32x128xf32> to vector<32x128xf32>
    %345 = arith.mulf %326, %344 : vector<32x128xf32>
    %346 = arith.addf %318, %345 : vector<32x128xf32>
    %c12 = arith.constant 12 : index
    %c0_189 = arith.constant 0 : index
    %c0_190 = arith.constant 0 : index
    %347 = vector.load %arg2[%c12, %c0_189, %c0_190] : memref<224x32x128xf32, #tpu.memory_space<vmem>>, vector<1x32x128xf32>
    %348 = vector.shape_cast %347 : vector<1x32x128xf32> to vector<32x128xf32>
    %349 = arith.mulf %5, %348 : vector<32x128xf32>
    %c44 = arith.constant 44 : index
    %c0_191 = arith.constant 0 : index
    %c0_192 = arith.constant 0 : index
    %350 = vector.load %arg2[%c44, %c0_191, %c0_192] : memref<224x32x128xf32, #tpu.memory_space<vmem>>, vector<1x32x128xf32>
    %351 = vector.shape_cast %350 : vector<1x32x128xf32> to vector<32x128xf32>
    %352 = arith.addf %349, %351 : vector<32x128xf32>
    %cst_193 = arith.constant 0.000000e+00 : f32
    %353 = vector.broadcast %cst_193 : f32 to vector<32x128xf32>
    %354 = arith.maximumf %352, %353 : vector<32x128xf32>
    %c76 = arith.constant 76 : index
    %c0_194 = arith.constant 0 : index
    %c0_195 = arith.constant 0 : index
    %355 = vector.load %arg2[%c76, %c0_194, %c0_195] : memref<224x32x128xf32, #tpu.memory_space<vmem>>, vector<1x32x128xf32>
    %356 = vector.shape_cast %355 : vector<1x32x128xf32> to vector<32x128xf32>
    %357 = arith.mulf %354, %356 : vector<32x128xf32>
    %358 = arith.addf %330, %357 : vector<32x128xf32>
    %c108 = arith.constant 108 : index
    %c0_196 = arith.constant 0 : index
    %c0_197 = arith.constant 0 : index
    %359 = vector.load %arg2[%c108, %c0_196, %c0_197] : memref<224x32x128xf32, #tpu.memory_space<vmem>>, vector<1x32x128xf32>
    %360 = vector.shape_cast %359 : vector<1x32x128xf32> to vector<32x128xf32>
    %361 = arith.mulf %354, %360 : vector<32x128xf32>
    %362 = arith.addf %334, %361 : vector<32x128xf32>
    %c140 = arith.constant 140 : index
    %c0_198 = arith.constant 0 : index
    %c0_199 = arith.constant 0 : index
    %363 = vector.load %arg2[%c140, %c0_198, %c0_199] : memref<224x32x128xf32, #tpu.memory_space<vmem>>, vector<1x32x128xf32>
    %364 = vector.shape_cast %363 : vector<1x32x128xf32> to vector<32x128xf32>
    %365 = arith.mulf %354, %364 : vector<32x128xf32>
    %366 = arith.addf %338, %365 : vector<32x128xf32>
    %c172 = arith.constant 172 : index
    %c0_200 = arith.constant 0 : index
    %c0_201 = arith.constant 0 : index
    %367 = vector.load %arg2[%c172, %c0_200, %c0_201] : memref<224x32x128xf32, #tpu.memory_space<vmem>>, vector<1x32x128xf32>
    %368 = vector.shape_cast %367 : vector<1x32x128xf32> to vector<32x128xf32>
    %369 = arith.mulf %354, %368 : vector<32x128xf32>
    %370 = arith.addf %342, %369 : vector<32x128xf32>
    %c204 = arith.constant 204 : index
    %c0_202 = arith.constant 0 : index
    %c0_203 = arith.constant 0 : index
    %371 = vector.load %arg2[%c204, %c0_202, %c0_203] : memref<224x32x128xf32, #tpu.memory_space<vmem>>, vector<1x32x128xf32>
    %372 = vector.shape_cast %371 : vector<1x32x128xf32> to vector<32x128xf32>
    %373 = arith.mulf %354, %372 : vector<32x128xf32>
    %374 = arith.addf %346, %373 : vector<32x128xf32>
    %c13 = arith.constant 13 : index
    %c0_204 = arith.constant 0 : index
    %c0_205 = arith.constant 0 : index
    %375 = vector.load %arg2[%c13, %c0_204, %c0_205] : memref<224x32x128xf32, #tpu.memory_space<vmem>>, vector<1x32x128xf32>
    %376 = vector.shape_cast %375 : vector<1x32x128xf32> to vector<32x128xf32>
    %377 = arith.mulf %5, %376 : vector<32x128xf32>
    %c45 = arith.constant 45 : index
    %c0_206 = arith.constant 0 : index
    %c0_207 = arith.constant 0 : index
    %378 = vector.load %arg2[%c45, %c0_206, %c0_207] : memref<224x32x128xf32, #tpu.memory_space<vmem>>, vector<1x32x128xf32>
    %379 = vector.shape_cast %378 : vector<1x32x128xf32> to vector<32x128xf32>
    %380 = arith.addf %377, %379 : vector<32x128xf32>
    %cst_208 = arith.constant 0.000000e+00 : f32
    %381 = vector.broadcast %cst_208 : f32 to vector<32x128xf32>
    %382 = arith.maximumf %380, %381 : vector<32x128xf32>
    %c77 = arith.constant 77 : index
    %c0_209 = arith.constant 0 : index
    %c0_210 = arith.constant 0 : index
    %383 = vector.load %arg2[%c77, %c0_209, %c0_210] : memref<224x32x128xf32, #tpu.memory_space<vmem>>, vector<1x32x128xf32>
    %384 = vector.shape_cast %383 : vector<1x32x128xf32> to vector<32x128xf32>
    %385 = arith.mulf %382, %384 : vector<32x128xf32>
    %386 = arith.addf %358, %385 : vector<32x128xf32>
    %c109 = arith.constant 109 : index
    %c0_211 = arith.constant 0 : index
    %c0_212 = arith.constant 0 : index
    %387 = vector.load %arg2[%c109, %c0_211, %c0_212] : memref<224x32x128xf32, #tpu.memory_space<vmem>>, vector<1x32x128xf32>
    %388 = vector.shape_cast %387 : vector<1x32x128xf32> to vector<32x128xf32>
    %389 = arith.mulf %382, %388 : vector<32x128xf32>
    %390 = arith.addf %362, %389 : vector<32x128xf32>
    %c141 = arith.constant 141 : index
    %c0_213 = arith.constant 0 : index
    %c0_214 = arith.constant 0 : index
    %391 = vector.load %arg2[%c141, %c0_213, %c0_214] : memref<224x32x128xf32, #tpu.memory_space<vmem>>, vector<1x32x128xf32>
    %392 = vector.shape_cast %391 : vector<1x32x128xf32> to vector<32x128xf32>
    %393 = arith.mulf %382, %392 : vector<32x128xf32>
    %394 = arith.addf %366, %393 : vector<32x128xf32>
    %c173 = arith.constant 173 : index
    %c0_215 = arith.constant 0 : index
    %c0_216 = arith.constant 0 : index
    %395 = vector.load %arg2[%c173, %c0_215, %c0_216] : memref<224x32x128xf32, #tpu.memory_space<vmem>>, vector<1x32x128xf32>
    %396 = vector.shape_cast %395 : vector<1x32x128xf32> to vector<32x128xf32>
    %397 = arith.mulf %382, %396 : vector<32x128xf32>
    %398 = arith.addf %370, %397 : vector<32x128xf32>
    %c205 = arith.constant 205 : index
    %c0_217 = arith.constant 0 : index
    %c0_218 = arith.constant 0 : index
    %399 = vector.load %arg2[%c205, %c0_217, %c0_218] : memref<224x32x128xf32, #tpu.memory_space<vmem>>, vector<1x32x128xf32>
    %400 = vector.shape_cast %399 : vector<1x32x128xf32> to vector<32x128xf32>
    %401 = arith.mulf %382, %400 : vector<32x128xf32>
    %402 = arith.addf %374, %401 : vector<32x128xf32>
    %c14 = arith.constant 14 : index
    %c0_219 = arith.constant 0 : index
    %c0_220 = arith.constant 0 : index
    %403 = vector.load %arg2[%c14, %c0_219, %c0_220] : memref<224x32x128xf32, #tpu.memory_space<vmem>>, vector<1x32x128xf32>
    %404 = vector.shape_cast %403 : vector<1x32x128xf32> to vector<32x128xf32>
    %405 = arith.mulf %5, %404 : vector<32x128xf32>
    %c46 = arith.constant 46 : index
    %c0_221 = arith.constant 0 : index
    %c0_222 = arith.constant 0 : index
    %406 = vector.load %arg2[%c46, %c0_221, %c0_222] : memref<224x32x128xf32, #tpu.memory_space<vmem>>, vector<1x32x128xf32>
    %407 = vector.shape_cast %406 : vector<1x32x128xf32> to vector<32x128xf32>
    %408 = arith.addf %405, %407 : vector<32x128xf32>
    %cst_223 = arith.constant 0.000000e+00 : f32
    %409 = vector.broadcast %cst_223 : f32 to vector<32x128xf32>
    %410 = arith.maximumf %408, %409 : vector<32x128xf32>
    %c78 = arith.constant 78 : index
    %c0_224 = arith.constant 0 : index
    %c0_225 = arith.constant 0 : index
    %411 = vector.load %arg2[%c78, %c0_224, %c0_225] : memref<224x32x128xf32, #tpu.memory_space<vmem>>, vector<1x32x128xf32>
    %412 = vector.shape_cast %411 : vector<1x32x128xf32> to vector<32x128xf32>
    %413 = arith.mulf %410, %412 : vector<32x128xf32>
    %414 = arith.addf %386, %413 : vector<32x128xf32>
    %c110 = arith.constant 110 : index
    %c0_226 = arith.constant 0 : index
    %c0_227 = arith.constant 0 : index
    %415 = vector.load %arg2[%c110, %c0_226, %c0_227] : memref<224x32x128xf32, #tpu.memory_space<vmem>>, vector<1x32x128xf32>
    %416 = vector.shape_cast %415 : vector<1x32x128xf32> to vector<32x128xf32>
    %417 = arith.mulf %410, %416 : vector<32x128xf32>
    %418 = arith.addf %390, %417 : vector<32x128xf32>
    %c142 = arith.constant 142 : index
    %c0_228 = arith.constant 0 : index
    %c0_229 = arith.constant 0 : index
    %419 = vector.load %arg2[%c142, %c0_228, %c0_229] : memref<224x32x128xf32, #tpu.memory_space<vmem>>, vector<1x32x128xf32>
    %420 = vector.shape_cast %419 : vector<1x32x128xf32> to vector<32x128xf32>
    %421 = arith.mulf %410, %420 : vector<32x128xf32>
    %422 = arith.addf %394, %421 : vector<32x128xf32>
    %c174 = arith.constant 174 : index
    %c0_230 = arith.constant 0 : index
    %c0_231 = arith.constant 0 : index
    %423 = vector.load %arg2[%c174, %c0_230, %c0_231] : memref<224x32x128xf32, #tpu.memory_space<vmem>>, vector<1x32x128xf32>
    %424 = vector.shape_cast %423 : vector<1x32x128xf32> to vector<32x128xf32>
    %425 = arith.mulf %410, %424 : vector<32x128xf32>
    %426 = arith.addf %398, %425 : vector<32x128xf32>
    %c206 = arith.constant 206 : index
    %c0_232 = arith.constant 0 : index
    %c0_233 = arith.constant 0 : index
    %427 = vector.load %arg2[%c206, %c0_232, %c0_233] : memref<224x32x128xf32, #tpu.memory_space<vmem>>, vector<1x32x128xf32>
    %428 = vector.shape_cast %427 : vector<1x32x128xf32> to vector<32x128xf32>
    %429 = arith.mulf %410, %428 : vector<32x128xf32>
    %430 = arith.addf %402, %429 : vector<32x128xf32>
    %c15 = arith.constant 15 : index
    %c0_234 = arith.constant 0 : index
    %c0_235 = arith.constant 0 : index
    %431 = vector.load %arg2[%c15, %c0_234, %c0_235] : memref<224x32x128xf32, #tpu.memory_space<vmem>>, vector<1x32x128xf32>
    %432 = vector.shape_cast %431 : vector<1x32x128xf32> to vector<32x128xf32>
    %433 = arith.mulf %5, %432 : vector<32x128xf32>
    %c47 = arith.constant 47 : index
    %c0_236 = arith.constant 0 : index
    %c0_237 = arith.constant 0 : index
    %434 = vector.load %arg2[%c47, %c0_236, %c0_237] : memref<224x32x128xf32, #tpu.memory_space<vmem>>, vector<1x32x128xf32>
    %435 = vector.shape_cast %434 : vector<1x32x128xf32> to vector<32x128xf32>
    %436 = arith.addf %433, %435 : vector<32x128xf32>
    %cst_238 = arith.constant 0.000000e+00 : f32
    %437 = vector.broadcast %cst_238 : f32 to vector<32x128xf32>
    %438 = arith.maximumf %436, %437 : vector<32x128xf32>
    %c79 = arith.constant 79 : index
    %c0_239 = arith.constant 0 : index
    %c0_240 = arith.constant 0 : index
    %439 = vector.load %arg2[%c79, %c0_239, %c0_240] : memref<224x32x128xf32, #tpu.memory_space<vmem>>, vector<1x32x128xf32>
    %440 = vector.shape_cast %439 : vector<1x32x128xf32> to vector<32x128xf32>
    %441 = arith.mulf %438, %440 : vector<32x128xf32>
    %442 = arith.addf %414, %441 : vector<32x128xf32>
    %c111 = arith.constant 111 : index
    %c0_241 = arith.constant 0 : index
    %c0_242 = arith.constant 0 : index
    %443 = vector.load %arg2[%c111, %c0_241, %c0_242] : memref<224x32x128xf32, #tpu.memory_space<vmem>>, vector<1x32x128xf32>
    %444 = vector.shape_cast %443 : vector<1x32x128xf32> to vector<32x128xf32>
    %445 = arith.mulf %438, %444 : vector<32x128xf32>
    %446 = arith.addf %418, %445 : vector<32x128xf32>
    %c143 = arith.constant 143 : index
    %c0_243 = arith.constant 0 : index
    %c0_244 = arith.constant 0 : index
    %447 = vector.load %arg2[%c143, %c0_243, %c0_244] : memref<224x32x128xf32, #tpu.memory_space<vmem>>, vector<1x32x128xf32>
    %448 = vector.shape_cast %447 : vector<1x32x128xf32> to vector<32x128xf32>
    %449 = arith.mulf %438, %448 : vector<32x128xf32>
    %450 = arith.addf %422, %449 : vector<32x128xf32>
    %c175 = arith.constant 175 : index
    %c0_245 = arith.constant 0 : index
    %c0_246 = arith.constant 0 : index
    %451 = vector.load %arg2[%c175, %c0_245, %c0_246] : memref<224x32x128xf32, #tpu.memory_space<vmem>>, vector<1x32x128xf32>
    %452 = vector.shape_cast %451 : vector<1x32x128xf32> to vector<32x128xf32>
    %453 = arith.mulf %438, %452 : vector<32x128xf32>
    %454 = arith.addf %426, %453 : vector<32x128xf32>
    %c207 = arith.constant 207 : index
    %c0_247 = arith.constant 0 : index
    %c0_248 = arith.constant 0 : index
    %455 = vector.load %arg2[%c207, %c0_247, %c0_248] : memref<224x32x128xf32, #tpu.memory_space<vmem>>, vector<1x32x128xf32>
    %456 = vector.shape_cast %455 : vector<1x32x128xf32> to vector<32x128xf32>
    %457 = arith.mulf %438, %456 : vector<32x128xf32>
    %458 = arith.addf %430, %457 : vector<32x128xf32>
    %c16 = arith.constant 16 : index
    %c0_249 = arith.constant 0 : index
    %c0_250 = arith.constant 0 : index
    %459 = vector.load %arg2[%c16, %c0_249, %c0_250] : memref<224x32x128xf32, #tpu.memory_space<vmem>>, vector<1x32x128xf32>
    %460 = vector.shape_cast %459 : vector<1x32x128xf32> to vector<32x128xf32>
    %461 = arith.mulf %5, %460 : vector<32x128xf32>
    %c48 = arith.constant 48 : index
    %c0_251 = arith.constant 0 : index
    %c0_252 = arith.constant 0 : index
    %462 = vector.load %arg2[%c48, %c0_251, %c0_252] : memref<224x32x128xf32, #tpu.memory_space<vmem>>, vector<1x32x128xf32>
    %463 = vector.shape_cast %462 : vector<1x32x128xf32> to vector<32x128xf32>
    %464 = arith.addf %461, %463 : vector<32x128xf32>
    %cst_253 = arith.constant 0.000000e+00 : f32
    %465 = vector.broadcast %cst_253 : f32 to vector<32x128xf32>
    %466 = arith.maximumf %464, %465 : vector<32x128xf32>
    %c80 = arith.constant 80 : index
    %c0_254 = arith.constant 0 : index
    %c0_255 = arith.constant 0 : index
    %467 = vector.load %arg2[%c80, %c0_254, %c0_255] : memref<224x32x128xf32, #tpu.memory_space<vmem>>, vector<1x32x128xf32>
    %468 = vector.shape_cast %467 : vector<1x32x128xf32> to vector<32x128xf32>
    %469 = arith.mulf %466, %468 : vector<32x128xf32>
    %470 = arith.addf %442, %469 : vector<32x128xf32>
    %c112 = arith.constant 112 : index
    %c0_256 = arith.constant 0 : index
    %c0_257 = arith.constant 0 : index
    %471 = vector.load %arg2[%c112, %c0_256, %c0_257] : memref<224x32x128xf32, #tpu.memory_space<vmem>>, vector<1x32x128xf32>
    %472 = vector.shape_cast %471 : vector<1x32x128xf32> to vector<32x128xf32>
    %473 = arith.mulf %466, %472 : vector<32x128xf32>
    %474 = arith.addf %446, %473 : vector<32x128xf32>
    %c144 = arith.constant 144 : index
    %c0_258 = arith.constant 0 : index
    %c0_259 = arith.constant 0 : index
    %475 = vector.load %arg2[%c144, %c0_258, %c0_259] : memref<224x32x128xf32, #tpu.memory_space<vmem>>, vector<1x32x128xf32>
    %476 = vector.shape_cast %475 : vector<1x32x128xf32> to vector<32x128xf32>
    %477 = arith.mulf %466, %476 : vector<32x128xf32>
    %478 = arith.addf %450, %477 : vector<32x128xf32>
    %c176 = arith.constant 176 : index
    %c0_260 = arith.constant 0 : index
    %c0_261 = arith.constant 0 : index
    %479 = vector.load %arg2[%c176, %c0_260, %c0_261] : memref<224x32x128xf32, #tpu.memory_space<vmem>>, vector<1x32x128xf32>
    %480 = vector.shape_cast %479 : vector<1x32x128xf32> to vector<32x128xf32>
    %481 = arith.mulf %466, %480 : vector<32x128xf32>
    %482 = arith.addf %454, %481 : vector<32x128xf32>
    %c208 = arith.constant 208 : index
    %c0_262 = arith.constant 0 : index
    %c0_263 = arith.constant 0 : index
    %483 = vector.load %arg2[%c208, %c0_262, %c0_263] : memref<224x32x128xf32, #tpu.memory_space<vmem>>, vector<1x32x128xf32>
    %484 = vector.shape_cast %483 : vector<1x32x128xf32> to vector<32x128xf32>
    %485 = arith.mulf %466, %484 : vector<32x128xf32>
    %486 = arith.addf %458, %485 : vector<32x128xf32>
    %c17 = arith.constant 17 : index
    %c0_264 = arith.constant 0 : index
    %c0_265 = arith.constant 0 : index
    %487 = vector.load %arg2[%c17, %c0_264, %c0_265] : memref<224x32x128xf32, #tpu.memory_space<vmem>>, vector<1x32x128xf32>
    %488 = vector.shape_cast %487 : vector<1x32x128xf32> to vector<32x128xf32>
    %489 = arith.mulf %5, %488 : vector<32x128xf32>
    %c49 = arith.constant 49 : index
    %c0_266 = arith.constant 0 : index
    %c0_267 = arith.constant 0 : index
    %490 = vector.load %arg2[%c49, %c0_266, %c0_267] : memref<224x32x128xf32, #tpu.memory_space<vmem>>, vector<1x32x128xf32>
    %491 = vector.shape_cast %490 : vector<1x32x128xf32> to vector<32x128xf32>
    %492 = arith.addf %489, %491 : vector<32x128xf32>
    %cst_268 = arith.constant 0.000000e+00 : f32
    %493 = vector.broadcast %cst_268 : f32 to vector<32x128xf32>
    %494 = arith.maximumf %492, %493 : vector<32x128xf32>
    %c81 = arith.constant 81 : index
    %c0_269 = arith.constant 0 : index
    %c0_270 = arith.constant 0 : index
    %495 = vector.load %arg2[%c81, %c0_269, %c0_270] : memref<224x32x128xf32, #tpu.memory_space<vmem>>, vector<1x32x128xf32>
    %496 = vector.shape_cast %495 : vector<1x32x128xf32> to vector<32x128xf32>
    %497 = arith.mulf %494, %496 : vector<32x128xf32>
    %498 = arith.addf %470, %497 : vector<32x128xf32>
    %c113 = arith.constant 113 : index
    %c0_271 = arith.constant 0 : index
    %c0_272 = arith.constant 0 : index
    %499 = vector.load %arg2[%c113, %c0_271, %c0_272] : memref<224x32x128xf32, #tpu.memory_space<vmem>>, vector<1x32x128xf32>
    %500 = vector.shape_cast %499 : vector<1x32x128xf32> to vector<32x128xf32>
    %501 = arith.mulf %494, %500 : vector<32x128xf32>
    %502 = arith.addf %474, %501 : vector<32x128xf32>
    %c145 = arith.constant 145 : index
    %c0_273 = arith.constant 0 : index
    %c0_274 = arith.constant 0 : index
    %503 = vector.load %arg2[%c145, %c0_273, %c0_274] : memref<224x32x128xf32, #tpu.memory_space<vmem>>, vector<1x32x128xf32>
    %504 = vector.shape_cast %503 : vector<1x32x128xf32> to vector<32x128xf32>
    %505 = arith.mulf %494, %504 : vector<32x128xf32>
    %506 = arith.addf %478, %505 : vector<32x128xf32>
    %c177 = arith.constant 177 : index
    %c0_275 = arith.constant 0 : index
    %c0_276 = arith.constant 0 : index
    %507 = vector.load %arg2[%c177, %c0_275, %c0_276] : memref<224x32x128xf32, #tpu.memory_space<vmem>>, vector<1x32x128xf32>
    %508 = vector.shape_cast %507 : vector<1x32x128xf32> to vector<32x128xf32>
    %509 = arith.mulf %494, %508 : vector<32x128xf32>
    %510 = arith.addf %482, %509 : vector<32x128xf32>
    %c209 = arith.constant 209 : index
    %c0_277 = arith.constant 0 : index
    %c0_278 = arith.constant 0 : index
    %511 = vector.load %arg2[%c209, %c0_277, %c0_278] : memref<224x32x128xf32, #tpu.memory_space<vmem>>, vector<1x32x128xf32>
    %512 = vector.shape_cast %511 : vector<1x32x128xf32> to vector<32x128xf32>
    %513 = arith.mulf %494, %512 : vector<32x128xf32>
    %514 = arith.addf %486, %513 : vector<32x128xf32>
    %c18 = arith.constant 18 : index
    %c0_279 = arith.constant 0 : index
    %c0_280 = arith.constant 0 : index
    %515 = vector.load %arg2[%c18, %c0_279, %c0_280] : memref<224x32x128xf32, #tpu.memory_space<vmem>>, vector<1x32x128xf32>
    %516 = vector.shape_cast %515 : vector<1x32x128xf32> to vector<32x128xf32>
    %517 = arith.mulf %5, %516 : vector<32x128xf32>
    %c50 = arith.constant 50 : index
    %c0_281 = arith.constant 0 : index
    %c0_282 = arith.constant 0 : index
    %518 = vector.load %arg2[%c50, %c0_281, %c0_282] : memref<224x32x128xf32, #tpu.memory_space<vmem>>, vector<1x32x128xf32>
    %519 = vector.shape_cast %518 : vector<1x32x128xf32> to vector<32x128xf32>
    %520 = arith.addf %517, %519 : vector<32x128xf32>
    %cst_283 = arith.constant 0.000000e+00 : f32
    %521 = vector.broadcast %cst_283 : f32 to vector<32x128xf32>
    %522 = arith.maximumf %520, %521 : vector<32x128xf32>
    %c82 = arith.constant 82 : index
    %c0_284 = arith.constant 0 : index
    %c0_285 = arith.constant 0 : index
    %523 = vector.load %arg2[%c82, %c0_284, %c0_285] : memref<224x32x128xf32, #tpu.memory_space<vmem>>, vector<1x32x128xf32>
    %524 = vector.shape_cast %523 : vector<1x32x128xf32> to vector<32x128xf32>
    %525 = arith.mulf %522, %524 : vector<32x128xf32>
    %526 = arith.addf %498, %525 : vector<32x128xf32>
    %c114 = arith.constant 114 : index
    %c0_286 = arith.constant 0 : index
    %c0_287 = arith.constant 0 : index
    %527 = vector.load %arg2[%c114, %c0_286, %c0_287] : memref<224x32x128xf32, #tpu.memory_space<vmem>>, vector<1x32x128xf32>
    %528 = vector.shape_cast %527 : vector<1x32x128xf32> to vector<32x128xf32>
    %529 = arith.mulf %522, %528 : vector<32x128xf32>
    %530 = arith.addf %502, %529 : vector<32x128xf32>
    %c146 = arith.constant 146 : index
    %c0_288 = arith.constant 0 : index
    %c0_289 = arith.constant 0 : index
    %531 = vector.load %arg2[%c146, %c0_288, %c0_289] : memref<224x32x128xf32, #tpu.memory_space<vmem>>, vector<1x32x128xf32>
    %532 = vector.shape_cast %531 : vector<1x32x128xf32> to vector<32x128xf32>
    %533 = arith.mulf %522, %532 : vector<32x128xf32>
    %534 = arith.addf %506, %533 : vector<32x128xf32>
    %c178 = arith.constant 178 : index
    %c0_290 = arith.constant 0 : index
    %c0_291 = arith.constant 0 : index
    %535 = vector.load %arg2[%c178, %c0_290, %c0_291] : memref<224x32x128xf32, #tpu.memory_space<vmem>>, vector<1x32x128xf32>
    %536 = vector.shape_cast %535 : vector<1x32x128xf32> to vector<32x128xf32>
    %537 = arith.mulf %522, %536 : vector<32x128xf32>
    %538 = arith.addf %510, %537 : vector<32x128xf32>
    %c210 = arith.constant 210 : index
    %c0_292 = arith.constant 0 : index
    %c0_293 = arith.constant 0 : index
    %539 = vector.load %arg2[%c210, %c0_292, %c0_293] : memref<224x32x128xf32, #tpu.memory_space<vmem>>, vector<1x32x128xf32>
    %540 = vector.shape_cast %539 : vector<1x32x128xf32> to vector<32x128xf32>
    %541 = arith.mulf %522, %540 : vector<32x128xf32>
    %542 = arith.addf %514, %541 : vector<32x128xf32>
    %c19 = arith.constant 19 : index
    %c0_294 = arith.constant 0 : index
    %c0_295 = arith.constant 0 : index
    %543 = vector.load %arg2[%c19, %c0_294, %c0_295] : memref<224x32x128xf32, #tpu.memory_space<vmem>>, vector<1x32x128xf32>
    %544 = vector.shape_cast %543 : vector<1x32x128xf32> to vector<32x128xf32>
    %545 = arith.mulf %5, %544 : vector<32x128xf32>
    %c51 = arith.constant 51 : index
    %c0_296 = arith.constant 0 : index
    %c0_297 = arith.constant 0 : index
    %546 = vector.load %arg2[%c51, %c0_296, %c0_297] : memref<224x32x128xf32, #tpu.memory_space<vmem>>, vector<1x32x128xf32>
    %547 = vector.shape_cast %546 : vector<1x32x128xf32> to vector<32x128xf32>
    %548 = arith.addf %545, %547 : vector<32x128xf32>
    %cst_298 = arith.constant 0.000000e+00 : f32
    %549 = vector.broadcast %cst_298 : f32 to vector<32x128xf32>
    %550 = arith.maximumf %548, %549 : vector<32x128xf32>
    %c83 = arith.constant 83 : index
    %c0_299 = arith.constant 0 : index
    %c0_300 = arith.constant 0 : index
    %551 = vector.load %arg2[%c83, %c0_299, %c0_300] : memref<224x32x128xf32, #tpu.memory_space<vmem>>, vector<1x32x128xf32>
    %552 = vector.shape_cast %551 : vector<1x32x128xf32> to vector<32x128xf32>
    %553 = arith.mulf %550, %552 : vector<32x128xf32>
    %554 = arith.addf %526, %553 : vector<32x128xf32>
    %c115 = arith.constant 115 : index
    %c0_301 = arith.constant 0 : index
    %c0_302 = arith.constant 0 : index
    %555 = vector.load %arg2[%c115, %c0_301, %c0_302] : memref<224x32x128xf32, #tpu.memory_space<vmem>>, vector<1x32x128xf32>
    %556 = vector.shape_cast %555 : vector<1x32x128xf32> to vector<32x128xf32>
    %557 = arith.mulf %550, %556 : vector<32x128xf32>
    %558 = arith.addf %530, %557 : vector<32x128xf32>
    %c147 = arith.constant 147 : index
    %c0_303 = arith.constant 0 : index
    %c0_304 = arith.constant 0 : index
    %559 = vector.load %arg2[%c147, %c0_303, %c0_304] : memref<224x32x128xf32, #tpu.memory_space<vmem>>, vector<1x32x128xf32>
    %560 = vector.shape_cast %559 : vector<1x32x128xf32> to vector<32x128xf32>
    %561 = arith.mulf %550, %560 : vector<32x128xf32>
    %562 = arith.addf %534, %561 : vector<32x128xf32>
    %c179 = arith.constant 179 : index
    %c0_305 = arith.constant 0 : index
    %c0_306 = arith.constant 0 : index
    %563 = vector.load %arg2[%c179, %c0_305, %c0_306] : memref<224x32x128xf32, #tpu.memory_space<vmem>>, vector<1x32x128xf32>
    %564 = vector.shape_cast %563 : vector<1x32x128xf32> to vector<32x128xf32>
    %565 = arith.mulf %550, %564 : vector<32x128xf32>
    %566 = arith.addf %538, %565 : vector<32x128xf32>
    %c211 = arith.constant 211 : index
    %c0_307 = arith.constant 0 : index
    %c0_308 = arith.constant 0 : index
    %567 = vector.load %arg2[%c211, %c0_307, %c0_308] : memref<224x32x128xf32, #tpu.memory_space<vmem>>, vector<1x32x128xf32>
    %568 = vector.shape_cast %567 : vector<1x32x128xf32> to vector<32x128xf32>
    %569 = arith.mulf %550, %568 : vector<32x128xf32>
    %570 = arith.addf %542, %569 : vector<32x128xf32>
    %c20 = arith.constant 20 : index
    %c0_309 = arith.constant 0 : index
    %c0_310 = arith.constant 0 : index
    %571 = vector.load %arg2[%c20, %c0_309, %c0_310] : memref<224x32x128xf32, #tpu.memory_space<vmem>>, vector<1x32x128xf32>
    %572 = vector.shape_cast %571 : vector<1x32x128xf32> to vector<32x128xf32>
    %573 = arith.mulf %5, %572 : vector<32x128xf32>
    %c52 = arith.constant 52 : index
    %c0_311 = arith.constant 0 : index
    %c0_312 = arith.constant 0 : index
    %574 = vector.load %arg2[%c52, %c0_311, %c0_312] : memref<224x32x128xf32, #tpu.memory_space<vmem>>, vector<1x32x128xf32>
    %575 = vector.shape_cast %574 : vector<1x32x128xf32> to vector<32x128xf32>
    %576 = arith.addf %573, %575 : vector<32x128xf32>
    %cst_313 = arith.constant 0.000000e+00 : f32
    %577 = vector.broadcast %cst_313 : f32 to vector<32x128xf32>
    %578 = arith.maximumf %576, %577 : vector<32x128xf32>
    %c84 = arith.constant 84 : index
    %c0_314 = arith.constant 0 : index
    %c0_315 = arith.constant 0 : index
    %579 = vector.load %arg2[%c84, %c0_314, %c0_315] : memref<224x32x128xf32, #tpu.memory_space<vmem>>, vector<1x32x128xf32>
    %580 = vector.shape_cast %579 : vector<1x32x128xf32> to vector<32x128xf32>
    %581 = arith.mulf %578, %580 : vector<32x128xf32>
    %582 = arith.addf %554, %581 : vector<32x128xf32>
    %c116 = arith.constant 116 : index
    %c0_316 = arith.constant 0 : index
    %c0_317 = arith.constant 0 : index
    %583 = vector.load %arg2[%c116, %c0_316, %c0_317] : memref<224x32x128xf32, #tpu.memory_space<vmem>>, vector<1x32x128xf32>
    %584 = vector.shape_cast %583 : vector<1x32x128xf32> to vector<32x128xf32>
    %585 = arith.mulf %578, %584 : vector<32x128xf32>
    %586 = arith.addf %558, %585 : vector<32x128xf32>
    %c148 = arith.constant 148 : index
    %c0_318 = arith.constant 0 : index
    %c0_319 = arith.constant 0 : index
    %587 = vector.load %arg2[%c148, %c0_318, %c0_319] : memref<224x32x128xf32, #tpu.memory_space<vmem>>, vector<1x32x128xf32>
    %588 = vector.shape_cast %587 : vector<1x32x128xf32> to vector<32x128xf32>
    %589 = arith.mulf %578, %588 : vector<32x128xf32>
    %590 = arith.addf %562, %589 : vector<32x128xf32>
    %c180 = arith.constant 180 : index
    %c0_320 = arith.constant 0 : index
    %c0_321 = arith.constant 0 : index
    %591 = vector.load %arg2[%c180, %c0_320, %c0_321] : memref<224x32x128xf32, #tpu.memory_space<vmem>>, vector<1x32x128xf32>
    %592 = vector.shape_cast %591 : vector<1x32x128xf32> to vector<32x128xf32>
    %593 = arith.mulf %578, %592 : vector<32x128xf32>
    %594 = arith.addf %566, %593 : vector<32x128xf32>
    %c212 = arith.constant 212 : index
    %c0_322 = arith.constant 0 : index
    %c0_323 = arith.constant 0 : index
    %595 = vector.load %arg2[%c212, %c0_322, %c0_323] : memref<224x32x128xf32, #tpu.memory_space<vmem>>, vector<1x32x128xf32>
    %596 = vector.shape_cast %595 : vector<1x32x128xf32> to vector<32x128xf32>
    %597 = arith.mulf %578, %596 : vector<32x128xf32>
    %598 = arith.addf %570, %597 : vector<32x128xf32>
    %c21 = arith.constant 21 : index
    %c0_324 = arith.constant 0 : index
    %c0_325 = arith.constant 0 : index
    %599 = vector.load %arg2[%c21, %c0_324, %c0_325] : memref<224x32x128xf32, #tpu.memory_space<vmem>>, vector<1x32x128xf32>
    %600 = vector.shape_cast %599 : vector<1x32x128xf32> to vector<32x128xf32>
    %601 = arith.mulf %5, %600 : vector<32x128xf32>
    %c53 = arith.constant 53 : index
    %c0_326 = arith.constant 0 : index
    %c0_327 = arith.constant 0 : index
    %602 = vector.load %arg2[%c53, %c0_326, %c0_327] : memref<224x32x128xf32, #tpu.memory_space<vmem>>, vector<1x32x128xf32>
    %603 = vector.shape_cast %602 : vector<1x32x128xf32> to vector<32x128xf32>
    %604 = arith.addf %601, %603 : vector<32x128xf32>
    %cst_328 = arith.constant 0.000000e+00 : f32
    %605 = vector.broadcast %cst_328 : f32 to vector<32x128xf32>
    %606 = arith.maximumf %604, %605 : vector<32x128xf32>
    %c85 = arith.constant 85 : index
    %c0_329 = arith.constant 0 : index
    %c0_330 = arith.constant 0 : index
    %607 = vector.load %arg2[%c85, %c0_329, %c0_330] : memref<224x32x128xf32, #tpu.memory_space<vmem>>, vector<1x32x128xf32>
    %608 = vector.shape_cast %607 : vector<1x32x128xf32> to vector<32x128xf32>
    %609 = arith.mulf %606, %608 : vector<32x128xf32>
    %610 = arith.addf %582, %609 : vector<32x128xf32>
    %c117 = arith.constant 117 : index
    %c0_331 = arith.constant 0 : index
    %c0_332 = arith.constant 0 : index
    %611 = vector.load %arg2[%c117, %c0_331, %c0_332] : memref<224x32x128xf32, #tpu.memory_space<vmem>>, vector<1x32x128xf32>
    %612 = vector.shape_cast %611 : vector<1x32x128xf32> to vector<32x128xf32>
    %613 = arith.mulf %606, %612 : vector<32x128xf32>
    %614 = arith.addf %586, %613 : vector<32x128xf32>
    %c149 = arith.constant 149 : index
    %c0_333 = arith.constant 0 : index
    %c0_334 = arith.constant 0 : index
    %615 = vector.load %arg2[%c149, %c0_333, %c0_334] : memref<224x32x128xf32, #tpu.memory_space<vmem>>, vector<1x32x128xf32>
    %616 = vector.shape_cast %615 : vector<1x32x128xf32> to vector<32x128xf32>
    %617 = arith.mulf %606, %616 : vector<32x128xf32>
    %618 = arith.addf %590, %617 : vector<32x128xf32>
    %c181 = arith.constant 181 : index
    %c0_335 = arith.constant 0 : index
    %c0_336 = arith.constant 0 : index
    %619 = vector.load %arg2[%c181, %c0_335, %c0_336] : memref<224x32x128xf32, #tpu.memory_space<vmem>>, vector<1x32x128xf32>
    %620 = vector.shape_cast %619 : vector<1x32x128xf32> to vector<32x128xf32>
    %621 = arith.mulf %606, %620 : vector<32x128xf32>
    %622 = arith.addf %594, %621 : vector<32x128xf32>
    %c213 = arith.constant 213 : index
    %c0_337 = arith.constant 0 : index
    %c0_338 = arith.constant 0 : index
    %623 = vector.load %arg2[%c213, %c0_337, %c0_338] : memref<224x32x128xf32, #tpu.memory_space<vmem>>, vector<1x32x128xf32>
    %624 = vector.shape_cast %623 : vector<1x32x128xf32> to vector<32x128xf32>
    %625 = arith.mulf %606, %624 : vector<32x128xf32>
    %626 = arith.addf %598, %625 : vector<32x128xf32>
    %c22 = arith.constant 22 : index
    %c0_339 = arith.constant 0 : index
    %c0_340 = arith.constant 0 : index
    %627 = vector.load %arg2[%c22, %c0_339, %c0_340] : memref<224x32x128xf32, #tpu.memory_space<vmem>>, vector<1x32x128xf32>
    %628 = vector.shape_cast %627 : vector<1x32x128xf32> to vector<32x128xf32>
    %629 = arith.mulf %5, %628 : vector<32x128xf32>
    %c54 = arith.constant 54 : index
    %c0_341 = arith.constant 0 : index
    %c0_342 = arith.constant 0 : index
    %630 = vector.load %arg2[%c54, %c0_341, %c0_342] : memref<224x32x128xf32, #tpu.memory_space<vmem>>, vector<1x32x128xf32>
    %631 = vector.shape_cast %630 : vector<1x32x128xf32> to vector<32x128xf32>
    %632 = arith.addf %629, %631 : vector<32x128xf32>
    %cst_343 = arith.constant 0.000000e+00 : f32
    %633 = vector.broadcast %cst_343 : f32 to vector<32x128xf32>
    %634 = arith.maximumf %632, %633 : vector<32x128xf32>
    %c86 = arith.constant 86 : index
    %c0_344 = arith.constant 0 : index
    %c0_345 = arith.constant 0 : index
    %635 = vector.load %arg2[%c86, %c0_344, %c0_345] : memref<224x32x128xf32, #tpu.memory_space<vmem>>, vector<1x32x128xf32>
    %636 = vector.shape_cast %635 : vector<1x32x128xf32> to vector<32x128xf32>
    %637 = arith.mulf %634, %636 : vector<32x128xf32>
    %638 = arith.addf %610, %637 : vector<32x128xf32>
    %c118 = arith.constant 118 : index
    %c0_346 = arith.constant 0 : index
    %c0_347 = arith.constant 0 : index
    %639 = vector.load %arg2[%c118, %c0_346, %c0_347] : memref<224x32x128xf32, #tpu.memory_space<vmem>>, vector<1x32x128xf32>
    %640 = vector.shape_cast %639 : vector<1x32x128xf32> to vector<32x128xf32>
    %641 = arith.mulf %634, %640 : vector<32x128xf32>
    %642 = arith.addf %614, %641 : vector<32x128xf32>
    %c150 = arith.constant 150 : index
    %c0_348 = arith.constant 0 : index
    %c0_349 = arith.constant 0 : index
    %643 = vector.load %arg2[%c150, %c0_348, %c0_349] : memref<224x32x128xf32, #tpu.memory_space<vmem>>, vector<1x32x128xf32>
    %644 = vector.shape_cast %643 : vector<1x32x128xf32> to vector<32x128xf32>
    %645 = arith.mulf %634, %644 : vector<32x128xf32>
    %646 = arith.addf %618, %645 : vector<32x128xf32>
    %c182 = arith.constant 182 : index
    %c0_350 = arith.constant 0 : index
    %c0_351 = arith.constant 0 : index
    %647 = vector.load %arg2[%c182, %c0_350, %c0_351] : memref<224x32x128xf32, #tpu.memory_space<vmem>>, vector<1x32x128xf32>
    %648 = vector.shape_cast %647 : vector<1x32x128xf32> to vector<32x128xf32>
    %649 = arith.mulf %634, %648 : vector<32x128xf32>
    %650 = arith.addf %622, %649 : vector<32x128xf32>
    %c214 = arith.constant 214 : index
    %c0_352 = arith.constant 0 : index
    %c0_353 = arith.constant 0 : index
    %651 = vector.load %arg2[%c214, %c0_352, %c0_353] : memref<224x32x128xf32, #tpu.memory_space<vmem>>, vector<1x32x128xf32>
    %652 = vector.shape_cast %651 : vector<1x32x128xf32> to vector<32x128xf32>
    %653 = arith.mulf %634, %652 : vector<32x128xf32>
    %654 = arith.addf %626, %653 : vector<32x128xf32>
    %c23 = arith.constant 23 : index
    %c0_354 = arith.constant 0 : index
    %c0_355 = arith.constant 0 : index
    %655 = vector.load %arg2[%c23, %c0_354, %c0_355] : memref<224x32x128xf32, #tpu.memory_space<vmem>>, vector<1x32x128xf32>
    %656 = vector.shape_cast %655 : vector<1x32x128xf32> to vector<32x128xf32>
    %657 = arith.mulf %5, %656 : vector<32x128xf32>
    %c55 = arith.constant 55 : index
    %c0_356 = arith.constant 0 : index
    %c0_357 = arith.constant 0 : index
    %658 = vector.load %arg2[%c55, %c0_356, %c0_357] : memref<224x32x128xf32, #tpu.memory_space<vmem>>, vector<1x32x128xf32>
    %659 = vector.shape_cast %658 : vector<1x32x128xf32> to vector<32x128xf32>
    %660 = arith.addf %657, %659 : vector<32x128xf32>
    %cst_358 = arith.constant 0.000000e+00 : f32
    %661 = vector.broadcast %cst_358 : f32 to vector<32x128xf32>
    %662 = arith.maximumf %660, %661 : vector<32x128xf32>
    %c87 = arith.constant 87 : index
    %c0_359 = arith.constant 0 : index
    %c0_360 = arith.constant 0 : index
    %663 = vector.load %arg2[%c87, %c0_359, %c0_360] : memref<224x32x128xf32, #tpu.memory_space<vmem>>, vector<1x32x128xf32>
    %664 = vector.shape_cast %663 : vector<1x32x128xf32> to vector<32x128xf32>
    %665 = arith.mulf %662, %664 : vector<32x128xf32>
    %666 = arith.addf %638, %665 : vector<32x128xf32>
    %c119 = arith.constant 119 : index
    %c0_361 = arith.constant 0 : index
    %c0_362 = arith.constant 0 : index
    %667 = vector.load %arg2[%c119, %c0_361, %c0_362] : memref<224x32x128xf32, #tpu.memory_space<vmem>>, vector<1x32x128xf32>
    %668 = vector.shape_cast %667 : vector<1x32x128xf32> to vector<32x128xf32>
    %669 = arith.mulf %662, %668 : vector<32x128xf32>
    %670 = arith.addf %642, %669 : vector<32x128xf32>
    %c151 = arith.constant 151 : index
    %c0_363 = arith.constant 0 : index
    %c0_364 = arith.constant 0 : index
    %671 = vector.load %arg2[%c151, %c0_363, %c0_364] : memref<224x32x128xf32, #tpu.memory_space<vmem>>, vector<1x32x128xf32>
    %672 = vector.shape_cast %671 : vector<1x32x128xf32> to vector<32x128xf32>
    %673 = arith.mulf %662, %672 : vector<32x128xf32>
    %674 = arith.addf %646, %673 : vector<32x128xf32>
    %c183 = arith.constant 183 : index
    %c0_365 = arith.constant 0 : index
    %c0_366 = arith.constant 0 : index
    %675 = vector.load %arg2[%c183, %c0_365, %c0_366] : memref<224x32x128xf32, #tpu.memory_space<vmem>>, vector<1x32x128xf32>
    %676 = vector.shape_cast %675 : vector<1x32x128xf32> to vector<32x128xf32>
    %677 = arith.mulf %662, %676 : vector<32x128xf32>
    %678 = arith.addf %650, %677 : vector<32x128xf32>
    %c215 = arith.constant 215 : index
    %c0_367 = arith.constant 0 : index
    %c0_368 = arith.constant 0 : index
    %679 = vector.load %arg2[%c215, %c0_367, %c0_368] : memref<224x32x128xf32, #tpu.memory_space<vmem>>, vector<1x32x128xf32>
    %680 = vector.shape_cast %679 : vector<1x32x128xf32> to vector<32x128xf32>
    %681 = arith.mulf %662, %680 : vector<32x128xf32>
    %682 = arith.addf %654, %681 : vector<32x128xf32>
    %c24 = arith.constant 24 : index
    %c0_369 = arith.constant 0 : index
    %c0_370 = arith.constant 0 : index
    %683 = vector.load %arg2[%c24, %c0_369, %c0_370] : memref<224x32x128xf32, #tpu.memory_space<vmem>>, vector<1x32x128xf32>
    %684 = vector.shape_cast %683 : vector<1x32x128xf32> to vector<32x128xf32>
    %685 = arith.mulf %5, %684 : vector<32x128xf32>
    %c56 = arith.constant 56 : index
    %c0_371 = arith.constant 0 : index
    %c0_372 = arith.constant 0 : index
    %686 = vector.load %arg2[%c56, %c0_371, %c0_372] : memref<224x32x128xf32, #tpu.memory_space<vmem>>, vector<1x32x128xf32>
    %687 = vector.shape_cast %686 : vector<1x32x128xf32> to vector<32x128xf32>
    %688 = arith.addf %685, %687 : vector<32x128xf32>
    %cst_373 = arith.constant 0.000000e+00 : f32
    %689 = vector.broadcast %cst_373 : f32 to vector<32x128xf32>
    %690 = arith.maximumf %688, %689 : vector<32x128xf32>
    %c88 = arith.constant 88 : index
    %c0_374 = arith.constant 0 : index
    %c0_375 = arith.constant 0 : index
    %691 = vector.load %arg2[%c88, %c0_374, %c0_375] : memref<224x32x128xf32, #tpu.memory_space<vmem>>, vector<1x32x128xf32>
    %692 = vector.shape_cast %691 : vector<1x32x128xf32> to vector<32x128xf32>
    %693 = arith.mulf %690, %692 : vector<32x128xf32>
    %694 = arith.addf %666, %693 : vector<32x128xf32>
    %c120 = arith.constant 120 : index
    %c0_376 = arith.constant 0 : index
    %c0_377 = arith.constant 0 : index
    %695 = vector.load %arg2[%c120, %c0_376, %c0_377] : memref<224x32x128xf32, #tpu.memory_space<vmem>>, vector<1x32x128xf32>
    %696 = vector.shape_cast %695 : vector<1x32x128xf32> to vector<32x128xf32>
    %697 = arith.mulf %690, %696 : vector<32x128xf32>
    %698 = arith.addf %670, %697 : vector<32x128xf32>
    %c152 = arith.constant 152 : index
    %c0_378 = arith.constant 0 : index
    %c0_379 = arith.constant 0 : index
    %699 = vector.load %arg2[%c152, %c0_378, %c0_379] : memref<224x32x128xf32, #tpu.memory_space<vmem>>, vector<1x32x128xf32>
    %700 = vector.shape_cast %699 : vector<1x32x128xf32> to vector<32x128xf32>
    %701 = arith.mulf %690, %700 : vector<32x128xf32>
    %702 = arith.addf %674, %701 : vector<32x128xf32>
    %c184 = arith.constant 184 : index
    %c0_380 = arith.constant 0 : index
    %c0_381 = arith.constant 0 : index
    %703 = vector.load %arg2[%c184, %c0_380, %c0_381] : memref<224x32x128xf32, #tpu.memory_space<vmem>>, vector<1x32x128xf32>
    %704 = vector.shape_cast %703 : vector<1x32x128xf32> to vector<32x128xf32>
    %705 = arith.mulf %690, %704 : vector<32x128xf32>
    %706 = arith.addf %678, %705 : vector<32x128xf32>
    %c216 = arith.constant 216 : index
    %c0_382 = arith.constant 0 : index
    %c0_383 = arith.constant 0 : index
    %707 = vector.load %arg2[%c216, %c0_382, %c0_383] : memref<224x32x128xf32, #tpu.memory_space<vmem>>, vector<1x32x128xf32>
    %708 = vector.shape_cast %707 : vector<1x32x128xf32> to vector<32x128xf32>
    %709 = arith.mulf %690, %708 : vector<32x128xf32>
    %710 = arith.addf %682, %709 : vector<32x128xf32>
    %c25 = arith.constant 25 : index
    %c0_384 = arith.constant 0 : index
    %c0_385 = arith.constant 0 : index
    %711 = vector.load %arg2[%c25, %c0_384, %c0_385] : memref<224x32x128xf32, #tpu.memory_space<vmem>>, vector<1x32x128xf32>
    %712 = vector.shape_cast %711 : vector<1x32x128xf32> to vector<32x128xf32>
    %713 = arith.mulf %5, %712 : vector<32x128xf32>
    %c57 = arith.constant 57 : index
    %c0_386 = arith.constant 0 : index
    %c0_387 = arith.constant 0 : index
    %714 = vector.load %arg2[%c57, %c0_386, %c0_387] : memref<224x32x128xf32, #tpu.memory_space<vmem>>, vector<1x32x128xf32>
    %715 = vector.shape_cast %714 : vector<1x32x128xf32> to vector<32x128xf32>
    %716 = arith.addf %713, %715 : vector<32x128xf32>
    %cst_388 = arith.constant 0.000000e+00 : f32
    %717 = vector.broadcast %cst_388 : f32 to vector<32x128xf32>
    %718 = arith.maximumf %716, %717 : vector<32x128xf32>
    %c89 = arith.constant 89 : index
    %c0_389 = arith.constant 0 : index
    %c0_390 = arith.constant 0 : index
    %719 = vector.load %arg2[%c89, %c0_389, %c0_390] : memref<224x32x128xf32, #tpu.memory_space<vmem>>, vector<1x32x128xf32>
    %720 = vector.shape_cast %719 : vector<1x32x128xf32> to vector<32x128xf32>
    %721 = arith.mulf %718, %720 : vector<32x128xf32>
    %722 = arith.addf %694, %721 : vector<32x128xf32>
    %c121 = arith.constant 121 : index
    %c0_391 = arith.constant 0 : index
    %c0_392 = arith.constant 0 : index
    %723 = vector.load %arg2[%c121, %c0_391, %c0_392] : memref<224x32x128xf32, #tpu.memory_space<vmem>>, vector<1x32x128xf32>
    %724 = vector.shape_cast %723 : vector<1x32x128xf32> to vector<32x128xf32>
    %725 = arith.mulf %718, %724 : vector<32x128xf32>
    %726 = arith.addf %698, %725 : vector<32x128xf32>
    %c153 = arith.constant 153 : index
    %c0_393 = arith.constant 0 : index
    %c0_394 = arith.constant 0 : index
    %727 = vector.load %arg2[%c153, %c0_393, %c0_394] : memref<224x32x128xf32, #tpu.memory_space<vmem>>, vector<1x32x128xf32>
    %728 = vector.shape_cast %727 : vector<1x32x128xf32> to vector<32x128xf32>
    %729 = arith.mulf %718, %728 : vector<32x128xf32>
    %730 = arith.addf %702, %729 : vector<32x128xf32>
    %c185 = arith.constant 185 : index
    %c0_395 = arith.constant 0 : index
    %c0_396 = arith.constant 0 : index
    %731 = vector.load %arg2[%c185, %c0_395, %c0_396] : memref<224x32x128xf32, #tpu.memory_space<vmem>>, vector<1x32x128xf32>
    %732 = vector.shape_cast %731 : vector<1x32x128xf32> to vector<32x128xf32>
    %733 = arith.mulf %718, %732 : vector<32x128xf32>
    %734 = arith.addf %706, %733 : vector<32x128xf32>
    %c217 = arith.constant 217 : index
    %c0_397 = arith.constant 0 : index
    %c0_398 = arith.constant 0 : index
    %735 = vector.load %arg2[%c217, %c0_397, %c0_398] : memref<224x32x128xf32, #tpu.memory_space<vmem>>, vector<1x32x128xf32>
    %736 = vector.shape_cast %735 : vector<1x32x128xf32> to vector<32x128xf32>
    %737 = arith.mulf %718, %736 : vector<32x128xf32>
    %738 = arith.addf %710, %737 : vector<32x128xf32>
    %c26 = arith.constant 26 : index
    %c0_399 = arith.constant 0 : index
    %c0_400 = arith.constant 0 : index
    %739 = vector.load %arg2[%c26, %c0_399, %c0_400] : memref<224x32x128xf32, #tpu.memory_space<vmem>>, vector<1x32x128xf32>
    %740 = vector.shape_cast %739 : vector<1x32x128xf32> to vector<32x128xf32>
    %741 = arith.mulf %5, %740 : vector<32x128xf32>
    %c58 = arith.constant 58 : index
    %c0_401 = arith.constant 0 : index
    %c0_402 = arith.constant 0 : index
    %742 = vector.load %arg2[%c58, %c0_401, %c0_402] : memref<224x32x128xf32, #tpu.memory_space<vmem>>, vector<1x32x128xf32>
    %743 = vector.shape_cast %742 : vector<1x32x128xf32> to vector<32x128xf32>
    %744 = arith.addf %741, %743 : vector<32x128xf32>
    %cst_403 = arith.constant 0.000000e+00 : f32
    %745 = vector.broadcast %cst_403 : f32 to vector<32x128xf32>
    %746 = arith.maximumf %744, %745 : vector<32x128xf32>
    %c90 = arith.constant 90 : index
    %c0_404 = arith.constant 0 : index
    %c0_405 = arith.constant 0 : index
    %747 = vector.load %arg2[%c90, %c0_404, %c0_405] : memref<224x32x128xf32, #tpu.memory_space<vmem>>, vector<1x32x128xf32>
    %748 = vector.shape_cast %747 : vector<1x32x128xf32> to vector<32x128xf32>
    %749 = arith.mulf %746, %748 : vector<32x128xf32>
    %750 = arith.addf %722, %749 : vector<32x128xf32>
    %c122 = arith.constant 122 : index
    %c0_406 = arith.constant 0 : index
    %c0_407 = arith.constant 0 : index
    %751 = vector.load %arg2[%c122, %c0_406, %c0_407] : memref<224x32x128xf32, #tpu.memory_space<vmem>>, vector<1x32x128xf32>
    %752 = vector.shape_cast %751 : vector<1x32x128xf32> to vector<32x128xf32>
    %753 = arith.mulf %746, %752 : vector<32x128xf32>
    %754 = arith.addf %726, %753 : vector<32x128xf32>
    %c154 = arith.constant 154 : index
    %c0_408 = arith.constant 0 : index
    %c0_409 = arith.constant 0 : index
    %755 = vector.load %arg2[%c154, %c0_408, %c0_409] : memref<224x32x128xf32, #tpu.memory_space<vmem>>, vector<1x32x128xf32>
    %756 = vector.shape_cast %755 : vector<1x32x128xf32> to vector<32x128xf32>
    %757 = arith.mulf %746, %756 : vector<32x128xf32>
    %758 = arith.addf %730, %757 : vector<32x128xf32>
    %c186 = arith.constant 186 : index
    %c0_410 = arith.constant 0 : index
    %c0_411 = arith.constant 0 : index
    %759 = vector.load %arg2[%c186, %c0_410, %c0_411] : memref<224x32x128xf32, #tpu.memory_space<vmem>>, vector<1x32x128xf32>
    %760 = vector.shape_cast %759 : vector<1x32x128xf32> to vector<32x128xf32>
    %761 = arith.mulf %746, %760 : vector<32x128xf32>
    %762 = arith.addf %734, %761 : vector<32x128xf32>
    %c218 = arith.constant 218 : index
    %c0_412 = arith.constant 0 : index
    %c0_413 = arith.constant 0 : index
    %763 = vector.load %arg2[%c218, %c0_412, %c0_413] : memref<224x32x128xf32, #tpu.memory_space<vmem>>, vector<1x32x128xf32>
    %764 = vector.shape_cast %763 : vector<1x32x128xf32> to vector<32x128xf32>
    %765 = arith.mulf %746, %764 : vector<32x128xf32>
    %766 = arith.addf %738, %765 : vector<32x128xf32>
    %c27 = arith.constant 27 : index
    %c0_414 = arith.constant 0 : index
    %c0_415 = arith.constant 0 : index
    %767 = vector.load %arg2[%c27, %c0_414, %c0_415] : memref<224x32x128xf32, #tpu.memory_space<vmem>>, vector<1x32x128xf32>
    %768 = vector.shape_cast %767 : vector<1x32x128xf32> to vector<32x128xf32>
    %769 = arith.mulf %5, %768 : vector<32x128xf32>
    %c59 = arith.constant 59 : index
    %c0_416 = arith.constant 0 : index
    %c0_417 = arith.constant 0 : index
    %770 = vector.load %arg2[%c59, %c0_416, %c0_417] : memref<224x32x128xf32, #tpu.memory_space<vmem>>, vector<1x32x128xf32>
    %771 = vector.shape_cast %770 : vector<1x32x128xf32> to vector<32x128xf32>
    %772 = arith.addf %769, %771 : vector<32x128xf32>
    %cst_418 = arith.constant 0.000000e+00 : f32
    %773 = vector.broadcast %cst_418 : f32 to vector<32x128xf32>
    %774 = arith.maximumf %772, %773 : vector<32x128xf32>
    %c91 = arith.constant 91 : index
    %c0_419 = arith.constant 0 : index
    %c0_420 = arith.constant 0 : index
    %775 = vector.load %arg2[%c91, %c0_419, %c0_420] : memref<224x32x128xf32, #tpu.memory_space<vmem>>, vector<1x32x128xf32>
    %776 = vector.shape_cast %775 : vector<1x32x128xf32> to vector<32x128xf32>
    %777 = arith.mulf %774, %776 : vector<32x128xf32>
    %778 = arith.addf %750, %777 : vector<32x128xf32>
    %c123 = arith.constant 123 : index
    %c0_421 = arith.constant 0 : index
    %c0_422 = arith.constant 0 : index
    %779 = vector.load %arg2[%c123, %c0_421, %c0_422] : memref<224x32x128xf32, #tpu.memory_space<vmem>>, vector<1x32x128xf32>
    %780 = vector.shape_cast %779 : vector<1x32x128xf32> to vector<32x128xf32>
    %781 = arith.mulf %774, %780 : vector<32x128xf32>
    %782 = arith.addf %754, %781 : vector<32x128xf32>
    %c155 = arith.constant 155 : index
    %c0_423 = arith.constant 0 : index
    %c0_424 = arith.constant 0 : index
    %783 = vector.load %arg2[%c155, %c0_423, %c0_424] : memref<224x32x128xf32, #tpu.memory_space<vmem>>, vector<1x32x128xf32>
    %784 = vector.shape_cast %783 : vector<1x32x128xf32> to vector<32x128xf32>
    %785 = arith.mulf %774, %784 : vector<32x128xf32>
    %786 = arith.addf %758, %785 : vector<32x128xf32>
    %c187 = arith.constant 187 : index
    %c0_425 = arith.constant 0 : index
    %c0_426 = arith.constant 0 : index
    %787 = vector.load %arg2[%c187, %c0_425, %c0_426] : memref<224x32x128xf32, #tpu.memory_space<vmem>>, vector<1x32x128xf32>
    %788 = vector.shape_cast %787 : vector<1x32x128xf32> to vector<32x128xf32>
    %789 = arith.mulf %774, %788 : vector<32x128xf32>
    %790 = arith.addf %762, %789 : vector<32x128xf32>
    %c219 = arith.constant 219 : index
    %c0_427 = arith.constant 0 : index
    %c0_428 = arith.constant 0 : index
    %791 = vector.load %arg2[%c219, %c0_427, %c0_428] : memref<224x32x128xf32, #tpu.memory_space<vmem>>, vector<1x32x128xf32>
    %792 = vector.shape_cast %791 : vector<1x32x128xf32> to vector<32x128xf32>
    %793 = arith.mulf %774, %792 : vector<32x128xf32>
    %794 = arith.addf %766, %793 : vector<32x128xf32>
    %c28 = arith.constant 28 : index
    %c0_429 = arith.constant 0 : index
    %c0_430 = arith.constant 0 : index
    %795 = vector.load %arg2[%c28, %c0_429, %c0_430] : memref<224x32x128xf32, #tpu.memory_space<vmem>>, vector<1x32x128xf32>
    %796 = vector.shape_cast %795 : vector<1x32x128xf32> to vector<32x128xf32>
    %797 = arith.mulf %5, %796 : vector<32x128xf32>
    %c60 = arith.constant 60 : index
    %c0_431 = arith.constant 0 : index
    %c0_432 = arith.constant 0 : index
    %798 = vector.load %arg2[%c60, %c0_431, %c0_432] : memref<224x32x128xf32, #tpu.memory_space<vmem>>, vector<1x32x128xf32>
    %799 = vector.shape_cast %798 : vector<1x32x128xf32> to vector<32x128xf32>
    %800 = arith.addf %797, %799 : vector<32x128xf32>
    %cst_433 = arith.constant 0.000000e+00 : f32
    %801 = vector.broadcast %cst_433 : f32 to vector<32x128xf32>
    %802 = arith.maximumf %800, %801 : vector<32x128xf32>
    %c92 = arith.constant 92 : index
    %c0_434 = arith.constant 0 : index
    %c0_435 = arith.constant 0 : index
    %803 = vector.load %arg2[%c92, %c0_434, %c0_435] : memref<224x32x128xf32, #tpu.memory_space<vmem>>, vector<1x32x128xf32>
    %804 = vector.shape_cast %803 : vector<1x32x128xf32> to vector<32x128xf32>
    %805 = arith.mulf %802, %804 : vector<32x128xf32>
    %806 = arith.addf %778, %805 : vector<32x128xf32>
    %c124 = arith.constant 124 : index
    %c0_436 = arith.constant 0 : index
    %c0_437 = arith.constant 0 : index
    %807 = vector.load %arg2[%c124, %c0_436, %c0_437] : memref<224x32x128xf32, #tpu.memory_space<vmem>>, vector<1x32x128xf32>
    %808 = vector.shape_cast %807 : vector<1x32x128xf32> to vector<32x128xf32>
    %809 = arith.mulf %802, %808 : vector<32x128xf32>
    %810 = arith.addf %782, %809 : vector<32x128xf32>
    %c156 = arith.constant 156 : index
    %c0_438 = arith.constant 0 : index
    %c0_439 = arith.constant 0 : index
    %811 = vector.load %arg2[%c156, %c0_438, %c0_439] : memref<224x32x128xf32, #tpu.memory_space<vmem>>, vector<1x32x128xf32>
    %812 = vector.shape_cast %811 : vector<1x32x128xf32> to vector<32x128xf32>
    %813 = arith.mulf %802, %812 : vector<32x128xf32>
    %814 = arith.addf %786, %813 : vector<32x128xf32>
    %c188 = arith.constant 188 : index
    %c0_440 = arith.constant 0 : index
    %c0_441 = arith.constant 0 : index
    %815 = vector.load %arg2[%c188, %c0_440, %c0_441] : memref<224x32x128xf32, #tpu.memory_space<vmem>>, vector<1x32x128xf32>
    %816 = vector.shape_cast %815 : vector<1x32x128xf32> to vector<32x128xf32>
    %817 = arith.mulf %802, %816 : vector<32x128xf32>
    %818 = arith.addf %790, %817 : vector<32x128xf32>
    %c220 = arith.constant 220 : index
    %c0_442 = arith.constant 0 : index
    %c0_443 = arith.constant 0 : index
    %819 = vector.load %arg2[%c220, %c0_442, %c0_443] : memref<224x32x128xf32, #tpu.memory_space<vmem>>, vector<1x32x128xf32>
    %820 = vector.shape_cast %819 : vector<1x32x128xf32> to vector<32x128xf32>
    %821 = arith.mulf %802, %820 : vector<32x128xf32>
    %822 = arith.addf %794, %821 : vector<32x128xf32>
    %c29 = arith.constant 29 : index
    %c0_444 = arith.constant 0 : index
    %c0_445 = arith.constant 0 : index
    %823 = vector.load %arg2[%c29, %c0_444, %c0_445] : memref<224x32x128xf32, #tpu.memory_space<vmem>>, vector<1x32x128xf32>
    %824 = vector.shape_cast %823 : vector<1x32x128xf32> to vector<32x128xf32>
    %825 = arith.mulf %5, %824 : vector<32x128xf32>
    %c61 = arith.constant 61 : index
    %c0_446 = arith.constant 0 : index
    %c0_447 = arith.constant 0 : index
    %826 = vector.load %arg2[%c61, %c0_446, %c0_447] : memref<224x32x128xf32, #tpu.memory_space<vmem>>, vector<1x32x128xf32>
    %827 = vector.shape_cast %826 : vector<1x32x128xf32> to vector<32x128xf32>
    %828 = arith.addf %825, %827 : vector<32x128xf32>
    %cst_448 = arith.constant 0.000000e+00 : f32
    %829 = vector.broadcast %cst_448 : f32 to vector<32x128xf32>
    %830 = arith.maximumf %828, %829 : vector<32x128xf32>
    %c93 = arith.constant 93 : index
    %c0_449 = arith.constant 0 : index
    %c0_450 = arith.constant 0 : index
    %831 = vector.load %arg2[%c93, %c0_449, %c0_450] : memref<224x32x128xf32, #tpu.memory_space<vmem>>, vector<1x32x128xf32>
    %832 = vector.shape_cast %831 : vector<1x32x128xf32> to vector<32x128xf32>
    %833 = arith.mulf %830, %832 : vector<32x128xf32>
    %834 = arith.addf %806, %833 : vector<32x128xf32>
    %c125 = arith.constant 125 : index
    %c0_451 = arith.constant 0 : index
    %c0_452 = arith.constant 0 : index
    %835 = vector.load %arg2[%c125, %c0_451, %c0_452] : memref<224x32x128xf32, #tpu.memory_space<vmem>>, vector<1x32x128xf32>
    %836 = vector.shape_cast %835 : vector<1x32x128xf32> to vector<32x128xf32>
    %837 = arith.mulf %830, %836 : vector<32x128xf32>
    %838 = arith.addf %810, %837 : vector<32x128xf32>
    %c157 = arith.constant 157 : index
    %c0_453 = arith.constant 0 : index
    %c0_454 = arith.constant 0 : index
    %839 = vector.load %arg2[%c157, %c0_453, %c0_454] : memref<224x32x128xf32, #tpu.memory_space<vmem>>, vector<1x32x128xf32>
    %840 = vector.shape_cast %839 : vector<1x32x128xf32> to vector<32x128xf32>
    %841 = arith.mulf %830, %840 : vector<32x128xf32>
    %842 = arith.addf %814, %841 : vector<32x128xf32>
    %c189 = arith.constant 189 : index
    %c0_455 = arith.constant 0 : index
    %c0_456 = arith.constant 0 : index
    %843 = vector.load %arg2[%c189, %c0_455, %c0_456] : memref<224x32x128xf32, #tpu.memory_space<vmem>>, vector<1x32x128xf32>
    %844 = vector.shape_cast %843 : vector<1x32x128xf32> to vector<32x128xf32>
    %845 = arith.mulf %830, %844 : vector<32x128xf32>
    %846 = arith.addf %818, %845 : vector<32x128xf32>
    %c221 = arith.constant 221 : index
    %c0_457 = arith.constant 0 : index
    %c0_458 = arith.constant 0 : index
    %847 = vector.load %arg2[%c221, %c0_457, %c0_458] : memref<224x32x128xf32, #tpu.memory_space<vmem>>, vector<1x32x128xf32>
    %848 = vector.shape_cast %847 : vector<1x32x128xf32> to vector<32x128xf32>
    %849 = arith.mulf %830, %848 : vector<32x128xf32>
    %850 = arith.addf %822, %849 : vector<32x128xf32>
    %c30 = arith.constant 30 : index
    %c0_459 = arith.constant 0 : index
    %c0_460 = arith.constant 0 : index
    %851 = vector.load %arg2[%c30, %c0_459, %c0_460] : memref<224x32x128xf32, #tpu.memory_space<vmem>>, vector<1x32x128xf32>
    %852 = vector.shape_cast %851 : vector<1x32x128xf32> to vector<32x128xf32>
    %853 = arith.mulf %5, %852 : vector<32x128xf32>
    %c62 = arith.constant 62 : index
    %c0_461 = arith.constant 0 : index
    %c0_462 = arith.constant 0 : index
    %854 = vector.load %arg2[%c62, %c0_461, %c0_462] : memref<224x32x128xf32, #tpu.memory_space<vmem>>, vector<1x32x128xf32>
    %855 = vector.shape_cast %854 : vector<1x32x128xf32> to vector<32x128xf32>
    %856 = arith.addf %853, %855 : vector<32x128xf32>
    %cst_463 = arith.constant 0.000000e+00 : f32
    %857 = vector.broadcast %cst_463 : f32 to vector<32x128xf32>
    %858 = arith.maximumf %856, %857 : vector<32x128xf32>
    %c94 = arith.constant 94 : index
    %c0_464 = arith.constant 0 : index
    %c0_465 = arith.constant 0 : index
    %859 = vector.load %arg2[%c94, %c0_464, %c0_465] : memref<224x32x128xf32, #tpu.memory_space<vmem>>, vector<1x32x128xf32>
    %860 = vector.shape_cast %859 : vector<1x32x128xf32> to vector<32x128xf32>
    %861 = arith.mulf %858, %860 : vector<32x128xf32>
    %862 = arith.addf %834, %861 : vector<32x128xf32>
    %c126 = arith.constant 126 : index
    %c0_466 = arith.constant 0 : index
    %c0_467 = arith.constant 0 : index
    %863 = vector.load %arg2[%c126, %c0_466, %c0_467] : memref<224x32x128xf32, #tpu.memory_space<vmem>>, vector<1x32x128xf32>
    %864 = vector.shape_cast %863 : vector<1x32x128xf32> to vector<32x128xf32>
    %865 = arith.mulf %858, %864 : vector<32x128xf32>
    %866 = arith.addf %838, %865 : vector<32x128xf32>
    %c158 = arith.constant 158 : index
    %c0_468 = arith.constant 0 : index
    %c0_469 = arith.constant 0 : index
    %867 = vector.load %arg2[%c158, %c0_468, %c0_469] : memref<224x32x128xf32, #tpu.memory_space<vmem>>, vector<1x32x128xf32>
    %868 = vector.shape_cast %867 : vector<1x32x128xf32> to vector<32x128xf32>
    %869 = arith.mulf %858, %868 : vector<32x128xf32>
    %870 = arith.addf %842, %869 : vector<32x128xf32>
    %c190 = arith.constant 190 : index
    %c0_470 = arith.constant 0 : index
    %c0_471 = arith.constant 0 : index
    %871 = vector.load %arg2[%c190, %c0_470, %c0_471] : memref<224x32x128xf32, #tpu.memory_space<vmem>>, vector<1x32x128xf32>
    %872 = vector.shape_cast %871 : vector<1x32x128xf32> to vector<32x128xf32>
    %873 = arith.mulf %858, %872 : vector<32x128xf32>
    %874 = arith.addf %846, %873 : vector<32x128xf32>
    %c222 = arith.constant 222 : index
    %c0_472 = arith.constant 0 : index
    %c0_473 = arith.constant 0 : index
    %875 = vector.load %arg2[%c222, %c0_472, %c0_473] : memref<224x32x128xf32, #tpu.memory_space<vmem>>, vector<1x32x128xf32>
    %876 = vector.shape_cast %875 : vector<1x32x128xf32> to vector<32x128xf32>
    %877 = arith.mulf %858, %876 : vector<32x128xf32>
    %878 = arith.addf %850, %877 : vector<32x128xf32>
    %c31 = arith.constant 31 : index
    %c0_474 = arith.constant 0 : index
    %c0_475 = arith.constant 0 : index
    %879 = vector.load %arg2[%c31, %c0_474, %c0_475] : memref<224x32x128xf32, #tpu.memory_space<vmem>>, vector<1x32x128xf32>
    %880 = vector.shape_cast %879 : vector<1x32x128xf32> to vector<32x128xf32>
    %881 = arith.mulf %5, %880 : vector<32x128xf32>
    %c63 = arith.constant 63 : index
    %c0_476 = arith.constant 0 : index
    %c0_477 = arith.constant 0 : index
    %882 = vector.load %arg2[%c63, %c0_476, %c0_477] : memref<224x32x128xf32, #tpu.memory_space<vmem>>, vector<1x32x128xf32>
    %883 = vector.shape_cast %882 : vector<1x32x128xf32> to vector<32x128xf32>
    %884 = arith.addf %881, %883 : vector<32x128xf32>
    %cst_478 = arith.constant 0.000000e+00 : f32
    %885 = vector.broadcast %cst_478 : f32 to vector<32x128xf32>
    %886 = arith.maximumf %884, %885 : vector<32x128xf32>
    %c95 = arith.constant 95 : index
    %c0_479 = arith.constant 0 : index
    %c0_480 = arith.constant 0 : index
    %887 = vector.load %arg2[%c95, %c0_479, %c0_480] : memref<224x32x128xf32, #tpu.memory_space<vmem>>, vector<1x32x128xf32>
    %888 = vector.shape_cast %887 : vector<1x32x128xf32> to vector<32x128xf32>
    %889 = arith.mulf %886, %888 : vector<32x128xf32>
    %890 = arith.addf %862, %889 : vector<32x128xf32>
    %c127 = arith.constant 127 : index
    %c0_481 = arith.constant 0 : index
    %c0_482 = arith.constant 0 : index
    %891 = vector.load %arg2[%c127, %c0_481, %c0_482] : memref<224x32x128xf32, #tpu.memory_space<vmem>>, vector<1x32x128xf32>
    %892 = vector.shape_cast %891 : vector<1x32x128xf32> to vector<32x128xf32>
    %893 = arith.mulf %886, %892 : vector<32x128xf32>
    %894 = arith.addf %866, %893 : vector<32x128xf32>
    %c159 = arith.constant 159 : index
    %c0_483 = arith.constant 0 : index
    %c0_484 = arith.constant 0 : index
    %895 = vector.load %arg2[%c159, %c0_483, %c0_484] : memref<224x32x128xf32, #tpu.memory_space<vmem>>, vector<1x32x128xf32>
    %896 = vector.shape_cast %895 : vector<1x32x128xf32> to vector<32x128xf32>
    %897 = arith.mulf %886, %896 : vector<32x128xf32>
    %898 = arith.addf %870, %897 : vector<32x128xf32>
    %c191 = arith.constant 191 : index
    %c0_485 = arith.constant 0 : index
    %c0_486 = arith.constant 0 : index
    %899 = vector.load %arg2[%c191, %c0_485, %c0_486] : memref<224x32x128xf32, #tpu.memory_space<vmem>>, vector<1x32x128xf32>
    %900 = vector.shape_cast %899 : vector<1x32x128xf32> to vector<32x128xf32>
    %901 = arith.mulf %886, %900 : vector<32x128xf32>
    %902 = arith.addf %874, %901 : vector<32x128xf32>
    %c223 = arith.constant 223 : index
    %c0_487 = arith.constant 0 : index
    %c0_488 = arith.constant 0 : index
    %903 = vector.load %arg2[%c223, %c0_487, %c0_488] : memref<224x32x128xf32, #tpu.memory_space<vmem>>, vector<1x32x128xf32>
    %904 = vector.shape_cast %903 : vector<1x32x128xf32> to vector<32x128xf32>
    %905 = arith.mulf %886, %904 : vector<32x128xf32>
    %906 = arith.addf %878, %905 : vector<32x128xf32>
    %c0_489 = arith.constant 0 : index
    %c0_490 = arith.constant 0 : index
    %c0_491 = arith.constant 0 : index
    %907 = vector.load %arg3[%c0_489, %c0_490, %c0_491] : memref<5x32x128xf32, #tpu.memory_space<vmem>>, vector<1x32x128xf32>
    %908 = vector.shape_cast %907 : vector<1x32x128xf32> to vector<32x128xf32>
    %909 = arith.addf %890, %908 : vector<32x128xf32>
    %cst_492 = arith.constant 0.000000e+00 : f32
    %910 = vector.broadcast %cst_492 : f32 to vector<32x128xf32>
    %911 = arith.maximumf %909, %910 : vector<32x128xf32>
    %912 = arith.mulf %911, %0 : vector<32x128xf32>
    %cst_493 = arith.constant dense<0.000000e+00> : vector<32xf32>
    %913 = vector.multi_reduction <add>, %912, %cst_493 [1] : vector<32x128xf32> to vector<32xf32>
    %914 = vector.shape_cast %913 : vector<32xf32> to vector<32x1xf32>
    %c0_494 = arith.constant 0 : index
    %c0_495 = arith.constant 0 : index
    %c0_496 = arith.constant 0 : index
    %915 = vector.load %arg5[%c0_494, %c0_495, %c0_496] : memref<5x32x64xf32, #tpu.memory_space<vmem>>, vector<1x32x64xf32>
    %916 = vector.shape_cast %915 : vector<1x32x64xf32> to vector<32x64xf32>
    %917 = vector.broadcast %914 : vector<32x1xf32> to vector<32x64xf32>
    %918 = arith.mulf %917, %916 : vector<32x64xf32>
    %919 = arith.addf %1, %918 : vector<32x64xf32>
    %c1_497 = arith.constant 1 : index
    %c0_498 = arith.constant 0 : index
    %c0_499 = arith.constant 0 : index
    %920 = vector.load %arg3[%c1_497, %c0_498, %c0_499] : memref<5x32x128xf32, #tpu.memory_space<vmem>>, vector<1x32x128xf32>
    %921 = vector.shape_cast %920 : vector<1x32x128xf32> to vector<32x128xf32>
    %922 = arith.addf %894, %921 : vector<32x128xf32>
    %cst_500 = arith.constant 0.000000e+00 : f32
    %923 = vector.broadcast %cst_500 : f32 to vector<32x128xf32>
    %924 = arith.maximumf %922, %923 : vector<32x128xf32>
    %925 = arith.mulf %924, %0 : vector<32x128xf32>
    %cst_501 = arith.constant dense<0.000000e+00> : vector<32xf32>
    %926 = vector.multi_reduction <add>, %925, %cst_501 [1] : vector<32x128xf32> to vector<32xf32>
    %927 = vector.shape_cast %926 : vector<32xf32> to vector<32x1xf32>
    %c1_502 = arith.constant 1 : index
    %c0_503 = arith.constant 0 : index
    %c0_504 = arith.constant 0 : index
    %928 = vector.load %arg5[%c1_502, %c0_503, %c0_504] : memref<5x32x64xf32, #tpu.memory_space<vmem>>, vector<1x32x64xf32>
    %929 = vector.shape_cast %928 : vector<1x32x64xf32> to vector<32x64xf32>
    %930 = vector.broadcast %927 : vector<32x1xf32> to vector<32x64xf32>
    %931 = arith.mulf %930, %929 : vector<32x64xf32>
    %932 = arith.addf %919, %931 : vector<32x64xf32>
    %c2_505 = arith.constant 2 : index
    %c0_506 = arith.constant 0 : index
    %c0_507 = arith.constant 0 : index
    %933 = vector.load %arg3[%c2_505, %c0_506, %c0_507] : memref<5x32x128xf32, #tpu.memory_space<vmem>>, vector<1x32x128xf32>
    %934 = vector.shape_cast %933 : vector<1x32x128xf32> to vector<32x128xf32>
    %935 = arith.addf %898, %934 : vector<32x128xf32>
    %cst_508 = arith.constant 0.000000e+00 : f32
    %936 = vector.broadcast %cst_508 : f32 to vector<32x128xf32>
    %937 = arith.maximumf %935, %936 : vector<32x128xf32>
    %938 = arith.mulf %937, %0 : vector<32x128xf32>
    %cst_509 = arith.constant dense<0.000000e+00> : vector<32xf32>
    %939 = vector.multi_reduction <add>, %938, %cst_509 [1] : vector<32x128xf32> to vector<32xf32>
    %940 = vector.shape_cast %939 : vector<32xf32> to vector<32x1xf32>
    %c2_510 = arith.constant 2 : index
    %c0_511 = arith.constant 0 : index
    %c0_512 = arith.constant 0 : index
    %941 = vector.load %arg5[%c2_510, %c0_511, %c0_512] : memref<5x32x64xf32, #tpu.memory_space<vmem>>, vector<1x32x64xf32>
    %942 = vector.shape_cast %941 : vector<1x32x64xf32> to vector<32x64xf32>
    %943 = vector.broadcast %940 : vector<32x1xf32> to vector<32x64xf32>
    %944 = arith.mulf %943, %942 : vector<32x64xf32>
    %945 = arith.addf %932, %944 : vector<32x64xf32>
    %c3_513 = arith.constant 3 : index
    %c0_514 = arith.constant 0 : index
    %c0_515 = arith.constant 0 : index
    %946 = vector.load %arg3[%c3_513, %c0_514, %c0_515] : memref<5x32x128xf32, #tpu.memory_space<vmem>>, vector<1x32x128xf32>
    %947 = vector.shape_cast %946 : vector<1x32x128xf32> to vector<32x128xf32>
    %948 = arith.addf %902, %947 : vector<32x128xf32>
    %cst_516 = arith.constant 0.000000e+00 : f32
    %949 = vector.broadcast %cst_516 : f32 to vector<32x128xf32>
    %950 = arith.maximumf %948, %949 : vector<32x128xf32>
    %951 = arith.mulf %950, %0 : vector<32x128xf32>
    %cst_517 = arith.constant dense<0.000000e+00> : vector<32xf32>
    %952 = vector.multi_reduction <add>, %951, %cst_517 [1] : vector<32x128xf32> to vector<32xf32>
    %953 = vector.shape_cast %952 : vector<32xf32> to vector<32x1xf32>
    %c3_518 = arith.constant 3 : index
    %c0_519 = arith.constant 0 : index
    %c0_520 = arith.constant 0 : index
    %954 = vector.load %arg5[%c3_518, %c0_519, %c0_520] : memref<5x32x64xf32, #tpu.memory_space<vmem>>, vector<1x32x64xf32>
    %955 = vector.shape_cast %954 : vector<1x32x64xf32> to vector<32x64xf32>
    %956 = vector.broadcast %953 : vector<32x1xf32> to vector<32x64xf32>
    %957 = arith.mulf %956, %955 : vector<32x64xf32>
    %958 = arith.addf %945, %957 : vector<32x64xf32>
    %c4_521 = arith.constant 4 : index
    %c0_522 = arith.constant 0 : index
    %c0_523 = arith.constant 0 : index
    %959 = vector.load %arg3[%c4_521, %c0_522, %c0_523] : memref<5x32x128xf32, #tpu.memory_space<vmem>>, vector<1x32x128xf32>
    %960 = vector.shape_cast %959 : vector<1x32x128xf32> to vector<32x128xf32>
    %961 = arith.addf %906, %960 : vector<32x128xf32>
    %cst_524 = arith.constant 0.000000e+00 : f32
    %962 = vector.broadcast %cst_524 : f32 to vector<32x128xf32>
    %963 = arith.maximumf %961, %962 : vector<32x128xf32>
    %964 = arith.mulf %963, %0 : vector<32x128xf32>
    %cst_525 = arith.constant dense<0.000000e+00> : vector<32xf32>
    %965 = vector.multi_reduction <add>, %964, %cst_525 [1] : vector<32x128xf32> to vector<32xf32>
    %966 = vector.shape_cast %965 : vector<32xf32> to vector<32x1xf32>
    %c4_526 = arith.constant 4 : index
    %c0_527 = arith.constant 0 : index
    %c0_528 = arith.constant 0 : index
    %967 = vector.load %arg5[%c4_526, %c0_527, %c0_528] : memref<5x32x64xf32, #tpu.memory_space<vmem>>, vector<1x32x64xf32>
    %968 = vector.shape_cast %967 : vector<1x32x64xf32> to vector<32x64xf32>
    %969 = vector.broadcast %966 : vector<32x1xf32> to vector<32x64xf32>
    %970 = arith.mulf %969, %968 : vector<32x64xf32>
    %971 = arith.addf %958, %970 : vector<32x64xf32>
    %cst_529 = arith.constant 0.000000e+00 : f32
    %972 = vector.broadcast %cst_529 : f32 to vector<32x64xf32>
    %973 = arith.maximumf %971, %972 : vector<32x64xf32>
    %974 = arith.index_cast %3 : i32 to index
    %c0_530 = arith.constant 0 : index
    %975 = vector.load %arg14[%974, %c0_530] : memref<32x64xf32, #tpu.memory_space<vmem>>, vector<32x64xf32>
    tpu.vector_store %arg14[%974, %c0_530], %973 {strides = array<i32>} : memref<32x64xf32, #tpu.memory_space<vmem>>, vector<32x64xf32>,
    %c1_i32 = arith.constant 1 : i32
    %c0_531 = arith.constant 0 : index
    %c0_532 = arith.constant 0 : index
    %976 = vector.load %arg14[%c0_531, %c0_532] : memref<32x64xf32, #tpu.memory_space<vmem>>, vector<32x64xf32>
    %c0_533 = arith.constant 0 : index
    %c0_534 = arith.constant 0 : index
    %977 = vector.load %arg7[%c0_533, %c0_534] : memref<64x256xf32, #tpu.memory_space<vmem>>, vector<64x256xf32>
    %cst_535 = arith.constant dense<0.000000e+00> : vector<32x256xf32>
    %978 = tpu.matmul %976, %977, %cst_535 {dimension_numbers = #tpu.dot_dimension_numbers<[1], [0], [0], [1], [0, 0, 1, 1], [], []>} : vector<32x64xf32>, vector<64x256xf32>, vector<32x256xf32> -> vector<32x256xf32>
    %c0_536 = arith.constant 0 : index
    %c0_537 = arith.constant 0 : index
    %979 = vector.load %arg8[%c0_536, %c0_537] : memref<1x256xf32, #tpu.memory_space<vmem>>, vector<1x256xf32>
    %980 = vector.broadcast %979 : vector<1x256xf32> to vector<32x256xf32>
    %981 = arith.addf %978, %980 : vector<32x256xf32>
    %cst_538 = arith.constant 0.000000e+00 : f32
    %982 = vector.broadcast %cst_538 : f32 to vector<32x256xf32>
    %983 = arith.maximumf %981, %982 : vector<32x256xf32>
    %c0_539 = arith.constant 0 : index
    %c0_540 = arith.constant 0 : index
    %984 = vector.load %arg9[%c0_539, %c0_540] : memref<256x64xf32, #tpu.memory_space<vmem>>, vector<256x64xf32>
    %cst_541 = arith.constant dense<0.000000e+00> : vector<32x64xf32>
    %985 = tpu.matmul %983, %984, %cst_541 {dimension_numbers = #tpu.dot_dimension_numbers<[1], [0], [0], [1], [0, 0, 1, 1], [], []>} : vector<32x256xf32>, vector<256x64xf32>, vector<32x64xf32> -> vector<32x64xf32>
    %c0_542 = arith.constant 0 : index
    %c0_543 = arith.constant 0 : index
    %986 = vector.load %arg10[%c0_542, %c0_543] : memref<1x64xf32, #tpu.memory_space<vmem>>, vector<1x64xf32>
    %987 = vector.broadcast %986 : vector<1x64xf32> to vector<32x64xf32>
    %988 = arith.addf %985, %987 : vector<32x64xf32>
    %cst_544 = arith.constant 0.000000e+00 : f32
    %989 = vector.broadcast %cst_544 : f32 to vector<32x64xf32>
    %990 = arith.maximumf %988, %989 : vector<32x64xf32>
    %c0_545 = arith.constant 0 : index
    %c0_546 = arith.constant 0 : index
    %991 = vector.load %arg11[%c0_545, %c0_546] : memref<64x2xf32, #tpu.memory_space<vmem>>, vector<64x2xf32>
    %cst_547 = arith.constant dense<0.000000e+00> : vector<32x2xf32>
    %992 = tpu.matmul %990, %991, %cst_547 {dimension_numbers = #tpu.dot_dimension_numbers<[1], [0], [0], [1], [0, 0, 1, 1], [], []>} : vector<32x64xf32>, vector<64x2xf32>, vector<32x2xf32> -> vector<32x2xf32>
    %c0_548 = arith.constant 0 : index
    %c0_549 = arith.constant 0 : index
    %993 = vector.load %arg12[%c0_548, %c0_549] : memref<1x2xf32, #tpu.memory_space<vmem>>, vector<1x2xf32>
    %994 = vector.broadcast %993 : vector<1x2xf32> to vector<32x2xf32>
    %995 = arith.addf %992, %994 : vector<32x2xf32>
    %cst_550 = arith.constant dense<0xFF800000> : vector<32xf32>
    %996 = vector.multi_reduction <maximumf>, %995, %cst_550 [1] : vector<32x2xf32> to vector<32xf32>
    %997 = vector.shape_cast %996 : vector<32xf32> to vector<32x1xf32>
    %998 = vector.broadcast %997 : vector<32x1xf32> to vector<32x2xf32>
    %999 = arith.subf %995, %998 : vector<32x2xf32>
    %1000 = math.exp %999 : vector<32x2xf32>
    %cst_551 = arith.constant dense<0.000000e+00> : vector<32xf32>
    %1001 = vector.multi_reduction <add>, %1000, %cst_551 [1] : vector<32x2xf32> to vector<32xf32>
    %1002 = vector.shape_cast %1001 : vector<32xf32> to vector<32x1xf32>
    %1003 = vector.broadcast %1002 : vector<32x1xf32> to vector<32x2xf32>
    %1004 = arith.divf %1000, %1003 : vector<32x2xf32>
    %c0_552 = arith.constant 0 : index
    %c0_553 = arith.constant 0 : index
    %1005 = vector.load %arg13[%c0_552, %c0_553] : memref<32x2xf32, #tpu.memory_space<vmem>>, vector<32x2xf32>
    tpu.vector_store %arg13[%c0_552, %c0_553], %1004 {strides = array<i32>} : memref<32x2xf32, #tpu.memory_space<vmem>>, vector<32x2xf32>,
    return
  }
  func.func @transform_0(%arg0: i32) -> (i32, i32) {
    %c0_i32 = arith.constant 0 : i32
    %c0_i32_0 = arith.constant 0 : i32
    return %arg0, %c0_i32 : i32, i32
  }
  func.func @transform_1(%arg0: i32) -> (i32, i32, i32) {
    %c0_i32 = arith.constant 0 : i32
    %c0_i32_0 = arith.constant 0 : i32
    %c0_i32_1 = arith.constant 0 : i32
    %c0_i32_2 = arith.constant 0 : i32
    return %c0_i32, %c0_i32_0, %c0_i32_1 : i32, i32, i32
  }
  func.func @transform_2(%arg0: i32) -> (i32, i32, i32) {
    %c0_i32 = arith.constant 0 : i32
    %c0_i32_0 = arith.constant 0 : i32
    %c0_i32_1 = arith.constant 0 : i32
    %c0_i32_2 = arith.constant 0 : i32
    return %c0_i32, %c0_i32_0, %c0_i32_1 : i32, i32, i32
  }
  func.func @transform_3(%arg0: i32) -> (i32, i32) {
    %c0_i32 = arith.constant 0 : i32
    %c0_i32_0 = arith.constant 0 : i32
    %c0_i32_1 = arith.constant 0 : i32
    return %c0_i32, %c0_i32_0 : i32, i32
  }
  func.func @transform_4(%arg0: i32) -> (i32, i32, i32) {
    %c0_i32 = arith.constant 0 : i32
    %c0_i32_0 = arith.constant 0 : i32
    %c0_i32_1 = arith.constant 0 : i32
    %c0_i32_2 = arith.constant 0 : i32
    return %c0_i32, %c0_i32_0, %c0_i32_1 : i32, i32, i32
  }
  func.func @transform_5(%arg0: i32) -> (i32, i32) {
    %c0_i32 = arith.constant 0 : i32
    %c0_i32_0 = arith.constant 0 : i32
    %c0_i32_1 = arith.constant 0 : i32
    return %c0_i32, %c0_i32_0 : i32, i32
  }
  func.func @transform_6(%arg0: i32) -> (i32, i32) {
    %c0_i32 = arith.constant 0 : i32
    %c0_i32_0 = arith.constant 0 : i32
    %c0_i32_1 = arith.constant 0 : i32
    return %c0_i32, %c0_i32_0 : i32, i32
  }
  func.func @transform_7(%arg0: i32) -> (i32, i32) {
    %c0_i32 = arith.constant 0 : i32
    %c0_i32_0 = arith.constant 0 : i32
    %c0_i32_1 = arith.constant 0 : i32
    return %c0_i32, %c0_i32_0 : i32, i32
  }
  func.func @transform_8(%arg0: i32) -> (i32, i32) {
    %c0_i32 = arith.constant 0 : i32
    %c0_i32_0 = arith.constant 0 : i32
    %c0_i32_1 = arith.constant 0 : i32
    return %c0_i32, %c0_i32_0 : i32, i32
  }
  func.func @transform_9(%arg0: i32) -> (i32, i32) {
    %c0_i32 = arith.constant 0 : i32
    %c0_i32_0 = arith.constant 0 : i32
    %c0_i32_1 = arith.constant 0 : i32
    return %c0_i32, %c0_i32_0 : i32, i32
  }
  func.func @transform_10(%arg0: i32) -> (i32, i32) {
    %c0_i32 = arith.constant 0 : i32
    %c0_i32_0 = arith.constant 0 : i32
    %c0_i32_1 = arith.constant 0 : i32
    return %c0_i32, %c0_i32_0 : i32, i32
  }
  func.func @transform_11(%arg0: i32) -> (i32, i32) {
    %c0_i32 = arith.constant 0 : i32
    %c0_i32_0 = arith.constant 0 : i32
    %c0_i32_1 = arith.constant 0 : i32
    return %c0_i32, %c0_i32_0 : i32, i32
  }
  func.func @transform_12(%arg0: i32) -> (i32, i32) {
    %c0_i32 = arith.constant 0 : i32
    %c0_i32_0 = arith.constant 0 : i32
    return %arg0, %c0_i32 : i32, i32
  }
}

</mosaic_0001>

<bundles_post_ra>
// kernel: tpu_custom_call.1
= control target key start
LH: loop header
LB: loop body
LE: loop exit
PB: predicated region body
PF: predicated region fallthrough
CT: control target
= control target key end

     0   :  { %17 = vsyncpa [#allocation4], 0  ;;  %s5972_s0 = inlined_call_operand.hbm [shape: f32[32,128], index: 0, kind: input, shape index: {}]   ;;  %s5973_s1 = inlined_call_operand.hbm [shape: f32[224,32,128], index: 1, kind: input, shape index: {}]   ;;  %s5974_s2 = inlined_call_operand.hbm [shape: f32[5,32,128], index: 2, kind: input, shape index: {}]   ;;  %s5975_s3 = inlined_call_operand.hbm [shape: f32[32,128], index: 3, kind: input, shape index: {}]   ;;  %s5976_s4 = inlined_call_operand.hbm [shape: f32[5,32,64], index: 4, kind: input, shape index: {}]   ;;  %s5977_s5 = inlined_call_operand.hbm [shape: f32[32,64], index: 5, kind: input, shape index: {}]   ;;  %s5978_s6 = inlined_call_operand.hbm [shape: f32[64,256], index: 6, kind: input, shape index: {}]   ;;  %s5979_s7 = inlined_call_operand.hbm [shape: f32[1,256], index: 7, kind: input, shape index: {}]   ;;  %s5980_s8 = inlined_call_operand.vmem [shape: f32[256,64], index: 8, kind: input, shape index: {}]   ;;  %s5981_s9 = inlined_call_operand.hbm [shape: f32[1,64], index: 9, kind: input, shape index: {}]   ;;  %s5982_s10 = inlined_call_operand.vmem [shape: f32[64,2], index: 10, kind: input, shape index: {}]   ;;  %s5983_s11 = inlined_call_operand.hbm [shape: f32[1,2], index: 11, kind: input, shape index: {}]   ;;  %s5984_s12 = inlined_call_operand.vmem [shape: f32[32,2], index: 12, kind: output, shape index: {}]  }
   0x1   :  { %18 = vsyncpa [#allocation6], 0 }
   0x2   :  { %19 = vsyncpa [#allocation9], 0 }
   0x3   :  { %20 = vsyncpa [#allocation12], 0 }
   0x4   :  { %21 = vsyncpa [#allocation15], 0 }
   0x5   :  { %22 = vsyncpa [#allocation18], 0  ;;  %s3939_s21 = smov [#allocation5]   ;;  %s3940_s23 = smov [#allocation8]  }
   0x6   :  { %s40_s22 = sshll.u32 %s3939_s21, 4  ;;  %s64_s24 = sshll.u32 %s3940_s23, 4  ;;  %s41_s22 = int_to_ptr.vmem [resolvable:$true] %s40_s22  ;;  %s65_s24 = int_to_ptr.vmem [resolvable:$true] %s64_s24 }
   0x7   :  { %s3735_s25 = scalar_lea.vmem %s41_s22, 114688  ;;  %p3740_p1 = scmp.lt.s32.totalorder %s41_s22, %s41_s22 }
   0x8   :  { %p3736_p0 = scmp.ne.s32.totalorder %s41_s22, %s3735_s25  ;;  %p3741_p2 = scmp.lt.s32.totalorder %s3735_s25, %s3735_s25 }
   0xa   :  { %p3742_p3 = por %p3741_p2, %p3740_p1 }
   0xc   :  { %p3743_p4 = pnand %p3742_p3, %p3736_p0 }
   0xe   :  { %3746 = shalt.err (!%p3743_p4)
}
   0xf   :  { %s3941_s26 = smov 128   ;;  %s3942_s27 = smov 8  }
  0x10   :  { %46 = dma.hbm_to_vmem [thread:$0]  %s5973_s1, 114688, %s41_s22, [#allocation6], %s3941_s26, %s3941_s26, %s3942_s27  }
  0x11   :  { %s3755_s30 = scalar_lea.vmem %s65_s24, 512  ;;  %p3760_p6 = scmp.lt.s32.totalorder %s65_s24, %s65_s24 }
  0x12   :  { %p3756_p5 = scmp.ne.s32.totalorder %s65_s24, %s3755_s30  ;;  %p3761_p7 = scmp.lt.s32.totalorder %s3755_s30, %s3755_s30 }
  0x14   :  { %p3762_p8 = por %p3761_p7, %p3760_p6 }
  0x16   :  { %p3763_p9 = pnand %p3762_p8, %p3756_p5 }
  0x18   :  { %3766 = shalt.err (!%p3763_p9)
}
  0x19   :  { %70 = dma.hbm_to_vmem [thread:$0]  %s5975_s3, 512, %s65_s24, [#allocation9], %s3941_s26, %s3941_s26, %s3942_s27  }
  0x1a   :  { %s3943_s15 = smov [#allocation11]   ;;  %s3944_s17 = smov [#allocation14]  }
  0x1b   :  { %s88_s16 = sshll.u32 %s3943_s15, 4  ;;  %s113_s18 = sshll.u32 %s3944_s17, 4  ;;  %s89_s16 = int_to_ptr.vmem [resolvable:$true] %s88_s16  ;;  %s114_s18 = int_to_ptr.vmem [resolvable:$true] %s113_s18 }
  0x1c   :  { %s3775_s1 = scalar_lea.vmem %s89_s16, 512  ;;  %p3780_p11 = scmp.lt.s32.totalorder %s89_s16, %s89_s16 }
  0x1d   :  { %p3776_p10 = scmp.ne.s32.totalorder %s89_s16, %s3775_s1  ;;  %p3781_p12 = scmp.lt.s32.totalorder %s3775_s1, %s3775_s1 }
  0x1f   :  { %p3782_p13 = por %p3781_p12, %p3780_p11 }
  0x21   :  { %p3783_p0 = pnand %p3782_p13, %p3776_p10 }
  0x23   :  { %3786 = shalt.err (!%p3783_p0)
}
  0x24   :  { %94 = dma.hbm_to_vmem [thread:$0]  %s5977_s5, 512, %s89_s16, [#allocation12], %s3941_s26, %s3941_s26, %s3942_s27  }
  0x25   :  { %s3795_s3 = scalar_lea.vmem %s114_s18, 32  ;;  %p3800_p2 = scmp.lt.s32.totalorder %s114_s18, %s114_s18 }
  0x26   :  { %p3796_p1 = scmp.ne.s32.totalorder %s114_s18, %s3795_s3  ;;  %p3801_p3 = scmp.lt.s32.totalorder %s3795_s3, %s3795_s3 }
  0x28   :  { %p3802_p4 = por %p3801_p3, %p3800_p2 }
  0x2a   :  { %p3803_p5 = pnand %p3802_p4, %p3796_p1 }
  0x2c   :  { %3806 = shalt.err (!%p3803_p5)
}
  0x2d   :  { %116 = dma.hbm_to_vmem [thread:$0]  %s5979_s7, 32, %s114_s18, [#allocation15]  }
  0x2e   :  { %s3945_s23 = smov [#allocation3]   ;;  %s3946_s25 = smov [#allocation7]  }
  0x2f   :  { %s28_s24 = sshll.u32 %s3945_s23, 4  ;;  %s52_s28 = sshll.u32 %s3946_s25, 4  ;;  %s29_s24 = int_to_ptr.vmem [resolvable:$true] %s28_s24  ;;  %s53_s28 = int_to_ptr.vmem [resolvable:$true] %s52_s28 }
  0x30   :  { %s3815_s29 = scalar_lea.vmem %s29_s24, 512  ;;  %p3820_p7 = scmp.lt.s32.totalorder %s29_s24, %s29_s24 }
  0x31   :  { %p3816_p6 = scmp.ne.s32.totalorder %s29_s24, %s3815_s29  ;;  %p3821_p8 = scmp.lt.s32.totalorder %s3815_s29, %s3815_s29 }
  0x33   :  { %p3822_p9 = por %p3821_p8, %p3820_p7 }
  0x35   :  { %p3823_p10 = pnand %p3822_p9, %p3816_p6 }
  0x37   :  { %3826 = shalt.err (!%p3823_p10)
}
  0x38   :  { %34 = dma.hbm_to_vmem [thread:$0]  %s5972_s0, 512, %s29_s24, [#allocation4], %s3941_s26, %s3941_s26, %s3942_s27  }
  0x39   :  { %s3835_s7 = scalar_lea.vmem %s53_s28, 2560  ;;  %p3840_p12 = scmp.lt.s32.totalorder %s53_s28, %s53_s28 }
  0x3a   :  { %p3836_p11 = scmp.ne.s32.totalorder %s53_s28, %s3835_s7  ;;  %p3841_p13 = scmp.lt.s32.totalorder %s3835_s7, %s3835_s7 }
  0x3c   :  { %p3842_p0 = por %p3841_p13, %p3840_p12 }
  0x3e   :  { %p3843_p1 = pnand %p3842_p0, %p3836_p11 }
  0x40   :  { %3846 = shalt.err (!%p3843_p1)
}
  0x41   :  { %58 = dma.hbm_to_vmem [thread:$0]  %s5974_s2, 2560, %s53_s28, [#allocation6], %s3941_s26, %s3941_s26, %s3942_s27  }
  0x42   :  { %s3947_s15 = smov [#allocation10]   ;;  %s3948_s17 = smov [#allocation13]  }
  0x43   :  { %s76_s16 = sshll.u32 %s3947_s15, 4  ;;  %s100_s18 = sshll.u32 %s3948_s17, 4  ;;  %s77_s16 = int_to_ptr.vmem [resolvable:$true] %s76_s16  ;;  %s101_s18 = int_to_ptr.vmem [resolvable:$true] %s100_s18 }
  0x44   :  { %s3855_s0 = scalar_lea.vmem %s77_s16, 2560  ;;  %p3860_p3 = scmp.lt.s32.totalorder %s77_s16, %s77_s16 }
  0x45   :  { %p3856_p2 = scmp.ne.s32.totalorder %s77_s16, %s3855_s0  ;;  %p3861_p4 = scmp.lt.s32.totalorder %s3855_s0, %s3855_s0 }
  0x47   :  { %p3862_p5 = por %p3861_p4, %p3860_p3 }
  0x49   :  { %p3863_p6 = pnand %p3862_p5, %p3856_p2 }
  0x4b   :  { %3866 = shalt.err (!%p3863_p6)
}
  0x4c   :  { %82 = dma.hbm_to_vmem [thread:$0]  %s5976_s4, 2560, %s77_s16, [#allocation9], %s3941_s26, %s3941_s26, %s3942_s27  }
  0x4d   :  { %s3875_s2 = scalar_lea.vmem %s101_s18, 2048  ;;  %p3880_p8 = scmp.lt.s32.totalorder %s101_s18, %s101_s18 }
  0x4e   :  { %p3876_p7 = scmp.ne.s32.totalorder %s101_s18, %s3875_s2  ;;  %p3881_p9 = scmp.lt.s32.totalorder %s3875_s2, %s3875_s2 }
  0x50   :  { %p3882_p10 = por %p3881_p9, %p3880_p8 }
  0x52   :  { %p3883_p11 = pnand %p3882_p10, %p3876_p7 }
  0x54   :  { %3886 = shalt.err (!%p3883_p11)
}
  0x55   :  { %s3949_s20 = smov 256   ;;  %s3950_s3 = smov 16  }
  0x56   :  { %106 = dma.hbm_to_vmem [thread:$0]  %s5978_s6, 2048, %s101_s18, [#allocation12], %s3949_s20, %s3949_s20, %s3950_s3  }
  0x57   :  { %s3951_s23 = smov [#allocation16]   ;;  %s3952_s25 = smov [#allocation17]  }
  0x58   :  { %s125_s24 = sshll.u32 %s3951_s23, 4  ;;  %s137_s28 = sshll.u32 %s3952_s25, 4  ;;  %s126_s24 = int_to_ptr.vmem [resolvable:$true] %s125_s24  ;;  %s138_s28 = int_to_ptr.vmem [resolvable:$true] %s137_s28 }
  0x59   :  { %s3895_s4 = scalar_lea.vmem %s126_s24, 16  ;;  %s3899_s26 = scalar_lea.vmem %s126_s24, 32 }
  0x5a   :  { %p3896_p12 = scmp.ne.s32.totalorder %s126_s24, %s3895_s4  ;;  %p3900_p13 = scmp.lt.s32.totalorder %s126_s24, %s126_s24 }
  0x5b   :  { %p3901_p0 = scmp.lt.s32.totalorder %s3899_s26, %s3895_s4 }
  0x5d   :  { %p3902_p1 = por %p3901_p0, %p3900_p13 }
  0x5f   :  { %p3903_p2 = pnand %p3902_p1, %p3896_p12 }
  0x61   :  { %3906 = shalt.err (!%p3903_p2)
}
  0x62   :  { %128 = dma.hbm_to_vmem [thread:$0]  %s5981_s9, 16, %s126_s24, [#allocation15]  }
  0x63   :  { %s3915_s5 = scalar_lea.vmem %s138_s28, 16  ;;  %s3919_s6 = scalar_lea.vmem %s138_s28, 32 }
  0x64   :  { %p3916_p3 = scmp.ne.s32.totalorder %s138_s28, %s3915_s5  ;;  %p3920_p4 = scmp.lt.s32.totalorder %s138_s28, %s138_s28 }
  0x65   :  { %p3921_p5 = scmp.lt.s32.totalorder %s3919_s6, %s3915_s5 }
  0x67   :  { %p3922_p6 = por %p3921_p5, %p3920_p4 }
  0x69   :  { %p3923_p7 = pnand %p3922_p6, %p3916_p3 }
  0x6b   :  { %3926 = shalt.err (!%p3923_p7)
}
  0x6c   :  { %140 = dma.hbm_to_vmem [thread:$0]  %s5983_s11, 16, %s138_s28, [#allocation18]  }
  0x6d   :  { %3927 = dma.done.wait [#allocation4], 512  }
  0x6e   :  { %3928 = vsyncadd [#allocation4], 4294966784 }
  0x6f   :  { %3929 = dma.done.wait [#allocation6], 117248  }
  0x70   :  { %3930 = vsyncadd [#allocation6], 4294850048 }
  0x71   :  { %3931 = dma.done.wait [#allocation9], 3072  }
  0x72   :  { %3932 = vsyncadd [#allocation9], 4294964224 }
  0x73   :  { %3933 = dma.done.wait [#allocation12], 2560  }
  0x74   :  { %3934 = vsyncadd [#allocation12], 4294964736 }
  0x75   :  { %3935 = dma.done.wait [#allocation15], 48  }
  0x76   :  { %3936 = vsyncadd [#allocation15], 4294967248 }
  0x77   :  { %3937 = dma.done.wait [#allocation18], 16  }
  0x78   :  { %3938 = vsyncadd [#allocation18], 4294967280  ;;  %v4067_v0 = vld [vmem:[#allocation3 + $0x8] sm:$0xff]  ;;  %vm3158_vm0 = vcmask 523264   ;;  %vm3544_vm1 = vcmask 15360  }
  0x79   :  { %v184_v1 = vld [vmem:[#allocation5 + $0x8] sm:$0xff] }
  0x7a   :  { %v188_v2 = vmul.f32 %v184_v1, %v4067_v0  ;;  %v193_v3 = vld [vmem:[#allocation5 + $0x408] sm:$0xff] }
  0x7b   :  { %v271_v4 = vld [vmem:[#allocation5 + $0x28] sm:$0xff] }
  0x7c   :  { %v275_v5 = vmul.f32 %v271_v4, %v4067_v0  ;;  %v280_v6 = vld [vmem:[#allocation5 + $0x428] sm:$0xff]  ;;  %v197_v8 = vadd.f32 %v193_v3, %v188_v2 }
  0x7d   :  { %v358_v7 = vld [vmem:[#allocation5 + $0x48] sm:$0xff] }
  0x7e   :  { %v362_v9 = vmul.f32 %v358_v7, %v4067_v0  ;;  %v367_v10 = vld [vmem:[#allocation5 + $0x448] sm:$0xff]  ;;  %v284_v13 = vadd.f32 %v280_v6, %v275_v5  ;;  %v4073_v17 = vmax.f32 %v197_v8, 0.0 }
  0x7f   :  { %v445_v11 = vld [vmem:[#allocation5 + $0x68] sm:$0xff] }
  0x80   :  { %v206_v12 = vld [vmem:[#allocation5 + $0x808] sm:$0xff]  ;;  %v449_v14 = vmul.f32 %v445_v11, %v4067_v0  ;;  %6246 = vst [vmem:[#allocation25_spill] sm:$0xff] %v4073_v17  ;;  %v371_v19 = vadd.f32 %v367_v10, %v362_v9  ;;  %v4076_v23 = vmax.f32 %v284_v13, 0.0 }
  0x81   :  { %v454_v15 = vld [vmem:[#allocation5 + $0x468] sm:$0xff]  ;;  %v210_v29 = vmul.f32 %v206_v12, %v4073_v17 }
  0x82   :  { %v532_v16 = vld [vmem:[#allocation5 + $0x88] sm:$0xff]  ;;  %6247 = vst [vmem:[#allocation26_spill] sm:$0xff] %v4076_v23  ;;  %v458_v25 = vadd.f32 %v454_v15, %v449_v14  ;;  %v4080_v30 = vmax.f32 %v371_v19, 0.0 }
  0x83   :  { %v293_v18 = vld [vmem:[#allocation5 + $0x828] sm:$0xff]  ;;  %v536_v20 = vmul.f32 %v532_v16, %v4067_v0 }
  0x84   :  { %v541_v21 = vld [vmem:[#allocation5 + $0x488] sm:$0xff]  ;;  %6248 = vst [vmem:[#allocation27_spill] sm:$0xff] %v4080_v30  ;;  %v297_v36 = vmul.f32 %v293_v18, %v4076_v23  ;;  %v4084_v37 = vmax.f32 %v458_v25, 0.0  ;;  %v1275_v23 = vld [vmem:[#allocation5 + $0x1180] sm:$0xff] }
  0x85   :  { %v619_v22 = vld [vmem:[#allocation5 + $0xa8] sm:$0xff]  ;;  %v545_v32 = vadd.f32 %v541_v21, %v536_v20 }
  0x86   :  { %v380_v24 = vld [vmem:[#allocation5 + $0x848] sm:$0xff]  ;;  %v623_v26 = vmul.f32 %v619_v22, %v4067_v0  ;;  %6249 = vst [vmem:[#allocation28_spill] sm:$0xff] %v4084_v37  ;;  %v301_v49 = vadd.f32 %v297_v36, %v210_v29 }
  0x87   :  { %v628_v27 = vld [vmem:[#allocation5 + $0x4a8] sm:$0xff]  ;;  %v384_v42 = vmul.f32 %v380_v24, %v4080_v30  ;;  %v4088_v43 = vmax.f32 %v545_v32, 0.0 }
  0x88   :  { %v706_v28 = vld [vmem:[#allocation5 + $0xc8] sm:$0xff]  ;;  %v632_v38 = vadd.f32 %v628_v27, %v623_v26 }
  0x89   :  { %v467_v31 = vld [vmem:[#allocation5 + $0x868] sm:$0xff]  ;;  %v710_v33 = vmul.f32 %v706_v28, %v4067_v0  ;;  %6250 = vst [vmem:[#allocation29_spill] sm:$0xff] %v4088_v43  ;;  %v388_v61 = vadd.f32 %v384_v42, %v301_v49 }
  0x8a   :  { %v715_v34 = vld [vmem:[#allocation5 + $0x4c8] sm:$0xff]  ;;  %v471_v50 = vmul.f32 %v467_v31, %v4084_v37  ;;  %v4092_v51 = vmax.f32 %v632_v38, 0.0  ;;  %v2554_v37 = vld [vmem:[#allocation5 + $0xb60] sm:$0xff] }
  0x8b   :  { %v793_v35 = vld [vmem:[#allocation5 + $0xe8] sm:$0xff]  ;;  %v719_v45 = vadd.f32 %v715_v34, %v710_v33 }
  0x8c   :  { %v797_v39 = vmul.f32 %v793_v35, %v4067_v0  ;;  %v802_v40 = vld [vmem:[#allocation5 + $0x4e8] sm:$0xff]  ;;  %6251 = vst [vmem:[#allocation30_spill] sm:$0xff] %v4092_v51  ;;  %v475_v8 = vadd.f32 %v471_v50, %v388_v61 }
  0x8d   :  { %v880_v41 = vld [vmem:[#allocation5 + $0x108] sm:$0xff]  ;;  %v4094_v56 = vmax.f32 %v719_v45, 0.0 }
  0x8e   :  { %v554_v44 = vld [vmem:[#allocation5 + $0x888] sm:$0xff]  ;;  %v884_v46 = vmul.f32 %v880_v41, %v4067_v0  ;;  %v806_v53 = vadd.f32 %v802_v40, %v797_v39 }
  0x8f   :  { %v889_v47 = vld [vmem:[#allocation5 + $0x508] sm:$0xff]  ;;  %6252 = vst [vmem:[#allocation31_spill] sm:$0xff] %v4094_v56  ;;  %v558_v62 = vmul.f32 %v554_v44, %v4088_v43 }
  0x90   :  { %v967_v48 = vld [vmem:[#allocation5 + $0x128] sm:$0xff]  ;;  %v893_v57 = vadd.f32 %v889_v47, %v884_v46  ;;  %v4101_v9 = vmax.f32 %v806_v53, 0.0 }
  0x91   :  { %v641_v52 = vld [vmem:[#allocation5 + $0x8a8] sm:$0xff]  ;;  %v971_v58 = vmul.f32 %v967_v48, %v4067_v0  ;;  %v562_v24 = vadd.f32 %v558_v62, %v475_v8 }
  0x92   :  { %v976_v54 = vld [vmem:[#allocation5 + $0x528] sm:$0xff]  ;;  %v645_v4 = vmul.f32 %v641_v52, %v4092_v51  ;;  %6253 = vst [vmem:[#allocation32_spill] sm:$0xff] %v4101_v9  ;;  %v4105_v18 = vmax.f32 %v893_v57, 0.0 }
  0x93   :  { %v1054_v55 = vld [vmem:[#allocation5 + $0x148] sm:$0xff]  ;;  %v980_v5 = vadd.f32 %v976_v54, %v971_v58 }
  0x94   :  { %v1063_v59 = vld [vmem:[#allocation5 + $0x548] sm:$0xff]  ;;  %v1058_v1 = vmul.f32 %v1054_v55, %v4067_v0  ;;  %6254 = vst [vmem:[#allocation33_spill] sm:$0xff] %v4105_v18  ;;  %v649_v39 = vadd.f32 %v645_v4, %v562_v24 }
  0x95   :  { %v1141_v60 = vld [vmem:[#allocation5 + $0x168] sm:$0xff]  ;;  %v4108_v26 = vmax.f32 %v980_v5, 0.0 }
  0x96   :  { %v728_v63 = vld [vmem:[#allocation5 + $0x8c8] sm:$0xff]  ;;  %v1145_v6 = vmul.f32 %v1141_v60, %v4067_v0  ;;  %v1067_v10 = vadd.f32 %v1063_v59, %v1058_v1 }
  0x97   :  { %v1150_v2 = vld [vmem:[#allocation5 + $0x568] sm:$0xff]  ;;  %v732_v15 = vmul.f32 %v728_v63, %v4094_v56  ;;  %6255 = vst [vmem:[#allocation34_spill] sm:$0xff] %v4108_v26 }
  0x98   :  { %v1228_v3 = vld [vmem:[#allocation5 + $0x188] sm:$0xff]  ;;  %v1154_v19 = vadd.f32 %v1150_v2, %v1145_v6  ;;  %v4110_v27 = vmax.f32 %v1067_v10, 0.0 }
  0x99   :  { %v1315_v7 = vld [vmem:[#allocation5 + $0x1a8] sm:$0xff]  ;;  %v1232_v11 = vmul.f32 %v1228_v3, %v4067_v0  ;;  %v736_v52 = vadd.f32 %v732_v15, %v649_v39 }
  0x9a   :  { %v1237_v12 = vld [vmem:[#allocation5 + $0x588] sm:$0xff]  ;;  %v1319_v20 = vmul.f32 %v1315_v7, %v4067_v0  ;;  %6256 = vst [vmem:[#allocation35_spill] sm:$0xff] %v4110_v27  ;;  %v4116_v46 = vmax.f32 %v1154_v19, 0.0 }
  0x9b   :  { %v1324_v13 = vld [vmem:[#allocation5 + $0x5a8] sm:$0xff]  ;;  %v1241_v34 = vadd.f32 %v1237_v12, %v1232_v11 }
  0x9c   :  { %v1402_v14 = vld [vmem:[#allocation5 + $0x1c8] sm:$0xff]  ;;  %v1328_v35 = vadd.f32 %v1324_v13, %v1319_v20  ;;  %6257 = vst [vmem:[#allocation36_spill] sm:$0xff] %v4116_v46 }
  0x9d   :  { %v815_v16 = vld [vmem:[#allocation5 + $0x8e8] sm:$0xff]  ;;  %v1406_v28 = vmul.f32 %v1402_v14, %v4067_v0  ;;  %v4122_v60 = vmax.f32 %v1241_v34, 0.0 }
  0x9e   :  { %v1411_v21 = vld [vmem:[#allocation5 + $0x5c8] sm:$0xff]  ;;  %v819_v40 = vmul.f32 %v815_v16, %v4101_v9  ;;  %v4124_v62 = vmax.f32 %v1328_v35, 0.0  ;;  %v2541_v9 = vld [vmem:[#allocation5 + $0x760] sm:$0xff] }
  0x9f   :  { %v1489_v22 = vld [vmem:[#allocation5 + $0x1e8] sm:$0xff]  ;;  %v1415_v41 = vadd.f32 %v1411_v21, %v1406_v28  ;;  %6258 = vst [vmem:[#allocation37_spill] sm:$0xff] %v4122_v60 }
  0xa0   :  { %v902_v25 = vld [vmem:[#allocation5 + $0x908] sm:$0xff]  ;;  %v1493_v36 = vmul.f32 %v1489_v22, %v4067_v0  ;;  %6259 = vst [vmem:[#allocation38_spill] sm:$0xff] %v4124_v62  ;;  %v823_v3 = vadd.f32 %v819_v40, %v736_v52 }
  0xa1   :  { %v1498_v29 = vld [vmem:[#allocation5 + $0x5e8] sm:$0xff]  ;;  %v906_v45 = vmul.f32 %v902_v25, %v4105_v18  ;;  %v4127_v5 = vmax.f32 %v1415_v41, 0.0 }
  0xa2   :  { %v1576_v31 = vld [vmem:[#allocation5 + $0x208] sm:$0xff]  ;;  %v1502_v47 = vadd.f32 %v1498_v29, %v1493_v36 }
  0xa3   :  { %v989_v32 = vld [vmem:[#allocation5 + $0x928] sm:$0xff]  ;;  %v1580_v48 = vmul.f32 %v1576_v31, %v4067_v0  ;;  %6260 = vst [vmem:[#allocation39_spill] sm:$0xff] %v4127_v5  ;;  %v910_v20 = vadd.f32 %v906_v45, %v823_v3 }
  0xa4   :  { %v1076_v33 = vld [vmem:[#allocation5 + $0x948] sm:$0xff]  ;;  %v993_v53 = vmul.f32 %v989_v32, %v4108_v26  ;;  %v4131_v13 = vmax.f32 %v1502_v47, 0.0  ;;  %v2619_v26 = vld [vmem:[#allocation5 + $0x380] sm:$0xff] }
  0xa5   :  { %v1663_v38 = vld [vmem:[#allocation5 + $0x228] sm:$0xff]  ;;  %v1080_v54 = vmul.f32 %v1076_v33, %v4110_v27 }
  0xa6   :  { %v1585_v42 = vld [vmem:[#allocation5 + $0x608] sm:$0xff]  ;;  %v1667_v57 = vmul.f32 %v1663_v38, %v4067_v0  ;;  %6261 = vst [vmem:[#allocation40_spill] sm:$0xff] %v4131_v13  ;;  %v997_v39 = vadd.f32 %v993_v53, %v910_v20 }
  0xa7   :  { %v1750_v44 = vld [vmem:[#allocation5 + $0x248] sm:$0xff]  ;;  %v1589_v63 = vadd.f32 %v1585_v42, %v1580_v48 }
  0xa8   :  { %v1672_v49 = vld [vmem:[#allocation5 + $0x628] sm:$0xff]  ;;  %v1754_v1 = vmul.f32 %v1750_v44, %v4067_v0 }
  0xa9   :  { %v1837_v50 = vld [vmem:[#allocation5 + $0x268] sm:$0xff]  ;;  %v1676_v6 = vadd.f32 %v1672_v49, %v1667_v57  ;;  %v4134_v21 = vmax.f32 %v1589_v63, 0.0 }
  0xaa   :  { %v1163_v55 = vld [vmem:[#allocation5 + $0x968] sm:$0xff]  ;;  %v1841_v7 = vmul.f32 %v1837_v50, %v4067_v0 }
  0xab   :  { %v1759_v58 = vld [vmem:[#allocation5 + $0x648] sm:$0xff]  ;;  %v1167_v11 = vmul.f32 %v1163_v55, %v4116_v46  ;;  %6262 = vst [vmem:[#allocation41_spill] sm:$0xff] %v4134_v21  ;;  %v4136_v22 = vmax.f32 %v1676_v6, 0.0  ;;  %v1771_v46 = vld [vmem:[#allocation5 + $0xa40] sm:$0xff] }
  0xac   :  { %v1924_v59 = vld [vmem:[#allocation5 + $0x288] sm:$0xff]  ;;  %v1763_v15 = vadd.f32 %v1759_v58, %v1754_v1  ;;  %v1084_v58 = vadd.f32 %v1080_v54, %v997_v39 }
  0xad   :  { %v1250_v61 = vld [vmem:[#allocation5 + $0x988] sm:$0xff]  ;;  %v1928_v16 = vmul.f32 %v1924_v59, %v4067_v0  ;;  %6263 = vst [vmem:[#allocation42_spill] sm:$0xff] %v4136_v22 }
  0xae   :  { %v2011_v2 = vld [vmem:[#allocation5 + $0x2a8] sm:$0xff]  ;;  %v1254_v31 = vmul.f32 %v1250_v61, %v4122_v60  ;;  %v4140_v34 = vmax.f32 %v1763_v15, 0.0  ;;  %v1510_v60 = vld [vmem:[#allocation5 + $0x9e0] sm:$0xff] }
  0xaf   :  { %v1337_v4 = vld [vmem:[#allocation5 + $0x9a8] sm:$0xff]  ;;  %v2015_v24 = vmul.f32 %v2011_v2, %v4067_v0 }
  0xb0   :  { %v1846_v8 = vld [vmem:[#allocation5 + $0x668] sm:$0xff]  ;;  %6264 = vst [vmem:[#allocation43_spill] sm:$0xff] %v4140_v34  ;;  %v1341_v40 = vmul.f32 %v1337_v4, %v4124_v62 }
  0xb1   :  { %v2098_v10 = vld [vmem:[#allocation5 + $0x2c8] sm:$0xff]  ;;  %v1850_v35 = vadd.f32 %v1846_v8, %v1841_v7  ;;  %v1171_v8 = vadd.f32 %v1167_v11, %v1084_v58 }
  0xb2   :  { %v1424_v12 = vld [vmem:[#allocation5 + $0x9c8] sm:$0xff]  ;;  %v2102_v36 = vmul.f32 %v2098_v10, %v4067_v0 }
  0xb3   :  { %v1511_v14 = vld [vmem:[#allocation5 + $0x9e8] sm:$0xff]  ;;  %v4145_v41 = vmul.f32 %v1424_v12, %v4127_v5  ;;  %v4161_v3 = vmax.f32 %v1850_v35, 0.0 }
  0xb4   :  { %v1933_v19 = vld [vmem:[#allocation5 + $0x688] sm:$0xff]  ;;  %v4148_v48 = vmul.f32 %v1511_v14, %v4131_v13 }
  0xb5   :  { %v2020_v25 = vld [vmem:[#allocation5 + $0x6a8] sm:$0xff]  ;;  %v1937_v44 = vadd.f32 %v1933_v19, %v1928_v16  ;;  %6265 = vst [vmem:[#allocation44_spill] sm:$0xff] %v4161_v3 }
  0xb6   :  { %v2107_v28 = vld [vmem:[#allocation5 + $0x6c8] sm:$0xff]  ;;  %v2024_v49 = vadd.f32 %v2020_v25, %v2015_v24 }
  0xb7   :  { %v2185_v29 = vld [vmem:[#allocation5 + $0x2e8] sm:$0xff]  ;;  %v2111_v50 = vadd.f32 %v2107_v28, %v2102_v36  ;;  %v4164_v10 = vmax.f32 %v1937_v44, 0.0 }
  0xb8   :  { %v1598_v32 = vld [vmem:[#allocation5 + $0xa08] sm:$0xff]  ;;  %v2189_v52 = vmul.f32 %v2185_v29, %v4067_v0  ;;  %v4167_v24 = vmax.f32 %v2024_v49, 0.0 }
  0xb9   :  { %v1685_v33 = vld [vmem:[#allocation5 + $0xa28] sm:$0xff]  ;;  %v4152_v53 = vmul.f32 %v1598_v32, %v4134_v21  ;;  %6266 = vst [vmem:[#allocation45_spill] sm:$0xff] %v4164_v10  ;;  %v4169_v25 = vmax.f32 %v2111_v50, 0.0 }
  0xba   :  { %v2272_v38 = vld [vmem:[#allocation5 + $0x308] sm:$0xff]  ;;  %v4155_v59 = vmul.f32 %v1685_v33, %v4136_v22  ;;  %6267 = vst [vmem:[#allocation46_spill] sm:$0xff] %v4167_v24  ;;  %v1258_v33 = vadd.f32 %v1254_v31, %v1171_v8 }
  0xbb   :  { %v1772_v42 = vld [vmem:[#allocation5 + $0xa48] sm:$0xff]  ;;  %v2276_v61 = vmul.f32 %v2272_v38, %v4067_v0  ;;  %6268 = vst [vmem:[#allocation47_spill] sm:$0xff] %v4169_v25 }
  0xbc   :  { %v2194_v45 = vld [vmem:[#allocation5 + $0x6e8] sm:$0xff]  ;;  %v4159_v2 = vmul.f32 %v1772_v42, %v4140_v34 }
  0xbd   :  { %v2359_v47 = vld [vmem:[#allocation5 + $0x328] sm:$0xff]  ;;  %v2198_v4 = vadd.f32 %v2194_v45, %v2189_v52 }
  0xbe   :  { %v2281_v55 = vld [vmem:[#allocation5 + $0x708] sm:$0xff]  ;;  %v2363_v6 = vmul.f32 %v2359_v47, %v4067_v0 }
  0xbf   :  { %v2446_v57 = vld [vmem:[#allocation5 + $0x348] sm:$0xff]  ;;  %v2285_v12 = vadd.f32 %v2281_v55, %v2276_v61  ;;  %v4172_v36 = vmax.f32 %v2198_v4, 0.0  ;;  %v183_v4 = vld [vmem:[#allocation5] sm:$0xff] }
  0xc0   :  { %v2368_v63 = vld [vmem:[#allocation5 + $0x728] sm:$0xff]  ;;  %v2450_v14 = vmul.f32 %v2446_v57, %v4067_v0  ;;  %v1345_v57 = vadd.f32 %v1341_v40, %v1258_v33 }
  0xc1   :  { %v2533_v1 = vld [vmem:[#allocation5 + $0x368] sm:$0xff]  ;;  %v2372_v28 = vadd.f32 %v2368_v63, %v2363_v6  ;;  %6269 = vst [vmem:[#allocation48_spill] sm:$0xff] %v4172_v36  ;;  %v4175_v45 = vmax.f32 %v2285_v12, 0.0 }
  0xc2   :  { %v2455_v7 = vld [vmem:[#allocation5 + $0x748] sm:$0xff]  ;;  %v2537_v29 = vmul.f32 %v2533_v1, %v4067_v0  ;;  %v4185_v1 = vld [vmem:[#allocation3] sm:$0xff] }
  0xc3   :  { %v2620_v54 = vld [vmem:[#allocation5 + $0x388] sm:$0xff]  ;;  %v2459_v38 = vadd.f32 %v2455_v7, %v2450_v14  ;;  %6270 = vst [vmem:[#allocation49_spill] sm:$0xff] %v4175_v45  ;;  %v4177_v49 = vmax.f32 %v2372_v28, 0.0  ;;  %v270_v14 = vld [vmem:[#allocation5 + $0x20] sm:$0xff] }
  0xc4   :  { %v2542_v15 = vld [vmem:[#allocation5 + $0x768] sm:$0xff]  ;;  %v2624_v39 = vmul.f32 %v2620_v54, %v4067_v0 }
  0xc5   :  { %v2707_v16 = vld [vmem:[#allocation5 + $0x3a8] sm:$0xff]  ;;  %6271 = vst [vmem:[#allocation50_spill] sm:$0xff] %v4177_v49  ;;  %v2546_v50 = vadd.f32 %v2542_v15, %v2537_v29  ;;  %v4183_v61 = vmax.f32 %v2459_v38, 0.0  ;;  %v1432_v15 = vadd.f32 %v4145_v41, %v1345_v57  ;;  %v192_v29 = vld [vmem:[#allocation5 + $0x400] sm:$0xff] }
  0xc6   :  { %v1859_v19 = vld [vmem:[#allocation5 + $0xa68] sm:$0xff]  ;;  %v2711_v52 = vmul.f32 %v2707_v16, %v4067_v0  ;;  %v366_v57 = vld [vmem:[#allocation5 + $0x440] sm:$0xff] }
  0xc7   :  { %v1946_v20 = vld [vmem:[#allocation5 + $0xa88] sm:$0xff]  ;;  %v4181_v31 = vmul.f32 %v1859_v19, %v4161_v3  ;;  %6272 = vst [vmem:[#allocation51_spill] sm:$0xff] %v4183_v61  ;;  %v4193_v8 = vmax.f32 %v2546_v50, 0.0  ;;  %v1053_v3 = vld [vmem:[#allocation5 + $0x140] sm:$0xff] }
  0xc8   :  { %v2629_v32 = vld [vmem:[#allocation5 + $0x788] sm:$0xff]  ;;  %v4188_v6 = vmul.f32 %v1946_v20, %v4164_v10  ;;  %v888_v10 = vld [vmem:[#allocation5 + $0x500] sm:$0xff] }
  0xc9   :  { %v2033_v35 = vld [vmem:[#allocation5 + $0xaa8] sm:$0xff]  ;;  %v2633_v63 = vadd.f32 %v2629_v32, %v2624_v39  ;;  %6273 = vst [vmem:[#allocation52_spill] sm:$0xff] %v4193_v8  ;;  %v357_v32 = vld [vmem:[#allocation5 + $0x40] sm:$0xff] }
  0xca   :  { %v2120_v11 = vld [vmem:[#allocation5 + $0xac8] sm:$0xff]  ;;  %v4191_v7 = vmul.f32 %v2033_v35, %v4167_v24  ;;  %v279_v39 = vld [vmem:[#allocation5 + $0x420] sm:$0xff] }
  0xcb   :  { %v2716_v42 = vld [vmem:[#allocation5 + $0x7a8] sm:$0xff]  ;;  %v4197_v16 = vmul.f32 %v2120_v11, %v4169_v25  ;;  %v4209_v38 = vmax.f32 %v2633_v63, 0.0  ;;  %v187_v11 = vmul.f32 %v183_v4, %v4185_v1  ;;  %v618_v25 = vld [vmem:[#allocation5 + $0xa0] sm:$0xff] }
  0xcc   :  { %v2207_v44 = vld [vmem:[#allocation5 + $0xae8] sm:$0xff]  ;;  %v2720_v40 = vadd.f32 %v2716_v42, %v2711_v52  ;;  %v444_v42 = vld [vmem:[#allocation5 + $0x60] sm:$0xff] }
  0xcd   :  { %v2294_v47 = vld [vmem:[#allocation5 + $0xb08] sm:$0xff]  ;;  %v4200_v19 = vmul.f32 %v2207_v44, %v4172_v36  ;;  %6274 = vst [vmem:[#allocation53_spill] sm:$0xff] %v4209_v38  ;;  %v1519_v44 = vadd.f32 %v4148_v48, %v1432_v15  ;;  %v361_v36 = vmul.f32 %v357_v32, %v4185_v1  ;;  %v453_v48 = vld [vmem:[#allocation5 + $0x460] sm:$0xff] }
  0xce   :  { %v2794_v55 = vld [vmem:[#allocation5 + $0x3c8] sm:$0xff]  ;;  %v4204_v33 = vmul.f32 %v2294_v47, %v4175_v45  ;;  %v274_v47 = vmul.f32 %v270_v14, %v4185_v1  ;;  %v196_v45 = vadd.f32 %v192_v29, %v187_v11  ;;  %v540_v14 = vld [vmem:[#allocation5 + $0x480] sm:$0xff] }
  0xcf   :  { %v2381_v58 = vld [vmem:[#allocation5 + $0xb28] sm:$0xff]  ;;  %v2798_v20 = vmul.f32 %v2794_v55, %v4067_v0  ;;  %v370_v29 = vadd.f32 %v366_v57, %v361_v36  ;;  %v705_v11 = vld [vmem:[#allocation5 + $0xc0] sm:$0xff]  ;;  %v622_v36 = vmul.f32 %v618_v25, %v4185_v1 }
  0xd0   :  { %v2468_v54 = vld [vmem:[#allocation5 + $0xb48] sm:$0xff]  ;;  %v4207_v35 = vmul.f32 %v2381_v58, %v4177_v49  ;;  %v531_v58 = vld [vmem:[#allocation5 + $0x80] sm:$0xff]  ;;  %v4221_v49 = vmax.f32 %v2720_v40, 0.0  ;;  %v4231_v40 = vmax.f32 %v196_v45, 0.0 }
  0xd1   :  { %v2881_v12 = vld [vmem:[#allocation5 + $0x3e8] sm:$0xff]  ;;  %v4214_v50 = vmul.f32 %v2468_v54, %v4183_v61  ;;  %v1606_v54 = vadd.f32 %v4152_v53, %v1519_v44  ;;  %v205_v61 = vld [vmem:[#allocation5 + $0x800] sm:$0xff]  ;;  %v535_v32 = vmul.f32 %v531_v58, %v4185_v1 }
  0xd2   :  { %v2555_v28 = vld [vmem:[#allocation5 + $0xb68] sm:$0xff]  ;;  %v2885_v55 = vmul.f32 %v2881_v12, %v4067_v0  ;;  %6275 = vst [vmem:[#allocation54_spill] sm:$0xff] %v4221_v49  ;;  %v283_v0 = vadd.f32 %v279_v39, %v274_v47  ;;  %v448_v12 = vmul.f32 %v444_v42, %v4185_v1  ;;  %6276 = vst [vmem:[#allocation55_spill] sm:$0xff] %v4231_v40  ;;  %v379_v39 = vld [vmem:[#allocation5 + $0x840] sm:$0xff] }
  0xd3   :  { %v2803_v41 = vld [vmem:[#allocation5 + $0x7c8] sm:$0xff]  ;;  %v4219_v63 = vmul.f32 %v2555_v28, %v4193_v8  ;;  %v292_v8 = vld [vmem:[#allocation5 + $0x820] sm:$0xff]  ;;  %v1693_v53 = vadd.f32 %v4155_v59, %v1606_v54  ;;  %v544_v24 = vadd.f32 %v540_v14, %v535_v32 }
  0xd4   :  { %v2642_v52 = vld [vmem:[#allocation5 + $0xb88] sm:$0xff]  ;;  %v4225_v15 = vadd.f32 %v2803_v41, %v2798_v20  ;;  %v4237_v41 = vmax.f32 %v283_v0, 0.0  ;;  %v457_v42 = vadd.f32 %v453_v48, %v448_v12  ;;  %v627_v44 = vld [vmem:[#allocation5 + $0x4a0] sm:$0xff]  ;;  %v709_v48 = vmul.f32 %v705_v11, %v4185_v1 }
  0xd5   :  { %v2890_v4 = vld [vmem:[#allocation5 + $0x7e8] sm:$0xff]  ;;  %v4229_v28 = vmul.f32 %v2642_v52, %v4209_v38  ;;  %v792_v47 = vld [vmem:[#allocation5 + $0xe0] sm:$0xff]  ;;  %v209_v52 = vmul.f32 %v205_v61, %v4231_v40  ;;  %v4240_v38 = vmax.f32 %v370_v29, 0.0  ;;  %v1780_v58 = vadd.f32 %v4159_v2, %v1693_v53 }
  0xd6   :  { %v4235_v20 = vadd.f32 %v2890_v4, %v2885_v55  ;;  %6277 = vst [vmem:[#allocation56_spill] sm:$0xff] %v4237_v41  ;;  %v466_v45 = vld [vmem:[#allocation5 + $0x860] sm:$0xff]  ;;  %v296_v59 = vmul.f32 %v292_v8, %v4237_v41  ;;  %v4245_v55 = vmax.f32 %v457_v42, 0.0  ;;  %v4249_v12 = vmax.f32 %v544_v24, 0.0  ;;  %v2729_v2 = vld [vmem:[#allocation5 + $0xba8] sm:$0xff] }
  0xd7   :  { %6278 = vst [vmem:[#allocation57_spill] sm:$0xff] %v4240_v38  ;;  %v714_v57 = vld [vmem:[#allocation5 + $0x4c0] sm:$0xff]  ;;  %v383_v61 = vmul.f32 %v379_v39, %v4240_v38  ;;  %v631_v29 = vadd.f32 %v627_v44, %v622_v36  ;;  %v796_v14 = vmul.f32 %v792_v47, %v4185_v1  ;;  %v1867_v32 = vadd.f32 %v4181_v31, %v1780_v58 }
  0xd8   :  { %6279 = vst [vmem:[#allocation58_spill] sm:$0xff] %v4245_v55  ;;  %v553_v4 = vld [vmem:[#allocation5 + $0x880] sm:$0xff]  ;;  %6280 = vst [vmem:[#allocation59_spill] sm:$0xff] %v4249_v12  ;;  %v300_v53 = vadd.f32 %v296_v59, %v209_v52  ;;  %v470_v8 = vmul.f32 %v466_v45, %v4245_v55  ;;  %v718_v42 = vadd.f32 %v714_v57, %v709_v48 }
  0xd9   :  { %v801_v54 = vld [vmem:[#allocation5 + $0x4e0] sm:$0xff]  ;;  %v557_v11 = vmul.f32 %v553_v4, %v4249_v12  ;;  %v4255_v34 = vmax.f32 %v631_v29, 0.0  ;;  %v1954_v47 = vadd.f32 %v4188_v6, %v1867_v32  ;;  %v4263_v59 = vmul.f32 %v2729_v2, %v4221_v49  ;;  %v2816_v49 = vld [vmem:[#allocation5 + $0xbc8] sm:$0xff] }
  0xda   :  { %v879_v0 = vld [vmem:[#allocation5 + $0x100] sm:$0xff]  ;;  %v805_v24 = vadd.f32 %v801_v54, %v796_v14  ;;  %v387_v22 = vadd.f32 %v383_v61, %v300_v53  ;;  %v4259_v31 = vmax.f32 %v718_v42, 0.0  ;;  %v1057_v54 = vmul.f32 %v1053_v3, %v4185_v1 }
  0xdb   :  { %v966_v25 = vld [vmem:[#allocation5 + $0x120] sm:$0xff]  ;;  %6281 = vst [vmem:[#allocation60_spill] sm:$0xff] %v4255_v34  ;;  %v883_v44 = vmul.f32 %v879_v0, %v4185_v1  ;;  %v2041_v29 = vadd.f32 %v4191_v7, %v1954_v47  ;;  %v4271_v42 = vmax.f32 %v4225_v15, 0.0  ;;  %v4280_v47 = vmax.f32 %v4235_v20, 0.0 }
  0xdc   :  { %v640_v39 = vld [vmem:[#allocation5 + $0x8a0] sm:$0xff]  ;;  %6282 = vst [vmem:[#allocation61_spill] sm:$0xff] %v4259_v31  ;;  %v970_v45 = vmul.f32 %v966_v25, %v4185_v1  ;;  %v4265_v4 = vmax.f32 %v805_v24, 0.0  ;;  %v474_v6 = vadd.f32 %v470_v8, %v387_v22 }
  0xdd   :  { %v975_v36 = vld [vmem:[#allocation5 + $0x520] sm:$0xff]  ;;  %v892_v48 = vadd.f32 %v888_v10, %v883_v44  ;;  %v644_v61 = vmul.f32 %v640_v39, %v4255_v34  ;;  %6284 = vst [vmem:[#allocation63_spill] sm:$0xff] %v4271_v42  ;;  %v2128_v3 = vadd.f32 %v4197_v16, %v2041_v29  ;;  %6286 = vst [vmem:[#allocation65_spill] sm:$0xff] %v4280_v47 }
  0xde   :  { %v727_v52 = vld [vmem:[#allocation5 + $0x8c0] sm:$0xff]  ;;  %6283 = vst [vmem:[#allocation62_spill] sm:$0xff] %v4265_v4  ;;  %v979_v32 = vadd.f32 %v975_v36, %v970_v45  ;;  %v561_v7 = vadd.f32 %v557_v11, %v474_v6  ;;  %v4288_v21 = vmul.f32 %v2816_v49, %v4271_v42 }
  0xdf   :  { %v1062_v57 = vld [vmem:[#allocation5 + $0x540] sm:$0xff]  ;;  %v731_v2 = vmul.f32 %v727_v52, %v4259_v31  ;;  %v4276_v22 = vmax.f32 %v892_v48, 0.0  ;;  %v2215_v16 = vadd.f32 %v4200_v19, %v2128_v3 }
  0xe0   :  { %v1140_v58 = vld [vmem:[#allocation5 + $0x160] sm:$0xff]  ;;  %v1066_v24 = vadd.f32 %v1062_v57, %v1057_v54  ;;  %v2903_v54 = vld [vmem:[#allocation5 + $0xbe8] sm:$0xff]  ;;  %v648_v11 = vadd.f32 %v644_v61, %v561_v7  ;;  %v4285_v48 = vmax.f32 %v979_v32, 0.0 }
  0xe1   :  { %v1227_v0 = vld [vmem:[#allocation5 + $0x180] sm:$0xff]  ;;  %v1144_v10 = vmul.f32 %v1140_v58, %v4185_v1  ;;  %6285 = vst [vmem:[#allocation64_spill] sm:$0xff] %v4276_v22  ;;  %v4297_v7 = vmul.f32 %v2903_v54, %v4280_v47 }
  0xe2   :  { %v814_v14 = vld [vmem:[#allocation5 + $0x8e0] sm:$0xff]  ;;  %v1231_v8 = vmul.f32 %v1227_v0, %v4185_v1  ;;  %6287 = vst [vmem:[#allocation66_spill] sm:$0xff] %v4285_v48  ;;  %v4290_v13 = vmax.f32 %v1066_v24, 0.0 }
  0xe3   :  { %v1149_v53 = vld [vmem:[#allocation5 + $0x560] sm:$0xff]  ;;  %v818_v15 = vmul.f32 %v814_v14, %v4265_v4 }
  0xe4   :  { %v1314_v25 = vld [vmem:[#allocation5 + $0x1a0] sm:$0xff]  ;;  %v1153_v45 = vadd.f32 %v1149_v53, %v1144_v10  ;;  %6288 = vst [vmem:[#allocation67_spill] sm:$0xff] %v4290_v13  ;;  %v735_v10 = vadd.f32 %v731_v2, %v648_v11 }
  0xe5   :  { %v1236_v44 = vld [vmem:[#allocation5 + $0x580] sm:$0xff]  ;;  %v1318_v57 = vmul.f32 %v1314_v25, %v4185_v1  ;;  %v2302_v25 = vadd.f32 %v4204_v33, %v2215_v16 }
  0xe6   :  { %v1323_v39 = vld [vmem:[#allocation5 + $0x5a0] sm:$0xff]  ;;  %v1240_v29 = vadd.f32 %v1236_v44, %v1231_v8  ;;  %v4299_v49 = vmax.f32 %v1153_v45, 0.0  ;;  %v822_v2 = vadd.f32 %v818_v15, %v735_v10 }
  0xe7   :  { %v1401_v36 = vld [vmem:[#allocation5 + $0x1c0] sm:$0xff]  ;;  %v1327_v14 = vadd.f32 %v1323_v39, %v1318_v57  ;;  %v2389_v33 = vadd.f32 %v4207_v35, %v2302_v25 }
  0xe8   :  { %v901_v52 = vld [vmem:[#allocation5 + $0x900] sm:$0xff]  ;;  %v1405_v53 = vmul.f32 %v1401_v36, %v4185_v1  ;;  %6289 = vst [vmem:[#allocation68_spill] sm:$0xff] %v4299_v49  ;;  %v4304_v16 = vmax.f32 %v1240_v29, 0.0 }
  0xe9   :  { %v1488_v58 = vld [vmem:[#allocation5 + $0x1e0] sm:$0xff]  ;;  %v905_v19 = vmul.f32 %v901_v52, %v4276_v22  ;;  %v4307_v45 = vmax.f32 %v1327_v14, 0.0  ;;  %v2476_v42 = vadd.f32 %v4214_v50, %v2389_v33 }
  0xea   :  { %v1410_v0 = vld [vmem:[#allocation5 + $0x5c0] sm:$0xff]  ;;  %v1492_v32 = vmul.f32 %v1488_v58, %v4185_v1  ;;  %6290 = vst [vmem:[#allocation69_spill] sm:$0xff] %v4304_v16 }
  0xeb   :  { %v1575_v6 = vld [vmem:[#allocation5 + $0x200] sm:$0xff]  ;;  %v1414_v24 = vadd.f32 %v1410_v0, %v1405_v53  ;;  %6291 = vst [vmem:[#allocation70_spill] sm:$0xff] %v4307_v45  ;;  %v909_v35 = vadd.f32 %v905_v19, %v822_v2 }
  0xec   :  { %v988_v20 = vld [vmem:[#allocation5 + $0x920] sm:$0xff]  ;;  %v1579_v8 = vmul.f32 %v1575_v6, %v4185_v1 }
  0xed   :  { %v1075_v61 = vld [vmem:[#allocation5 + $0x940] sm:$0xff]  ;;  %v992_v52 = vmul.f32 %v988_v20, %v4285_v48  ;;  %v4313_v62 = vmax.f32 %v1414_v24, 0.0 }
  0xee   :  { %v1497_v44 = vld [vmem:[#allocation5 + $0x5e0] sm:$0xff]  ;;  %v1079_v54 = vmul.f32 %v1075_v61, %v4290_v13 }
  0xef   :  { %v1662_v3 = vld [vmem:[#allocation5 + $0x220] sm:$0xff]  ;;  %v1501_v0 = vadd.f32 %v1497_v44, %v1492_v32  ;;  %6292 = vst [vmem:[#allocation71_spill] sm:$0xff] %v4313_v62  ;;  %v2563_v44 = vadd.f32 %v4219_v63, %v2476_v42 }
  0xf0   :  { %v1584_v39 = vld [vmem:[#allocation5 + $0x600] sm:$0xff]  ;;  %v1666_v6 = vmul.f32 %v1662_v3, %v4185_v1  ;;  %v996_v3 = vadd.f32 %v992_v52, %v909_v35 }
  0xf1   :  { %v1749_v36 = vld [vmem:[#allocation5 + $0x240] sm:$0xff]  ;;  %v1588_v25 = vadd.f32 %v1584_v39, %v1579_v8  ;;  %v4319_v2 = vmax.f32 %v1501_v0, 0.0 }
  0xf2   :  { %v1162_v57 = vld [vmem:[#allocation5 + $0x960] sm:$0xff]  ;;  %v1753_v20 = vmul.f32 %v1749_v36, %v4185_v1 }
  0xf3   :  { %v1671_v58 = vld [vmem:[#allocation5 + $0x620] sm:$0xff]  ;;  %v1166_v5 = vmul.f32 %v1162_v57, %v4299_v49  ;;  %6293 = vst [vmem:[#allocation72_spill] sm:$0xff] %v4319_v2  ;;  %v4323_v63 = vmax.f32 %v1588_v25, 0.0 }
  0xf4   :  { %v1836_v11 = vld [vmem:[#allocation5 + $0x260] sm:$0xff]  ;;  %v1675_v61 = vadd.f32 %v1671_v58, %v1666_v6  ;;  %v1083_v6 = vadd.f32 %v1079_v54, %v996_v3  ;;  %v1514_v3 = vmul.f32 %v1510_v60, %v4319_v2 }
  0xf5   :  { %v1249_v47 = vld [vmem:[#allocation5 + $0x980] sm:$0xff]  ;;  %v1840_v14 = vmul.f32 %v1836_v11, %v4185_v1  ;;  %v2650_v11 = vadd.f32 %v4229_v28, %v2563_v44  ;;  %6294 = vst [vmem:[#allocation73_spill] sm:$0xff] %v4323_v63 }
  0xf6   :  { %v1758_v53 = vld [vmem:[#allocation5 + $0x640] sm:$0xff]  ;;  %v1253_v50 = vmul.f32 %v1249_v47, %v4304_v16  ;;  %v1170_v28 = vadd.f32 %v1166_v5, %v1083_v6 }
  0xf7   :  { %v1336_v15 = vld [vmem:[#allocation5 + $0x9a0] sm:$0xff]  ;;  %v1762_v33 = vadd.f32 %v1758_v53, %v1753_v20 }
  0xf8   :  { %v1845_v29 = vld [vmem:[#allocation5 + $0x660] sm:$0xff]  ;;  %v1340_v36 = vmul.f32 %v1336_v15, %v4307_v45  ;;  %v4327_v15 = vmax.f32 %v1675_v61, 0.0 }
  0xf9   :  { %v1923_v10 = vld [vmem:[#allocation5 + $0x280] sm:$0xff]  ;;  %v1849_v57 = vadd.f32 %v1845_v29, %v1840_v14  ;;  %v4331_v14 = vmax.f32 %v1762_v33, 0.0 }
  0xfa   :  { %v2010_v32 = vld [vmem:[#allocation5 + $0x2a0] sm:$0xff]  ;;  %v1927_v24 = vmul.f32 %v1923_v10, %v4185_v1  ;;  %6295 = vst [vmem:[#allocation74_spill] sm:$0xff] %v4327_v15  ;;  %v2737_v10 = vadd.f32 %v4263_v59, %v2650_v11 }
  0xfb   :  { %v1423_v19 = vld [vmem:[#allocation5 + $0x9c0] sm:$0xff]  ;;  %v2014_v42 = vmul.f32 %v2010_v32, %v4185_v1  ;;  %6296 = vst [vmem:[#allocation75_spill] sm:$0xff] %v4331_v14  ;;  %v2967_v32 = vld [vmem:[#allocation7 + $0x8] sm:$0xff] }
  0xfc   :  { %v1932_v8 = vld [vmem:[#allocation5 + $0x680] sm:$0xff]  ;;  %v1427_v53 = vmul.f32 %v1423_v19, %v4313_v62  ;;  %v4334_v19 = vmax.f32 %v1849_v57, 0.0 }
  0xfd   :  { %v2097_v39 = vld [vmem:[#allocation5 + $0x2c0] sm:$0xff]  ;;  %v1936_v0 = vadd.f32 %v1932_v8, %v1927_v24  ;;  %v1257_v24 = vadd.f32 %v1253_v50, %v1170_v28 }
  0xfe   :  { %v2019_v58 = vld [vmem:[#allocation5 + $0x6a0] sm:$0xff]  ;;  %v2101_v20 = vmul.f32 %v2097_v39, %v4185_v1  ;;  %6297 = vst [vmem:[#allocation76_spill] sm:$0xff] %v4334_v19  ;;  %v2824_v39 = vadd.f32 %v4288_v21, %v2737_v10 }
  0xff   :  { %v2106_v47 = vld [vmem:[#allocation5 + $0x6c0] sm:$0xff]  ;;  %v2023_v25 = vadd.f32 %v2019_v58, %v2014_v42  ;;  %v4341_v60 = vmax.f32 %v1936_v0, 0.0  ;;  %v1344_v50 = vadd.f32 %v1340_v36, %v1257_v24 }
 0x100   :  { %v2184_v52 = vld [vmem:[#allocation5 + $0x2e0] sm:$0xff]  ;;  %v2110_v27 = vadd.f32 %v2106_v47, %v2101_v20  ;;  %v2911_v21 = vadd.f32 %v4297_v7, %v2824_v39 }
 0x101   :  { %v1597_v35 = vld [vmem:[#allocation5 + $0xa00] sm:$0xff]  ;;  %v2188_v8 = vmul.f32 %v2184_v52, %v4185_v1  ;;  %6298 = vst [vmem:[#allocation77_spill] sm:$0xff] %v4341_v60  ;;  %v4343_v42 = vmax.f32 %v2023_v25, 0.0  ;;  %v1431_v51 = vadd.f32 %v1427_v53, %v1344_v50 }
 0x102   :  { %v2271_v29 = vld [vmem:[#allocation5 + $0x300] sm:$0xff]  ;;  %v1601_v5 = vmul.f32 %v1597_v35, %v4323_v63  ;;  %v1775_v35 = vmul.f32 %v1771_v46, %v4331_v14  ;;  %v2971_v56 = vadd.f32 %v2967_v32, %v2911_v21 }
 0x103   :  { %v1684_v54 = vld [vmem:[#allocation5 + $0xa20] sm:$0xff]  ;;  %v2275_v33 = vmul.f32 %v2271_v29, %v4185_v1  ;;  %6299 = vst [vmem:[#allocation78_spill] sm:$0xff] %v4343_v42  ;;  %v4348_v29 = vmax.f32 %v2110_v27, 0.0  ;;  %v172_v27 = vld [vmem:[#allocation8 + $0x8] sm:$0xff] }
 0x104   :  { %v2358_v44 = vld [vmem:[#allocation5 + $0x320] sm:$0xff]  ;;  %v1688_v6 = vmul.f32 %v1684_v54, %v4327_v15 }
 0x105   :  { %v1858_v61 = vld [vmem:[#allocation5 + $0xa60] sm:$0xff]  ;;  %v2362_v47 = vmul.f32 %v2358_v44, %v4185_v1  ;;  %6300 = vst [vmem:[#allocation79_spill] sm:$0xff] %v4348_v29 }
 0x106   :  { %v2193_v59 = vld [vmem:[#allocation5 + $0x6e0] sm:$0xff]  ;;  %v4351_v0 = vmul.f32 %v1858_v61, %v4334_v19 }
 0x107   :  { %v2280_v58 = vld [vmem:[#allocation5 + $0x700] sm:$0xff]  ;;  %v2197_v25 = vadd.f32 %v2193_v59, %v2188_v8  ;;  %v2623_v8 = vmul.f32 %v2619_v26, %v4185_v1 }
 0x108   :  { %v2445_v11 = vld [vmem:[#allocation5 + $0x340] sm:$0xff]  ;;  %v2284_v18 = vadd.f32 %v2280_v58, %v2275_v33  ;;  %v2975_v33 = vmax.f32 %v2971_v56, 0.0  ;;  %v1518_v58 = vadd.f32 %v1514_v3, %v1431_v51 }
 0x109   :  { %v1945_v57 = vld [vmem:[#allocation5 + $0xa80] sm:$0xff]  ;;  %v2449_v44 = vmul.f32 %v2445_v11, %v4185_v1 }
 0x10a   :  { %v2367_v52 = vld [vmem:[#allocation5 + $0x720] sm:$0xff]  ;;  %v4356_v24 = vmul.f32 %v1945_v57, %v4341_v60  ;;  %v1605_v26 = vadd.f32 %v1601_v5, %v1518_v58 }
 0x10b   :  { %v2532_v20 = vld [vmem:[#allocation5 + $0x360] sm:$0xff]  ;;  %v2371_v7 = vadd.f32 %v2367_v52, %v2362_v47  ;;  %v4365_v52 = vmax.f32 %v2197_v25, 0.0 }
 0x10c   :  { %v2032_v10 = vld [vmem:[#allocation5 + $0xaa0] sm:$0xff]  ;;  %v2536_v36 = vmul.f32 %v2532_v20, %v4185_v1  ;;  %v4367_v20 = vmax.f32 %v2284_v18, 0.0 }
 0x10d   :  { %v2454_v28 = vld [vmem:[#allocation5 + $0x740] sm:$0xff]  ;;  %v4359_v61 = vmul.f32 %v2032_v10, %v4343_v42  ;;  %6301 = vst [vmem:[#allocation80_spill] sm:$0xff] %v4365_v52  ;;  %v4370_v56 = vmax.f32 %v2371_v7, 0.0 }
 0x10e   :  { %v2119_v54 = vld [vmem:[#allocation5 + $0xac0] sm:$0xff]  ;;  %v2458_v43 = vadd.f32 %v2454_v28, %v2449_v44  ;;  %v2545_v32 = vadd.f32 %v2541_v9, %v2536_v36  ;;  %6302 = vst [vmem:[#allocation81_spill] sm:$0xff] %v4367_v20  ;;  %v2979_v28 = vmul.f32 %v2975_v33, %v172_v27 }
 0x10f   :  { %v2628_v46 = vld [vmem:[#allocation5 + $0x780] sm:$0xff]  ;;  %v4363_v53 = vmul.f32 %v2119_v54, %v4348_v29  ;;  %6303 = vst [vmem:[#allocation82_spill] sm:$0xff] %v4370_v56 }
 0x110   :  { %v2706_v39 = vld [vmem:[#allocation5 + $0x3a0] sm:$0xff]  ;;  %v2632_v57 = vadd.f32 %v2628_v46, %v2623_v8  ;;  %v4373_v36 = vmax.f32 %v2458_v43, 0.0  ;;  %v4375_v25 = vmax.f32 %v2545_v32, 0.0  ;;  %2984 = vadd.xlane.f32.xlu1 %v2979_v28  ;;  %v1692_v8 = vadd.f32 %v1688_v6, %v1605_v26 }
 0x111   :  { %v2793_v59 = vld [vmem:[#allocation5 + $0x3c0] sm:$0xff]  ;;  %v2710_v21 = vmul.f32 %v2706_v39, %v4185_v1 }
 0x112   :  { %v2715_v11 = vld [vmem:[#allocation5 + $0x7a0] sm:$0xff]  ;;  %v2797_v51 = vmul.f32 %v2793_v59, %v4185_v1  ;;  %6304 = vst [vmem:[#allocation83_spill] sm:$0xff] %v4373_v36  ;;  %6305 = vst [vmem:[#allocation84_spill] sm:$0xff] %v4375_v25  ;;  %v4378_v5 = vmax.f32 %v2632_v57, 0.0 }
 0x113   :  { %v2880_v47 = vld [vmem:[#allocation5 + $0x3e0] sm:$0xff]  ;;  %v2719_v18 = vadd.f32 %v2715_v11, %v2710_v21 }
 0x114   :  { %v2802_v50 = vld [vmem:[#allocation5 + $0x7c0] sm:$0xff]  ;;  %v2884_v46 = vmul.f32 %v2880_v47, %v4185_v1  ;;  %6306 = vst [vmem:[#allocation85_spill] sm:$0xff] %v4378_v5  ;;  %v1779_v47 = vadd.f32 %v1775_v35, %v1692_v8  ;;  %v4404_v8 = vmul.f32 %v2554_v37, %v4375_v25 }
 0x115   :  { %v231_v10 = vld [vmem:[#allocation5 + $0x1000] sm:$0xff]  ;;  %v2806_v7 = vadd.f32 %v2802_v50, %v2797_v51  ;;  %v4384_v30 = vmax.f32 %v2719_v18, 0.0 }
 0x116   :  { %v2206_v44 = vld [vmem:[#allocation5 + $0xae0] sm:$0xff]  ;;  %v235_v33 = vmul.f32 %v231_v10, %v4231_v40  ;;  %6310 = vst [vmem:[#allocation89_spill] sm:$0xff] %v4404_v8 }
 0x117   :  { %v2889_v3 = vld [vmem:[#allocation5 + $0x7e0] sm:$0xff]  ;;  %v4382_v58 = vmul.f32 %v2206_v44, %v4365_v52  ;;  %6307 = vst [vmem:[#allocation86_spill] sm:$0xff] %v4384_v30  ;;  %v4390_v21 = vmax.f32 %v2806_v7, 0.0 }
 0x118   :  { %v318_v9 = vld [vmem:[#allocation5 + $0x1020] sm:$0xff]  ;;  %v2893_v11 = vadd.f32 %v2889_v3, %v2884_v46 }
 0x119   :  { %v2293_v54 = vld [vmem:[#allocation5 + $0xb00] sm:$0xff]  ;;  %v322_v1 = vmul.f32 %v318_v9, %v4237_v41  ;;  %6308 = vst [vmem:[#allocation87_spill] sm:$0xff] %v4390_v21 }
 0x11a   :  { %v405_v39 = vld [vmem:[#allocation5 + $0x1040] sm:$0xff]  ;;  %v4388_v6 = vmul.f32 %v2293_v54, %v4367_v20  ;;  %v4396_v44 = vmax.f32 %v2893_v11, 0.0  ;;  %v1866_v54 = vadd.f32 %v4351_v0, %v1779_v47 }
 0x11b   :  { %v2380_v27 = vld [vmem:[#allocation5 + $0xb20] sm:$0xff]  ;;  %v409_v10 = vmul.f32 %v405_v39, %v4240_v38  ;;  %v326_v3 = vadd.f32 %v322_v1, %v235_v33 }
 0x11c   :  { %v492_v59 = vld [vmem:[#allocation5 + $0x1060] sm:$0xff]  ;;  %v4394_v26 = vmul.f32 %v2380_v27, %v4370_v56  ;;  %6309 = vst [vmem:[#allocation88_spill] sm:$0xff] %v4396_v44  ;;  %v1953_v37 = vadd.f32 %v4356_v24, %v1866_v54 }
 0x11d   :  { %v2467_v43 = vld [vmem:[#allocation5 + $0xb40] sm:$0xff]  ;;  %v496_v9 = vmul.f32 %v492_v59, %v4245_v55  ;;  %v413_v1 = vadd.f32 %v409_v10, %v326_v3 }
 0x11e   :  { %v2641_v32 = vld [vmem:[#allocation5 + $0xb80] sm:$0xff]  ;;  %v4401_v46 = vmul.f32 %v2467_v43, %v4373_v36 }
 0x11f   :  { %v2728_v57 = vld [vmem:[#allocation5 + $0xba0] sm:$0xff]  ;;  %v4407_v39 = vmul.f32 %v2641_v32, %v4378_v5 }
 0x120   :  { %v2815_v50 = vld [vmem:[#allocation5 + $0xbc0] sm:$0xff]  ;;  %v4410_v33 = vmul.f32 %v2728_v57, %v4384_v30 }
 0x121   :  { %v579_v28 = vld [vmem:[#allocation5 + $0x1080] sm:$0xff]  ;;  %6311 = vst [vmem:[#allocation90_spill] sm:$0xff] %v4407_v39  ;;  %v4413_v59 = vmul.f32 %v2815_v50, %v4390_v21  ;;  %v500_v50 = vadd.f32 %v496_v9, %v413_v1  ;;  %v4437_v9 = vmul.f32 %v1275_v23, %v4304_v16 }
 0x122   :  { %v2902_v51 = vld [vmem:[#allocation5 + $0xbe0] sm:$0xff]  ;;  %6312 = vst [vmem:[#allocation91_spill] sm:$0xff] %v4410_v33  ;;  %v583_v0 = vmul.f32 %v579_v28, %v4249_v12 }
 0x123   :  { %v666_v35 = vld [vmem:[#allocation5 + $0x10a0] sm:$0xff]  ;;  %6313 = vst [vmem:[#allocation92_spill] sm:$0xff] %v4413_v59  ;;  %v4418_v32 = vmul.f32 %v2902_v51, %v4396_v44  ;;  %6316 = vst [vmem:[#allocation95_spill] sm:$0xff] %v4437_v9 }
 0x124   :  { %v753_v18 = vld [vmem:[#allocation5 + $0x10c0] sm:$0xff]  ;;  %v670_v17 = vmul.f32 %v666_v35, %v4255_v34  ;;  %v587_v59 = vadd.f32 %v583_v0, %v500_v50 }
 0x125   :  { %v840_v27 = vld [vmem:[#allocation5 + $0x10e0] sm:$0xff]  ;;  %6314 = vst [vmem:[#allocation93_spill] sm:$0xff] %v4418_v32  ;;  %v757_v39 = vmul.f32 %v753_v18, %v4259_v31  ;;  %v2040_v32 = vadd.f32 %v4359_v61, %v1953_v37 }
 0x126   :  { %v927_v7 = vld [vmem:[#allocation5 + $0x1100] sm:$0xff]  ;;  %v844_v10 = vmul.f32 %v840_v27, %v4265_v4 }
 0x127   :  { %v1014_v11 = vld [vmem:[#allocation5 + $0x1120] sm:$0xff]  ;;  %v4424_v28 = vmul.f32 %v927_v7, %v4276_v22 }
 0x128   :  { %v1101_v43 = vld [vmem:[#allocation5 + $0x1140] sm:$0xff]  ;;  %v4427_v3 = vmul.f32 %v1014_v11, %v4285_v48 }
 0x129   :  { %v1188_v47 = vld [vmem:[#allocation5 + $0x1160] sm:$0xff]  ;;  %v4431_v35 = vmul.f32 %v1101_v43, %v4290_v13 }
 0x12a   :  { %v1362_v57 = vld [vmem:[#allocation5 + $0x11a0] sm:$0xff]  ;;  %v4434_v18 = vmul.f32 %v1188_v47, %v4299_v49 }
 0x12b   :  { %v1449_v33 = vld [vmem:[#allocation5 + $0x11c0] sm:$0xff]  ;;  %v4440_v11 = vmul.f32 %v1362_v57, %v4307_v45 }
 0x12c   :  { %v1536_v8 = vld [vmem:[#allocation5 + $0x11e0] sm:$0xff]  ;;  %6315 = vst [vmem:[#allocation94_spill] sm:$0xff] %v4434_v18  ;;  %v4443_v48 = vmul.f32 %v1449_v33, %v4313_v62  ;;  %v2127_v18 = vadd.f32 %v4363_v53, %v2040_v32 }
 0x12d   :  { %v1623_v24 = vld [vmem:[#allocation5 + $0x1200] sm:$0xff]  ;;  %v4446_v61 = vmul.f32 %v1536_v8, %v4319_v2 }
 0x12e   :  { %v1710_v54 = vld [vmem:[#allocation5 + $0x1220] sm:$0xff]  ;;  %6317 = vst [vmem:[#allocation96_spill] sm:$0xff] %v4443_v48  ;;  %v4450_v23 = vmul.f32 %v1623_v24, %v4323_v63  ;;  %v674_v48 = vadd.f32 %v670_v17, %v587_v59 }
 0x12f   :  { %v1797_v51 = vld [vmem:[#allocation5 + $0x1240] sm:$0xff]  ;;  %6318 = vst [vmem:[#allocation97_spill] sm:$0xff] %v4446_v61  ;;  %v4453_v9 = vmul.f32 %v1710_v54, %v4327_v15 }
 0x130   :  { %v1884_v27 = vld [vmem:[#allocation5 + $0x1260] sm:$0xff]  ;;  %v4456_v0 = vmul.f32 %v1797_v51, %v4331_v14 }
 0x131   :  { %v1971_v7 = vld [vmem:[#allocation5 + $0x1280] sm:$0xff]  ;;  %6319 = vst [vmem:[#allocation98_spill] sm:$0xff] %v4453_v9  ;;  %v4459_v8 = vmul.f32 %v1884_v27, %v4334_v19  ;;  %v2214_v9 = vadd.f32 %v4382_v58, %v2127_v18 }
 0x132   :  { %v2058_v1 = vld [vmem:[#allocation5 + $0x12a0] sm:$0xff]  ;;  %6320 = vst [vmem:[#allocation99_spill] sm:$0xff] %v4456_v0  ;;  %v4462_v61 = vmul.f32 %v1971_v7, %v4341_v60 }
 0x133   :  { %v2145_v43 = vld [vmem:[#allocation5 + $0x12c0] sm:$0xff]  ;;  %6321 = vst [vmem:[#allocation100_spill] sm:$0xff] %v4459_v8  ;;  %v4465_v53 = vmul.f32 %v2058_v1, %v4343_v42 }
 0x134   :  { %v2232_v37 = vld [vmem:[#allocation5 + $0x12e0] sm:$0xff]  ;;  %6322 = vst [vmem:[#allocation101_spill] sm:$0xff] %v4462_v61  ;;  %v4469_v51 = vmul.f32 %v2145_v43, %v4348_v29  ;;  %v761_v61 = vadd.f32 %v757_v39, %v674_v48 }
 0x135   :  { %v2319_v47 = vld [vmem:[#allocation5 + $0x1300] sm:$0xff]  ;;  %6323 = vst [vmem:[#allocation102_spill] sm:$0xff] %v4465_v53  ;;  %v4472_v0 = vmul.f32 %v2232_v37, %v4365_v52  ;;  %v2301_v37 = vadd.f32 %v4388_v6, %v2214_v9 }
 0x136   :  { %v2406_v57 = vld [vmem:[#allocation5 + $0x1320] sm:$0xff]  ;;  %6324 = vst [vmem:[#allocation103_spill] sm:$0xff] %v4469_v51  ;;  %v4475_v17 = vmul.f32 %v2319_v47, %v4367_v20 }
 0x137   :  { %v2493_v33 = vld [vmem:[#allocation5 + $0x1340] sm:$0xff]  ;;  %6325 = vst [vmem:[#allocation104_spill] sm:$0xff] %v4472_v0  ;;  %v4478_v1 = vmul.f32 %v2406_v57, %v4370_v56 }
 0x138   :  { %v218_v50 = vld [vmem:[#allocation5 + $0xc00] sm:$0xff]  ;;  %6326 = vst [vmem:[#allocation105_spill] sm:$0xff] %v4475_v17  ;;  %v4481_v53 = vmul.f32 %v2493_v33, %v4373_v36 }
 0x139   :  { %v2580_v32 = vld [vmem:[#allocation5 + $0x1360] sm:$0xff]  ;;  %6327 = vst [vmem:[#allocation106_spill] sm:$0xff] %v4478_v1  ;;  %v222_v18 = vmul.f32 %v218_v50, %v4231_v40  ;;  %v848_v1 = vadd.f32 %v844_v10, %v761_v61 }
 0x13a   :  { %v305_v24 = vld [vmem:[#allocation5 + $0xc20] sm:$0xff]  ;;  %6328 = vst [vmem:[#allocation107_spill] sm:$0xff] %v4481_v53  ;;  %v4486_v0 = vmul.f32 %v2580_v32, %v4375_v25  ;;  %v2388_v32 = vadd.f32 %v4394_v26, %v2301_v37 }
 0x13b   :  { %v392_v54 = vld [vmem:[#allocation5 + $0xc40] sm:$0xff]  ;;  %v309_v47 = vmul.f32 %v305_v24, %v4237_v41 }
 0x13c   :  { %v2667_v59 = vld [vmem:[#allocation5 + $0x1380] sm:$0xff]  ;;  %6329 = vst [vmem:[#allocation108_spill] sm:$0xff] %v4486_v0  ;;  %v396_v17 = vmul.f32 %v392_v54, %v4240_v38  ;;  %v2475_v26 = vadd.f32 %v4401_v46, %v2388_v32 }
 0x13d   :  { %v2754_v27 = vld [vmem:[#allocation5 + $0x13a0] sm:$0xff]  ;;  %v4491_v33 = vmul.f32 %v2667_v59, %v4378_v5  ;;  %v313_v54 = vadd.f32 %v309_v47, %v222_v18 }
 0x13e   :  { %v2841_v7 = vld [vmem:[#allocation5 + $0x13c0] sm:$0xff]  ;;  %v4494_v53 = vmul.f32 %v2754_v27, %v4384_v30 }
 0x13f   :  { %v2928_v58 = vld [vmem:[#allocation5 + $0x13e0] sm:$0xff]  ;;  %6330 = vst [vmem:[#allocation109_spill] sm:$0xff] %v4491_v33  ;;  %v4497_v50 = vmul.f32 %v2841_v7, %v4390_v21  ;;  %v935_v33 = vadd.f32 %v4424_v28, %v848_v1 }
 0x140   :  { %v479_v43 = vld [vmem:[#allocation5 + $0xc60] sm:$0xff]  ;;  %6331 = vst [vmem:[#allocation110_spill] sm:$0xff] %v4494_v53  ;;  %v4501_v24 = vmul.f32 %v2928_v58, %v4396_v44  ;;  %v400_v58 = vadd.f32 %v396_v17, %v313_v54 }
 0x141   :  { %v566_v48 = vld [vmem:[#allocation5 + $0xc80] sm:$0xff]  ;;  %6332 = vst [vmem:[#allocation111_spill] sm:$0xff] %v4497_v50  ;;  %v483_v0 = vmul.f32 %v479_v43, %v4245_v55  ;;  %v1022_v1 = vadd.f32 %v4427_v3, %v935_v33 }
 0x142   :  { %v653_v39 = vld [vmem:[#allocation5 + $0xca0] sm:$0xff]  ;;  %6333 = vst [vmem:[#allocation112_spill] sm:$0xff] %v4501_v24  ;;  %v570_v27 = vmul.f32 %v566_v48, %v4249_v12  ;;  %v6334_v48 = vld [vmem:[#allocation66_spill] sm:$0xff] }
 0x143   :  { %v740_v57 = vld [vmem:[#allocation5 + $0xcc0] sm:$0xff]  ;;  %v657_v7 = vmul.f32 %v653_v39, %v4255_v34 }
 0x144   :  { %v827_v6 = vld [vmem:[#allocation5 + $0xce0] sm:$0xff]  ;;  %v744_v50 = vmul.f32 %v740_v57, %v4259_v31 }
 0x145   :  { %v914_v9 = vld [vmem:[#allocation5 + $0xd00] sm:$0xff]  ;;  %v4510_v18 = vmul.f32 %v827_v6, %v4265_v4 }
 0x146   :  { %v1001_v10 = vld [vmem:[#allocation5 + $0xd20] sm:$0xff]  ;;  %v4513_v43 = vmul.f32 %v914_v9, %v4276_v22  ;;  %v487_v9 = vadd.f32 %v483_v0, %v400_v58  ;;  %v6341_v58 = vld [vmem:[#allocation90_spill] sm:$0xff] }
 0x147   :  { %v1088_v61 = vld [vmem:[#allocation5 + $0xd40] sm:$0xff]  ;;  %v4517_v39 = vmul.f32 %v1001_v10, %v6334_v48 }
 0x148   :  { %v1175_v59 = vld [vmem:[#allocation5 + $0xd60] sm:$0xff]  ;;  %v4520_v57 = vmul.f32 %v1088_v61, %v4290_v13  ;;  %v1109_v61 = vadd.f32 %v4431_v35, %v1022_v1 }
 0x149   :  { %v1262_v53 = vld [vmem:[#allocation5 + $0xd80] sm:$0xff]  ;;  %v4523_v46 = vmul.f32 %v1175_v59, %v4299_v49 }
 0x14a   :  { %v1349_v51 = vld [vmem:[#allocation5 + $0xda0] sm:$0xff]  ;;  %6335 = vst [vmem:[#allocation113_spill] sm:$0xff] %v4520_v57  ;;  %v4527_v24 = vmul.f32 %v1262_v53, %v4304_v16 }
 0x14b   :  { %v1436_v37 = vld [vmem:[#allocation5 + $0xdc0] sm:$0xff]  ;;  %v4530_v8 = vmul.f32 %v1349_v51, %v4307_v45  ;;  %v574_v51 = vadd.f32 %v570_v27, %v487_v9  ;;  %v6348_v9 = vld [vmem:[#allocation91_spill] sm:$0xff] }
 0x14c   :  { %v1523_v47 = vld [vmem:[#allocation5 + $0xde0] sm:$0xff]  ;;  %v4534_v57 = vmul.f32 %v1436_v37, %v4313_v62 }
 0x14d   :  { %v1610_v28 = vld [vmem:[#allocation5 + $0xe00] sm:$0xff]  ;;  %6338 = vst [vmem:[#allocation114_spill] sm:$0xff] %v4530_v8  ;;  %v4537_v59 = vmul.f32 %v1523_v47, %v4319_v2 }
 0x14e   :  { %v1697_v17 = vld [vmem:[#allocation5 + $0xe20] sm:$0xff]  ;;  %6339 = vst [vmem:[#allocation115_spill] sm:$0xff] %v4534_v57  ;;  %v6344_v57 = vld [vmem:[#allocation94_spill] sm:$0xff] }
 0x14f   :  { %v1784_v6 = vld [vmem:[#allocation5 + $0xe40] sm:$0xff]  ;;  %6340 = vst [vmem:[#allocation116_spill] sm:$0xff] %v4537_v59  ;;  %v4544_v8 = vmul.f32 %v1697_v17, %v4327_v15  ;;  %v1196_v47 = vadd.f32 %v6344_v57, %v1109_v61 }
 0x150   :  { %v6336_v32 = vld [vmem:[#allocation89_spill] sm:$0xff] }
 0x151   :  { %v2562_v54 = vadd.f32 %v6336_v32, %v2475_v26  ;;  %6337 = vst [vmem:[#allocation89_spill] sm:$0xff] %v4527_v24  ;;  %v1871_v3 = vld [vmem:[#allocation5 + $0xe60] sm:$0xff]  ;;  %v4540_v26 = vmul.f32 %v1610_v28, %v4323_v63  ;;  %6342 = vst [vmem:[#allocation90_spill] sm:$0xff] %v4544_v8  ;;  %v4547_v24 = vmul.f32 %v1784_v6, %v4331_v14 }
 0x152   :  { %v1958_v33 = vld [vmem:[#allocation5 + $0xe80] sm:$0xff]  ;;  %v4551_v59 = vmul.f32 %v1871_v3, %v4334_v19  ;;  %v661_v6 = vadd.f32 %v657_v7, %v574_v51 }
 0x153   :  { %v2045_v10 = vld [vmem:[#allocation5 + $0xea0] sm:$0xff]  ;;  %v2649_v32 = vadd.f32 %v6341_v58, %v2562_v54  ;;  %6343 = vst [vmem:[#allocation117_spill] sm:$0xff] %v4547_v24  ;;  %v4554_v28 = vmul.f32 %v1958_v33, %v4341_v60 }
 0x154   :  { %v2132_v0 = vld [vmem:[#allocation5 + $0xec0] sm:$0xff]  ;;  %6345 = vst [vmem:[#allocation94_spill] sm:$0xff] %v4551_v59  ;;  %v4557_v54 = vmul.f32 %v2045_v10, %v4343_v42  ;;  %v6351_v59 = vld [vmem:[#allocation95_spill] sm:$0xff] }
 0x155   :  { %v2219_v53 = vld [vmem:[#allocation5 + $0xee0] sm:$0xff]  ;;  %6346 = vst [vmem:[#allocation118_spill] sm:$0xff] %v4554_v28  ;;  %v2736_v58 = vadd.f32 %v6348_v9, %v2649_v32  ;;  %v4561_v24 = vmul.f32 %v2132_v0, %v4348_v29  ;;  %v1283_v33 = vadd.f32 %v6351_v59, %v1196_v47  ;;  %v748_v9 = vadd.f32 %v744_v50, %v661_v6 }
 0x156   :  { %v2306_v35 = vld [vmem:[#allocation5 + $0xf00] sm:$0xff]  ;;  %6347 = vst [vmem:[#allocation119_spill] sm:$0xff] %v4557_v54  ;;  %v4564_v8 = vmul.f32 %v2219_v53, %v4365_v52 }
 0x157   :  { %v2393_v37 = vld [vmem:[#allocation5 + $0xf20] sm:$0xff]  ;;  %6349 = vst [vmem:[#allocation91_spill] sm:$0xff] %v4561_v24  ;;  %v4568_v28 = vmul.f32 %v2306_v35, %v4367_v20  ;;  %v1370_v35 = vadd.f32 %v4440_v11, %v1283_v33 }
 0x158   :  { %v2480_v1 = vld [vmem:[#allocation5 + $0xf40] sm:$0xff]  ;;  %6350 = vst [vmem:[#allocation120_spill] sm:$0xff] %v4564_v8  ;;  %v4571_v10 = vmul.f32 %v2393_v37, %v4370_v56 }
 0x159   :  { %v244_v27 = vld [vmem:[#allocation5 + $0x1400] sm:$0xff]  ;;  %v4574_v32 = vmul.f32 %v2480_v1, %v4373_v36 }
 0x15a   :  { %v331_v17 = vld [vmem:[#allocation5 + $0x1420] sm:$0xff]  ;;  %6352 = vst [vmem:[#allocation95_spill] sm:$0xff] %v4571_v10  ;;  %v248_v54 = vmul.f32 %v244_v27, %v4231_v40 }
 0x15b   :  { %v2567_v57 = vld [vmem:[#allocation5 + $0xf60] sm:$0xff]  ;;  %6353 = vst [vmem:[#allocation121_spill] sm:$0xff] %v4574_v32  ;;  %v335_v59 = vmul.f32 %v331_v17, %v4237_v41 }
 0x15c   :  { %v2654_v3 = vld [vmem:[#allocation5 + $0xf80] sm:$0xff]  ;;  %v4581_v37 = vmul.f32 %v2567_v57, %v4375_v25 }
 0x15d   :  { %v418_v61 = vld [vmem:[#allocation5 + $0x1440] sm:$0xff]  ;;  %v4584_v1 = vmul.f32 %v2654_v3, %v4378_v5  ;;  %v339_v10 = vadd.f32 %v335_v59, %v248_v54 }
 0x15e   :  { %v505_v7 = vld [vmem:[#allocation5 + $0x1460] sm:$0xff]  ;;  %v422_v32 = vmul.f32 %v418_v61, %v4240_v38 }
 0x15f   :  { %v6354_v0 = vld [vmem:[#allocation92_spill] sm:$0xff]  ;;  %v6356_v50 = vld [vmem:[#allocation93_spill] sm:$0xff]  ;;  %v509_v27 = vmul.f32 %v505_v7, %v4245_v55 }
 0x160   :  { %v2823_v51 = vadd.f32 %v6354_v0, %v2736_v58  ;;  %v2741_v53 = vld [vmem:[#allocation5 + $0xfa0] sm:$0xff]  ;;  %6355 = vst [vmem:[#allocation92_spill] sm:$0xff] %v4584_v1  ;;  %v835_v0 = vadd.f32 %v4510_v18, %v748_v9  ;;  %v426_v54 = vadd.f32 %v422_v32, %v339_v10 }
 0x161   :  { %v2828_v8 = vld [vmem:[#allocation5 + $0xfc0] sm:$0xff]  ;;  %v4592_v57 = vmul.f32 %v2741_v53, %v4384_v30 }
 0x162   :  { %v2915_v24 = vld [vmem:[#allocation5 + $0xfe0] sm:$0xff]  ;;  %v2910_v6 = vadd.f32 %v6356_v50, %v2823_v51  ;;  %v4595_v3 = vmul.f32 %v2828_v8, %v4390_v21  ;;  %v922_v18 = vadd.f32 %v4513_v43, %v835_v0  ;;  %v513_v10 = vadd.f32 %v509_v27, %v426_v54 }
 0x163   :  { %v2966_v47 = vld [vmem:[#allocation7] sm:$0xff]  ;;  %6358 = vst [vmem:[#allocation93_spill] sm:$0xff] %v4592_v57  ;;  %v4598_v61 = vmul.f32 %v2915_v24, %v4396_v44  ;;  %v6407_v57 = vld [vmem:[#allocation42_spill] sm:$0xff] }
 0x164   :  { %v592_v58 = vld [vmem:[#allocation5 + $0x1480] sm:$0xff]  ;;  %v2970_v50 = vadd.f32 %v2966_v47, %v2910_v6  ;;  %v1009_v43 = vadd.f32 %v4517_v39, %v922_v18 }
 0x165   :  { %v679_v17 = vld [vmem:[#allocation5 + $0x14a0] sm:$0xff]  ;;  %6360 = vst [vmem:[#allocation122_spill] sm:$0xff] %v4598_v61  ;;  %v596_v7 = vmul.f32 %v592_v58, %v4249_v12 }
 0x166   :  { %v766_v41 = vld [vmem:[#allocation5 + $0x14c0] sm:$0xff]  ;;  %v683_v8 = vmul.f32 %v679_v17, %v4255_v34  ;;  %v2974_v47 = vmax.f32 %v2970_v50, 0.0  ;;  %v1437_v34 = vld [vmem:[#allocation5 + $0xdc8] sm:$0xff] }
 0x167   :  { %v853_v40 = vld [vmem:[#allocation5 + $0x14e0] sm:$0xff]  ;;  %v770_v38 = vmul.f32 %v766_v41, %v4259_v31  ;;  %v600_v18 = vadd.f32 %v596_v7, %v513_v10  ;;  %v1263_v31 = vld [vmem:[#allocation5 + $0xd88] sm:$0xff] }
 0x168   :  { %v6357_v11 = vld [vmem:[#allocation96_spill] sm:$0xff]  ;;  %v6361_v53 = vld [vmem:[#allocation97_spill] sm:$0xff]  ;;  %v857_v24 = vmul.f32 %v853_v40, %v4265_v4 }
 0x169   :  { %v1457_v33 = vadd.f32 %v6357_v11, %v1370_v35  ;;  %6359 = vst [vmem:[#allocation96_spill] sm:$0xff] %v4595_v3  ;;  %v940_v51 = vld [vmem:[#allocation5 + $0x1500] sm:$0xff]  ;;  %v687_v7 = vadd.f32 %v683_v8, %v600_v18  ;;  %v1176_v4 = vld [vmem:[#allocation5 + $0xd68] sm:$0xff] }
 0x16a   :  { %v1027_v9 = vld [vmem:[#allocation5 + $0x1520] sm:$0xff]  ;;  %v4610_v32 = vmul.f32 %v940_v51, %v4276_v22  ;;  %v1089_v22 = vld [vmem:[#allocation5 + $0xd48] sm:$0xff] }
 0x16b   :  { %v1114_v59 = vld [vmem:[#allocation5 + $0x1540] sm:$0xff]  ;;  %v1544_v11 = vadd.f32 %v6361_v53, %v1457_v33  ;;  %v4614_v33 = vmul.f32 %v1027_v9, %v6334_v48 }
 0x16c   :  { %v1201_v55 = vld [vmem:[#allocation5 + $0x1560] sm:$0xff]  ;;  %v4617_v41 = vmul.f32 %v1114_v59, %v4290_v13  ;;  %v828_v13 = vld [vmem:[#allocation5 + $0xce8] sm:$0xff] }
 0x16d   :  { %v4602_v35 = vld [vmem:[#allocation8] sm:$0xff]  ;;  %v1631_v12 = vadd.f32 %v4450_v23, %v1544_v11  ;;  %v4620_v40 = vmul.f32 %v1201_v55, %v4299_v49  ;;  %v6363_v11 = vld [vmem:[#allocation98_spill] sm:$0xff] }
 0x16e   :  { %v1288_v61 = vld [vmem:[#allocation5 + $0x1580] sm:$0xff]  ;;  %v2978_v27 = vmul.f32 %v2974_v47, %v4602_v35 }
 0x16f   :  { %v1375_v58 = vld [vmem:[#allocation5 + $0x15a0] sm:$0xff]  ;;  %v4625_v54 = vmul.f32 %v1288_v61, %v4304_v16  ;;  %v1718_v48 = vadd.f32 %v6363_v11, %v1631_v12  ;;  %v567_v16 = vld [vmem:[#allocation5 + $0xc88] sm:$0xff] }
 0x170   :  { %v1462_v6 = vld [vmem:[#allocation5 + $0x15c0] sm:$0xff]  ;;  %v4629_v59 = vmul.f32 %v1375_v58, %v4307_v45  ;;  %2982 = vadd.xlane.f32.xlu0 %v2978_v27 }
 0x171   :  { %v1549_v0 = vld [vmem:[#allocation5 + $0x15e0] sm:$0xff]  ;;  %v4632_v55 = vmul.f32 %v1462_v6, %v4313_v62  ;;  %v6364_v6 = vld [vmem:[#allocation99_spill] sm:$0xff] }
 0x172   :  { %v1636_v17 = vld [vmem:[#allocation5 + $0x1600] sm:$0xff]  ;;  %v4635_v49 = vmul.f32 %v1549_v0, %v4319_v2  ;;  %v1805_v62 = vadd.f32 %v6364_v6, %v1718_v48  ;;  %v393_v6 = vld [vmem:[#allocation5 + $0xc48] sm:$0xff] }
 0x173   :  { %v1723_v39 = vld [vmem:[#allocation5 + $0x1620] sm:$0xff]  ;;  %v4639_v10 = vmul.f32 %v1636_v17, %v4323_v63  ;;  %v219_v17 = vld [vmem:[#allocation5 + $0xc08] sm:$0xff]  ;;  %v6377_v63 = vld [vmem:[#allocation27_spill] sm:$0xff] }
 0x174   :  { %v6362_v51 = vld [vmem:[#allocation113_spill] sm:$0xff]  ;;  %v4642_v12 = vmul.f32 %v1723_v39, %v4327_v15  ;;  %v774_v39 = vadd.f32 %v770_v38, %v687_v7  ;;  %v6371_v7 = vld [vmem:[#allocation114_spill] sm:$0xff]  ;;  %v397_v45 = vmul.f32 %v393_v6, %v6377_v63  ;;  %v6383_v6 = vld [vmem:[#allocation28_spill] sm:$0xff] }
 0x175   :  { %v1096_v50 = vadd.f32 %v6362_v51, %v1009_v43  ;;  %v1810_v23 = vld [vmem:[#allocation5 + $0x1640] sm:$0xff] }
 0x176   :  { %v1897_v53 = vld [vmem:[#allocation5 + $0x1660] sm:$0xff]  ;;  %v4646_v0 = vmul.f32 %v1810_v23, %v4331_v14  ;;  %v306_v23 = vld [vmem:[#allocation5 + $0xc28] sm:$0xff] }
 0x177   :  { %v1984_v9 = vld [vmem:[#allocation5 + $0x1680] sm:$0xff]  ;;  %v1183_v61 = vadd.f32 %v4523_v46, %v1096_v50  ;;  %v4649_v2 = vmul.f32 %v1897_v53, %v4334_v19 }
 0x178   :  { %v2071_v47 = vld [vmem:[#allocation5 + $0x16a0] sm:$0xff]  ;;  %v4652_v46 = vmul.f32 %v1984_v9, %v4341_v60 }
 0x179   :  { %v2158_v43 = vld [vmem:[#allocation5 + $0x16c0] sm:$0xff]  ;;  %v4656_v18 = vmul.f32 %v2071_v47, %v4343_v42 }
 0x17a   :  { %v2245_v58 = vld [vmem:[#allocation5 + $0x16e0] sm:$0xff]  ;;  %v4659_v15 = vmul.f32 %v2158_v43, %v4348_v29  ;;  %v861_v43 = vadd.f32 %v857_v24, %v774_v39 }
 0x17b   :  { %v2332_v51 = vld [vmem:[#allocation5 + $0x1700] sm:$0xff]  ;;  %v4663_v19 = vmul.f32 %v2245_v58, %v4365_v52 }
 0x17c   :  { %v2419_v11 = vld [vmem:[#allocation5 + $0x1720] sm:$0xff]  ;;  %6366 = vst [vmem:[#allocation97_spill] sm:$0xff] %v4659_v15  ;;  %v4666_v9 = vmul.f32 %v2332_v51, %v4367_v20  ;;  %v6409_v15 = vld [vmem:[#allocation43_spill] sm:$0xff] }
 0x17d   :  { %v2506_v8 = vld [vmem:[#allocation5 + $0x1740] sm:$0xff]  ;;  %6368 = vst [vmem:[#allocation113_spill] sm:$0xff] %v4663_v19 }
 0x17e   :  { %v6365_v27 = vld [vmem:[#allocation89_spill] sm:$0xff]  ;;  %v6367_v14 = vld [vmem:[#allocation100_spill] sm:$0xff]  ;;  %6369 = vst [vmem:[#allocation98_spill] sm:$0xff] %v4666_v9  ;;  %v4673_v29 = vmul.f32 %v2506_v8, %v4373_v36  ;;  %v948_v8 = vadd.f32 %v4610_v32, %v861_v43 }
 0x17f   :  { %v1270_v50 = vadd.f32 %v6365_v27, %v1183_v61  ;;  %v2593_v48 = vld [vmem:[#allocation5 + $0x1760] sm:$0xff]  ;;  %v1892_v53 = vadd.f32 %v6367_v14, %v1805_v62  ;;  %v4669_v61 = vmul.f32 %v2419_v11, %v4370_v56  ;;  %v480_v14 = vld [vmem:[#allocation5 + $0xc68] sm:$0xff] }
 0x180   :  { %v2680_v38 = vld [vmem:[#allocation5 + $0x1780] sm:$0xff]  ;;  %6372 = vst [vmem:[#allocation89_spill] sm:$0xff] %v4673_v29  ;;  %v4678_v51 = vmul.f32 %v2593_v48, %v4375_v25  ;;  %v6376_v11 = vld [vmem:[#allocation26_spill] sm:$0xff]  ;;  %v484_v36 = vmul.f32 %v480_v14, %v6383_v6  ;;  %v6400_v29 = vld [vmem:[#allocation39_spill] sm:$0xff] }
 0x181   :  { %6370 = vst [vmem:[#allocation99_spill] sm:$0xff] %v4669_v61  ;;  %v2767_v47 = vld [vmem:[#allocation5 + $0x17a0] sm:$0xff]  ;;  %v1357_v27 = vadd.f32 %v6371_v7, %v1270_v50  ;;  %v310_v56 = vmul.f32 %v306_v23, %v6376_v11  ;;  %v6378_v50 = vld [vmem:[#allocation115_spill] sm:$0xff]  ;;  %v4685_v39 = vmul.f32 %v2680_v38, %v4378_v5  ;;  %v741_v7 = vld [vmem:[#allocation5 + $0xcc8] sm:$0xff]  ;;  %v1035_v38 = vadd.f32 %v4614_v33, %v948_v8 }
 0x182   :  { %v2854_v42 = vld [vmem:[#allocation5 + $0x17c0] sm:$0xff]  ;;  %6375 = vst [vmem:[#allocation100_spill] sm:$0xff] %v4678_v51  ;;  %v6381_v48 = vld [vmem:[#allocation102_spill] sm:$0xff]  ;;  %v4730_v61 = vmul.f32 %v1437_v34, %v6400_v29 }
 0x183   :  { %v6373_v60 = vld [vmem:[#allocation25_spill] sm:$0xff]  ;;  %v1444_v24 = vadd.f32 %v6378_v50, %v1357_v27  ;;  %6379 = vst [vmem:[#allocation114_spill] sm:$0xff] %v4685_v39  ;;  %v4692_v25 = vmul.f32 %v2854_v42, %v4390_v21  ;;  %v6384_v50 = vld [vmem:[#allocation116_spill] sm:$0xff]  ;;  %v6388_v21 = vld [vmem:[#allocation30_spill] sm:$0xff]  ;;  %v1122_v33 = vadd.f32 %v4617_v41, %v1035_v38 }
 0x184   :  { %v223_v62 = vmul.f32 %v219_v17, %v6373_v60  ;;  %v6374_v58 = vld [vmem:[#allocation101_spill] sm:$0xff]  ;;  %v4688_v17 = vmul.f32 %v2767_v47, %v4384_v30  ;;  %v6390_v8 = vld [vmem:[#allocation32_spill] sm:$0xff]  ;;  %v6399_v51 = vld [vmem:[#allocation38_spill] sm:$0xff] }
 0x185   :  { %v1979_v52 = vadd.f32 %v6374_v58, %v1892_v53  ;;  %v2941_v20 = vld [vmem:[#allocation5 + $0x17e0] sm:$0xff]  ;;  %v654_v53 = vld [vmem:[#allocation5 + $0xca8] sm:$0xff]  ;;  %6382 = vst [vmem:[#allocation115_spill] sm:$0xff] %v4692_v25  ;;  %v1531_v32 = vadd.f32 %v6384_v50, %v1444_v24 }
 0x186   :  { %6380 = vst [vmem:[#allocation101_spill] sm:$0xff] %v4688_v17  ;;  %v314_v23 = vadd.f32 %v310_v56, %v223_v62  ;;  %v915_v27 = vld [vmem:[#allocation5 + $0xd08] sm:$0xff]  ;;  %v4698_v43 = vmul.f32 %v2941_v20, %v4396_v44  ;;  %v658_v56 = vmul.f32 %v654_v53, %v6388_v21  ;;  %v6389_v62 = vld [vmem:[#allocation31_spill] sm:$0xff]  ;;  %v832_v20 = vmul.f32 %v828_v13, %v6390_v8  ;;  %v6396_v38 = vld [vmem:[#allocation36_spill] sm:$0xff] }
 0x187   :  { %v2066_v58 = vadd.f32 %v6381_v48, %v1979_v52  ;;  %v6386_v47 = vld [vmem:[#allocation29_spill] sm:$0xff]  ;;  %v6387_v52 = vld [vmem:[#allocation103_spill] sm:$0xff]  ;;  %v745_v14 = vmul.f32 %v741_v7, %v6389_v62  ;;  %v1618_v24 = vadd.f32 %v4540_v26, %v1531_v32  ;;  %v6395_v32 = vld [vmem:[#allocation90_spill] sm:$0xff]  ;;  %v1209_v13 = vadd.f32 %v4620_v40, %v1122_v33 }
 0x188   :  { %6385 = vst [vmem:[#allocation102_spill] sm:$0xff] %v4698_v43  ;;  %v571_v30 = vmul.f32 %v567_v16, %v6386_v47  ;;  %v1002_v5 = vld [vmem:[#allocation5 + $0xd28] sm:$0xff]  ;;  %v401_v42 = vadd.f32 %v397_v45, %v314_v23  ;;  %v6392_v43 = vld [vmem:[#allocation104_spill] sm:$0xff]  ;;  %v6394_v7 = vld [vmem:[#allocation35_spill] sm:$0xff] }
 0x189   :  { %v2153_v48 = vadd.f32 %v6387_v52, %v2066_v58  ;;  %v6391_v50 = vld [vmem:[#allocation33_spill] sm:$0xff]  ;;  %v6393_v23 = vld [vmem:[#allocation34_spill] sm:$0xff]  ;;  %v4715_v52 = vmul.f32 %v1089_v22, %v6394_v7  ;;  %v1705_v41 = vadd.f32 %v6395_v32, %v1618_v24  ;;  %v6402_v9 = vld [vmem:[#allocation40_spill] sm:$0xff] }
 0x18a   :  { %v4708_v44 = vmul.f32 %v915_v27, %v6391_v50  ;;  %v1350_v16 = vld [vmem:[#allocation5 + $0xda8] sm:$0xff]  ;;  %v488_v45 = vadd.f32 %v484_v36, %v401_v42  ;;  %v4712_v53 = vmul.f32 %v1002_v5, %v6393_v23  ;;  %v4720_v27 = vmul.f32 %v1176_v4, %v6396_v38 }
 0x18b   :  { %v2240_v58 = vadd.f32 %v6392_v43, %v2153_v48  ;;  %v1524_v25 = vld [vmem:[#allocation5 + $0xde8] sm:$0xff]  ;;  %v4727_v22 = vmul.f32 %v1350_v16, %v6399_v51  ;;  %v1296_v4 = vadd.f32 %v4625_v54, %v1209_v13 }
 0x18c   :  { %v1611_v26 = vld [vmem:[#allocation5 + $0xe08] sm:$0xff]  ;;  %v575_v42 = vadd.f32 %v571_v30, %v488_v45 }
 0x18d   :  { %v6397_v17 = vld [vmem:[#allocation37_spill] sm:$0xff]  ;;  %v6406_v45 = vld [vmem:[#allocation106_spill] sm:$0xff] }
 0x18e   :  { %v4723_v39 = vmul.f32 %v1263_v31, %v6397_v17  ;;  %v1698_v43 = vld [vmem:[#allocation5 + $0xe28] sm:$0xff]  ;;  %v4735_v31 = vmul.f32 %v1524_v25, %v6402_v9  ;;  %v1383_v25 = vadd.f32 %v4629_v59, %v1296_v4 }
 0x18f   :  { %v1785_v36 = vld [vmem:[#allocation5 + $0xe48] sm:$0xff]  ;;  %v4742_v34 = vmul.f32 %v1698_v43, %v6407_v57 }
 0x190   :  { %v6398_v48 = vld [vmem:[#allocation105_spill] sm:$0xff]  ;;  %6403 = vst [vmem:[#allocation116_spill] sm:$0xff] %v4735_v31  ;;  %v4745_v1 = vmul.f32 %v1785_v36, %v6409_v15  ;;  %v6411_v54 = vld [vmem:[#allocation94_spill] sm:$0xff]  ;;  %v6412_v31 = vld [vmem:[#allocation44_spill] sm:$0xff] }
 0x191   :  { %v2327_v5 = vadd.f32 %v6398_v48, %v2240_v58  ;;  %v1872_v24 = vld [vmem:[#allocation5 + $0xe68] sm:$0xff]  ;;  %v662_v48 = vadd.f32 %v658_v56, %v575_v42  ;;  %6408 = vst [vmem:[#allocation30_spill] sm:$0xff] %v4742_v34  ;;  %v6416_v42 = vld [vmem:[#allocation107_spill] sm:$0xff] }
 0x192   :  { %v1959_v32 = vld [vmem:[#allocation5 + $0xe88] sm:$0xff]  ;;  %6410 = vst [vmem:[#allocation31_spill] sm:$0xff] %v4745_v1  ;;  %v6419_v1 = vld [vmem:[#allocation47_spill] sm:$0xff] }
 0x193   :  { %v6401_v40 = vld [vmem:[#allocation117_spill] sm:$0xff]  ;;  %v2414_v16 = vadd.f32 %v6406_v45, %v2327_v5  ;;  %v749_v45 = vadd.f32 %v745_v14, %v662_v48  ;;  %v6417_v34 = vld [vmem:[#allocation46_spill] sm:$0xff]  ;;  %v6426_v48 = vld [vmem:[#allocation108_spill] sm:$0xff] }
 0x194   :  { %v1792_v33 = vadd.f32 %v6401_v40, %v1705_v41  ;;  %v6404_v3 = vld [vmem:[#allocation41_spill] sm:$0xff]  ;;  %v6421_v59 = vld [vmem:[#allocation118_spill] sm:$0xff] }
 0x195   :  { %v4738_v19 = vmul.f32 %v1611_v26, %v6404_v3  ;;  %v2046_v58 = vld [vmem:[#allocation5 + $0xea8] sm:$0xff]  ;;  %v4750_v26 = vmul.f32 %v1872_v24, %v6412_v31  ;;  %v2501_v43 = vadd.f32 %v6416_v42, %v2414_v16  ;;  %v1470_v24 = vadd.f32 %v4632_v55, %v1383_v25 }
 0x196   :  { %v2133_v30 = vld [vmem:[#allocation5 + $0xec8] sm:$0xff]  ;;  %v1879_v13 = vadd.f32 %v6411_v54, %v1792_v33  ;;  %v4757_v36 = vmul.f32 %v2046_v58, %v6417_v34  ;;  %v836_v42 = vadd.f32 %v832_v20, %v749_v45 }
 0x197   :  { %6405 = vst [vmem:[#allocation103_spill] sm:$0xff] %v4738_v19  ;;  %v2220_v41 = vld [vmem:[#allocation5 + $0xee8] sm:$0xff]  ;;  %6413 = vst [vmem:[#allocation32_spill] sm:$0xff] %v4750_v26  ;;  %v4760_v15 = vmul.f32 %v2133_v30, %v6419_v1  ;;  %v6422_v26 = vld [vmem:[#allocation48_spill] sm:$0xff]  ;;  %v2588_v58 = vadd.f32 %v6426_v48, %v2501_v43 }
 0x198   :  { %v2307_v40 = vld [vmem:[#allocation5 + $0xf08] sm:$0xff]  ;;  %6418 = vst [vmem:[#allocation90_spill] sm:$0xff] %v4757_v36  ;;  %v1966_v4 = vadd.f32 %v6421_v59, %v1879_v13  ;;  %v6431_v59 = vld [vmem:[#allocation119_spill] sm:$0xff]  ;;  %v923_v20 = vadd.f32 %v4708_v44, %v836_v42 }
 0x199   :  { %v6414_v19 = vld [vmem:[#allocation45_spill] sm:$0xff]  ;;  %6420 = vst [vmem:[#allocation105_spill] sm:$0xff] %v4760_v15  ;;  %v6427_v36 = vld [vmem:[#allocation50_spill] sm:$0xff]  ;;  %v6429_v15 = vld [vmem:[#allocation51_spill] sm:$0xff] }
 0x19a   :  { %v4753_v3 = vmul.f32 %v1959_v32, %v6414_v19  ;;  %v2394_v5 = vld [vmem:[#allocation5 + $0xf28] sm:$0xff]  ;;  %v4765_v32 = vmul.f32 %v2220_v41, %v6422_v26  ;;  %v2053_v55 = vadd.f32 %v6431_v59, %v1966_v4  ;;  %v1557_v41 = vadd.f32 %v4635_v49, %v1470_v24 }
 0x19b   :  { %v2481_v56 = vld [vmem:[#allocation5 + $0xf48] sm:$0xff]  ;;  %v4772_v30 = vmul.f32 %v2394_v5, %v6427_v36  ;;  %v6433_v5 = vld [vmem:[#allocation52_spill] sm:$0xff] }
 0x19c   :  { %6415 = vst [vmem:[#allocation104_spill] sm:$0xff] %v4753_v3  ;;  %v232_v33 = vld [vmem:[#allocation5 + $0x1008] sm:$0xff]  ;;  %6423 = vst [vmem:[#allocation117_spill] sm:$0xff] %v4765_v32  ;;  %v4775_v1 = vmul.f32 %v2481_v56, %v6429_v15  ;;  %v1644_v49 = vadd.f32 %v4639_v10, %v1557_v41 }
 0x19d   :  { %v319_v54 = vld [vmem:[#allocation5 + $0x1028] sm:$0xff]  ;;  %6428 = vst [vmem:[#allocation94_spill] sm:$0xff] %v4772_v30 }
 0x19e   :  { %v6424_v3 = vld [vmem:[#allocation49_spill] sm:$0xff]  ;;  %6430 = vst [vmem:[#allocation107_spill] sm:$0xff] %v4775_v1  ;;  %v6434_v1 = vld [vmem:[#allocation91_spill] sm:$0xff]  ;;  %v1731_v10 = vadd.f32 %v4642_v12, %v1644_v49 }
 0x19f   :  { %v4768_v19 = vmul.f32 %v2307_v40, %v6424_v3  ;;  %v2568_v16 = vld [vmem:[#allocation5 + $0xf68] sm:$0xff]  ;;  %v236_v40 = vmul.f32 %v232_v33, %v6373_v60  ;;  %v2140_v4 = vadd.f32 %v6434_v1, %v2053_v55  ;;  %v3041_v60 = vld [vmem:[#allocation7 + $0x40] sm:$0xff] }
 0x1a0   :  { %v406_v14 = vld [vmem:[#allocation5 + $0x1048] sm:$0xff]  ;;  %v4784_v45 = vmul.f32 %v2568_v16, %v6433_v5  ;;  %v1818_v12 = vadd.f32 %v4646_v0, %v1731_v10 }
 0x1a1   :  { %6425 = vst [vmem:[#allocation106_spill] sm:$0xff] %v4768_v19  ;;  %v493_v13 = vld [vmem:[#allocation5 + $0x1068] sm:$0xff]  ;;  %v323_v19 = vmul.f32 %v319_v54, %v6376_v11  ;;  %v410_v56 = vmul.f32 %v406_v14, %v6377_v63  ;;  %v6438_v63 = vld [vmem:[#allocation120_spill] sm:$0xff] }
 0x1a2   :  { %v2655_v25 = vld [vmem:[#allocation5 + $0xf88] sm:$0xff]  ;;  %v497_v33 = vmul.f32 %v493_v13, %v6383_v6  ;;  %v2227_v1 = vadd.f32 %v6438_v63, %v2140_v4 }
 0x1a3   :  { %v2742_v32 = vld [vmem:[#allocation5 + $0xfa8] sm:$0xff]  ;;  %v327_v30 = vadd.f32 %v323_v19, %v236_v40  ;;  %v6439_v40 = vld [vmem:[#allocation111_spill] sm:$0xff] }
 0x1a4   :  { %v6432_v3 = vld [vmem:[#allocation109_spill] sm:$0xff]  ;;  %v6435_v54 = vld [vmem:[#allocation110_spill] sm:$0xff]  ;;  %v2314_v63 = vadd.f32 %v4568_v28, %v2227_v1  ;;  %v1905_v28 = vadd.f32 %v4649_v2, %v1818_v12 }
 0x1a5   :  { %v2675_v43 = vadd.f32 %v6432_v3, %v2588_v58  ;;  %v580_v48 = vld [vmem:[#allocation5 + $0x1088] sm:$0xff]  ;;  %v1010_v3 = vadd.f32 %v4712_v53, %v923_v20  ;;  %v414_v55 = vadd.f32 %v410_v56, %v327_v30  ;;  %v6440_v20 = vld [vmem:[#allocation63_spill] sm:$0xff] }
 0x1a6   :  { %v2829_v24 = vld [vmem:[#allocation5 + $0xfc8] sm:$0xff]  ;;  %v584_v19 = vmul.f32 %v580_v48, %v6386_v47 }
 0x1a7   :  { %v2916_v59 = vld [vmem:[#allocation5 + $0xfe8] sm:$0xff]  ;;  %v2762_v11 = vadd.f32 %v6435_v54, %v2675_v43  ;;  %v1097_v53 = vadd.f32 %v4715_v52, %v1010_v3  ;;  %v501_v30 = vadd.f32 %v497_v33, %v414_v55 }
 0x1a8   :  { %v6436_v44 = vld [vmem:[#allocation53_spill] sm:$0xff]  ;;  %v6437_v16 = vld [vmem:[#allocation54_spill] sm:$0xff] }
 0x1a9   :  { %v4793_v58 = vmul.f32 %v2655_v25, %v6436_v44  ;;  %v4796_v42 = vmul.f32 %v2742_v32, %v6437_v16  ;;  %v667_v14 = vld [vmem:[#allocation5 + $0x10a8] sm:$0xff]  ;;  %v2849_v43 = vadd.f32 %v6439_v40, %v2762_v11  ;;  %v4804_v25 = vmul.f32 %v2829_v24, %v6440_v20  ;;  %v6442_v11 = vld [vmem:[#allocation112_spill] sm:$0xff]  ;;  %v6443_v40 = vld [vmem:[#allocation95_spill] sm:$0xff] }
 0x1aa   :  { %v754_v41 = vld [vmem:[#allocation5 + $0x10c8] sm:$0xff]  ;;  %v671_v56 = vmul.f32 %v667_v14, %v6388_v21  ;;  %v1184_v52 = vadd.f32 %v4720_v27, %v1097_v53  ;;  %v2401_v47 = vadd.f32 %v6443_v40, %v2314_v63  ;;  %v588_v1 = vadd.f32 %v584_v19, %v501_v30 }
 0x1ab   :  { %v841_v13 = vld [vmem:[#allocation5 + $0x10e8] sm:$0xff]  ;;  %v2936_v49 = vadd.f32 %v6442_v11, %v2849_v43  ;;  %v758_v24 = vmul.f32 %v754_v41, %v6389_v62  ;;  %v1992_v63 = vadd.f32 %v4652_v46, %v1905_v28 }
 0x1ac   :  { %v6441_v54 = vld [vmem:[#allocation65_spill] sm:$0xff]  ;;  %v1271_v55 = vadd.f32 %v4723_v39, %v1184_v52  ;;  %v675_v11 = vadd.f32 %v671_v56, %v588_v1 }
 0x1ad   :  { %v4807_v32 = vmul.f32 %v2916_v59, %v6441_v54  ;;  %v928_v6 = vld [vmem:[#allocation5 + $0x1108] sm:$0xff]  ;;  %v845_v59 = vmul.f32 %v841_v13, %v6390_v8  ;;  %v3045_v10 = vadd.f32 %v3041_v60, %v2936_v49  ;;  %v2079_v46 = vadd.f32 %v4656_v18, %v1992_v63 }
 0x1ae   :  { %v1015_v48 = vld [vmem:[#allocation5 + $0x1128] sm:$0xff]  ;;  %v932_v0 = vmul.f32 %v928_v6, %v6391_v50  ;;  %v1358_v60 = vadd.f32 %v4727_v22, %v1271_v55  ;;  %v762_v56 = vadd.f32 %v758_v24, %v675_v11 }
 0x1af   :  { %v1102_v4 = vld [vmem:[#allocation5 + $0x1148] sm:$0xff]  ;;  %v1019_v43 = vmul.f32 %v1015_v48, %v6393_v23  ;;  %v3049_v12 = vmax.f32 %v3045_v10, 0.0  ;;  %v642_v23 = vld [vmem:[#allocation5 + $0x8b0] sm:$0xff] }
 0x1b0   :  { %v1189_v3 = vld [vmem:[#allocation5 + $0x1168] sm:$0xff]  ;;  %v4822_v27 = vmul.f32 %v1102_v4, %v6394_v7  ;;  %v1445_v40 = vadd.f32 %v4730_v61, %v1358_v60  ;;  %v849_v55 = vadd.f32 %v845_v59, %v762_v56  ;;  %v6448_v61 = vld [vmem:[#allocation116_spill] sm:$0xff] }
 0x1b1   :  { %v1276_v33 = vld [vmem:[#allocation5 + $0x1188] sm:$0xff]  ;;  %v4827_v2 = vmul.f32 %v1189_v3, %v6396_v38  ;;  %v3053_v22 = vmul.f32 %v3049_v12, %v4602_v35  ;;  %v207_v38 = vld [vmem:[#allocation5 + $0x810] sm:$0xff] }
 0x1b2   :  { %v1363_v14 = vld [vmem:[#allocation5 + $0x11a8] sm:$0xff]  ;;  %v4831_v39 = vmul.f32 %v1276_v33, %v6397_v17  ;;  %v1532_v11 = vadd.f32 %v6448_v61, %v1445_v40  ;;  %v4869_v40 = vld [vmem:[#allocation3 + $0x10] sm:$0xff] }
 0x1b3   :  { %v1450_v41 = vld [vmem:[#allocation5 + $0x11c8] sm:$0xff]  ;;  %v4834_v30 = vmul.f32 %v1363_v14, %v6399_v51  ;;  %v6446_v14 = vld [vmem:[#allocation92_spill] sm:$0xff]  ;;  %3057 = vadd.xlane.f32.xlu1 %v3053_v22  ;;  %v272_v61 = vld [vmem:[#allocation5 + $0x30] sm:$0xff] }
 0x1b4   :  { %v6444_v13 = vld [vmem:[#allocation121_spill] sm:$0xff]  ;;  %v4839_v4 = vmul.f32 %v1450_v41, %v6400_v29 }
 0x1b5   :  { %v2488_v53 = vadd.f32 %v6444_v13, %v2401_v47  ;;  %v1537_v6 = vld [vmem:[#allocation5 + $0x11e8] sm:$0xff] }
 0x1b6   :  { %v1624_v19 = vld [vmem:[#allocation5 + $0x1208] sm:$0xff]  ;;  %v4844_v28 = vmul.f32 %v1537_v6, %v6402_v9  ;;  %v6449_v6 = vld [vmem:[#allocation43_spill] sm:$0xff] }
 0x1b7   :  { %v1711_v48 = vld [vmem:[#allocation5 + $0x1228] sm:$0xff]  ;;  %v2575_v47 = vadd.f32 %v4581_v37, %v2488_v53  ;;  %v194_v9 = vld [vmem:[#allocation5 + $0x410] sm:$0xff] }
 0x1b8   :  { %v1798_v49 = vld [vmem:[#allocation5 + $0x1248] sm:$0xff]  ;;  %v4852_v41 = vmul.f32 %v1711_v48, %v6407_v57  ;;  %v936_v57 = vadd.f32 %v932_v0, %v849_v55  ;;  %v6456_v0 = vld [vmem:[#allocation96_spill] sm:$0xff] }
 0x1b9   :  { %v1885_v52 = vld [vmem:[#allocation5 + $0x1268] sm:$0xff]  ;;  %v2662_v18 = vadd.f32 %v6446_v14, %v2575_v47  ;;  %v4856_v12 = vmul.f32 %v1798_v49, %v6449_v6  ;;  %v185_v49 = vld [vmem:[#allocation5 + $0x10] sm:$0xff] }
 0x1ba   :  { %v1972_v3 = vld [vmem:[#allocation5 + $0x1288] sm:$0xff]  ;;  %v6453_v6 = vld [vmem:[#allocation103_spill] sm:$0xff] }
 0x1bb   :  { %v6445_v1 = vld [vmem:[#allocation41_spill] sm:$0xff] }
 0x1bc   :  { %v4847_v33 = vmul.f32 %v1624_v19, %v6445_v1  ;;  %v2059_v37 = vld [vmem:[#allocation5 + $0x12a8] sm:$0xff]  ;;  %v4859_v19 = vmul.f32 %v1885_v52, %v6412_v31  ;;  %v1619_v52 = vadd.f32 %v6453_v6, %v1532_v11  ;;  %v6454_v31 = vld [vmem:[#allocation47_spill] sm:$0xff] }
 0x1bd   :  { %v6447_v24 = vld [vmem:[#allocation97_spill] sm:$0xff]  ;;  %v4867_v22 = vmul.f32 %v2059_v37, %v6417_v34  ;;  %v6457_v37 = vld [vmem:[#allocation98_spill] sm:$0xff] }
 0x1be   :  { %v2166_v10 = vadd.f32 %v6447_v24, %v2079_v46  ;;  %v2146_v13 = vld [vmem:[#allocation5 + $0x12c8] sm:$0xff]  ;;  %v281_v11 = vld [vmem:[#allocation5 + $0x430] sm:$0xff] }
 0x1bf   :  { %v2233_v53 = vld [vmem:[#allocation5 + $0x12e8] sm:$0xff]  ;;  %v4873_v1 = vmul.f32 %v2146_v13, %v6454_v31  ;;  %v446_v6 = vld [vmem:[#allocation5 + $0x70] sm:$0xff]  ;;  %v3003_v13 = vld [vmem:[#allocation7 + $0x20] sm:$0xff] }
 0x1c0   :  { %v2320_v63 = vld [vmem:[#allocation5 + $0x1308] sm:$0xff] }
 0x1c1   :  { %v6450_v60 = vld [vmem:[#allocation45_spill] sm:$0xff]  ;;  %v6458_v31 = vld [vmem:[#allocation30_spill] sm:$0xff] }
 0x1c2   :  { %v4862_v47 = vmul.f32 %v1972_v3, %v6450_v60  ;;  %v2407_v46 = vld [vmem:[#allocation5 + $0x1328] sm:$0xff]  ;;  %v4876_v3 = vmul.f32 %v2233_v53, %v6422_v26  ;;  %v1706_v29 = vadd.f32 %v6458_v31, %v1619_v52  ;;  %v6461_v26 = vld [vmem:[#allocation31_spill] sm:$0xff] }
 0x1c3   :  { %v2494_v59 = vld [vmem:[#allocation5 + $0x1348] sm:$0xff]  ;;  %v4884_v34 = vmul.f32 %v2407_v46, %v6427_v36  ;;  %v455_v36 = vld [vmem:[#allocation5 + $0x470] sm:$0xff] }
 0x1c4   :  { %v6451_v56 = vld [vmem:[#allocation93_spill] sm:$0xff]  ;;  %v4888_v53 = vmul.f32 %v2494_v59, %v6429_v15  ;;  %v1793_v51 = vadd.f32 %v6461_v26, %v1706_v29  ;;  %v450_v59 = vmul.f32 %v446_v6, %v4869_v40  ;;  %v6465_v26 = vld [vmem:[#allocation100_spill] sm:$0xff] }
 0x1c5   :  { %v2749_v48 = vadd.f32 %v6451_v56, %v2662_v18  ;;  %v6452_v14 = vld [vmem:[#allocation113_spill] sm:$0xff] }
 0x1c6   :  { %v2253_v24 = vadd.f32 %v6452_v14, %v2166_v10  ;;  %v6455_v60 = vld [vmem:[#allocation49_spill] sm:$0xff]  ;;  %v359_v10 = vld [vmem:[#allocation5 + $0x50] sm:$0xff]  ;;  %v1023_v14 = vadd.f32 %v1019_v43, %v936_v57  ;;  %v459_v29 = vadd.f32 %v455_v36, %v450_v59 }
 0x1c7   :  { %v4879_v18 = vmul.f32 %v2320_v63, %v6455_v60  ;;  %v2836_v55 = vadd.f32 %v6456_v0, %v2749_v48  ;;  %v189_v63 = vmul.f32 %v185_v49, %v4869_v40  ;;  %v276_v60 = vmul.f32 %v272_v61, %v4869_v40  ;;  %v368_v48 = vld [vmem:[#allocation5 + $0x450] sm:$0xff]  ;;  %v6462_v49 = vld [vmem:[#allocation89_spill] sm:$0xff] }
 0x1c8   :  { %v2340_v56 = vadd.f32 %v6457_v37, %v2253_v24  ;;  %v6459_v0 = vld [vmem:[#allocation122_spill] sm:$0xff]  ;;  %v6460_v57 = vld [vmem:[#allocation99_spill] sm:$0xff]  ;;  %v1110_v46 = vadd.f32 %v4822_v27, %v1023_v14  ;;  %v363_v37 = vmul.f32 %v359_v10, %v4869_v40 }
 0x1c9   :  { %v2923_v24 = vadd.f32 %v6459_v0, %v2836_v55  ;;  %v198_v31 = vadd.f32 %v194_v9, %v189_v63  ;;  %v285_v52 = vadd.f32 %v281_v11, %v276_v60  ;;  %v294_v55 = vld [vmem:[#allocation5 + $0x830] sm:$0xff]  ;;  %v6467_v63 = vld [vmem:[#allocation104_spill] sm:$0xff] }
 0x1ca   :  { %v2427_v43 = vadd.f32 %v6460_v57, %v2340_v56  ;;  %v1197_v61 = vadd.f32 %v4827_v2, %v1110_v46  ;;  %v372_v0 = vadd.f32 %v368_v48, %v363_v37  ;;  %v6463_v56 = vld [vmem:[#allocation32_spill] sm:$0xff]  ;;  %v381_v14 = vld [vmem:[#allocation5 + $0x850] sm:$0xff] }
 0x1cb   :  { %v3007_v15 = vadd.f32 %v3003_v13, %v2923_v24  ;;  %v1880_v57 = vadd.f32 %v6463_v56, %v1793_v51  ;;  %v4901_v27 = vmax.f32 %v198_v31, 0.0  ;;  %v4903_v10 = vmax.f32 %v285_v52, 0.0  ;;  %v468_v13 = vld [vmem:[#allocation5 + $0x870] sm:$0xff] }
 0x1cc   :  { %v2514_v17 = vadd.f32 %v6462_v49, %v2427_v43  ;;  %v1284_v11 = vadd.f32 %v4831_v39, %v1197_v61  ;;  %v4907_v6 = vmax.f32 %v372_v0, 0.0  ;;  %v533_v2 = vld [vmem:[#allocation5 + $0x90] sm:$0xff]  ;;  %v4912_v43 = vmax.f32 %v459_v29, 0.0  ;;  %v6471_v29 = vld [vmem:[#allocation101_spill] sm:$0xff] }
 0x1cd   :  { %6464 = vst [vmem:[#allocation118_spill] sm:$0xff] %v4903_v10  ;;  %v3011_v9 = vmax.f32 %v3007_v15, 0.0  ;;  %v1967_v24 = vadd.f32 %v6467_v63, %v1880_v57  ;;  %v211_v48 = vmul.f32 %v207_v38, %v4901_v27  ;;  %v298_v51 = vmul.f32 %v294_v55, %v4903_v10  ;;  %v620_v46 = vld [vmem:[#allocation5 + $0xb0] sm:$0xff] }
 0x1ce   :  { %v2601_v60 = vadd.f32 %v6465_v26, %v2514_v17  ;;  %6466 = vst [vmem:[#allocation108_spill] sm:$0xff] %v4907_v6  ;;  %6468 = vst [vmem:[#allocation119_spill] sm:$0xff] %v4912_v43  ;;  %v707_v37 = vld [vmem:[#allocation5 + $0xd0] sm:$0xff]  ;;  %v1371_v39 = vadd.f32 %v4834_v30, %v1284_v11  ;;  %v385_v31 = vmul.f32 %v381_v14, %v4907_v6  ;;  %v6472_v11 = vld [vmem:[#allocation105_spill] sm:$0xff] }
 0x1cf   :  { %v3015_v15 = vmul.f32 %v3011_v9, %v4602_v35  ;;  %v6469_v36 = vld [vmem:[#allocation114_spill] sm:$0xff]  ;;  %v302_v0 = vadd.f32 %v298_v51, %v211_v48  ;;  %v472_v38 = vmul.f32 %v468_v13, %v4912_v43  ;;  %v537_v55 = vmul.f32 %v533_v2, %v4869_v40  ;;  %v6473_v51 = vld [vmem:[#allocation115_spill] sm:$0xff] }
 0x1d0   :  { %v2688_v17 = vadd.f32 %v6469_v36, %v2601_v60  ;;  %v542_v52 = vld [vmem:[#allocation5 + $0x490] sm:$0xff]  ;;  %v1458_v26 = vadd.f32 %v4839_v4, %v1371_v39  ;;  %v624_v30 = vmul.f32 %v620_v46, %v4869_v40  ;;  %v711_v14 = vmul.f32 %v707_v37, %v4869_v40  ;;  %v3079_v4 = vld [vmem:[#allocation7 + $0x60] sm:$0xff] }
 0x1d1   :  { %v794_v59 = vld [vmem:[#allocation5 + $0xf0] sm:$0xff]  ;;  %3019 = vadd.xlane.f32.xlu0 %v3015_v15  ;;  %v546_v48 = vadd.f32 %v542_v52, %v537_v55  ;;  %v6474_v39 = vld [vmem:[#allocation117_spill] sm:$0xff] }
 0x1d2   :  { %v6470_v49 = vld [vmem:[#allocation90_spill] sm:$0xff]  ;;  %v2775_v9 = vadd.f32 %v6471_v29, %v2688_v17  ;;  %v798_v13 = vmul.f32 %v794_v59, %v4869_v40  ;;  %v1545_v36 = vadd.f32 %v4844_v28, %v1458_v26 }
 0x1d3   :  { %v2054_v61 = vadd.f32 %v6470_v49, %v1967_v24  ;;  %v629_v56 = vld [vmem:[#allocation5 + $0x4b0] sm:$0xff]  ;;  %v389_v24 = vadd.f32 %v385_v31, %v302_v0  ;;  %v4930_v37 = vmax.f32 %v546_v48, 0.0 }
 0x1d4   :  { %v716_v57 = vld [vmem:[#allocation5 + $0x4d0] sm:$0xff]  ;;  %v2862_v2 = vadd.f32 %v6473_v51, %v2775_v9  ;;  %v633_v49 = vadd.f32 %v629_v56, %v624_v30  ;;  %v1632_v59 = vadd.f32 %v4847_v33, %v1545_v36 }
 0x1d5   :  { %v803_v60 = vld [vmem:[#allocation5 + $0x4f0] sm:$0xff]  ;;  %v2141_v63 = vadd.f32 %v6472_v11, %v2054_v61  ;;  %v720_v17 = vadd.f32 %v716_v57, %v711_v14  ;;  %v476_v7 = vadd.f32 %v472_v38, %v389_v24  ;;  %6475 = vst [vmem:[#allocation109_spill] sm:$0xff] %v4930_v37 }
 0x1d6   :  { %v555_v15 = vld [vmem:[#allocation5 + $0x890] sm:$0xff]  ;;  %v807_v31 = vadd.f32 %v803_v60, %v798_v13  ;;  %v4934_v55 = vmax.f32 %v633_v49, 0.0  ;;  %v1719_v24 = vadd.f32 %v4852_v41, %v1632_v59 }
 0x1d7   :  { %v881_v29 = vld [vmem:[#allocation5 + $0x110] sm:$0xff]  ;;  %v2228_v46 = vadd.f32 %v6474_v39, %v2141_v63  ;;  %v4936_v28 = vmax.f32 %v720_v17, 0.0  ;;  %v559_v30 = vmul.f32 %v555_v15, %v4930_v37 }
 0x1d8   :  { %v729_v61 = vld [vmem:[#allocation5 + $0x8d0] sm:$0xff]  ;;  %6477 = vst [vmem:[#allocation91_spill] sm:$0xff] %v4934_v55  ;;  %v4940_v38 = vmax.f32 %v807_v31, 0.0  ;;  %v885_v14 = vmul.f32 %v881_v29, %v4869_v40  ;;  %v646_v33 = vmul.f32 %v642_v23, %v4934_v55  ;;  %v1806_v29 = vadd.f32 %v4856_v12, %v1719_v24 }
 0x1d9   :  { %v6476_v52 = vld [vmem:[#allocation102_spill] sm:$0xff]  ;;  %6478 = vst [vmem:[#allocation110_spill] sm:$0xff] %v4936_v28  ;;  %v733_v48 = vmul.f32 %v729_v61, %v4936_v28  ;;  %v563_v36 = vadd.f32 %v559_v30, %v476_v7 }
 0x1da   :  { %v2949_v0 = vadd.f32 %v6476_v52, %v2862_v2  ;;  %v816_v56 = vld [vmem:[#allocation5 + $0x8f0] sm:$0xff]  ;;  %6480 = vst [vmem:[#allocation120_spill] sm:$0xff] %v4940_v38 }
 0x1db   :  { %v890_v57 = vld [vmem:[#allocation5 + $0x510] sm:$0xff]  ;;  %v820_v49 = vmul.f32 %v816_v56, %v4940_v38 }
 0x1dc   :  { %v6479_v9 = vld [vmem:[#allocation106_spill] sm:$0xff]  ;;  %v3083_v63 = vadd.f32 %v3079_v4, %v2949_v0  ;;  %v894_v15 = vadd.f32 %v890_v57, %v885_v14  ;;  %v6482_v52 = vld [vmem:[#allocation107_spill] sm:$0xff]  ;;  %v650_v0 = vadd.f32 %v646_v33, %v563_v36 }
 0x1dd   :  { %v2315_v26 = vadd.f32 %v6479_v9, %v2228_v46  ;;  %v968_v11 = vld [vmem:[#allocation5 + $0x130] sm:$0xff]  ;;  %v1893_v9 = vadd.f32 %v4859_v19, %v1806_v29 }
 0x1de   :  { %v1055_v60 = vld [vmem:[#allocation5 + $0x150] sm:$0xff]  ;;  %v3087_v46 = vmax.f32 %v3083_v63, 0.0  ;;  %v972_v4 = vmul.f32 %v968_v11, %v4869_v40  ;;  %v4952_v59 = vmax.f32 %v894_v15, 0.0  ;;  %v737_v11 = vadd.f32 %v733_v48, %v650_v0 }
 0x1df   :  { %v1142_v13 = vld [vmem:[#allocation5 + $0x170] sm:$0xff]  ;;  %v1059_v41 = vmul.f32 %v1055_v60, %v4869_v40 }
 0x1e0   :  { %v6481_v51 = vld [vmem:[#allocation94_spill] sm:$0xff]  ;;  %6483 = vst [vmem:[#allocation111_spill] sm:$0xff] %v4952_v59  ;;  %v1146_v7 = vmul.f32 %v1142_v13, %v4869_v40  ;;  %v3091_v57 = vmul.f32 %v3087_v46, %v4602_v35  ;;  %v1980_v13 = vadd.f32 %v4862_v47, %v1893_v9  ;;  %v824_v48 = vadd.f32 %v820_v49, %v737_v11 }
 0x1e1   :  { %v2402_v2 = vadd.f32 %v6481_v51, %v2315_v26  ;;  %v977_v17 = vld [vmem:[#allocation5 + $0x530] sm:$0xff] }
 0x1e2   :  { %v1064_v39 = vld [vmem:[#allocation5 + $0x550] sm:$0xff]  ;;  %v981_v26 = vadd.f32 %v977_v17, %v972_v4  ;;  %3095 = vadd.xlane.f32.xlu1 %v3091_v57 }
 0x1e3   :  { %v903_v31 = vld [vmem:[#allocation5 + $0x910] sm:$0xff]  ;;  %v2489_v61 = vadd.f32 %v6482_v52, %v2402_v2  ;;  %v1068_v12 = vadd.f32 %v1064_v39, %v1059_v41 }
 0x1e4   :  { %v1151_v23 = vld [vmem:[#allocation5 + $0x570] sm:$0xff]  ;;  %v907_v60 = vmul.f32 %v903_v31, %v4952_v59  ;;  %v4960_v2 = vmax.f32 %v981_v26, 0.0  ;;  %v2067_v31 = vadd.f32 %v4867_v22, %v1980_v13 }
 0x1e5   :  { %v1229_v56 = vld [vmem:[#allocation5 + $0x190] sm:$0xff]  ;;  %v2576_v14 = vadd.f32 %v4784_v45, %v2489_v61  ;;  %v1155_v33 = vadd.f32 %v1151_v23, %v1146_v7  ;;  %v4962_v35 = vmax.f32 %v1068_v12, 0.0  ;;  %v2581_v61 = vld [vmem:[#allocation5 + $0x1368] sm:$0xff] }
 0x1e6   :  { %v1316_v30 = vld [vmem:[#allocation5 + $0x1b0] sm:$0xff]  ;;  %6484 = vst [vmem:[#allocation112_spill] sm:$0xff] %v4960_v2  ;;  %v1233_v36 = vmul.f32 %v1229_v56, %v4869_v40  ;;  %v911_v0 = vadd.f32 %v907_v60, %v824_v48  ;;  %v2154_v57 = vadd.f32 %v4873_v1, %v2067_v31 }
 0x1e7   :  { %v990_v63 = vld [vmem:[#allocation5 + $0x930] sm:$0xff]  ;;  %6485 = vst [vmem:[#allocation95_spill] sm:$0xff] %v4962_v35  ;;  %v2663_v45 = vadd.f32 %v4793_v58, %v2576_v14  ;;  %v4966_v17 = vmax.f32 %v1155_v33, 0.0  ;;  %v1320_v39 = vmul.f32 %v1316_v30, %v4869_v40  ;;  %v3004_v33 = vld [vmem:[#allocation7 + $0x28] sm:$0xff] }
 0x1e8   :  { %v1077_v24 = vld [vmem:[#allocation5 + $0x950] sm:$0xff]  ;;  %v994_v47 = vmul.f32 %v990_v63, %v4960_v2  ;;  %v2241_v1 = vadd.f32 %v4876_v3, %v2154_v57 }
 0x1e9   :  { %v1238_v51 = vld [vmem:[#allocation5 + $0x590] sm:$0xff]  ;;  %6486 = vst [vmem:[#allocation121_spill] sm:$0xff] %v4966_v17  ;;  %v1081_v4 = vmul.f32 %v1077_v24, %v4962_v35  ;;  %v2750_v52 = vadd.f32 %v4796_v42, %v2663_v45  ;;  %v2668_v45 = vld [vmem:[#allocation5 + $0x1388] sm:$0xff] }
 0x1ea   :  { %v1164_v19 = vld [vmem:[#allocation5 + $0x970] sm:$0xff]  ;;  %v1242_v41 = vadd.f32 %v1238_v51, %v1233_v36  ;;  %v998_v42 = vadd.f32 %v994_v47, %v911_v0  ;;  %v2585_v51 = vmul.f32 %v2581_v61, %v6433_v5 }
 0x1eb   :  { %v1325_v15 = vld [vmem:[#allocation5 + $0x5b0] sm:$0xff]  ;;  %v1168_v58 = vmul.f32 %v1164_v19, %v4966_v17  ;;  %v2837_v14 = vadd.f32 %v4804_v25, %v2750_v52 }
 0x1ec   :  { %v1403_v46 = vld [vmem:[#allocation5 + $0x1d0] sm:$0xff]  ;;  %v1329_v49 = vadd.f32 %v1325_v15, %v1320_v39  ;;  %v4975_v9 = vmax.f32 %v1242_v41, 0.0  ;;  %v1085_v48 = vadd.f32 %v1081_v4, %v998_v42 }
 0x1ed   :  { %v1490_v29 = vld [vmem:[#allocation5 + $0x1f0] sm:$0xff]  ;;  %v1407_v26 = vmul.f32 %v1403_v46, %v4869_v40  ;;  %v2924_v15 = vadd.f32 %v4807_v32, %v2837_v14 }
 0x1ee   :  { %v1577_v23 = vld [vmem:[#allocation5 + $0x210] sm:$0xff]  ;;  %6487 = vst [vmem:[#allocation92_spill] sm:$0xff] %v4975_v9  ;;  %v1494_v12 = vmul.f32 %v1490_v29, %v4869_v40  ;;  %v4980_v11 = vmax.f32 %v1329_v49, 0.0  ;;  %v2328_v29 = vadd.f32 %v4879_v18, %v2241_v1  ;;  %v1172_v61 = vadd.f32 %v1168_v58, %v1085_v48 }
 0x1ef   :  { %v1412_v7 = vld [vmem:[#allocation5 + $0x5d0] sm:$0xff]  ;;  %v1581_v63 = vmul.f32 %v1577_v23, %v4869_v40  ;;  %v3008_v52 = vadd.f32 %v3004_v33, %v2924_v15  ;;  %v2672_v18 = vmul.f32 %v2668_v45, %v6436_v44  ;;  %v2842_v45 = vld [vmem:[#allocation5 + $0x13c8] sm:$0xff] }
 0x1f0   :  { %v1499_v56 = vld [vmem:[#allocation5 + $0x5f0] sm:$0xff]  ;;  %6488 = vst [vmem:[#allocation97_spill] sm:$0xff] %v4980_v11  ;;  %v1416_v13 = vadd.f32 %v1412_v7, %v1407_v26  ;;  %v2415_v7 = vadd.f32 %v4884_v34, %v2328_v29 }
 0x1f1   :  { %v1251_v22 = vld [vmem:[#allocation5 + $0x990] sm:$0xff]  ;;  %v1503_v19 = vadd.f32 %v1499_v56, %v1494_v12  ;;  %v3012_v12 = vmax.f32 %v3008_v52, 0.0 }
 0x1f2   :  { %v1586_v30 = vld [vmem:[#allocation5 + $0x610] sm:$0xff]  ;;  %v1255_v25 = vmul.f32 %v1251_v22, %v4975_v9  ;;  %v4989_v47 = vmax.f32 %v1416_v13, 0.0 }
 0x1f3   :  { %v1338_v60 = vld [vmem:[#allocation5 + $0x9b0] sm:$0xff]  ;;  %v1590_v39 = vadd.f32 %v1586_v30, %v1581_v63  ;;  %v4992_v0 = vmax.f32 %v1503_v19, 0.0  ;;  %v2755_v30 = vld [vmem:[#allocation5 + $0x13a8] sm:$0xff] }
 0x1f4   :  { %v1664_v24 = vld [vmem:[#allocation5 + $0x230] sm:$0xff]  ;;  %v1342_v31 = vmul.f32 %v1338_v60, %v4980_v11  ;;  %6489 = vst [vmem:[#allocation116_spill] sm:$0xff] %v4989_v47  ;;  %v1259_v14 = vadd.f32 %v1255_v25, %v1172_v61  ;;  %v2929_v61 = vld [vmem:[#allocation5 + $0x13e8] sm:$0xff] }
 0x1f5   :  { %v1751_v36 = vld [vmem:[#allocation5 + $0x250] sm:$0xff]  ;;  %v1668_v41 = vmul.f32 %v1664_v24, %v4869_v40  ;;  %6490 = vst [vmem:[#allocation93_spill] sm:$0xff] %v4992_v0  ;;  %v4997_v57 = vmax.f32 %v1590_v39, 0.0  ;;  %v2502_v24 = vadd.f32 %v4888_v53, %v2415_v7 }
 0x1f6   :  { %v1673_v46 = vld [vmem:[#allocation5 + $0x630] sm:$0xff]  ;;  %v1755_v32 = vmul.f32 %v1751_v36, %v4869_v40  ;;  %v5005_v36 = vld [vmem:[#allocation8 + $0x8] sm:$0xff]  ;;  %v1346_v48 = vadd.f32 %v1342_v31, %v1259_v14 }
 0x1f7   :  { %v1425_v3 = vld [vmem:[#allocation5 + $0x9d0] sm:$0xff]  ;;  %6491 = vst [vmem:[#allocation113_spill] sm:$0xff] %v4997_v57  ;;  %v1677_v22 = vadd.f32 %v1673_v46, %v1668_v41  ;;  %v3016_v15 = vmul.f32 %v5005_v36, %v3012_v12  ;;  %v2589_v29 = vadd.f32 %v2585_v51, %v2502_v24 }
 0x1f8   :  { %v1760_v23 = vld [vmem:[#allocation5 + $0x650] sm:$0xff]  ;;  %v1429_v58 = vmul.f32 %v1425_v3, %v4989_v47  ;;  %v2759_v3 = vmul.f32 %v2755_v30, %v6437_v16 }
 0x1f9   :  { %v1838_v4 = vld [vmem:[#allocation5 + $0x270] sm:$0xff]  ;;  %v1764_v42 = vadd.f32 %v1760_v23, %v1755_v32  ;;  %v5001_v1 = vmax.f32 %v1677_v22, 0.0  ;;  %3021 = vadd.xlane.f32.xlu0 %v3016_v15  ;;  %v2676_v22 = vadd.f32 %v2672_v18, %v2589_v29 }
 0x1fa   :  { %v1925_v49 = vld [vmem:[#allocation5 + $0x290] sm:$0xff]  ;;  %v1842_v34 = vmul.f32 %v1838_v4, %v4869_v40  ;;  %v1433_v32 = vadd.f32 %v1429_v58, %v1346_v48 }
 0x1fb   :  { %v1512_v56 = vld [vmem:[#allocation5 + $0x9f0] sm:$0xff]  ;;  %6492 = vst [vmem:[#allocation103_spill] sm:$0xff] %v5001_v1  ;;  %v1929_v13 = vmul.f32 %v1925_v49, %v4869_v40  ;;  %v5012_v49 = vmax.f32 %v1764_v42, 0.0  ;;  %v2763_v24 = vadd.f32 %v2759_v3, %v2676_v22 }
 0x1fc   :  { %v2012_v26 = vld [vmem:[#allocation5 + $0x2b0] sm:$0xff]  ;;  %v1516_v25 = vmul.f32 %v1512_v56, %v4992_v0 }
 0x1fd   :  { %v1847_v60 = vld [vmem:[#allocation5 + $0x670] sm:$0xff]  ;;  %v2016_v46 = vmul.f32 %v2012_v26, %v4869_v40  ;;  %6493 = vst [vmem:[#allocation96_spill] sm:$0xff] %v5012_v49  ;;  %v2846_v26 = vmul.f32 %v2842_v45, %v6440_v20 }
 0x1fe   :  { %v1934_v63 = vld [vmem:[#allocation5 + $0x690] sm:$0xff]  ;;  %v1851_v41 = vadd.f32 %v1847_v60, %v1842_v34  ;;  %v1520_v14 = vadd.f32 %v1516_v25, %v1433_v32 }
 0x1ff   :  { %v1599_v33 = vld [vmem:[#allocation5 + $0xa10] sm:$0xff]  ;;  %v1938_v23 = vadd.f32 %v1934_v63, %v1929_v13 }
 0x200   :  { %v2099_v19 = vld [vmem:[#allocation5 + $0x2d0] sm:$0xff]  ;;  %v1603_v4 = vmul.f32 %v1599_v33, %v4997_v57  ;;  %v5017_v60 = vmax.f32 %v1851_v41, 0.0  ;;  %v2933_v33 = vmul.f32 %v2929_v61, %v6441_v54 }
 0x201   :  { %v1686_v39 = vld [vmem:[#allocation5 + $0xa30] sm:$0xff]  ;;  %v2103_v31 = vmul.f32 %v2099_v19, %v4869_v40  ;;  %v5019_v63 = vmax.f32 %v1938_v23, 0.0 }
 0x202   :  { %v2021_v53 = vld [vmem:[#allocation5 + $0x6b0] sm:$0xff]  ;;  %v1690_v51 = vmul.f32 %v1686_v39, %v5001_v1  ;;  %6494 = vst [vmem:[#allocation98_spill] sm:$0xff] %v5017_v60  ;;  %v1607_v45 = vadd.f32 %v1603_v4, %v1520_v14 }
 0x203   :  { %v2186_v52 = vld [vmem:[#allocation5 + $0x2f0] sm:$0xff]  ;;  %v2025_v30 = vadd.f32 %v2021_v53, %v2016_v46  ;;  %6495 = vst [vmem:[#allocation30_spill] sm:$0xff] %v5019_v63  ;;  %v2850_v46 = vadd.f32 %v2846_v26, %v2763_v24 }
 0x204   :  { %v2108_v7 = vld [vmem:[#allocation5 + $0x6d0] sm:$0xff]  ;;  %v2190_v58 = vmul.f32 %v2186_v52, %v4869_v40  ;;  %v3042_v52 = vld [vmem:[#allocation7 + $0x48] sm:$0xff]  ;;  %v1694_v61 = vadd.f32 %v1690_v51, %v1607_v45 }
 0x205   :  { %v2273_v56 = vld [vmem:[#allocation5 + $0x310] sm:$0xff]  ;;  %v2112_v18 = vadd.f32 %v2108_v7, %v2103_v31  ;;  %v5025_v53 = vmax.f32 %v2025_v30, 0.0 }
 0x206   :  { %v1773_v12 = vld [vmem:[#allocation5 + $0xa50] sm:$0xff]  ;;  %v2277_v15 = vmul.f32 %v2273_v56, %v4869_v40  ;;  %v2937_v56 = vadd.f32 %v2933_v33, %v2850_v46 }
 0x207   :  { %v2360_v42 = vld [vmem:[#allocation5 + $0x330] sm:$0xff]  ;;  %v1777_v48 = vmul.f32 %v1773_v12, %v5012_v49  ;;  %6496 = vst [vmem:[#allocation122_spill] sm:$0xff] %v5025_v53  ;;  %v5030_v12 = vmax.f32 %v2112_v18, 0.0 }
 0x208   :  { %v1860_v34 = vld [vmem:[#allocation5 + $0xa70] sm:$0xff]  ;;  %v2364_v29 = vmul.f32 %v2360_v42, %v4869_v40  ;;  %v3046_v45 = vadd.f32 %v3042_v52, %v2937_v56 }
 0x209   :  { %v1947_v13 = vld [vmem:[#allocation5 + $0xa90] sm:$0xff]  ;;  %v1864_v32 = vmul.f32 %v1860_v34, %v5017_v60  ;;  %6497 = vst [vmem:[#allocation99_spill] sm:$0xff] %v5030_v12  ;;  %v1781_v42 = vadd.f32 %v1777_v48, %v1694_v61 }
 0x20a   :  { %v2195_v19 = vld [vmem:[#allocation5 + $0x6f0] sm:$0xff]  ;;  %v1951_v31 = vmul.f32 %v1947_v13, %v5019_v63 }
 0x20b   :  { %v2282_v25 = vld [vmem:[#allocation5 + $0x710] sm:$0xff]  ;;  %v2199_v7 = vadd.f32 %v2195_v19, %v2190_v58  ;;  %v1868_v19 = vadd.f32 %v1864_v32, %v1781_v42 }
 0x20c   :  { %v2447_v39 = vld [vmem:[#allocation5 + $0x350] sm:$0xff]  ;;  %v2286_v26 = vadd.f32 %v2282_v25, %v2277_v15 }
 0x20d   :  { %v2369_v41 = vld [vmem:[#allocation5 + $0x730] sm:$0xff]  ;;  %v2451_v30 = vmul.f32 %v2447_v39, %v4869_v40  ;;  %v5037_v15 = vmax.f32 %v2199_v7, 0.0 }
 0x20e   :  { %v2534_v3 = vld [vmem:[#allocation5 + $0x370] sm:$0xff]  ;;  %v2373_v54 = vadd.f32 %v2369_v41, %v2364_v29  ;;  %v3050_v29 = vmax.f32 %v3046_v45, 0.0 }
 0x20f   :  { %v2621_v23 = vld [vmem:[#allocation5 + $0x390] sm:$0xff]  ;;  %v2538_v51 = vmul.f32 %v2534_v3, %v4869_v40  ;;  %6498 = vst [vmem:[#allocation31_spill] sm:$0xff] %v5037_v15 }
 0x210   :  { %v2708_v4 = vld [vmem:[#allocation5 + $0x3b0] sm:$0xff]  ;;  %v2625_v34 = vmul.f32 %v2621_v23, %v4869_v40  ;;  %v5041_v23 = vmax.f32 %v2286_v26, 0.0  ;;  %v5043_v42 = vmax.f32 %v2373_v54, 0.0 }
 0x211   :  { %v2034_v22 = vld [vmem:[#allocation5 + $0xab0] sm:$0xff]  ;;  %v2712_v33 = vmul.f32 %v2708_v4, %v4869_v40  ;;  %v1955_v4 = vadd.f32 %v1951_v31, %v1868_v19 }
 0x212   :  { %v2795_v14 = vld [vmem:[#allocation5 + $0x3d0] sm:$0xff]  ;;  %v2038_v18 = vmul.f32 %v2034_v22, %v5025_v53  ;;  %6499 = vst [vmem:[#allocation89_spill] sm:$0xff] %v5041_v23  ;;  %6500 = vst [vmem:[#allocation32_spill] sm:$0xff] %v5043_v42 }
 0x213   :  { %v2121_v24 = vld [vmem:[#allocation5 + $0xad0] sm:$0xff]  ;;  %v2799_v48 = vmul.f32 %v2795_v14, %v4869_v40  ;;  %v3054_v14 = vmul.f32 %v5005_v36, %v3050_v29 }
 0x214   :  { %v2456_v20 = vld [vmem:[#allocation5 + $0x750] sm:$0xff]  ;;  %v2125_v41 = vmul.f32 %v2121_v24, %v5030_v12  ;;  %v2042_v50 = vadd.f32 %v2038_v18, %v1955_v4 }
 0x215   :  { %v2543_v13 = vld [vmem:[#allocation5 + $0x770] sm:$0xff]  ;;  %v2460_v52 = vadd.f32 %v2456_v20, %v2451_v30  ;;  %3059 = vadd.xlane.f32.xlu1 %v3054_v14 }
 0x216   :  { %v2630_v58 = vld [vmem:[#allocation5 + $0x790] sm:$0xff]  ;;  %v2547_v7 = vadd.f32 %v2543_v13, %v2538_v51 }
 0x217   :  { %v2717_v25 = vld [vmem:[#allocation5 + $0x7b0] sm:$0xff]  ;;  %v2634_v22 = vadd.f32 %v2630_v58, %v2625_v34  ;;  %v2129_v58 = vadd.f32 %v2125_v41, %v2042_v50 }
 0x218   :  { %v2882_v39 = vld [vmem:[#allocation5 + $0x3f0] sm:$0xff]  ;;  %v2721_v5 = vadd.f32 %v2717_v25, %v2712_v33  ;;  %v5052_v33 = vmax.f32 %v2460_v52, 0.0 }
 0x219   :  { %v220_v46 = vld [vmem:[#allocation5 + $0xc10] sm:$0xff]  ;;  %v2886_v45 = vmul.f32 %v2882_v39, %v4869_v40  ;;  %v5056_v39 = vmax.f32 %v2547_v7, 0.0 }
 0x21a   :  { %v2208_v3 = vld [vmem:[#allocation5 + $0xaf0] sm:$0xff]  ;;  %v224_v24 = vmul.f32 %v220_v46, %v4901_v27  ;;  %6501 = vst [vmem:[#allocation100_spill] sm:$0xff] %v5052_v33  ;;  %v5060_v46 = vmax.f32 %v2721_v5, 0.0 }
 0x21b   :  { %v2804_v61 = vld [vmem:[#allocation5 + $0x7d0] sm:$0xff]  ;;  %v2212_v20 = vmul.f32 %v2208_v3, %v5037_v15  ;;  %6502 = vst [vmem:[#allocation104_spill] sm:$0xff] %v5056_v39 }
 0x21c   :  { %v307_v56 = vld [vmem:[#allocation5 + $0xc30] sm:$0xff]  ;;  %v2808_v31 = vadd.f32 %v2804_v61, %v2799_v48  ;;  %v5058_v48 = vmax.f32 %v2634_v22, 0.0  ;;  %6504 = vst [vmem:[#allocation90_spill] sm:$0xff] %v5060_v46 }
 0x21d   :  { %v2295_v32 = vld [vmem:[#allocation5 + $0xb10] sm:$0xff]  ;;  %v311_v54 = vmul.f32 %v307_v56, %v4903_v10 }
 0x21e   :  { %v2891_v16 = vld [vmem:[#allocation5 + $0x7f0] sm:$0xff]  ;;  %v2299_v51 = vmul.f32 %v2295_v32, %v5041_v23  ;;  %6503 = vst [vmem:[#allocation114_spill] sm:$0xff] %v5058_v48  ;;  %v5062_v50 = vmax.f32 %v2808_v31, 0.0 }
 0x21f   :  { %v394_v44 = vld [vmem:[#allocation5 + $0xc50] sm:$0xff]  ;;  %v2895_v34 = vadd.f32 %v2891_v16, %v2886_v45  ;;  %v315_v40 = vadd.f32 %v311_v54, %v224_v24  ;;  %v2216_v16 = vadd.f32 %v2212_v20, %v2129_v58 }
 0x220   :  { %v481_v26 = vld [vmem:[#allocation5 + $0xc70] sm:$0xff]  ;;  %v398_v13 = vmul.f32 %v394_v44, %v4907_v6  ;;  %6505 = vst [vmem:[#allocation101_spill] sm:$0xff] %v5062_v50 }
 0x221   :  { %v2382_v30 = vld [vmem:[#allocation5 + $0xb30] sm:$0xff]  ;;  %v485_v19 = vmul.f32 %v481_v26, %v4912_v43  ;;  %v5065_v4 = vmax.f32 %v2895_v34, 0.0  ;;  %v2303_v14 = vadd.f32 %v2299_v51, %v2216_v16  ;;  %v382_v43 = vld [vmem:[#allocation5 + $0x858] sm:$0xff] }
 0x222   :  { %v568_v36 = vld [vmem:[#allocation5 + $0xc90] sm:$0xff]  ;;  %v2386_v18 = vmul.f32 %v2382_v30, %v5043_v42  ;;  %v402_v41 = vadd.f32 %v398_v13, %v315_v40 }
 0x223   :  { %v2469_v25 = vld [vmem:[#allocation5 + $0xb50] sm:$0xff]  ;;  %v572_v52 = vmul.f32 %v568_v36, %v4930_v37  ;;  %6506 = vst [vmem:[#allocation105_spill] sm:$0xff] %v5065_v4 }
 0x224   :  { %v655_v29 = vld [vmem:[#allocation5 + $0xcb0] sm:$0xff]  ;;  %v2473_v22 = vmul.f32 %v2469_v25, %v5052_v33  ;;  %v489_v5 = vadd.f32 %v485_v19, %v402_v41  ;;  %v2390_v58 = vadd.f32 %v2386_v18, %v2303_v14  ;;  %v257_v14 = vld [vmem:[#allocation5 + $0x1800] sm:$0xff] }
 0x225   :  { %v2556_v3 = vld [vmem:[#allocation5 + $0xb70] sm:$0xff]  ;;  %v659_v45 = vmul.f32 %v655_v29, %v4934_v55 }
 0x226   :  { %v2643_v44 = vld [vmem:[#allocation5 + $0xb90] sm:$0xff]  ;;  %v2560_v30 = vmul.f32 %v2556_v3, %v5056_v39  ;;  %v576_v40 = vadd.f32 %v572_v52, %v489_v5 }
 0x227   :  { %v2730_v61 = vld [vmem:[#allocation5 + $0xbb0] sm:$0xff]  ;;  %v2647_v31 = vmul.f32 %v2643_v44, %v5058_v48 }
 0x228   :  { %v2817_v56 = vld [vmem:[#allocation5 + $0xbd0] sm:$0xff]  ;;  %v2734_v54 = vmul.f32 %v2730_v61, %v5060_v46  ;;  %v663_v37 = vadd.f32 %v659_v45, %v576_v40 }
 0x229   :  { %v2904_v32 = vld [vmem:[#allocation5 + $0xbf0] sm:$0xff]  ;;  %v5073_v51 = vmul.f32 %v2817_v56, %v5062_v50  ;;  %v2477_v56 = vadd.f32 %v2473_v22, %v2390_v58 }
 0x22a   :  { %v742_v7 = vld [vmem:[#allocation5 + $0xcd0] sm:$0xff]  ;;  %v5077_v41 = vmul.f32 %v2904_v32, %v5065_v4  ;;  %v344_v32 = vld [vmem:[#allocation5 + $0x1820] sm:$0xff] }
 0x22b   :  { %v829_v24 = vld [vmem:[#allocation5 + $0xcf0] sm:$0xff]  ;;  %v746_v19 = vmul.f32 %v742_v7, %v4936_v28  ;;  %v431_v28 = vld [vmem:[#allocation5 + $0x1840] sm:$0xff]  ;;  %v2564_v58 = vadd.f32 %v2560_v30, %v2477_v56 }
 0x22c   :  { %v916_v26 = vld [vmem:[#allocation5 + $0xd10] sm:$0xff]  ;;  %v833_v3 = vmul.f32 %v829_v24, %v4940_v38  ;;  %v6509_v30 = vld [vmem:[#allocation57_spill] sm:$0xff]  ;;  %v295_v38 = vld [vmem:[#allocation5 + $0x838] sm:$0xff] }
 0x22d   :  { %v1003_v20 = vld [vmem:[#allocation5 + $0xd30] sm:$0xff]  ;;  %v920_v44 = vmul.f32 %v916_v26, %v4952_v59  ;;  %v621_v59 = vld [vmem:[#allocation5 + $0xb8] sm:$0xff] }
 0x22e   :  { %v1090_v13 = vld [vmem:[#allocation5 + $0xd50] sm:$0xff]  ;;  %v1007_v61 = vmul.f32 %v1003_v20, %v4960_v2  ;;  %v518_v2 = vld [vmem:[#allocation5 + $0x1860] sm:$0xff] }
 0x22f   :  { %v1177_v34 = vld [vmem:[#allocation5 + $0xd70] sm:$0xff]  ;;  %v5083_v52 = vmul.f32 %v1090_v13, %v4962_v35 }
 0x230   :  { %v1264_v36 = vld [vmem:[#allocation5 + $0xd90] sm:$0xff]  ;;  %v5086_v7 = vmul.f32 %v1177_v34, %v4966_v17  ;;  %v750_v34 = vadd.f32 %v746_v19, %v663_v37  ;;  %v435_v37 = vmul.f32 %v431_v28, %v6509_v30  ;;  %v2651_v19 = vadd.f32 %v2647_v31, %v2564_v58 }
 0x231   :  { %v1351_v25 = vld [vmem:[#allocation5 + $0xdb0] sm:$0xff]  ;;  %v5089_v24 = vmul.f32 %v1264_v36, %v4975_v9 }
 0x232   :  { %v1438_v29 = vld [vmem:[#allocation5 + $0xdd0] sm:$0xff]  ;;  %v5092_v26 = vmul.f32 %v1351_v25, %v4980_v11  ;;  %v2738_v58 = vadd.f32 %v2734_v54, %v2651_v19 }
 0x233   :  { %v1525_v16 = vld [vmem:[#allocation5 + $0xdf0] sm:$0xff]  ;;  %v5095_v20 = vmul.f32 %v1438_v29, %v4989_v47  ;;  %v6508_v47 = vld [vmem:[#allocation56_spill] sm:$0xff] }
 0x234   :  { %v1612_v55 = vld [vmem:[#allocation5 + $0xe10] sm:$0xff]  ;;  %v5098_v22 = vmul.f32 %v1525_v16, %v4992_v0  ;;  %v348_v11 = vmul.f32 %v344_v32, %v6508_v47 }
 0x235   :  { %v1699_v18 = vld [vmem:[#allocation5 + $0xe30] sm:$0xff]  ;;  %v5101_v40 = vmul.f32 %v1612_v55, %v4997_v57  ;;  %v837_v55 = vadd.f32 %v833_v3, %v750_v34 }
 0x236   :  { %v1786_v5 = vld [vmem:[#allocation5 + $0xe50] sm:$0xff]  ;;  %v5105_v25 = vmul.f32 %v1699_v18, %v5001_v1  ;;  %v605_v1 = vld [vmem:[#allocation5 + $0x1880] sm:$0xff] }
 0x237   :  { %v1873_v45 = vld [vmem:[#allocation5 + $0xe70] sm:$0xff]  ;;  %v5108_v29 = vmul.f32 %v1786_v5, %v5012_v49 }
 0x238   :  { %v1960_v13 = vld [vmem:[#allocation5 + $0xe90] sm:$0xff]  ;;  %v5113_v56 = vmul.f32 %v1873_v45, %v5017_v60  ;;  %v924_v45 = vadd.f32 %v920_v44, %v837_v55  ;;  %v779_v44 = vld [vmem:[#allocation5 + $0x18c0] sm:$0xff] }
 0x239   :  { %v2047_v17 = vld [vmem:[#allocation5 + $0xeb0] sm:$0xff]  ;;  %v6523_v60 = vld [vmem:[#allocation73_spill] sm:$0xff] }
 0x23a   :  { %v2134_v35 = vld [vmem:[#allocation5 + $0xed0] sm:$0xff]  ;;  %v5119_v5 = vmul.f32 %v2047_v17, %v5025_v53  ;;  %v692_v17 = vld [vmem:[#allocation5 + $0x18a0] sm:$0xff]  ;;  %v1011_v19 = vadd.f32 %v1007_v61, %v924_v45 }
 0x23b   :  { %v6507_v36 = vld [vmem:[#allocation55_spill] sm:$0xff]  ;;  %v5122_v49 = vmul.f32 %v2134_v35, %v5030_v12  ;;  %v6510_v31 = vld [vmem:[#allocation58_spill] sm:$0xff]  ;;  %v1127_v61 = vld [vmem:[#allocation5 + $0x1940] sm:$0xff] }
 0x23c   :  { %v261_v9 = vmul.f32 %v257_v14, %v6507_v36  ;;  %v2221_v16 = vld [vmem:[#allocation5 + $0xef0] sm:$0xff]  ;;  %v5116_v14 = vmul.f32 %v1960_v13, %v5019_v63  ;;  %v522_v3 = vmul.f32 %v518_v2, %v6510_v31  ;;  %v866_v31 = vld [vmem:[#allocation5 + $0x18e0] sm:$0xff] }
 0x23d   :  { %v2308_v0 = vld [vmem:[#allocation5 + $0xf10] sm:$0xff]  ;;  %v5126_v34 = vmul.f32 %v2221_v16, %v5037_v15  ;;  %v2825_v16 = vadd.f32 %v5073_v51, %v2738_v58  ;;  %v1214_v58 = vld [vmem:[#allocation5 + $0x1960] sm:$0xff] }
 0x23e   :  { %v2395_v36 = vld [vmem:[#allocation5 + $0xf30] sm:$0xff]  ;;  %v352_v28 = vadd.f32 %v348_v11, %v261_v9  ;;  %v5129_v13 = vmul.f32 %v2308_v0, %v5041_v23  ;;  %v1562_v15 = vld [vmem:[#allocation5 + $0x19e0] sm:$0xff] }
 0x23f   :  { %v2482_v18 = vld [vmem:[#allocation5 + $0xf50] sm:$0xff]  ;;  %v5132_v53 = vmul.f32 %v2395_v36, %v5043_v42  ;;  %v953_v36 = vld [vmem:[#allocation5 + $0x1900] sm:$0xff] }
 0x240   :  { %v2569_v47 = vld [vmem:[#allocation5 + $0xf70] sm:$0xff]  ;;  %v5135_v35 = vmul.f32 %v2482_v18, %v5052_v33  ;;  %v439_v11 = vadd.f32 %v435_v37, %v352_v28  ;;  %v1040_v42 = vld [vmem:[#allocation5 + $0x1920] sm:$0xff] }
 0x241   :  { %v2656_v32 = vld [vmem:[#allocation5 + $0xf90] sm:$0xff]  ;;  %v5140_v0 = vmul.f32 %v2569_v47, %v5056_v39  ;;  %v6512_v28 = vld [vmem:[#allocation60_spill] sm:$0xff]  ;;  %v2912_v47 = vadd.f32 %v5077_v41, %v2825_v16 }
 0x242   :  { %v2743_v30 = vld [vmem:[#allocation5 + $0xfb0] sm:$0xff]  ;;  %v5143_v55 = vmul.f32 %v2656_v32, %v5058_v48  ;;  %v696_v51 = vmul.f32 %v692_v17, %v6512_v28  ;;  %v1098_v32 = vadd.f32 %v5083_v52, %v1011_v19  ;;  %v1301_v39 = vld [vmem:[#allocation5 + $0x1980] sm:$0xff]  ;;  %v5161_v41 = vld [vmem:[#allocation3 + $0x18] sm:$0xff] }
 0x243   :  { %v2830_v63 = vld [vmem:[#allocation5 + $0xfd0] sm:$0xff]  ;;  %v5146_v18 = vmul.f32 %v2743_v30, %v5060_v46  ;;  %v1388_v30 = vld [vmem:[#allocation5 + $0x19a0] sm:$0xff] }
 0x244   :  { %v2917_v9 = vld [vmem:[#allocation5 + $0xff0] sm:$0xff]  ;;  %v5149_v37 = vmul.f32 %v2830_v63, %v5062_v50  ;;  %v1475_v46 = vld [vmem:[#allocation5 + $0x19c0] sm:$0xff] }
 0x245   :  { %v6511_v2 = vld [vmem:[#allocation59_spill] sm:$0xff]  ;;  %v5155_v45 = vmul.f32 %v2917_v9, %v5065_v4  ;;  %v6514_v63 = vld [vmem:[#allocation62_spill] sm:$0xff]  ;;  %v1649_v12 = vld [vmem:[#allocation5 + $0x1a00] sm:$0xff]  ;;  %v1185_v9 = vadd.f32 %v5086_v7, %v1098_v32 }
 0x246   :  { %v609_v54 = vmul.f32 %v605_v1, %v6511_v2  ;;  %v2968_v23 = vld [vmem:[#allocation7 + $0x10] sm:$0xff]  ;;  %v526_v1 = vadd.f32 %v522_v3, %v439_v11  ;;  %v6513_v2 = vld [vmem:[#allocation61_spill] sm:$0xff]  ;;  %v870_v50 = vmul.f32 %v866_v31, %v6514_v63  ;;  %v6515_v3 = vld [vmem:[#allocation64_spill] sm:$0xff]  ;;  %v5186_v57 = vmul.f32 %v1649_v12, %v6523_v60 }
 0x247   :  { %v783_v48 = vmul.f32 %v779_v44, %v6513_v2  ;;  %v957_v11 = vmul.f32 %v953_v36, %v6515_v3  ;;  %v6516_v17 = vld [vmem:[#allocation66_spill] sm:$0xff]  ;;  %v2972_v52 = vadd.f32 %v2968_v23, %v2912_v47  ;;  %v6517_v16 = vld [vmem:[#allocation67_spill] sm:$0xff]  ;;  %v6518_v44 = vld [vmem:[#allocation68_spill] sm:$0xff] }
 0x248   :  { %v613_v33 = vadd.f32 %v609_v54, %v526_v1  ;;  %v1044_v28 = vmul.f32 %v1040_v42, %v6516_v17  ;;  %v5165_v19 = vmul.f32 %v1127_v61, %v6517_v16  ;;  %v5168_v2 = vmul.f32 %v1214_v58, %v6518_v44  ;;  %v186_v54 = vld [vmem:[#allocation5 + $0x18] sm:$0xff]  ;;  %v5170_v63 = vld [vmem:[#allocation8 + $0x10] sm:$0xff]  ;;  %v6519_v42 = vld [vmem:[#allocation69_spill] sm:$0xff] }
 0x249   :  { %v273_v1 = vld [vmem:[#allocation5 + $0x38] sm:$0xff]  ;;  %v5173_v3 = vmul.f32 %v1301_v39, %v6519_v42  ;;  %v6520_v17 = vld [vmem:[#allocation70_spill] sm:$0xff]  ;;  %v2976_v32 = vmax.f32 %v2972_v52, 0.0  ;;  %v1272_v58 = vadd.f32 %v5089_v24, %v1185_v9 }
 0x24a   :  { %v360_v31 = vld [vmem:[#allocation5 + $0x58] sm:$0xff]  ;;  %v700_v36 = vadd.f32 %v696_v51, %v613_v33  ;;  %v5176_v4 = vmul.f32 %v1388_v30, %v6520_v17  ;;  %v190_v30 = vmul.f32 %v186_v54, %v5161_v41 }
 0x24b   :  { %v6521_v23 = vld [vmem:[#allocation71_spill] sm:$0xff]  ;;  %v6522_v16 = vld [vmem:[#allocation72_spill] sm:$0xff]  ;;  %v364_v17 = vmul.f32 %v360_v31, %v5161_v41  ;;  %v2980_v24 = vmul.f32 %v2976_v32, %v5170_v63  ;;  %v625_v32 = vmul.f32 %v621_v59, %v5161_v41 }
 0x24c   :  { %v5179_v7 = vmul.f32 %v1475_v46, %v6521_v23  ;;  %v447_v61 = vld [vmem:[#allocation5 + $0x78] sm:$0xff]  ;;  %v5183_v44 = vmul.f32 %v1562_v15, %v6522_v16  ;;  %v787_v42 = vadd.f32 %v783_v48, %v700_v36  ;;  %v277_v46 = vmul.f32 %v273_v1, %v5161_v41 }
 0x24d   :  { %v534_v47 = vld [vmem:[#allocation5 + $0x98] sm:$0xff]  ;;  %v1359_v15 = vadd.f32 %v5092_v26, %v1272_v58  ;;  %v451_v60 = vmul.f32 %v447_v61, %v5161_v41  ;;  %2986 = vadd.xlane.f32.xlu0 %v2980_v24 }
 0x24e   :  { %v195_v33 = vld [vmem:[#allocation5 + $0x418] sm:$0xff]  ;;  %v538_v12 = vmul.f32 %v534_v47, %v5161_v41  ;;  %v874_v9 = vadd.f32 %v870_v50, %v787_v42 }
 0x24f   :  { %v282_v39 = vld [vmem:[#allocation5 + $0x438] sm:$0xff]  ;;  %v199_v16 = vadd.f32 %v195_v33, %v190_v30  ;;  %v1446_v1 = vadd.f32 %v5095_v20, %v1359_v15 }
 0x250   :  { %v369_v51 = vld [vmem:[#allocation5 + $0x458] sm:$0xff]  ;;  %v286_v48 = vadd.f32 %v282_v39, %v277_v46  ;;  %v961_v26 = vadd.f32 %v957_v11, %v874_v9 }
 0x251   :  { %v456_v23 = vld [vmem:[#allocation5 + $0x478] sm:$0xff]  ;;  %v373_v36 = vadd.f32 %v369_v51, %v364_v17  ;;  %v5197_v58 = vmax.f32 %v199_v16, 0.0  ;;  %v1533_v39 = vadd.f32 %v5098_v22, %v1446_v1 }
 0x252   :  { %v543_v52 = vld [vmem:[#allocation5 + $0x498] sm:$0xff]  ;;  %v460_v6 = vadd.f32 %v456_v23, %v451_v60  ;;  %v5199_v61 = vmax.f32 %v286_v48, 0.0  ;;  %v1048_v17 = vadd.f32 %v1044_v28, %v961_v26 }
 0x253   :  { %v630_v54 = vld [vmem:[#allocation5 + $0x4b8] sm:$0xff]  ;;  %v547_v10 = vadd.f32 %v543_v52, %v538_v12  ;;  %6524 = vst [vmem:[#allocation115_spill] sm:$0xff] %v5197_v58  ;;  %v5201_v50 = vmax.f32 %v373_v36, 0.0  ;;  %v1620_v60 = vadd.f32 %v5101_v40, %v1533_v39 }
 0x254   :  { %v208_v31 = vld [vmem:[#allocation5 + $0x818] sm:$0xff]  ;;  %6525 = vst [vmem:[#allocation117_spill] sm:$0xff] %v5199_v61  ;;  %v5204_v51 = vmax.f32 %v460_v6, 0.0  ;;  %v634_v42 = vadd.f32 %v630_v54, %v625_v32  ;;  %v299_v11 = vmul.f32 %v295_v38, %v5199_v61  ;;  %v1135_v28 = vadd.f32 %v5165_v19, %v1048_v17 }
 0x255   :  { %6526 = vst [vmem:[#allocation102_spill] sm:$0xff] %v5201_v50  ;;  %v469_v47 = vld [vmem:[#allocation5 + $0x878] sm:$0xff]  ;;  %v5206_v20 = vmax.f32 %v547_v10, 0.0  ;;  %v212_v59 = vmul.f32 %v208_v31, %v5197_v58  ;;  %v386_v23 = vmul.f32 %v382_v43, %v5201_v50  ;;  %v1707_v40 = vadd.f32 %v5105_v25, %v1620_v60  ;;  %v1389_v50 = vld [vmem:[#allocation5 + $0x19a8] sm:$0xff] }
 0x256   :  { %v556_v33 = vld [vmem:[#allocation5 + $0x898] sm:$0xff]  ;;  %6527 = vst [vmem:[#allocation106_spill] sm:$0xff] %v5204_v51  ;;  %v473_v6 = vmul.f32 %v469_v47, %v5204_v51  ;;  %v5214_v22 = vmax.f32 %v634_v42, 0.0  ;;  %v1222_v26 = vadd.f32 %v5168_v2, %v1135_v28  ;;  %v1736_v47 = vld [vmem:[#allocation5 + $0x1a20] sm:$0xff] }
 0x257   :  { %6528 = vst [vmem:[#allocation94_spill] sm:$0xff] %v5206_v20  ;;  %v708_v30 = vld [vmem:[#allocation5 + $0xd8] sm:$0xff]  ;;  %v560_v10 = vmul.f32 %v556_v33, %v5206_v20  ;;  %v303_v16 = vadd.f32 %v299_v11, %v212_v59 }
 0x258   :  { %v795_v46 = vld [vmem:[#allocation5 + $0xf8] sm:$0xff]  ;;  %6529 = vst [vmem:[#allocation107_spill] sm:$0xff] %v5214_v22  ;;  %v712_v38 = vmul.f32 %v708_v30, %v5161_v41  ;;  %v1794_v30 = vadd.f32 %v5108_v29, %v1707_v40 }
 0x259   :  { %v643_v52 = vld [vmem:[#allocation5 + $0x8b8] sm:$0xff]  ;;  %v799_v43 = vmul.f32 %v795_v46, %v5161_v41  ;;  %v390_v19 = vadd.f32 %v386_v23, %v303_v16  ;;  %v1823_v46 = vld [vmem:[#allocation5 + $0x1a40] sm:$0xff] }
 0x25a   :  { %v882_v24 = vld [vmem:[#allocation5 + $0x118] sm:$0xff]  ;;  %v647_v1 = vmul.f32 %v643_v52, %v5214_v22  ;;  %v1309_v52 = vadd.f32 %v5173_v3, %v1222_v26 }
 0x25b   :  { %v969_v15 = vld [vmem:[#allocation5 + $0x138] sm:$0xff]  ;;  %v886_v31 = vmul.f32 %v882_v24, %v5161_v41  ;;  %v477_v24 = vadd.f32 %v473_v6, %v390_v19 }
 0x25c   :  { %v717_v12 = vld [vmem:[#allocation5 + $0x4d8] sm:$0xff]  ;;  %v973_v32 = vmul.f32 %v969_v15, %v5161_v41 }
 0x25d   :  { %v804_v9 = vld [vmem:[#allocation5 + $0x4f8] sm:$0xff]  ;;  %v721_v33 = vadd.f32 %v717_v12, %v712_v38  ;;  %v1881_v12 = vadd.f32 %v5113_v56, %v1794_v30  ;;  %v564_v6 = vadd.f32 %v560_v10, %v477_v24 }
 0x25e   :  { %v891_v48 = vld [vmem:[#allocation5 + $0x518] sm:$0xff]  ;;  %v808_v39 = vadd.f32 %v804_v9, %v799_v43  ;;  %v6532_v9 = vld [vmem:[#allocation74_spill] sm:$0xff] }
 0x25f   :  { %v978_v36 = vld [vmem:[#allocation5 + $0x538] sm:$0xff]  ;;  %v895_v59 = vadd.f32 %v891_v48, %v886_v31  ;;  %v5227_v60 = vmax.f32 %v721_v33, 0.0  ;;  %v1740_v28 = vmul.f32 %v1736_v47, %v6532_v9  ;;  %v1396_v48 = vadd.f32 %v5176_v4, %v1309_v52  ;;  %v1910_v4 = vld [vmem:[#allocation5 + $0x1a60] sm:$0xff] }
 0x260   :  { %v1056_v54 = vld [vmem:[#allocation5 + $0x158] sm:$0xff]  ;;  %v982_v11 = vadd.f32 %v978_v36, %v973_v32  ;;  %v5229_v15 = vmax.f32 %v808_v39, 0.0  ;;  %v1968_v32 = vadd.f32 %v5116_v14, %v1881_v12 }
 0x261   :  { %v1065_v42 = vld [vmem:[#allocation5 + $0x558] sm:$0xff]  ;;  %v1060_v25 = vmul.f32 %v1056_v54, %v5161_v41  ;;  %6530 = vst [vmem:[#allocation55_spill] sm:$0xff] %v5227_v60  ;;  %v5233_v29 = vmax.f32 %v895_v59, 0.0  ;;  %v1483_v39 = vadd.f32 %v5179_v7, %v1396_v48  ;;  %v1997_v7 = vld [vmem:[#allocation5 + $0x1a80] sm:$0xff] }
 0x262   :  { %v730_v17 = vld [vmem:[#allocation5 + $0x8d8] sm:$0xff]  ;;  %6531 = vst [vmem:[#allocation56_spill] sm:$0xff] %v5229_v15  ;;  %v5241_v47 = vmax.f32 %v982_v11, 0.0  ;;  %v2055_v14 = vadd.f32 %v5119_v5, %v1968_v32 }
 0x263   :  { %v817_v2 = vld [vmem:[#allocation5 + $0x8f8] sm:$0xff]  ;;  %6533 = vst [vmem:[#allocation57_spill] sm:$0xff] %v5233_v29  ;;  %v1069_v16 = vadd.f32 %v1065_v42, %v1060_v25  ;;  %v734_v54 = vmul.f32 %v730_v17, %v5227_v60  ;;  %v651_v42 = vadd.f32 %v647_v1, %v564_v6  ;;  %v1570_v24 = vadd.f32 %v5183_v44, %v1483_v39 }
 0x264   :  { %v904_v23 = vld [vmem:[#allocation5 + $0x918] sm:$0xff]  ;;  %v821_v56 = vmul.f32 %v817_v2, %v5229_v15  ;;  %6535 = vst [vmem:[#allocation58_spill] sm:$0xff] %v5241_v47  ;;  %v2084_v2 = vld [vmem:[#allocation5 + $0x1aa0] sm:$0xff] }
 0x265   :  { %v1143_v38 = vld [vmem:[#allocation5 + $0x178] sm:$0xff]  ;;  %v908_v26 = vmul.f32 %v904_v23, %v5233_v29  ;;  %v5247_v25 = vmax.f32 %v1069_v16, 0.0  ;;  %v738_v1 = vadd.f32 %v734_v54, %v651_v42  ;;  %v1657_v6 = vadd.f32 %v5186_v57, %v1570_v24 }
 0x266   :  { %v1230_v43 = vld [vmem:[#allocation5 + $0x198] sm:$0xff]  ;;  %v1147_v10 = vmul.f32 %v1143_v38, %v5161_v41  ;;  %v2142_v38 = vadd.f32 %v5122_v49, %v2055_v14  ;;  %v6540_v49 = vld [vmem:[#allocation78_spill] sm:$0xff] }
 0x267   :  { %v6534_v36 = vld [vmem:[#allocation75_spill] sm:$0xff]  ;;  %v1234_v30 = vmul.f32 %v1230_v43, %v5161_v41  ;;  %6536 = vst [vmem:[#allocation59_spill] sm:$0xff] %v5247_v25  ;;  %v6537_v43 = vld [vmem:[#allocation76_spill] sm:$0xff]  ;;  %v2088_v42 = vmul.f32 %v2084_v2, %v6540_v49 }
 0x268   :  { %v1827_v3 = vmul.f32 %v1823_v46, %v6534_v36  ;;  %v1317_v40 = vld [vmem:[#allocation5 + $0x1b8] sm:$0xff]  ;;  %v1914_v48 = vmul.f32 %v1910_v4, %v6537_v43 }
 0x269   :  { %v1404_v31 = vld [vmem:[#allocation5 + $0x1d8] sm:$0xff]  ;;  %v1321_v11 = vmul.f32 %v1317_v40, %v5161_v41  ;;  %v825_v40 = vadd.f32 %v821_v56, %v738_v1 }
 0x26a   :  { %v1152_v19 = vld [vmem:[#allocation5 + $0x578] sm:$0xff]  ;;  %v1408_v52 = vmul.f32 %v1404_v31, %v5161_v41 }
 0x26b   :  { %v1239_v33 = vld [vmem:[#allocation5 + $0x598] sm:$0xff]  ;;  %v1156_v23 = vadd.f32 %v1152_v19, %v1147_v10  ;;  %v2229_v19 = vadd.f32 %v5126_v34, %v2142_v38  ;;  %v912_v14 = vadd.f32 %v908_v26, %v825_v40 }
 0x26c   :  { %v1326_v46 = vld [vmem:[#allocation5 + $0x5b8] sm:$0xff]  ;;  %v1243_v12 = vadd.f32 %v1239_v33, %v1234_v30  ;;  %v6539_v33 = vld [vmem:[#allocation77_spill] sm:$0xff] }
 0x26d   :  { %v1491_v17 = vld [vmem:[#allocation5 + $0x1f8] sm:$0xff]  ;;  %v1330_v36 = vadd.f32 %v1326_v46, %v1321_v11  ;;  %v5257_v44 = vmax.f32 %v1156_v23, 0.0  ;;  %v2001_v39 = vmul.f32 %v1997_v7, %v6539_v33  ;;  %v1744_v46 = vadd.f32 %v1740_v28, %v1657_v6  ;;  %v2258_v23 = vld [vmem:[#allocation5 + $0x1ae0] sm:$0xff] }
 0x26e   :  { %v991_v59 = vld [vmem:[#allocation5 + $0x938] sm:$0xff]  ;;  %v1495_v16 = vmul.f32 %v1491_v17, %v5161_v41  ;;  %v2171_v17 = vld [vmem:[#allocation5 + $0x1ac0] sm:$0xff]  ;;  %v5263_v56 = vmax.f32 %v1243_v12, 0.0  ;;  %v2316_v11 = vadd.f32 %v5129_v13, %v2229_v19 }
 0x26f   :  { %v1413_v9 = vld [vmem:[#allocation5 + $0x5d8] sm:$0xff]  ;;  %v995_v31 = vmul.f32 %v991_v59, %v5241_v47  ;;  %6538 = vst [vmem:[#allocation60_spill] sm:$0xff] %v5257_v44  ;;  %v5267_v1 = vmax.f32 %v1330_v36, 0.0 }
 0x270   :  { %v1078_v5 = vld [vmem:[#allocation5 + $0x958] sm:$0xff]  ;;  %v1417_v4 = vadd.f32 %v1413_v9, %v1408_v52  ;;  %6541 = vst [vmem:[#allocation61_spill] sm:$0xff] %v5263_v56  ;;  %v1831_v52 = vadd.f32 %v1827_v3, %v1744_v46  ;;  %v2403_v12 = vadd.f32 %v5132_v53, %v2316_v11  ;;  %v2345_v53 = vld [vmem:[#allocation5 + $0x1b00] sm:$0xff] }
 0x271   :  { %v1165_v32 = vld [vmem:[#allocation5 + $0x978] sm:$0xff]  ;;  %v1082_v57 = vmul.f32 %v1078_v5, %v5247_v25  ;;  %6542 = vst [vmem:[#allocation62_spill] sm:$0xff] %v5267_v1  ;;  %v999_v9 = vadd.f32 %v995_v31, %v912_v14  ;;  %v2432_v14 = vld [vmem:[#allocation5 + $0x1b20] sm:$0xff] }
 0x272   :  { %v1500_v54 = vld [vmem:[#allocation5 + $0x5f8] sm:$0xff]  ;;  %v1169_v24 = vmul.f32 %v1165_v32, %v5257_v44  ;;  %v5273_v6 = vmax.f32 %v1417_v4, 0.0  ;;  %v2490_v33 = vadd.f32 %v5135_v35, %v2403_v12 }
 0x273   :  { %v1578_v10 = vld [vmem:[#allocation5 + $0x218] sm:$0xff]  ;;  %v1504_v7 = vadd.f32 %v1500_v54, %v1495_v16  ;;  %v1918_v16 = vadd.f32 %v1914_v48, %v1831_v52  ;;  %v1086_v32 = vadd.f32 %v1082_v57, %v999_v9 }
 0x274   :  { %v1665_v30 = vld [vmem:[#allocation5 + $0x238] sm:$0xff]  ;;  %v1582_v28 = vmul.f32 %v1578_v10, %v5161_v41  ;;  %6544 = vst [vmem:[#allocation64_spill] sm:$0xff] %v5273_v6 }
 0x275   :  { %v1752_v59 = vld [vmem:[#allocation5 + $0x258] sm:$0xff]  ;;  %v1669_v26 = vmul.f32 %v1665_v30, %v5161_v41  ;;  %v5279_v46 = vmax.f32 %v1504_v7, 0.0 }
 0x276   :  { %v1252_v34 = vld [vmem:[#allocation5 + $0x998] sm:$0xff]  ;;  %v1756_v36 = vmul.f32 %v1752_v59, %v5161_v41  ;;  %v1173_v59 = vadd.f32 %v1169_v24, %v1086_v32 }
 0x277   :  { %v1587_v2 = vld [vmem:[#allocation5 + $0x618] sm:$0xff]  ;;  %v1256_v3 = vmul.f32 %v1252_v34, %v5263_v56  ;;  %6546 = vst [vmem:[#allocation66_spill] sm:$0xff] %v5279_v46 }
 0x278   :  { %v1839_v38 = vld [vmem:[#allocation5 + $0x278] sm:$0xff]  ;;  %v1591_v31 = vadd.f32 %v1587_v2, %v1582_v28  ;;  %v2577_v2 = vadd.f32 %v5140_v0, %v2490_v33  ;;  %v6548_v28 = vld [vmem:[#allocation81_spill] sm:$0xff] }
 0x279   :  { %v6543_v43 = vld [vmem:[#allocation79_spill] sm:$0xff]  ;;  %v6545_v49 = vld [vmem:[#allocation80_spill] sm:$0xff]  ;;  %v1843_v4 = vmul.f32 %v1839_v38, %v5161_v41  ;;  %v2349_v12 = vmul.f32 %v2345_v53, %v6548_v28  ;;  %v1260_v38 = vadd.f32 %v1256_v3, %v1173_v59 }
 0x27a   :  { %v2175_v5 = vmul.f32 %v2171_v17, %v6543_v43  ;;  %v1339_v13 = vld [vmem:[#allocation5 + $0x9b8] sm:$0xff]  ;;  %v2262_v10 = vmul.f32 %v2258_v23, %v6545_v49  ;;  %v2005_v17 = vadd.f32 %v2001_v39, %v1918_v16  ;;  %v5284_v52 = vmax.f32 %v1591_v31, 0.0  ;;  %v2606_v59 = vld [vmem:[#allocation5 + $0x1b60] sm:$0xff] }
 0x27b   :  { %v1674_v40 = vld [vmem:[#allocation5 + $0x638] sm:$0xff]  ;;  %v1343_v48 = vmul.f32 %v1339_v13, %v5267_v1  ;;  %v2664_v13 = vadd.f32 %v5143_v55, %v2577_v2  ;;  %v3005_v2 = vld [vmem:[#allocation7 + $0x30] sm:$0xff]  ;;  %v1128_v1 = vld [vmem:[#allocation5 + $0x1948] sm:$0xff] }
 0x27c   :  { %v1761_v54 = vld [vmem:[#allocation5 + $0x658] sm:$0xff]  ;;  %v1678_v11 = vadd.f32 %v1674_v40, %v1669_v26  ;;  %6547 = vst [vmem:[#allocation67_spill] sm:$0xff] %v5284_v52  ;;  %v2092_v7 = vadd.f32 %v2088_v42, %v2005_v17  ;;  %v6549_v26 = vld [vmem:[#allocation82_spill] sm:$0xff] }
 0x27d   :  { %v1926_v19 = vld [vmem:[#allocation5 + $0x298] sm:$0xff]  ;;  %v1765_v35 = vadd.f32 %v1761_v54, %v1756_v36  ;;  %v2436_v40 = vmul.f32 %v2432_v14, %v6549_v26  ;;  %v2519_v54 = vld [vmem:[#allocation5 + $0x1b40] sm:$0xff]  ;;  %v2751_v49 = vadd.f32 %v5146_v18, %v2664_v13 }
 0x27e   :  { %v1426_v30 = vld [vmem:[#allocation5 + $0x9d8] sm:$0xff]  ;;  %v1930_v23 = vmul.f32 %v1926_v19, %v5161_v41  ;;  %v2179_v31 = vadd.f32 %v2175_v5, %v2092_v7  ;;  %v1347_v19 = vadd.f32 %v1343_v48, %v1260_v38  ;;  %v5292_v42 = vmax.f32 %v1678_v11, 0.0 }
 0x27f   :  { %v1513_v57 = vld [vmem:[#allocation5 + $0x9f8] sm:$0xff]  ;;  %v1430_v39 = vmul.f32 %v1426_v30, %v5273_v6  ;;  %v5297_v30 = vmax.f32 %v1765_v35, 0.0 }
 0x280   :  { %v1848_v34 = vld [vmem:[#allocation5 + $0x678] sm:$0xff]  ;;  %v1517_v0 = vmul.f32 %v1513_v57, %v5279_v46  ;;  %6550 = vst [vmem:[#allocation68_spill] sm:$0xff] %v5292_v42 }
 0x281   :  { %v2013_v9 = vld [vmem:[#allocation5 + $0x2b8] sm:$0xff]  ;;  %v1852_v16 = vadd.f32 %v1848_v34, %v1843_v4  ;;  %6551 = vst [vmem:[#allocation69_spill] sm:$0xff] %v5297_v30  ;;  %v2266_v4 = vadd.f32 %v2262_v10, %v2179_v31  ;;  %v1434_v57 = vadd.f32 %v1430_v39, %v1347_v19  ;;  %v2838_v34 = vadd.f32 %v5149_v37, %v2751_v49  ;;  %v2693_v10 = vld [vmem:[#allocation5 + $0x1b80] sm:$0xff] }
 0x282   :  { %v1600_v24 = vld [vmem:[#allocation5 + $0xa18] sm:$0xff]  ;;  %v2017_v3 = vmul.f32 %v2013_v9, %v5161_v41  ;;  %v2780_v49 = vld [vmem:[#allocation5 + $0x1ba0] sm:$0xff] }
 0x283   :  { %v1935_v43 = vld [vmem:[#allocation5 + $0x698] sm:$0xff]  ;;  %v1604_v53 = vmul.f32 %v1600_v24, %v5284_v52  ;;  %v5303_v7 = vmax.f32 %v1852_v16, 0.0  ;;  %v2353_v38 = vadd.f32 %v2349_v12, %v2266_v4  ;;  %v1521_v24 = vadd.f32 %v1517_v0, %v1434_v57  ;;  %v2333_v52 = vld [vmem:[#allocation5 + $0x1708] sm:$0xff] }
 0x284   :  { %v2100_v32 = vld [vmem:[#allocation5 + $0x2d8] sm:$0xff]  ;;  %v1939_v17 = vadd.f32 %v1935_v43, %v1930_v23 }
 0x285   :  { %v2187_v36 = vld [vmem:[#allocation5 + $0x2f8] sm:$0xff]  ;;  %v2104_v48 = vmul.f32 %v2100_v32, %v5161_v41  ;;  %6553 = vst [vmem:[#allocation70_spill] sm:$0xff] %v5303_v7  ;;  %v2925_v32 = vadd.f32 %v5155_v45, %v2838_v34  ;;  %v2440_v19 = vadd.f32 %v2436_v40, %v2353_v38 }
 0x286   :  { %v2274_v33 = vld [vmem:[#allocation5 + $0x318] sm:$0xff]  ;;  %v2191_v11 = vmul.f32 %v2187_v36, %v5161_v41 }
 0x287   :  { %v1687_v55 = vld [vmem:[#allocation5 + $0xa38] sm:$0xff]  ;;  %v2278_v23 = vmul.f32 %v2274_v33, %v5161_v41  ;;  %v1608_v33 = vadd.f32 %v1604_v53, %v1521_v24  ;;  %v6558_v53 = vld [vmem:[#allocation86_spill] sm:$0xff] }
 0x288   :  { %v2022_v14 = vld [vmem:[#allocation5 + $0x6b8] sm:$0xff]  ;;  %v1691_v39 = vmul.f32 %v1687_v55, %v5292_v42  ;;  %v3009_v55 = vadd.f32 %v3005_v2, %v2925_v32  ;;  %v2784_v24 = vmul.f32 %v2780_v49, %v6558_v53  ;;  %v332_v53 = vld [vmem:[#allocation5 + $0x1428] sm:$0xff] }
 0x289   :  { %v1774_v5 = vld [vmem:[#allocation5 + $0xa58] sm:$0xff]  ;;  %v2026_v43 = vadd.f32 %v2022_v14, %v2017_v3  ;;  %v6556_v3 = vld [vmem:[#allocation85_spill] sm:$0xff] }
 0x28a   :  { %v6552_v9 = vld [vmem:[#allocation83_spill] sm:$0xff]  ;;  %v6554_v37 = vld [vmem:[#allocation84_spill] sm:$0xff]  ;;  %v1778_v31 = vmul.f32 %v1774_v5, %v5297_v30  ;;  %v2697_v14 = vmul.f32 %v2693_v10, %v6556_v3  ;;  %v3013_v38 = vmax.f32 %v3009_v55, 0.0  ;;  %v2246_v42 = vld [vmem:[#allocation5 + $0x16e8] sm:$0xff] }
 0x28b   :  { %v2523_v18 = vmul.f32 %v2519_v54, %v6552_v9  ;;  %v2109_v28 = vld [vmem:[#allocation5 + $0x6d8] sm:$0xff]  ;;  %v2610_v36 = vmul.f32 %v2606_v59, %v6554_v37  ;;  %v5310_v54 = vmax.f32 %v1939_v17, 0.0  ;;  %v1695_v59 = vadd.f32 %v1691_v39, %v1608_v33 }
 0x28c   :  { %v2196_v35 = vld [vmem:[#allocation5 + $0x6f8] sm:$0xff]  ;;  %v2113_v4 = vadd.f32 %v2109_v28, %v2104_v48  ;;  %v5315_v37 = vmax.f32 %v2026_v43, 0.0  ;;  %v2867_v48 = vld [vmem:[#allocation5 + $0x1bc0] sm:$0xff] }
 0x28d   :  { %v2283_v13 = vld [vmem:[#allocation5 + $0x718] sm:$0xff]  ;;  %6555 = vst [vmem:[#allocation71_spill] sm:$0xff] %v5310_v54  ;;  %v2200_v0 = vadd.f32 %v2196_v35, %v2191_v11  ;;  %v2527_v34 = vadd.f32 %v2523_v18, %v2440_v19  ;;  %v1782_v10 = vadd.f32 %v1778_v31, %v1695_v59 }
 0x28e   :  { %v2361_v26 = vld [vmem:[#allocation5 + $0x338] sm:$0xff]  ;;  %v2287_v9 = vadd.f32 %v2283_v13, %v2278_v23  ;;  %6557 = vst [vmem:[#allocation72_spill] sm:$0xff] %v5315_v37  ;;  %v2954_v23 = vld [vmem:[#allocation5 + $0x1be0] sm:$0xff]  ;;  %v5320_v18 = vmax.f32 %v2113_v4, 0.0 }
 0x28f   :  { %v1861_v16 = vld [vmem:[#allocation5 + $0xa78] sm:$0xff]  ;;  %v2365_v45 = vmul.f32 %v2361_v26, %v5161_v41  ;;  %v2614_v35 = vadd.f32 %v2610_v36, %v2527_v34  ;;  %v5322_v39 = vmax.f32 %v2200_v0, 0.0  ;;  %v3017_v26 = vmul.f32 %v3013_v38, %v5170_v63 }
 0x290   :  { %v1948_v12 = vld [vmem:[#allocation5 + $0xa98] sm:$0xff]  ;;  %v1865_v5 = vmul.f32 %v1861_v16, %v5303_v7  ;;  %6559 = vst [vmem:[#allocation73_spill] sm:$0xff] %v5320_v18  ;;  %v5325_v19 = vmax.f32 %v2287_v9, 0.0  ;;  %v245_v9 = vld [vmem:[#allocation5 + $0x1408] sm:$0xff] }
 0x291   :  { %v2448_v57 = vld [vmem:[#allocation5 + $0x358] sm:$0xff]  ;;  %v1952_v11 = vmul.f32 %v1948_v12, %v5310_v54  ;;  %6560 = vst [vmem:[#allocation74_spill] sm:$0xff] %v5322_v39  ;;  %v2701_v12 = vadd.f32 %v2697_v14, %v2614_v35  ;;  %3023 = vadd.xlane.f32.xlu1 %v3017_v26 }
 0x292   :  { %v2370_v17 = vld [vmem:[#allocation5 + $0x738] sm:$0xff]  ;;  %v2452_v28 = vmul.f32 %v2448_v57, %v5161_v41  ;;  %6561 = vst [vmem:[#allocation75_spill] sm:$0xff] %v5325_v19  ;;  %v1869_v55 = vadd.f32 %v1865_v5, %v1782_v10 }
 0x293   :  { %v2535_v40 = vld [vmem:[#allocation5 + $0x378] sm:$0xff]  ;;  %v2374_v49 = vadd.f32 %v2370_v17, %v2365_v45  ;;  %v2788_v45 = vadd.f32 %v2784_v24, %v2701_v12  ;;  %v6565_v12 = vld [vmem:[#allocation25_spill] sm:$0xff] }
 0x294   :  { %v2035_v2 = vld [vmem:[#allocation5 + $0xab8] sm:$0xff]  ;;  %v2539_v33 = vmul.f32 %v2535_v40, %v5161_v41  ;;  %v1956_v17 = vadd.f32 %v1952_v11, %v1869_v55  ;;  %v6566_v55 = vld [vmem:[#allocation26_spill] sm:$0xff] }
 0x295   :  { %v2457_v43 = vld [vmem:[#allocation5 + $0x758] sm:$0xff]  ;;  %v2039_v31 = vmul.f32 %v2035_v2, %v5315_v37  ;;  %v419_v2 = vld [vmem:[#allocation5 + $0x1448] sm:$0xff]  ;;  %v5335_v10 = vmax.f32 %v2374_v49, 0.0 }
 0x296   :  { %v2622_v13 = vld [vmem:[#allocation5 + $0x398] sm:$0xff]  ;;  %v2461_v63 = vadd.f32 %v2457_v43, %v2452_v28 }
 0x297   :  { %v2122_v32 = vld [vmem:[#allocation5 + $0xad8] sm:$0xff]  ;;  %v2626_v38 = vmul.f32 %v2622_v13, %v5161_v41  ;;  %6564 = vst [vmem:[#allocation76_spill] sm:$0xff] %v5335_v10  ;;  %v2043_v13 = vadd.f32 %v2039_v31, %v1956_v17 }
 0x298   :  { %v2209_v16 = vld [vmem:[#allocation5 + $0xaf8] sm:$0xff]  ;;  %v2126_v14 = vmul.f32 %v2122_v32, %v5320_v18  ;;  %v249_v32 = vmul.f32 %v245_v9, %v6565_v12 }
 0x299   :  { %v6562_v57 = vld [vmem:[#allocation87_spill] sm:$0xff]  ;;  %v6563_v34 = vld [vmem:[#allocation88_spill] sm:$0xff]  ;;  %v2213_v40 = vmul.f32 %v2209_v16, %v5322_v39  ;;  %v336_v16 = vmul.f32 %v332_v53, %v6566_v55  ;;  %v5340_v39 = vmax.f32 %v2461_v63, 0.0 }
 0x29a   :  { %v2871_v36 = vmul.f32 %v2867_v48, %v6562_v57  ;;  %v2296_v4 = vld [vmem:[#allocation5 + $0xb18] sm:$0xff]  ;;  %v2958_v59 = vmul.f32 %v2954_v23, %v6563_v34  ;;  %v506_v23 = vld [vmem:[#allocation5 + $0x1468] sm:$0xff]  ;;  %v3117_v34 = vld [vmem:[#allocation7 + $0x80] sm:$0xff] }
 0x29b   :  { %v2544_v0 = vld [vmem:[#allocation5 + $0x778] sm:$0xff]  ;;  %v2300_v35 = vmul.f32 %v2296_v4, %v5325_v19  ;;  %6567 = vst [vmem:[#allocation77_spill] sm:$0xff] %v5340_v39  ;;  %v2130_v19 = vadd.f32 %v2126_v14, %v2043_v13 }
 0x29c   :  { %v2709_v3 = vld [vmem:[#allocation5 + $0x3b8] sm:$0xff]  ;;  %v2548_v26 = vadd.f32 %v2544_v0, %v2539_v33  ;;  %v2875_v43 = vadd.f32 %v2871_v36, %v2788_v45  ;;  %v593_v0 = vld [vmem:[#allocation5 + $0x1488] sm:$0xff]  ;;  %v340_v45 = vadd.f32 %v336_v16, %v249_v32 }
 0x29d   :  { %v2631_v5 = vld [vmem:[#allocation5 + $0x798] sm:$0xff]  ;;  %v2713_v28 = vmul.f32 %v2709_v3, %v5161_v41  ;;  %v767_v32 = vld [vmem:[#allocation5 + $0x14c8] sm:$0xff] }
 0x29e   :  { %v2796_v48 = vld [vmem:[#allocation5 + $0x3d8] sm:$0xff]  ;;  %v2635_v18 = vadd.f32 %v2631_v5, %v2626_v38  ;;  %v2962_v3 = vadd.f32 %v2958_v59, %v2875_v43  ;;  %v5346_v54 = vmax.f32 %v2548_v26, 0.0  ;;  %v680_v38 = vld [vmem:[#allocation5 + $0x14a8] sm:$0xff] }
 0x29f   :  { %v2383_v57 = vld [vmem:[#allocation5 + $0xb38] sm:$0xff]  ;;  %v2800_v49 = vmul.f32 %v2796_v48, %v5161_v41  ;;  %v2217_v48 = vadd.f32 %v2213_v40, %v2130_v19  ;;  %v6571_v59 = vld [vmem:[#allocation29_spill] sm:$0xff] }
 0x2a0   :  { %v2718_v24 = vld [vmem:[#allocation5 + $0x7b8] sm:$0xff]  ;;  %v2387_v9 = vmul.f32 %v2383_v57, %v5335_v10  ;;  %6570 = vst [vmem:[#allocation78_spill] sm:$0xff] %v5346_v54  ;;  %v3121_v5 = vadd.f32 %v3117_v34, %v2962_v3  ;;  %v597_v14 = vmul.f32 %v593_v0, %v6571_v59  ;;  %v5351_v13 = vmax.f32 %v2635_v18, 0.0  ;;  %v3723_v34 = vld [vmem:[#allocation8] sm:$0xff] }
 0x2a1   :  { %v2883_v11 = vld [vmem:[#allocation5 + $0x3f8] sm:$0xff]  ;;  %v2722_v53 = vadd.f32 %v2718_v24, %v2713_v28  ;;  %v2304_v26 = vadd.f32 %v2300_v35, %v2217_v48  ;;  %v941_v35 = vld [vmem:[#allocation5 + $0x1508] sm:$0xff] }
 0x2a2   :  { %v6568_v4 = vld [vmem:[#allocation27_spill] sm:$0xff]  ;;  %v6569_v17 = vld [vmem:[#allocation28_spill] sm:$0xff]  ;;  %v2887_v63 = vmul.f32 %v2883_v11, %v5161_v41  ;;  %6572 = vst [vmem:[#allocation79_spill] sm:$0xff] %v5351_v13  ;;  %v3125_v57 = vmax.f32 %v3121_v5, 0.0  ;;  %v684_v41 = vmul.f32 %v680_v38, %v6388_v21  ;;  %v854_v11 = vld [vmem:[#allocation5 + $0x14e8] sm:$0xff] }
 0x2a3   :  { %v423_v33 = vmul.f32 %v419_v2, %v6568_v4  ;;  %v2470_v36 = vld [vmem:[#allocation5 + $0xb58] sm:$0xff]  ;;  %v510_v37 = vmul.f32 %v506_v23, %v6569_v17  ;;  %v5355_v19 = vmax.f32 %v2722_v53, 0.0  ;;  %v2391_v0 = vadd.f32 %v2387_v9, %v2304_v26  ;;  %v345_v53 = vld [vmem:[#allocation5 + $0x1828] sm:$0xff] }
 0x2a4   :  { %v2805_v31 = vld [vmem:[#allocation5 + $0x7d8] sm:$0xff]  ;;  %v2474_v43 = vmul.f32 %v2470_v36, %v5340_v39  ;;  %v1028_v5 = vld [vmem:[#allocation5 + $0x1528] sm:$0xff] }
 0x2a5   :  { %v2557_v7 = vld [vmem:[#allocation5 + $0xb78] sm:$0xff]  ;;  %v427_v30 = vadd.f32 %v423_v33, %v340_v45  ;;  %v2809_v23 = vadd.f32 %v2805_v31, %v2800_v49  ;;  %6573 = vst [vmem:[#allocation80_spill] sm:$0xff] %v5355_v19  ;;  %v3129_v33 = vmul.f32 %v3723_v34, %v3125_v57  ;;  %v771_v49 = vmul.f32 %v767_v32, %v6389_v62  ;;  %v258_v45 = vld [vmem:[#allocation5 + $0x1808] sm:$0xff] }
 0x2a6   :  { %v2892_v2 = vld [vmem:[#allocation5 + $0x7f8] sm:$0xff]  ;;  %v2561_v24 = vmul.f32 %v2557_v7, %v5346_v54  ;;  %v858_v7 = vmul.f32 %v854_v11, %v6390_v8  ;;  %v6576_v32 = vld [vmem:[#allocation33_spill] sm:$0xff] }
 0x2a7   :  { %v2644_v16 = vld [vmem:[#allocation5 + $0xb98] sm:$0xff]  ;;  %v514_v28 = vadd.f32 %v510_v37, %v427_v30  ;;  %v2896_v40 = vadd.f32 %v2892_v2, %v2887_v63  ;;  %3133 = vadd.xlane.f32.xlu0 %v3129_v33  ;;  %v2478_v30 = vadd.f32 %v2474_v43, %v2391_v0  ;;  %v5359_v37 = vmax.f32 %v2809_v23, 0.0  ;;  %v432_v63 = vld [vmem:[#allocation5 + $0x1848] sm:$0xff] }
 0x2a8   :  { %v2731_v3 = vld [vmem:[#allocation5 + $0xbb8] sm:$0xff]  ;;  %v2648_v36 = vmul.f32 %v2644_v16, %v5351_v13  ;;  %v945_v57 = vmul.f32 %v941_v35, %v6576_v32  ;;  %v519_v26 = vld [vmem:[#allocation5 + $0x1868] sm:$0xff]  ;;  %v262_v16 = vmul.f32 %v258_v45, %v6565_v12 }
 0x2a9   :  { %v601_v18 = vadd.f32 %v597_v14, %v514_v28  ;;  %6574 = vst [vmem:[#allocation81_spill] sm:$0xff] %v5359_v37  ;;  %v2735_v38 = vmul.f32 %v2731_v3, %v5355_v19  ;;  %v2818_v9 = vld [vmem:[#allocation5 + $0xbd8] sm:$0xff]  ;;  %v2565_v48 = vadd.f32 %v2561_v24, %v2478_v30  ;;  %v5363_v2 = vmax.f32 %v2896_v40, 0.0  ;;  %v1115_v23 = vld [vmem:[#allocation5 + $0x1548] sm:$0xff] }
 0x2aa   :  { %v2905_v43 = vld [vmem:[#allocation5 + $0xbf8] sm:$0xff]  ;;  %v349_v28 = vmul.f32 %v345_v53, %v6566_v55  ;;  %v2822_v34 = vmul.f32 %v2818_v9, %v5359_v37  ;;  %v6577_v0 = vld [vmem:[#allocation34_spill] sm:$0xff] }
 0x2ab   :  { %v688_v31 = vadd.f32 %v684_v41, %v601_v18  ;;  %6575 = vst [vmem:[#allocation82_spill] sm:$0xff] %v5363_v2  ;;  %v436_v41 = vmul.f32 %v432_v63, %v6568_v4  ;;  %v2652_v11 = vadd.f32 %v2648_v36, %v2565_v48  ;;  %v1032_v24 = vmul.f32 %v1028_v5, %v6577_v0  ;;  %v606_v40 = vld [vmem:[#allocation5 + $0x1888] sm:$0xff]  ;;  %v6578_v12 = vld [vmem:[#allocation35_spill] sm:$0xff]  ;;  %v6579_v5 = vld [vmem:[#allocation36_spill] sm:$0xff] }
 0x2ac   :  { %v1202_v3 = vld [vmem:[#allocation5 + $0x1568] sm:$0xff]  ;;  %v353_v18 = vadd.f32 %v349_v28, %v262_v16  ;;  %v2909_v30 = vmul.f32 %v2905_v43, %v5363_v2  ;;  %v1119_v45 = vmul.f32 %v1115_v23, %v6578_v12  ;;  %v610_v63 = vmul.f32 %v606_v40, %v6571_v59  ;;  %v6582_v40 = vld [vmem:[#allocation39_spill] sm:$0xff]  ;;  %v6592_v44 = vld [vmem:[#allocation108_spill] sm:$0xff] }
 0x2ad   :  { %v775_v14 = vadd.f32 %v771_v49, %v688_v31  ;;  %v523_v49 = vmul.f32 %v519_v26, %v6569_v17  ;;  %v2739_v35 = vadd.f32 %v2735_v38, %v2652_v11  ;;  %v693_v55 = vld [vmem:[#allocation5 + $0x18a8] sm:$0xff]  ;;  %v1206_v48 = vmul.f32 %v1202_v3, %v6579_v5  ;;  %v2969_v17 = vld [vmem:[#allocation7 + $0x18] sm:$0xff] }
 0x2ae   :  { %v1289_v53 = vld [vmem:[#allocation5 + $0x1588] sm:$0xff]  ;;  %v440_v36 = vadd.f32 %v436_v41, %v353_v18  ;;  %v174_v54 = vld [vmem:[#allocation8 + $0x18] sm:$0xff] }
 0x2af   :  { %v862_v33 = vadd.f32 %v858_v7, %v775_v14  ;;  %v1376_v4 = vld [vmem:[#allocation5 + $0x15a8] sm:$0xff]  ;;  %v2826_v7 = vadd.f32 %v2822_v34, %v2739_v35  ;;  %v6583_v35 = vld [vmem:[#allocation40_spill] sm:$0xff]  ;;  %v6590_v46 = vld [vmem:[#allocation47_spill] sm:$0xff] }
 0x2b0   :  { %v1463_v14 = vld [vmem:[#allocation5 + $0x15c8] sm:$0xff]  ;;  %v527_v43 = vadd.f32 %v523_v49, %v440_v36  ;;  %v6593_v47 = vld [vmem:[#allocation48_spill] sm:$0xff]  ;;  %v6597_v60 = vld [vmem:[#allocation119_spill] sm:$0xff] }
 0x2b1   :  { %v949_v31 = vadd.f32 %v945_v57, %v862_v33  ;;  %v1550_v16 = vld [vmem:[#allocation5 + $0x15e8] sm:$0xff]  ;;  %v697_v57 = vmul.f32 %v693_v55, %v6388_v21  ;;  %v2913_v23 = vadd.f32 %v2909_v30, %v2826_v7  ;;  %v1467_v3 = vmul.f32 %v1463_v14, %v6582_v40  ;;  %v6586_v14 = vld [vmem:[#allocation43_spill] sm:$0xff] }
 0x2b2   :  { %v780_v28 = vld [vmem:[#allocation5 + $0x18c8] sm:$0xff]  ;;  %v614_v13 = vadd.f32 %v610_v63, %v527_v43  ;;  %v5409_v29 = vmul.f32 %v2246_v42, %v6593_v47  ;;  %v6598_v22 = vld [vmem:[#allocation51_spill] sm:$0xff] }
 0x2b3   :  { %v1036_v9 = vadd.f32 %v1032_v24, %v949_v31  ;;  %v1637_v38 = vld [vmem:[#allocation5 + $0x1608] sm:$0xff]  ;;  %v1554_v31 = vmul.f32 %v1550_v16, %v6583_v35  ;;  %v784_v49 = vmul.f32 %v780_v28, %v6389_v62  ;;  %v2973_v36 = vadd.f32 %v2969_v17, %v2913_v23  ;;  %v6587_v16 = vld [vmem:[#allocation44_spill] sm:$0xff]  ;;  %v407_v28 = vld [vmem:[#allocation5 + $0x1050] sm:$0xff] }
 0x2b4   :  { %v1724_v26 = vld [vmem:[#allocation5 + $0x1628] sm:$0xff]  ;;  %v701_v63 = vadd.f32 %v697_v57, %v614_v13  ;;  %v411_v25 = vmul.f32 %v407_v28, %v6592_v44 }
 0x2b5   :  { %v1123_v11 = vadd.f32 %v1119_v45, %v1036_v9  ;;  %v6580_v33 = vld [vmem:[#allocation37_spill] sm:$0xff]  ;;  %v6581_v41 = vld [vmem:[#allocation38_spill] sm:$0xff]  ;;  %v2977_v17 = vmax.f32 %v2973_v36, 0.0 }
 0x2b6   :  { %v1293_v2 = vmul.f32 %v1289_v53, %v6580_v33  ;;  %v1380_v18 = vmul.f32 %v1376_v4, %v6581_v41  ;;  %v1811_v59 = vld [vmem:[#allocation5 + $0x1648] sm:$0xff]  ;;  %v233_v9 = vld [vmem:[#allocation5 + $0x1010] sm:$0xff]  ;;  %v788_v13 = vadd.f32 %v784_v49, %v701_v63 }
 0x2b7   :  { %v1898_v34 = vld [vmem:[#allocation5 + $0x1668] sm:$0xff]  ;;  %v1210_v21 = vadd.f32 %v1206_v48, %v1123_v11  ;;  %v5389_v39 = vmul.f32 %v1811_v59, %v6586_v14  ;;  %v320_v48 = vld [vmem:[#allocation5 + $0x1030] sm:$0xff]  ;;  %v237_v57 = vmul.f32 %v233_v9, %v4901_v27 }
 0x2b8   :  { %v867_v24 = vld [vmem:[#allocation5 + $0x18e8] sm:$0xff]  ;;  %v5392_v10 = vmul.f32 %v1898_v34, %v6587_v16  ;;  %v581_v9 = vld [vmem:[#allocation5 + $0x1090] sm:$0xff] }
 0x2b9   :  { %v1985_v37 = vld [vmem:[#allocation5 + $0x1688] sm:$0xff]  ;;  %v871_v62 = vmul.f32 %v867_v24, %v6390_v8  ;;  %v494_v24 = vld [vmem:[#allocation5 + $0x1070] sm:$0xff] }
 0x2ba   :  { %v2072_v19 = vld [vmem:[#allocation5 + $0x16a8] sm:$0xff]  ;;  %v498_v42 = vmul.f32 %v494_v24, %v6597_v60 }
 0x2bb   :  { %v6584_v30 = vld [vmem:[#allocation41_spill] sm:$0xff]  ;;  %v6585_v55 = vld [vmem:[#allocation42_spill] sm:$0xff] }
 0x2bc   :  { %v5383_v45 = vmul.f32 %v1637_v38, %v6584_v30  ;;  %v5386_v53 = vmul.f32 %v1724_v26, %v6585_v55  ;;  %v2159_v4 = vld [vmem:[#allocation5 + $0x16c8] sm:$0xff]  ;;  %v1297_v38 = vadd.f32 %v1293_v2, %v1210_v21  ;;  %v2981_v2 = vmul.f32 %v2977_v17, %v174_v54 }
 0x2bd   :  { %v954_v7 = vld [vmem:[#allocation5 + $0x1908] sm:$0xff]  ;;  %v5402_v6 = vmul.f32 %v2159_v4, %v6590_v46 }
 0x2be   :  { %v6588_v43 = vld [vmem:[#allocation45_spill] sm:$0xff]  ;;  %v6589_v23 = vld [vmem:[#allocation46_spill] sm:$0xff]  ;;  %v958_v8 = vmul.f32 %v954_v7, %v6576_v32  ;;  %v1384_v36 = vadd.f32 %v1380_v18, %v1297_v38  ;;  %v875_v32 = vadd.f32 %v871_v62, %v788_v13  ;;  %2988 = vadd.xlane.f32.xlu1 %v2981_v2 }
 0x2bf   :  { %v5396_v26 = vmul.f32 %v1985_v37, %v6588_v43  ;;  %v5399_v11 = vmul.f32 %v2072_v19, %v6589_v23  ;;  %v1041_v59 = vld [vmem:[#allocation5 + $0x1928] sm:$0xff] }
 0x2c0   :  { %v2420_v34 = vld [vmem:[#allocation5 + $0x1728] sm:$0xff]  ;;  %v1045_v7 = vmul.f32 %v1041_v59, %v6577_v0  ;;  %v1471_v54 = vadd.f32 %v1467_v3, %v1384_v36  ;;  %v962_v0 = vadd.f32 %v958_v8, %v875_v32  ;;  %v1132_v59 = vmul.f32 %v1128_v1, %v6578_v12  ;;  %v668_v3 = vld [vmem:[#allocation5 + $0x10b0] sm:$0xff] }
 0x2c1   :  { %v2507_v37 = vld [vmem:[#allocation5 + $0x1748] sm:$0xff] }
 0x2c2   :  { %v2594_v21 = vld [vmem:[#allocation5 + $0x1768] sm:$0xff]  ;;  %v5420_v20 = vmul.f32 %v2507_v37, %v6598_v22  ;;  %v1558_v13 = vadd.f32 %v1554_v31, %v1471_v54  ;;  %v1049_v8 = vadd.f32 %v1045_v7, %v962_v0  ;;  %v755_v31 = vld [vmem:[#allocation5 + $0x10d0] sm:$0xff]  ;;  %v1393_v7 = vmul.f32 %v1389_v50, %v6581_v41 }
 0x2c3   :  { %v6591_v19 = vld [vmem:[#allocation118_spill] sm:$0xff]  ;;  %v6594_v4 = vld [vmem:[#allocation49_spill] sm:$0xff] }
 0x2c4   :  { %v324_v56 = vmul.f32 %v320_v48, %v6591_v19  ;;  %v5412_v15 = vmul.f32 %v2333_v52, %v6594_v4  ;;  %v2681_v49 = vld [vmem:[#allocation5 + $0x1788] sm:$0xff]  ;;  %6599 = vst [vmem:[#allocation84_spill] sm:$0xff] %v5420_v20  ;;  %v6600_v52 = vld [vmem:[#allocation52_spill] sm:$0xff]  ;;  %v6611_v20 = vld [vmem:[#allocation91_spill] sm:$0xff] }
 0x2c5   :  { %v6595_v18 = vld [vmem:[#allocation50_spill] sm:$0xff]  ;;  %v5423_v51 = vmul.f32 %v2594_v21, %v6600_v52  ;;  %v6604_v24 = vld [vmem:[#allocation109_spill] sm:$0xff]  ;;  %v6607_v21 = vld [vmem:[#allocation63_spill] sm:$0xff] }
 0x2c6   :  { %v5416_v63 = vmul.f32 %v2420_v34, %v6595_v18  ;;  %v2768_v17 = vld [vmem:[#allocation5 + $0x17a8] sm:$0xff]  ;;  %v328_v28 = vadd.f32 %v324_v56, %v237_v57  ;;  %v585_v61 = vmul.f32 %v581_v9, %v6604_v24  ;;  %v842_v0 = vld [vmem:[#allocation5 + $0x10f0] sm:$0xff] }
 0x2c7   :  { %v2855_v48 = vld [vmem:[#allocation5 + $0x17c8] sm:$0xff]  ;;  %6601 = vst [vmem:[#allocation85_spill] sm:$0xff] %v5423_v51  ;;  %v929_v41 = vld [vmem:[#allocation5 + $0x1110] sm:$0xff] }
 0x2c8   :  { %6596 = vst [vmem:[#allocation83_spill] sm:$0xff] %v5416_v63  ;;  %v1215_v38 = vld [vmem:[#allocation5 + $0x1968] sm:$0xff]  ;;  %v415_v57 = vadd.f32 %v411_v25, %v328_v28  ;;  %v5434_v51 = vmul.f32 %v2855_v48, %v6607_v21 }
 0x2c9   :  { %v2942_v62 = vld [vmem:[#allocation5 + $0x17e8] sm:$0xff]  ;;  %v1219_v1 = vmul.f32 %v1215_v38, %v6579_v5 }
 0x2ca   :  { %v6602_v34 = vld [vmem:[#allocation53_spill] sm:$0xff]  ;;  %v6605_v37 = vld [vmem:[#allocation54_spill] sm:$0xff]  ;;  %6608 = vst [vmem:[#allocation88_spill] sm:$0xff] %v5434_v51  ;;  %v502_v9 = vadd.f32 %v498_v42, %v415_v57 }
 0x2cb   :  { %v5427_v2 = vmul.f32 %v2681_v49, %v6602_v34  ;;  %v1302_v36 = vld [vmem:[#allocation5 + $0x1988] sm:$0xff]  ;;  %v5431_v58 = vmul.f32 %v2768_v17, %v6605_v37  ;;  %v1645_v49 = vadd.f32 %v5383_v45, %v1558_v13  ;;  %v672_v17 = vmul.f32 %v668_v3, %v6611_v20 }
 0x2cc   :  { %v1476_v56 = vld [vmem:[#allocation5 + $0x19c8] sm:$0xff]  ;;  %v1306_v48 = vmul.f32 %v1302_v36, %v6580_v33  ;;  %v589_v63 = vadd.f32 %v585_v61, %v502_v9  ;;  %v507_v9 = vld [vmem:[#allocation5 + $0x1470] sm:$0xff] }
 0x2cd   :  { %6603 = vst [vmem:[#allocation86_spill] sm:$0xff] %v5427_v2  ;;  %6606 = vst [vmem:[#allocation87_spill] sm:$0xff] %v5431_v58  ;;  %v1563_v12 = vld [vmem:[#allocation5 + $0x19e8] sm:$0xff]  ;;  %v1136_v58 = vadd.f32 %v1132_v59, %v1049_v8  ;;  %v1480_v5 = vmul.f32 %v1476_v56, %v6582_v40  ;;  %v1732_v45 = vadd.f32 %v5386_v53, %v1645_v49  ;;  %v246_v40 = vld [vmem:[#allocation5 + $0x1410] sm:$0xff] }
 0x2ce   :  { %v6609_v32 = vld [vmem:[#allocation65_spill] sm:$0xff]  ;;  %v6612_v42 = vld [vmem:[#allocation110_spill] sm:$0xff]  ;;  %v676_v61 = vadd.f32 %v672_v17, %v589_v63  ;;  %v6613_v56 = vld [vmem:[#allocation120_spill] sm:$0xff] }
 0x2cf   :  { %v5439_v54 = vmul.f32 %v2942_v62, %v6609_v32  ;;  %v1650_v2 = vld [vmem:[#allocation5 + $0x1a08] sm:$0xff]  ;;  %v1567_v62 = vmul.f32 %v1563_v12, %v6583_v35  ;;  %v759_v57 = vmul.f32 %v755_v31, %v6612_v42  ;;  %v1223_v3 = vadd.f32 %v1219_v1, %v1136_v58  ;;  %v333_v58 = vld [vmem:[#allocation5 + $0x1430] sm:$0xff] }
 0x2d0   :  { %v1737_v25 = vld [vmem:[#allocation5 + $0x1a28] sm:$0xff]  ;;  %v1654_v59 = vmul.f32 %v1650_v2, %v6584_v30  ;;  %v1819_v53 = vadd.f32 %v5389_v39, %v1732_v45  ;;  %v846_v8 = vmul.f32 %v842_v0, %v6613_v56  ;;  %v420_v1 = vld [vmem:[#allocation5 + $0x1450] sm:$0xff]  ;;  %v6615_v45 = vld [vmem:[#allocation112_spill] sm:$0xff] }
 0x2d1   :  { %6610 = vst [vmem:[#allocation25_spill] sm:$0xff] %v5439_v54  ;;  %v1824_v28 = vld [vmem:[#allocation5 + $0x1a48] sm:$0xff]  ;;  %v5450_v33 = vmul.f32 %v1737_v25, %v6585_v55  ;;  %v1310_v30 = vadd.f32 %v1306_v48, %v1223_v3  ;;  %v1016_v12 = vld [vmem:[#allocation5 + $0x1130] sm:$0xff]  ;;  %v763_v63 = vadd.f32 %v759_v57, %v676_v61 }
 0x2d2   :  { %v1911_v38 = vld [vmem:[#allocation5 + $0x1a68] sm:$0xff]  ;;  %v5453_v50 = vmul.f32 %v1824_v28, %v6586_v14  ;;  %v6614_v49 = vld [vmem:[#allocation111_spill] sm:$0xff]  ;;  %v250_v28 = vmul.f32 %v246_v40, %v4901_v27 }
 0x2d3   :  { %v1998_v13 = vld [vmem:[#allocation5 + $0x1a88] sm:$0xff]  ;;  %v5457_v35 = vmul.f32 %v1911_v38, %v6587_v16  ;;  %v1906_v16 = vadd.f32 %v5392_v10, %v1819_v53  ;;  %v933_v25 = vmul.f32 %v929_v41, %v6614_v49  ;;  %v1397_v17 = vadd.f32 %v1393_v7, %v1310_v30  ;;  %v594_v57 = vld [vmem:[#allocation5 + $0x1490] sm:$0xff] }
 0x2d4   :  { %v2085_v54 = vld [vmem:[#allocation5 + $0x1aa8] sm:$0xff]  ;;  %v5461_v55 = vmul.f32 %v1998_v13, %v6588_v43  ;;  %v850_v0 = vadd.f32 %v846_v8, %v763_v63  ;;  %v1020_v13 = vmul.f32 %v1016_v12, %v6615_v45  ;;  %v1190_v41 = vld [vmem:[#allocation5 + $0x1170] sm:$0xff]  ;;  %v511_v53 = vmul.f32 %v507_v9, %v6597_v60 }
 0x2d5   :  { %v2172_v51 = vld [vmem:[#allocation5 + $0x1ac8] sm:$0xff]  ;;  %v5464_v14 = vmul.f32 %v2085_v54, %v6589_v23  ;;  %v1103_v54 = vld [vmem:[#allocation5 + $0x1150] sm:$0xff]  ;;  %v1993_v48 = vadd.f32 %v5396_v26, %v1906_v16  ;;  %v1484_v7 = vadd.f32 %v1480_v5, %v1397_v17  ;;  %v598_v16 = vmul.f32 %v594_v57, %v6604_v24 }
 0x2d6   :  { %v2259_v36 = vld [vmem:[#allocation5 + $0x1ae8] sm:$0xff]  ;;  %v5467_v2 = vmul.f32 %v2172_v51, %v6590_v46  ;;  %v337_v51 = vmul.f32 %v333_v58, %v6591_v19  ;;  %v424_v46 = vmul.f32 %v420_v1, %v6592_v44  ;;  %v937_v61 = vadd.f32 %v933_v25, %v850_v0  ;;  %v6616_v8 = vld [vmem:[#allocation95_spill] sm:$0xff] }
 0x2d7   :  { %v2346_v39 = vld [vmem:[#allocation5 + $0x1b08] sm:$0xff]  ;;  %v5473_v43 = vmul.f32 %v2259_v36, %v6593_v47  ;;  %v2080_v36 = vadd.f32 %v5399_v11, %v1993_v48  ;;  %v1107_v58 = vmul.f32 %v1103_v54, %v6616_v8  ;;  %v681_v1 = vld [vmem:[#allocation5 + $0x14b0] sm:$0xff]  ;;  %v1571_v30 = vadd.f32 %v1567_v62, %v1484_v7  ;;  %v6618_v48 = vld [vmem:[#allocation92_spill] sm:$0xff] }
 0x2d8   :  { %v2433_v31 = vld [vmem:[#allocation5 + $0x1b28] sm:$0xff]  ;;  %v5479_v10 = vmul.f32 %v2346_v39, %v6594_v4  ;;  %v341_v40 = vadd.f32 %v337_v51, %v250_v28  ;;  %v1277_v39 = vld [vmem:[#allocation5 + $0x1190] sm:$0xff]  ;;  %v1024_v63 = vadd.f32 %v1020_v13, %v937_v61  ;;  %v685_v51 = vmul.f32 %v681_v1, %v6611_v20 }
 0x2d9   :  { %v2520_v23 = vld [vmem:[#allocation5 + $0x1b48] sm:$0xff]  ;;  %v5483_v47 = vmul.f32 %v2433_v31, %v6595_v18  ;;  %v2167_v31 = vadd.f32 %v5402_v6, %v2080_v36  ;;  %v768_v9 = vld [vmem:[#allocation5 + $0x14d0] sm:$0xff]  ;;  %v1658_v17 = vadd.f32 %v1654_v59, %v1571_v30  ;;  %v6620_v36 = vld [vmem:[#allocation116_spill] sm:$0xff] }
 0x2da   :  { %v2607_v38 = vld [vmem:[#allocation5 + $0x1b68] sm:$0xff]  ;;  %v5488_v26 = vmul.f32 %v2520_v23, %v6598_v22  ;;  %v428_v12 = vadd.f32 %v424_v46, %v341_v40  ;;  %v1451_v23 = vld [vmem:[#allocation5 + $0x11d0] sm:$0xff] }
 0x2db   :  { %v2694_v3 = vld [vmem:[#allocation5 + $0x1b88] sm:$0xff]  ;;  %v5492_v5 = vmul.f32 %v2607_v38, %v6600_v52  ;;  %v1364_v52 = vld [vmem:[#allocation5 + $0x11b0] sm:$0xff]  ;;  %v2254_v46 = vadd.f32 %v5409_v29, %v2167_v31  ;;  %v1281_v38 = vmul.f32 %v1277_v39, %v6618_v48  ;;  %v1745_v59 = vadd.f32 %v5450_v33, %v1658_v17 }
 0x2dc   :  { %v2781_v4 = vld [vmem:[#allocation5 + $0x1ba8] sm:$0xff]  ;;  %v5497_v11 = vmul.f32 %v2694_v3, %v6602_v34  ;;  %v515_v54 = vadd.f32 %v511_v53, %v428_v12  ;;  %v1111_v34 = vadd.f32 %v1107_v58, %v1024_v63  ;;  %v1538_v0 = vld [vmem:[#allocation5 + $0x11f0] sm:$0xff] }
 0x2dd   :  { %v2868_v18 = vld [vmem:[#allocation5 + $0x1bc8] sm:$0xff]  ;;  %v5501_v62 = vmul.f32 %v2781_v4, %v6605_v37  ;;  %v855_v13 = vld [vmem:[#allocation5 + $0x14f0] sm:$0xff]  ;;  %v2341_v29 = vadd.f32 %v5412_v15, %v2254_v46  ;;  %v1455_v4 = vmul.f32 %v1451_v23, %v6620_v36  ;;  %v1832_v1 = vadd.f32 %v5453_v50, %v1745_v59  ;;  %v6626_v59 = vld [vmem:[#allocation84_spill] sm:$0xff] }
 0x2de   :  { %v2955_v22 = vld [vmem:[#allocation5 + $0x1be8] sm:$0xff]  ;;  %v5506_v6 = vmul.f32 %v2868_v18, %v6607_v21  ;;  %v1625_v57 = vld [vmem:[#allocation5 + $0x1210] sm:$0xff]  ;;  %v602_v3 = vadd.f32 %v598_v16, %v515_v54  ;;  %v859_v12 = vmul.f32 %v855_v13, %v6613_v56  ;;  %v6625_v54 = vld [vmem:[#allocation96_spill] sm:$0xff] }
 0x2df   :  { %v6617_v25 = vld [vmem:[#allocation121_spill] sm:$0xff]  ;;  %v5511_v37 = vmul.f32 %v2955_v22, %v6609_v32  ;;  %v1712_v7 = vld [vmem:[#allocation5 + $0x1230] sm:$0xff]  ;;  %v1919_v23 = vadd.f32 %v5457_v35, %v1832_v1 }
 0x2e0   :  { %v1194_v28 = vmul.f32 %v1190_v41, %v6617_v25  ;;  %v772_v41 = vmul.f32 %v768_v9, %v6612_v42  ;;  %v6619_v21 = vld [vmem:[#allocation97_spill] sm:$0xff]  ;;  %v1799_v61 = vld [vmem:[#allocation5 + $0x1250] sm:$0xff]  ;;  %v689_v39 = vadd.f32 %v685_v51, %v602_v3  ;;  %v308_v51 = vld [vmem:[#allocation5 + $0xc38] sm:$0xff] }
 0x2e1   :  { %v1368_v53 = vmul.f32 %v1364_v52, %v6619_v21  ;;  %v942_v58 = vld [vmem:[#allocation5 + $0x1510] sm:$0xff]  ;;  %v6621_v33 = vld [vmem:[#allocation93_spill] sm:$0xff]  ;;  %v1803_v50 = vmul.f32 %v1799_v61, %v6625_v54  ;;  %v2006_v35 = vadd.f32 %v5461_v55, %v1919_v23 }
 0x2e2   :  { %v1198_v40 = vadd.f32 %v1194_v28, %v1111_v34  ;;  %v1542_v30 = vmul.f32 %v1538_v0, %v6621_v33  ;;  %v1886_v32 = vld [vmem:[#allocation5 + $0x1270] sm:$0xff]  ;;  %v6623_v15 = vld [vmem:[#allocation113_spill] sm:$0xff]  ;;  %v776_v46 = vadd.f32 %v772_v41, %v689_v39  ;;  %v946_v34 = vmul.f32 %v942_v58, %v6614_v49  ;;  %v221_v0 = vld [vmem:[#allocation5 + $0xc18] sm:$0xff] }
 0x2e3   :  { %v1973_v18 = vld [vmem:[#allocation5 + $0x1290] sm:$0xff]  ;;  %v1629_v63 = vmul.f32 %v1625_v57, %v6623_v15  ;;  %v482_v39 = vld [vmem:[#allocation5 + $0xc78] sm:$0xff]  ;;  %v6630_v49 = vld [vmem:[#allocation85_spill] sm:$0xff]  ;;  %v2093_v20 = vadd.f32 %v5464_v14, %v2006_v35 }
 0x2e4   :  { %v6622_v16 = vld [vmem:[#allocation83_spill] sm:$0xff]  ;;  %v1285_v22 = vadd.f32 %v1281_v38, %v1198_v40  ;;  %v6628_v57 = vld [vmem:[#allocation30_spill] sm:$0xff]  ;;  %v863_v41 = vadd.f32 %v859_v12, %v776_v46 }
 0x2e5   :  { %v2428_v31 = vadd.f32 %v6622_v16, %v2341_v29  ;;  %v6624_v28 = vld [vmem:[#allocation103_spill] sm:$0xff]  ;;  %v6627_v29 = vld [vmem:[#allocation98_spill] sm:$0xff]  ;;  %v5531_v40 = vmul.f32 %v1973_v18, %v6628_v57  ;;  %v6632_v18 = vld [vmem:[#allocation117_spill] sm:$0xff] }
 0x2e6   :  { %v1716_v9 = vmul.f32 %v1712_v7, %v6624_v28  ;;  %v2060_v17 = vld [vmem:[#allocation5 + $0x12b0] sm:$0xff]  ;;  %v1372_v3 = vadd.f32 %v1368_v53, %v1285_v22  ;;  %v5528_v38 = vmul.f32 %v1886_v32, %v6627_v29  ;;  %v395_v16 = vld [vmem:[#allocation5 + $0xc58] sm:$0xff]  ;;  %v312_v42 = vmul.f32 %v308_v51, %v6632_v18 }
 0x2e7   :  { %v1029_v52 = vld [vmem:[#allocation5 + $0x1530] sm:$0xff]  ;;  %v2515_v13 = vadd.f32 %v6626_v59, %v2428_v31  ;;  %v950_v24 = vadd.f32 %v946_v34, %v863_v41  ;;  %v569_v12 = vld [vmem:[#allocation5 + $0xc98] sm:$0xff] }
 0x2e8   :  { %v1116_v7 = vld [vmem:[#allocation5 + $0x1550] sm:$0xff]  ;;  %v1033_v58 = vmul.f32 %v1029_v52, %v6615_v45  ;;  %v1459_v53 = vadd.f32 %v1455_v4, %v1372_v3 }
 0x2e9   :  { %v6629_v1 = vld [vmem:[#allocation122_spill] sm:$0xff]  ;;  %v2602_v31 = vadd.f32 %v6630_v49, %v2515_v13  ;;  %v6631_v59 = vld [vmem:[#allocation115_spill] sm:$0xff]  ;;  %v1120_v55 = vmul.f32 %v1116_v7, %v6616_v8 }
 0x2ea   :  { %v5535_v61 = vmul.f32 %v2060_v17, %v6629_v1  ;;  %v2147_v22 = vld [vmem:[#allocation5 + $0x12d0] sm:$0xff]  ;;  %v225_v56 = vmul.f32 %v221_v0, %v6631_v59  ;;  %v1546_v45 = vadd.f32 %v1542_v30, %v1459_v53  ;;  %v2180_v0 = vadd.f32 %v5467_v2, %v2093_v20  ;;  %v656_v7 = vld [vmem:[#allocation5 + $0xcb8] sm:$0xff] }
 0x2eb   :  { %v1203_v32 = vld [vmem:[#allocation5 + $0x1570] sm:$0xff]  ;;  %v1037_v14 = vadd.f32 %v1033_v58, %v950_v24  ;;  %v743_v24 = vld [vmem:[#allocation5 + $0xcd8] sm:$0xff] }
 0x2ec   :  { %v6633_v17 = vld [vmem:[#allocation102_spill] sm:$0xff]  ;;  %v316_v4 = vadd.f32 %v312_v42, %v225_v56  ;;  %v6636_v59 = vld [vmem:[#allocation99_spill] sm:$0xff]  ;;  %v1207_v34 = vmul.f32 %v1203_v32, %v6617_v25  ;;  %v1633_v41 = vadd.f32 %v1629_v63, %v1546_v45  ;;  %v2267_v42 = vadd.f32 %v5473_v43, %v2180_v0  ;;  %v6640_v58 = vld [vmem:[#allocation88_spill] sm:$0xff] }
 0x2ed   :  { %v399_v23 = vmul.f32 %v395_v16, %v6633_v17  ;;  %v6634_v46 = vld [vmem:[#allocation86_spill] sm:$0xff]  ;;  %v5548_v51 = vmul.f32 %v2147_v22, %v6636_v59  ;;  %v6637_v35 = vld [vmem:[#allocation87_spill] sm:$0xff]  ;;  %v1124_v20 = vadd.f32 %v1120_v55, %v1037_v14 }
 0x2ee   :  { %v2689_v52 = vadd.f32 %v6634_v46, %v2602_v31  ;;  %v2234_v1 = vld [vmem:[#allocation5 + $0x12f0] sm:$0xff]  ;;  %v1720_v32 = vadd.f32 %v1716_v9, %v1633_v41  ;;  %v830_v0 = vld [vmem:[#allocation5 + $0xcf8] sm:$0xff] }
 0x2ef   :  { %v1290_v49 = vld [vmem:[#allocation5 + $0x1590] sm:$0xff]  ;;  %v403_v30 = vadd.f32 %v399_v23, %v316_v4  ;;  %v3080_v23 = vld [vmem:[#allocation7 + $0x68] sm:$0xff] }
 0x2f0   :  { %v6635_v13 = vld [vmem:[#allocation106_spill] sm:$0xff]  ;;  %v2776_v16 = vadd.f32 %v6637_v35, %v2689_v52  ;;  %v6639_v56 = vld [vmem:[#allocation31_spill] sm:$0xff]  ;;  %v1294_v2 = vmul.f32 %v1290_v49, %v6618_v48  ;;  %v6642_v4 = vld [vmem:[#allocation89_spill] sm:$0xff] }
 0x2f1   :  { %v486_v3 = vmul.f32 %v482_v39, %v6635_v13  ;;  %v2321_v17 = vld [vmem:[#allocation5 + $0x1310] sm:$0xff]  ;;  %v5555_v39 = vmul.f32 %v2234_v1, %v6639_v56  ;;  %v1211_v1 = vadd.f32 %v1207_v34, %v1124_v20  ;;  %v6643_v49 = vld [vmem:[#allocation25_spill] sm:$0xff]  ;;  %v917_v34 = vld [vmem:[#allocation5 + $0xd18] sm:$0xff] }
 0x2f2   :  { %v1377_v31 = vld [vmem:[#allocation5 + $0x15b0] sm:$0xff]  ;;  %v2863_v22 = vadd.f32 %v6640_v58, %v2776_v16  ;;  %v5562_v43 = vmul.f32 %v2321_v17, %v6642_v4 }
 0x2f3   :  { %v6638_v53 = vld [vmem:[#allocation94_spill] sm:$0xff]  ;;  %v490_v45 = vadd.f32 %v486_v3, %v403_v30  ;;  %v6641_v63 = vld [vmem:[#allocation107_spill] sm:$0xff]  ;;  %v1381_v55 = vmul.f32 %v1377_v31, %v6619_v21  ;;  %v6645_v30 = vld [vmem:[#allocation32_spill] sm:$0xff] }
 0x2f4   :  { %v573_v46 = vmul.f32 %v569_v12, %v6638_v53  ;;  %v2408_v13 = vld [vmem:[#allocation5 + $0x1330] sm:$0xff]  ;;  %v660_v35 = vmul.f32 %v656_v7, %v6641_v63  ;;  %v2354_v12 = vadd.f32 %v5479_v10, %v2267_v42  ;;  %v2950_v14 = vadd.f32 %v6643_v49, %v2863_v22 }
 0x2f5   :  { %v1464_v52 = vld [vmem:[#allocation5 + $0x15d0] sm:$0xff]  ;;  %v1807_v53 = vadd.f32 %v1803_v50, %v1720_v32  ;;  %v5569_v63 = vmul.f32 %v2408_v13, %v6645_v30  ;;  %v1298_v10 = vadd.f32 %v1294_v2, %v1211_v1  ;;  %v6646_v32 = vld [vmem:[#allocation56_spill] sm:$0xff] }
 0x2f6   :  { %v2495_v16 = vld [vmem:[#allocation5 + $0x1350] sm:$0xff]  ;;  %v577_v41 = vadd.f32 %v573_v46, %v490_v45  ;;  %v2441_v7 = vadd.f32 %v5483_v47, %v2354_v12  ;;  %v1468_v17 = vmul.f32 %v1464_v52, %v6620_v36  ;;  %v3084_v42 = vadd.f32 %v3080_v23, %v2950_v14  ;;  %v1004_v2 = vld [vmem:[#allocation5 + $0xd38] sm:$0xff] }
 0x2f7   :  { %v1551_v9 = vld [vmem:[#allocation5 + $0x15f0] sm:$0xff]  ;;  %v1894_v31 = vadd.f32 %v5528_v38, %v1807_v53  ;;  %v834_v49 = vmul.f32 %v830_v0, %v6646_v32  ;;  %v1385_v47 = vadd.f32 %v1381_v55, %v1298_v10  ;;  %v6648_v53 = vld [vmem:[#allocation57_spill] sm:$0xff]  ;;  %v6649_v0 = vld [vmem:[#allocation104_spill] sm:$0xff] }
 0x2f8   :  { %v6644_v58 = vld [vmem:[#allocation55_spill] sm:$0xff]  ;;  %v664_v50 = vadd.f32 %v660_v35, %v577_v41  ;;  %v2528_v46 = vadd.f32 %v5488_v26, %v2441_v7  ;;  %v1555_v13 = vmul.f32 %v1551_v9, %v6621_v33  ;;  %v3088_v12 = vmax.f32 %v3084_v42, 0.0  ;;  %v5586_v9 = vld [vmem:[#allocation8 + $0x8] sm:$0xff] }
 0x2f9   :  { %v747_v3 = vmul.f32 %v743_v24, %v6644_v58  ;;  %v2582_v20 = vld [vmem:[#allocation5 + $0x1370] sm:$0xff]  ;;  %v6647_v24 = vld [vmem:[#allocation100_spill] sm:$0xff]  ;;  %v1981_v52 = vadd.f32 %v5531_v40, %v1894_v31  ;;  %v921_v14 = vmul.f32 %v917_v34, %v6648_v53 }
 0x2fa   :  { %v1638_v22 = vld [vmem:[#allocation5 + $0x1610] sm:$0xff]  ;;  %v5576_v45 = vmul.f32 %v2495_v16, %v6647_v24  ;;  %v2615_v35 = vadd.f32 %v5492_v5, %v2528_v46  ;;  %v5583_v41 = vmul.f32 %v2582_v20, %v6649_v0  ;;  %v1472_v16 = vadd.f32 %v1468_v17, %v1385_v47  ;;  %v1091_v7 = vld [vmem:[#allocation5 + $0xd58] sm:$0xff] }
 0x2fb   :  { %v2669_v23 = vld [vmem:[#allocation5 + $0x1390] sm:$0xff]  ;;  %v751_v38 = vadd.f32 %v747_v3, %v664_v50  ;;  %v1642_v55 = vmul.f32 %v1638_v22, %v6623_v15  ;;  %v3092_v10 = vmul.f32 %v5586_v9, %v3088_v12  ;;  %v2068_v40 = vadd.f32 %v5535_v61, %v1981_v52  ;;  %v1178_v47 = vld [vmem:[#allocation5 + $0xd78] sm:$0xff] }
 0x2fc   :  { %v1725_v1 = vld [vmem:[#allocation5 + $0x1630] sm:$0xff]  ;;  %v2702_v20 = vadd.f32 %v5497_v11, %v2615_v35  ;;  %v1559_v17 = vadd.f32 %v1555_v13, %v1472_v16  ;;  %v1265_v15 = vld [vmem:[#allocation5 + $0xd98] sm:$0xff]  ;;  %v6654_v13 = vld [vmem:[#allocation101_spill] sm:$0xff] }
 0x2fd   :  { %v2756_v26 = vld [vmem:[#allocation5 + $0x13b0] sm:$0xff]  ;;  %v838_v34 = vadd.f32 %v834_v49, %v751_v38  ;;  %v1729_v22 = vmul.f32 %v1725_v1, %v6624_v28  ;;  %v3182_v32 = vld [vmem:[#allocation13 + $0x78] sm:$0xff]  ;;  %3097 = vadd.xlane.f32.xlu0 %v3092_v10  ;;  %v2155_v61 = vadd.f32 %v5548_v51, %v2068_v40  ;;  %v3180_v51 = vld [vmem:[#allocation13 + $0x68] sm:$0xff] }
 0x2fe   :  { %v2843_v42 = vld [vmem:[#allocation5 + $0x13d0] sm:$0xff]  ;;  %v1646_v1 = vadd.f32 %v1642_v55, %v1559_v17  ;;  %3223 = vmatprep.subr.mxu0 %v3182_v32  ;;  %v3179_v40 = vld [vmem:[#allocation13 + $0x60] sm:$0xff]  ;;  %v1352_v58 = vld [vmem:[#allocation5 + $0xdb8] sm:$0xff] }
 0x2ff   :  { %v1812_v3 = vld [vmem:[#allocation5 + $0x1650] sm:$0xff]  ;;  %v925_v49 = vadd.f32 %v921_v14, %v838_v34  ;;  %v5603_v16 = vmul.f32 %v2843_v42, %v6654_v13 }
 0x300   :  { %v1899_v31 = vld [vmem:[#allocation5 + $0x1670] sm:$0xff]  ;;  %v1816_v28 = vmul.f32 %v1812_v3, %v6625_v54  ;;  %v1733_v55 = vadd.f32 %v1729_v22, %v1646_v1 }
 0x301   :  { %v6650_v50 = vld [vmem:[#allocation58_spill] sm:$0xff]  ;;  %v6653_v38 = vld [vmem:[#allocation59_spill] sm:$0xff]  ;;  %v1903_v14 = vmul.f32 %v1899_v31, %v6627_v29 }
 0x302   :  { %v1008_v5 = vmul.f32 %v1004_v2, %v6650_v50  ;;  %v6651_v46 = vld [vmem:[#allocation114_spill] sm:$0xff]  ;;  %v1095_v2 = vmul.f32 %v1091_v7, %v6653_v38  ;;  %v6655_v38 = vld [vmem:[#allocation60_spill] sm:$0xff]  ;;  %v1820_v22 = vadd.f32 %v1816_v28, %v1733_v55  ;;  %v6660_v55 = vld [vmem:[#allocation109_spill] sm:$0xff] }
 0x303   :  { %v5593_v53 = vmul.f32 %v2669_v23, %v6651_v46  ;;  %v6652_v12 = vld [vmem:[#allocation90_spill] sm:$0xff]  ;;  %v2789_v23 = vadd.f32 %v5501_v62, %v2702_v20  ;;  %v1182_v33 = vmul.f32 %v1178_v47, %v6655_v38  ;;  %v3178_v62 = vld [vmem:[#allocation13 + $0x58] sm:$0xff]  ;;  %v6656_v20 = vld [vmem:[#allocation61_spill] sm:$0xff] }
 0x304   :  { %v5598_v52 = vmul.f32 %v2756_v26, %v6652_v12  ;;  %v259_v50 = vld [vmem:[#allocation5 + $0x1810] sm:$0xff]  ;;  %v2242_v26 = vadd.f32 %v5555_v39, %v2155_v61  ;;  %v1012_v34 = vadd.f32 %v1008_v5, %v925_v49  ;;  %v1269_v3 = vmul.f32 %v1265_v15, %v6656_v20  ;;  %v3118_v39 = vld [vmem:[#allocation7 + $0x88] sm:$0xff]  ;;  %v1439_v49 = vld [vmem:[#allocation5 + $0xdd8] sm:$0xff] }
 0x305   :  { %v346_v11 = vld [vmem:[#allocation5 + $0x1830] sm:$0xff]  ;;  %v2876_v42 = vadd.f32 %v5506_v6, %v2789_v23  ;;  %v263_v32 = vmul.f32 %v259_v50, %v4901_v27  ;;  %v6659_v28 = vld [vmem:[#allocation64_spill] sm:$0xff] }
 0x306   :  { %v3181_v35 = vld [vmem:[#allocation13 + $0x70] sm:$0xff]  ;;  %v2329_v31 = vadd.f32 %v5562_v43, %v2242_v26  ;;  %v1099_v5 = vadd.f32 %v1095_v2, %v1012_v34  ;;  %v350_v47 = vmul.f32 %v346_v11, %v6591_v19  ;;  %v1526_v2 = vld [vmem:[#allocation5 + $0xdf8] sm:$0xff]  ;;  %v1907_v11 = vadd.f32 %v1903_v14, %v1820_v22 }
 0x307   :  { %v433_v10 = vld [vmem:[#allocation5 + $0x1850] sm:$0xff]  ;;  %3224 = vmatpush1.msra.mxu0 %v3181_v35  ;;  %v2963_v6 = vadd.f32 %v5511_v37, %v2876_v42  ;;  %v1613_v42 = vld [vmem:[#allocation5 + $0xe18] sm:$0xff] }
 0x308   :  { %v1986_v7 = vld [vmem:[#allocation5 + $0x1690] sm:$0xff]  ;;  %3225 = vmatprep.subr.mxu0 %v3180_v51  ;;  %v437_v35 = vmul.f32 %v433_v10, %v6592_v44  ;;  %v2416_v1 = vadd.f32 %v5569_v63, %v2329_v31  ;;  %v1186_v51 = vadd.f32 %v1182_v33, %v1099_v5  ;;  %v354_v26 = vadd.f32 %v350_v47, %v263_v32  ;;  %v1700_v47 = vld [vmem:[#allocation5 + $0xe38] sm:$0xff] }
 0x309   :  { %v520_v17 = vld [vmem:[#allocation5 + $0x1870] sm:$0xff]  ;;  %3226 = vmatpush1.msra.mxu0 %v3179_v40  ;;  %v1990_v15 = vmul.f32 %v1986_v7, %v6628_v57  ;;  %v3122_v44 = vadd.f32 %v3118_v39, %v2963_v6  ;;  %v1443_v40 = vmul.f32 %v1439_v49, %v6659_v28 }
 0x30a   :  { %v3177_v54 = vld [vmem:[#allocation13 + $0x50] sm:$0xff]  ;;  %3227 = vmatprep.subr.mxu0 %v3178_v62  ;;  %v524_v19 = vmul.f32 %v520_v17, %v6597_v60  ;;  %v1273_v62 = vadd.f32 %v1269_v3, %v1186_v51  ;;  %v441_v63 = vadd.f32 %v437_v35, %v354_v26 }
 0x30b   :  { %v2073_v61 = vld [vmem:[#allocation5 + $0x16b0] sm:$0xff]  ;;  %3228 = vmatpush1.msra.mxu0 %v3177_v54  ;;  %v3126_v31 = vmax.f32 %v3122_v44, 0.0  ;;  %v1994_v32 = vadd.f32 %v1990_v15, %v1907_v11  ;;  %v1787_v44 = vld [vmem:[#allocation5 + $0xe58] sm:$0xff] }
 0x30c   :  { %v6657_v27 = vld [vmem:[#allocation62_spill] sm:$0xff]  ;;  %v6662_v6 = vld [vmem:[#allocation91_spill] sm:$0xff] }
 0x30d   :  { %v1356_v50 = vmul.f32 %v1352_v58, %v6657_v27  ;;  %v607_v23 = vld [vmem:[#allocation5 + $0x1890] sm:$0xff]  ;;  %v2503_v58 = vadd.f32 %v5576_v45, %v2416_v1  ;;  %v528_v45 = vadd.f32 %v524_v19, %v441_v63  ;;  %v3130_v35 = vmul.f32 %v5586_v9, %v3126_v31  ;;  %v3176_v19 = vld [vmem:[#allocation13 + $0x48] sm:$0xff] }
 0x30e   :  { %v2160_v43 = vld [vmem:[#allocation5 + $0x16d0] sm:$0xff]  ;;  %v611_v33 = vmul.f32 %v607_v23, %v6660_v55  ;;  %v6666_v55 = vld [vmem:[#allocation68_spill] sm:$0xff]  ;;  %3229 = vmatprep.subr.mxu0 %v3176_v19 }
 0x30f   :  { %v6658_v10 = vld [vmem:[#allocation122_spill] sm:$0xff]  ;;  %v2164_v60 = vmul.f32 %v2160_v43, %v6636_v59  ;;  %v2590_v39 = vadd.f32 %v5583_v41, %v2503_v58  ;;  %v1360_v49 = vadd.f32 %v1356_v50, %v1273_v62  ;;  %v6663_v43 = vld [vmem:[#allocation67_spill] sm:$0xff]  ;;  %v3175_v62 = vld [vmem:[#allocation13 + $0x40] sm:$0xff]  ;;  %3135 = vadd.xlane.f32.xlu1 %v3130_v35  ;;  %v1704_v31 = vmul.f32 %v1700_v47, %v6666_v55 }
 0x310   :  { %v2077_v37 = vmul.f32 %v2073_v61, %v6658_v10  ;;  %v694_v7 = vld [vmem:[#allocation5 + $0x18b0] sm:$0xff]  ;;  %v1617_v51 = vmul.f32 %v1613_v42, %v6663_v43  ;;  %v615_v11 = vadd.f32 %v611_v33, %v528_v45  ;;  %v1874_v33 = vld [vmem:[#allocation5 + $0xe78] sm:$0xff]  ;;  %3230 = vmatpush1.msra.mxu0 %v3175_v62 }
 0x311   :  { %v2247_v34 = vld [vmem:[#allocation5 + $0x16f0] sm:$0xff]  ;;  %v698_v3 = vmul.f32 %v694_v7, %v6662_v6  ;;  %v2677_v26 = vadd.f32 %v5593_v53, %v2590_v39  ;;  %v1447_v41 = vadd.f32 %v1443_v40, %v1360_v49  ;;  %v6665_v7 = vld [vmem:[#allocation105_spill] sm:$0xff] }
 0x312   :  { %v6661_v54 = vld [vmem:[#allocation66_spill] sm:$0xff]  ;;  %v2081_v22 = vadd.f32 %v2077_v37, %v1994_v32  ;;  %v2251_v23 = vmul.f32 %v2247_v34, %v6639_v56  ;;  %v3174_v32 = vld [vmem:[#allocation13 + $0x38] sm:$0xff] }
 0x313   :  { %v1530_v17 = vmul.f32 %v1526_v2, %v6661_v54  ;;  %v781_v14 = vld [vmem:[#allocation5 + $0x18d0] sm:$0xff]  ;;  %v2764_v53 = vadd.f32 %v5598_v52, %v2677_v26  ;;  %v702_v49 = vadd.f32 %v698_v3, %v615_v11  ;;  %3231 = vmatprep.subr.mxu0 %v3174_v32 }
 0x314   :  { %v2930_v61 = vld [vmem:[#allocation5 + $0x13f0] sm:$0xff]  ;;  %v2168_v37 = vadd.f32 %v2164_v60, %v2081_v22 }
 0x315   :  { %v2334_v5 = vld [vmem:[#allocation5 + $0x1710] sm:$0xff]  ;;  %v2934_v9 = vmul.f32 %v2930_v61, %v6665_v7  ;;  %v1534_v39 = vadd.f32 %v1530_v17, %v1447_v41  ;;  %v1961_v17 = vld [vmem:[#allocation5 + $0xe98] sm:$0xff] }
 0x316   :  { %v2421_v15 = vld [vmem:[#allocation5 + $0x1730] sm:$0xff]  ;;  %v2338_v34 = vmul.f32 %v2334_v5, %v6642_v4  ;;  %v2255_v35 = vadd.f32 %v2251_v23, %v2168_v37  ;;  %v6668_v5 = vld [vmem:[#allocation69_spill] sm:$0xff]  ;;  %v2048_v41 = vld [vmem:[#allocation5 + $0xeb8] sm:$0xff] }
 0x317   :  { %v2508_v1 = vld [vmem:[#allocation5 + $0x1750] sm:$0xff]  ;;  %v2425_v60 = vmul.f32 %v2421_v15, %v6645_v30  ;;  %v1791_v22 = vmul.f32 %v1787_v44, %v6668_v5  ;;  %v1621_v26 = vadd.f32 %v1617_v51, %v1534_v39  ;;  %v6671_v51 = vld [vmem:[#allocation112_spill] sm:$0xff] }
 0x318   :  { %v868_v2 = vld [vmem:[#allocation5 + $0x18f0] sm:$0xff]  ;;  %v2512_v61 = vmul.f32 %v2508_v1, %v6647_v24  ;;  %v2342_v23 = vadd.f32 %v2338_v34, %v2255_v35 }
 0x319   :  { %v6664_v50 = vld [vmem:[#allocation110_spill] sm:$0xff]  ;;  %v6669_v11 = vld [vmem:[#allocation111_spill] sm:$0xff] }
 0x31a   :  { %v785_v58 = vmul.f32 %v781_v14, %v6664_v50  ;;  %v2595_v63 = vld [vmem:[#allocation5 + $0x1770] sm:$0xff]  ;;  %v6667_v14 = vld [vmem:[#allocation120_spill] sm:$0xff]  ;;  %v2851_v50 = vadd.f32 %v5603_v16, %v2764_v53  ;;  %v1708_v16 = vadd.f32 %v1704_v31, %v1621_v26 }
 0x31b   :  { %v955_v42 = vld [vmem:[#allocation5 + $0x1910] sm:$0xff]  ;;  %v872_v45 = vmul.f32 %v868_v2, %v6667_v14  ;;  %v2599_v15 = vmul.f32 %v2595_v63, %v6649_v0  ;;  %v6673_v63 = vld [vmem:[#allocation72_spill] sm:$0xff] }
 0x31c   :  { %v2682_v40 = vld [vmem:[#allocation5 + $0x1790] sm:$0xff]  ;;  %v789_v3 = vadd.f32 %v785_v58, %v702_v49  ;;  %v959_v2 = vmul.f32 %v955_v42, %v6669_v11  ;;  %v2938_v62 = vadd.f32 %v2934_v9, %v2851_v50  ;;  %v234_v58 = vld [vmem:[#allocation5 + $0x1018] sm:$0xff]  ;;  %v2429_v42 = vadd.f32 %v2425_v60, %v2342_v23 }
 0x31d   :  { %v3173_v6 = vld [vmem:[#allocation13 + $0x30] sm:$0xff]  ;;  %v2686_v1 = vmul.f32 %v2682_v40, %v6651_v46  ;;  %v321_v49 = vld [vmem:[#allocation5 + $0x1038] sm:$0xff]  ;;  %v2052_v11 = vmul.f32 %v2048_v41, %v6673_v63 }
 0x31e   :  { %v1042_v47 = vld [vmem:[#allocation5 + $0x1930] sm:$0xff]  ;;  %3232 = vmatpush1.msra.mxu0 %v3173_v6  ;;  %v876_v53 = vadd.f32 %v872_v45, %v789_v3  ;;  %v408_v40 = vld [vmem:[#allocation5 + $0x1058] sm:$0xff]  ;;  %v2516_v45 = vadd.f32 %v2512_v61, %v2429_v42 }
 0x31f   :  { %v2769_v52 = vld [vmem:[#allocation5 + $0x17b0] sm:$0xff]  ;;  %v1046_v39 = vmul.f32 %v1042_v47, %v6671_v51  ;;  %v495_v31 = vld [vmem:[#allocation5 + $0x1078] sm:$0xff] }
 0x320   :  { %v3043_v19 = vld [vmem:[#allocation7 + $0x50] sm:$0xff]  ;;  %v2773_v32 = vmul.f32 %v2769_v52, %v6652_v12  ;;  %v963_v6 = vadd.f32 %v959_v2, %v876_v53  ;;  %v325_v52 = vmul.f32 %v321_v49, %v6632_v18  ;;  %v6676_v2 = vld [vmem:[#allocation73_spill] sm:$0xff] }
 0x321   :  { %v6670_v37 = vld [vmem:[#allocation70_spill] sm:$0xff]  ;;  %v6672_v34 = vld [vmem:[#allocation71_spill] sm:$0xff]  ;;  %v3047_v46 = vadd.f32 %v3043_v19, %v2938_v62  ;;  %v2603_v62 = vadd.f32 %v2599_v15, %v2516_v45 }
 0x322   :  { %v1878_v44 = vmul.f32 %v1874_v33, %v6670_v37  ;;  %v1129_v14 = vld [vmem:[#allocation5 + $0x1950] sm:$0xff]  ;;  %v1965_v35 = vmul.f32 %v1961_v17, %v6672_v34  ;;  %v1795_v33 = vadd.f32 %v1791_v22, %v1708_v16  ;;  %v2135_v37 = vld [vmem:[#allocation5 + $0xed8] sm:$0xff]  ;;  %v1050_v41 = vadd.f32 %v1046_v39, %v963_v6 }
 0x323   :  { %v1216_v5 = vld [vmem:[#allocation5 + $0x1970] sm:$0xff]  ;;  %v1133_v9 = vmul.f32 %v1129_v14, %v6616_v8  ;;  %v3051_v3 = vmax.f32 %v3047_v46, 0.0  ;;  %v582_v22 = vld [vmem:[#allocation5 + $0x1098] sm:$0xff]  ;;  %v2139_v16 = vmul.f32 %v2135_v37, %v6676_v2 }
 0x324   :  { %v1220_v47 = vmul.f32 %v1216_v5, %v6617_v25  ;;  %v1303_v50 = vld [vmem:[#allocation5 + $0x1990] sm:$0xff]  ;;  %v1882_v23 = vadd.f32 %v1878_v44, %v1795_v33  ;;  %v2222_v8 = vld [vmem:[#allocation5 + $0xef8] sm:$0xff] }
 0x325   :  { %v6674_v26 = vld [vmem:[#allocation115_spill] sm:$0xff]  ;;  %v6675_v51 = vld [vmem:[#allocation102_spill] sm:$0xff]  ;;  %v1137_v42 = vadd.f32 %v1133_v9, %v1050_v41  ;;  %v1307_v44 = vmul.f32 %v1303_v50, %v6618_v48 }
 0x326   :  { %v238_v60 = vmul.f32 %v234_v58, %v6674_v26  ;;  %v2856_v17 = vld [vmem:[#allocation5 + $0x17d0] sm:$0xff]  ;;  %v412_v19 = vmul.f32 %v408_v40, %v6675_v51  ;;  %v1969_v46 = vadd.f32 %v1965_v35, %v1882_v23  ;;  %v669_v39 = vld [vmem:[#allocation5 + $0x10b8] sm:$0xff]  ;;  %v2690_v40 = vadd.f32 %v2686_v1, %v2603_v62 }
 0x327   :  { %v1390_v14 = vld [vmem:[#allocation5 + $0x19b0] sm:$0xff]  ;;  %v2860_v15 = vmul.f32 %v2856_v17, %v6654_v13  ;;  %v2309_v33 = vld [vmem:[#allocation5 + $0xf18] sm:$0xff]  ;;  %v1224_v63 = vadd.f32 %v1220_v47, %v1137_v42 }
 0x328   :  { %v329_v61 = vadd.f32 %v325_v52, %v238_v60  ;;  %v6677_v53 = vld [vmem:[#allocation106_spill] sm:$0xff]  ;;  %v756_v35 = vld [vmem:[#allocation5 + $0x10d8] sm:$0xff]  ;;  %v2777_v9 = vadd.f32 %v2773_v32, %v2690_v40 }
 0x329   :  { %v499_v25 = vmul.f32 %v495_v31, %v6677_v53  ;;  %v5657_v5 = vld [vmem:[#allocation8 + $0x10] sm:$0xff]  ;;  %v2056_v31 = vadd.f32 %v2052_v11, %v1969_v46  ;;  %v2396_v50 = vld [vmem:[#allocation5 + $0xf38] sm:$0xff] }
 0x32a   :  { %v3055_v58 = vmul.f32 %v5657_v5, %v3051_v3  ;;  %v2943_v49 = vld [vmem:[#allocation5 + $0x17f0] sm:$0xff]  ;;  %v416_v6 = vadd.f32 %v412_v19, %v329_v61  ;;  %v1394_v3 = vmul.f32 %v1390_v14, %v6619_v21  ;;  %v2483_v47 = vld [vmem:[#allocation5 + $0xf58] sm:$0xff] }
 0x32b   :  { %v1477_v37 = vld [vmem:[#allocation5 + $0x19d0] sm:$0xff]  ;;  %v2947_v48 = vmul.f32 %v2943_v49, %v6665_v7  ;;  %v2143_v62 = vadd.f32 %v2139_v16, %v2056_v31  ;;  %v6683_v40 = vld [vmem:[#allocation76_spill] sm:$0xff]  ;;  %v6687_v7 = vld [vmem:[#allocation113_spill] sm:$0xff] }
 0x32c   :  { %v6678_v45 = vld [vmem:[#allocation94_spill] sm:$0xff]  ;;  %3061 = vadd.xlane.f32.xlu0 %v3055_v58  ;;  %v503_v23 = vadd.f32 %v499_v25, %v416_v6  ;;  %v6680_v17 = vld [vmem:[#allocation107_spill] sm:$0xff]  ;;  %v1481_v11 = vmul.f32 %v1477_v37, %v6620_v36  ;;  %v6685_v37 = vld [vmem:[#allocation56_spill] sm:$0xff] }
 0x32d   :  { %v586_v60 = vmul.f32 %v582_v22, %v6678_v45  ;;  %v6679_v52 = vld [vmem:[#allocation74_spill] sm:$0xff]  ;;  %v673_v41 = vmul.f32 %v669_v39, %v6680_v17  ;;  %v6681_v19 = vld [vmem:[#allocation75_spill] sm:$0xff]  ;;  %v1311_v22 = vadd.f32 %v1307_v44, %v1224_v63  ;;  %v6684_v39 = vld [vmem:[#allocation93_spill] sm:$0xff] }
 0x32e   :  { %v2226_v2 = vmul.f32 %v2222_v8, %v6679_v52  ;;  %v1564_v1 = vld [vmem:[#allocation5 + $0x19f0] sm:$0xff]  ;;  %v2313_v61 = vmul.f32 %v2309_v33, %v6681_v19  ;;  %v843_v58 = vld [vmem:[#allocation5 + $0x10f8] sm:$0xff]  ;;  %v2864_v8 = vadd.f32 %v2860_v15, %v2777_v9  ;;  %v2400_v52 = vmul.f32 %v2396_v50, %v6683_v40  ;;  %v6686_v19 = vld [vmem:[#allocation77_spill] sm:$0xff] }
 0x32f   :  { %v1651_v46 = vld [vmem:[#allocation5 + $0x1a10] sm:$0xff]  ;;  %v590_v21 = vadd.f32 %v586_v60, %v503_v23  ;;  %v2570_v25 = vld [vmem:[#allocation5 + $0xf78] sm:$0xff]  ;;  %v1398_v6 = vadd.f32 %v1394_v3, %v1311_v22  ;;  %v1568_v16 = vmul.f32 %v1564_v1, %v6684_v39  ;;  %v847_v15 = vmul.f32 %v843_v58, %v6685_v37 }
 0x330   :  { %v6682_v14 = vld [vmem:[#allocation55_spill] sm:$0xff]  ;;  %v2230_v49 = vadd.f32 %v2226_v2, %v2143_v62  ;;  %v2951_v33 = vadd.f32 %v2947_v48, %v2864_v8  ;;  %v2487_v60 = vmul.f32 %v2483_v47, %v6686_v19  ;;  %v1655_v2 = vmul.f32 %v1651_v46, %v6687_v7  ;;  %v6688_v40 = vld [vmem:[#allocation78_spill] sm:$0xff]  ;;  %v6689_v48 = vld [vmem:[#allocation57_spill] sm:$0xff] }
 0x331   :  { %v760_v32 = vmul.f32 %v756_v35, %v6682_v14  ;;  %v3081_v42 = vld [vmem:[#allocation7 + $0x70] sm:$0xff]  ;;  %v930_v31 = vld [vmem:[#allocation5 + $0x1118] sm:$0xff]  ;;  %v677_v36 = vadd.f32 %v673_v41, %v590_v21  ;;  %v1485_v35 = vadd.f32 %v1481_v11, %v1398_v6  ;;  %v2574_v3 = vmul.f32 %v2570_v25, %v6688_v40 }
 0x332   :  { %v2657_v63 = vld [vmem:[#allocation5 + $0xf98] sm:$0xff]  ;;  %v1738_v44 = vld [vmem:[#allocation5 + $0x1a30] sm:$0xff]  ;;  %v2317_v9 = vadd.f32 %v2313_v61, %v2230_v49  ;;  %v3085_v50 = vadd.f32 %v3081_v42, %v2951_v33  ;;  %v934_v8 = vmul.f32 %v930_v31, %v6689_v48 }
 0x333   :  { %v2744_v23 = vld [vmem:[#allocation5 + $0xfb8] sm:$0xff]  ;;  %v1825_v1 = vld [vmem:[#allocation5 + $0x1a50] sm:$0xff]  ;;  %v764_v39 = vadd.f32 %v760_v32, %v677_v36  ;;  %v1572_v58 = vadd.f32 %v1568_v16, %v1485_v35  ;;  %v6694_v32 = vld [vmem:[#allocation81_spill] sm:$0xff] }
 0x334   :  { %v1017_v62 = vld [vmem:[#allocation5 + $0x1138] sm:$0xff]  ;;  %v2404_v13 = vadd.f32 %v2400_v52, %v2317_v9  ;;  %v1912_v47 = vld [vmem:[#allocation5 + $0x1a70] sm:$0xff]  ;;  %v3089_v11 = vmax.f32 %v3085_v50, 0.0 }
 0x335   :  { %v2831_v22 = vld [vmem:[#allocation5 + $0xfd8] sm:$0xff]  ;;  %v851_v46 = vadd.f32 %v847_v15, %v764_v39  ;;  %v6693_v42 = vld [vmem:[#allocation58_spill] sm:$0xff]  ;;  %v1659_v31 = vadd.f32 %v1655_v2, %v1572_v58  ;;  %v1916_v50 = vmul.f32 %v1912_v47, %v6627_v29  ;;  %v3171_v58 = vld [vmem:[#allocation13 + $0x20] sm:$0xff] }
 0x336   :  { %v6690_v41 = vld [vmem:[#allocation79_spill] sm:$0xff]  ;;  %v6692_v6 = vld [vmem:[#allocation80_spill] sm:$0xff]  ;;  %v1021_v33 = vmul.f32 %v1017_v62, %v6693_v42  ;;  %v2491_v34 = vadd.f32 %v2487_v60, %v2404_v13  ;;  %v2835_v36 = vmul.f32 %v2831_v22, %v6694_v32  ;;  %v6697_v32 = vld [vmem:[#allocation82_spill] sm:$0xff] }
 0x337   :  { %v2661_v21 = vmul.f32 %v2657_v63, %v6690_v41  ;;  %v6691_v61 = vld [vmem:[#allocation103_spill] sm:$0xff]  ;;  %v2748_v7 = vmul.f32 %v2744_v23, %v6692_v6  ;;  %v6695_v52 = vld [vmem:[#allocation96_spill] sm:$0xff]  ;;  %v938_v15 = vadd.f32 %v934_v8, %v851_v46 }
 0x338   :  { %v1742_v49 = vmul.f32 %v1738_v44, %v6691_v61  ;;  %v1104_v19 = vld [vmem:[#allocation5 + $0x1158] sm:$0xff]  ;;  %v1829_v9 = vmul.f32 %v1825_v1, %v6695_v52  ;;  %v1999_v63 = vld [vmem:[#allocation5 + $0x1a90] sm:$0xff]  ;;  %v3093_v44 = vmul.f32 %v5657_v5, %v3089_v11  ;;  %v2578_v41 = vadd.f32 %v2574_v3, %v2491_v34  ;;  %v3172_v1 = vld [vmem:[#allocation13 + $0x28] sm:$0xff] }
 0x339   :  { %v247_v25 = vld [vmem:[#allocation5 + $0x1418] sm:$0xff]  ;;  %v2086_v23 = vld [vmem:[#allocation5 + $0x1ab0] sm:$0xff]  ;;  %v2003_v11 = vmul.f32 %v1999_v63, %v6628_v57  ;;  %v1025_v52 = vadd.f32 %v1021_v33, %v938_v15  ;;  %3233 = vmatprep.subr.mxu0 %v3172_v1 }
 0x33a   :  { %v334_v40 = vld [vmem:[#allocation5 + $0x1438] sm:$0xff]  ;;  %v1746_v13 = vadd.f32 %v1742_v49, %v1659_v31  ;;  %v251_v2 = vmul.f32 %v247_v25, %v6674_v26  ;;  %3099 = vadd.xlane.f32.xlu1 %v3093_v44  ;;  %v2665_v46 = vadd.f32 %v2661_v21, %v2578_v41  ;;  %v2173_v3 = vld [vmem:[#allocation5 + $0x1ad0] sm:$0xff]  ;;  %v2090_v57 = vmul.f32 %v2086_v23, %v6658_v10 }
 0x33b   :  { %v1191_v16 = vld [vmem:[#allocation5 + $0x1178] sm:$0xff]  ;;  %v338_v22 = vmul.f32 %v334_v40, %v6632_v18  ;;  %v3169_v40 = vld [vmem:[#allocation13 + $0x10] sm:$0xff]  ;;  %3234 = vmatpush1.msra.mxu0 %v3171_v58 }
 0x33c   :  { %v421_v35 = vld [vmem:[#allocation5 + $0x1458] sm:$0xff]  ;;  %v1195_v29 = vmul.f32 %v1191_v16, %v6655_v38  ;;  %v1833_v34 = vadd.f32 %v1829_v9, %v1746_v13  ;;  %v2260_v41 = vld [vmem:[#allocation5 + $0x1af0] sm:$0xff] }
 0x33d   :  { %v2918_v61 = vld [vmem:[#allocation5 + $0xff8] sm:$0xff]  ;;  %v425_v8 = vmul.f32 %v421_v35, %v6675_v51  ;;  %v342_v31 = vadd.f32 %v338_v22, %v251_v2  ;;  %v2752_v35 = vadd.f32 %v2748_v7, %v2665_v46  ;;  %v2264_v58 = vmul.f32 %v2260_v41, %v6639_v56  ;;  %v2521_v56 = vld [vmem:[#allocation5 + $0x1b50] sm:$0xff] }
 0x33e   :  { %v6696_v39 = vld [vmem:[#allocation59_spill] sm:$0xff]  ;;  %v2922_v44 = vmul.f32 %v2918_v61, %v6697_v32  ;;  %v1920_v15 = vadd.f32 %v1916_v50, %v1833_v34 }
 0x33f   :  { %v1108_v62 = vmul.f32 %v1104_v19, %v6696_v39  ;;  %v508_v6 = vld [vmem:[#allocation5 + $0x1478] sm:$0xff]  ;;  %v429_v9 = vadd.f32 %v425_v8, %v342_v31  ;;  %v2839_v10 = vadd.f32 %v2835_v36, %v2752_v35 }
 0x340   :  { %v1278_v60 = vld [vmem:[#allocation5 + $0x1198] sm:$0xff]  ;;  %v512_v25 = vmul.f32 %v508_v6, %v6677_v53  ;;  %v2177_v6 = vmul.f32 %v2173_v3, %v6636_v59  ;;  %v2007_v23 = vadd.f32 %v2003_v11, %v1920_v15 }
 0x341   :  { %v595_v47 = vld [vmem:[#allocation5 + $0x1498] sm:$0xff]  ;;  %v1112_v33 = vadd.f32 %v1108_v62, %v1025_v52  ;;  %v1282_v63 = vmul.f32 %v1278_v60, %v6656_v20  ;;  %v2347_v62 = vld [vmem:[#allocation5 + $0x1b10] sm:$0xff]  ;;  %v2926_v59 = vadd.f32 %v2922_v44, %v2839_v10 }
 0x342   :  { %v3170_v19 = vld [vmem:[#allocation13 + $0x18] sm:$0xff]  ;;  %v599_v13 = vmul.f32 %v595_v47, %v6678_v45  ;;  %v516_v1 = vadd.f32 %v512_v25, %v429_v9  ;;  %v2351_v11 = vmul.f32 %v2347_v62, %v6642_v4 }
 0x343   :  { %v1365_v49 = vld [vmem:[#allocation5 + $0x11b8] sm:$0xff]  ;;  %3235 = vmatprep.subr.mxu0 %v3170_v19  ;;  %v1199_v2 = vadd.f32 %v1195_v29, %v1112_v33  ;;  %v2094_v29 = vadd.f32 %v2090_v57, %v2007_v23  ;;  %v2434_v19 = vld [vmem:[#allocation5 + $0x1b30] sm:$0xff] }
 0x344   :  { %v682_v16 = vld [vmem:[#allocation5 + $0x14b8] sm:$0xff]  ;;  %v1369_v61 = vmul.f32 %v1365_v49, %v6657_v27  ;;  %3236 = vmatpush1.msra.mxu0 %v3169_v40  ;;  %v603_v34 = vadd.f32 %v599_v13, %v516_v1  ;;  %v2608_v33 = vld [vmem:[#allocation5 + $0x1b70] sm:$0xff]  ;;  %v2438_v57 = vmul.f32 %v2434_v19, %v6645_v30 }
 0x345   :  { %v1452_v21 = vld [vmem:[#allocation5 + $0x11d8] sm:$0xff]  ;;  %v686_v7 = vmul.f32 %v682_v16, %v6680_v17  ;;  %v1286_v52 = vadd.f32 %v1282_v63, %v1199_v2  ;;  %v2181_v40 = vadd.f32 %v2177_v6, %v2094_v29  ;;  %v2612_v10 = vmul.f32 %v2608_v33, %v6649_v0  ;;  %v6699_v33 = vld [vmem:[#allocation114_spill] sm:$0xff] }
 0x346   :  { %v769_v22 = vld [vmem:[#allocation5 + $0x14d8] sm:$0xff]  ;;  %v1456_v8 = vmul.f32 %v1452_v21, %v6659_v28 }
 0x347   :  { %v1539_v60 = vld [vmem:[#allocation5 + $0x11f8] sm:$0xff]  ;;  %v773_v36 = vmul.f32 %v769_v22, %v6682_v14  ;;  %v1373_v3 = vadd.f32 %v1369_v61, %v1286_v52  ;;  %v690_v16 = vadd.f32 %v686_v7, %v603_v34  ;;  %v2268_v4 = vadd.f32 %v2264_v58, %v2181_v40  ;;  %v2695_v58 = vld [vmem:[#allocation5 + $0x1b90] sm:$0xff] }
 0x348   :  { %v3006_v50 = vld [vmem:[#allocation7 + $0x38] sm:$0xff]  ;;  %v1543_v49 = vmul.f32 %v1539_v60, %v6661_v54  ;;  %v2525_v22 = vmul.f32 %v2521_v56, %v6647_v24  ;;  %v6698_v24 = vld [vmem:[#allocation69_spill] sm:$0xff] }
 0x349   :  { %v856_v47 = vld [vmem:[#allocation5 + $0x14f8] sm:$0xff]  ;;  %v3010_v25 = vadd.f32 %v3006_v50, %v2926_v59  ;;  %v1460_v35 = vadd.f32 %v1456_v8, %v1373_v3  ;;  %v777_v13 = vadd.f32 %v773_v36, %v690_v16  ;;  %v2355_v50 = vadd.f32 %v2351_v11, %v2268_v4  ;;  %v5718_v36 = vpop.xlane.xlu0 %2982 }
 0x34a   :  { %v1626_v46 = vld [vmem:[#allocation5 + $0x1218] sm:$0xff]  ;;  %v860_v44 = vmul.f32 %v856_v47, %v6685_v37 }
 0x34b   :  { %v943_v31 = vld [vmem:[#allocation5 + $0x1518] sm:$0xff]  ;;  %v1630_v15 = vmul.f32 %v1626_v46, %v6663_v43  ;;  %v3014_v21 = vmax.f32 %v3010_v25, 0.0  ;;  %v1547_v23 = vadd.f32 %v1543_v49, %v1460_v35  ;;  %v2442_v3 = vadd.f32 %v2438_v57, %v2355_v50  ;;  %v2782_v49 = vld [vmem:[#allocation5 + $0x1bb0] sm:$0xff] }
 0x34c   :  { %v1713_v63 = vld [vmem:[#allocation5 + $0x1238] sm:$0xff]  ;;  %v947_v2 = vmul.f32 %v943_v31, %v6689_v48  ;;  %v864_v8 = vadd.f32 %v860_v44, %v777_v13  ;;  %v6700_v44 = vld [vmem:[#allocation70_spill] sm:$0xff] }
 0x34d   :  { %v1030_v41 = vld [vmem:[#allocation5 + $0x1538] sm:$0xff]  ;;  %v1717_v62 = vmul.f32 %v1713_v63, %v6666_v55  ;;  %v1634_v29 = vadd.f32 %v1630_v15, %v1547_v23  ;;  %v2699_v63 = vmul.f32 %v2695_v58, %v6699_v33 }
 0x34e   :  { %v1800_v9 = vld [vmem:[#allocation5 + $0x1258] sm:$0xff]  ;;  %v1034_v47 = vmul.f32 %v1030_v41, %v6693_v42  ;;  %v951_v31 = vadd.f32 %v947_v2, %v864_v8  ;;  %v2529_v41 = vadd.f32 %v2525_v22, %v2442_v3  ;;  %v6702_v8 = vld [vmem:[#allocation101_spill] sm:$0xff] }
 0x34f   :  { %v1117_v61 = vld [vmem:[#allocation5 + $0x1558] sm:$0xff]  ;;  %v1804_v19 = vmul.f32 %v1800_v9, %v6698_v24  ;;  %v1721_v16 = vadd.f32 %v1717_v62, %v1634_v29 }
 0x350   :  { %v260_v6 = vld [vmem:[#allocation5 + $0x1818] sm:$0xff]  ;;  %v1121_v0 = vmul.f32 %v1117_v61, %v6696_v39  ;;  %v1038_v57 = vadd.f32 %v1034_v47, %v951_v31 }
 0x351   :  { %v347_v30 = vld [vmem:[#allocation5 + $0x1838] sm:$0xff]  ;;  %v264_v46 = vmul.f32 %v260_v6, %v6674_v26  ;;  %v1808_v61 = vadd.f32 %v1804_v19, %v1721_v16 }
 0x352   :  { %v434_v60 = vld [vmem:[#allocation5 + $0x1858] sm:$0xff]  ;;  %v351_v40 = vmul.f32 %v347_v30, %v6632_v18  ;;  %v2786_v18 = vmul.f32 %v2782_v49, %v6652_v12  ;;  %v2616_v30 = vadd.f32 %v2612_v10, %v2529_v41  ;;  %v1125_v50 = vadd.f32 %v1121_v0, %v1038_v57 }
 0x353   :  { %v5711_v1 = vld [vmem:[#allocation8 + $0x18] sm:$0xff]  ;;  %v438_v56 = vmul.f32 %v434_v60, %v6675_v51  ;;  %v2956_v60 = vld [vmem:[#allocation5 + $0x1bf0] sm:$0xff] }
 0x354   :  { %v3018_v7 = vmul.f32 %v5711_v1, %v3014_v21  ;;  %v1887_v52 = vld [vmem:[#allocation5 + $0x1278] sm:$0xff]  ;;  %v2869_v21 = vld [vmem:[#allocation5 + $0x1bd0] sm:$0xff]  ;;  %v355_v13 = vadd.f32 %v351_v40, %v264_v46  ;;  %v5733_v46 = vpop.xlane.xlu1 %2984  ;;  %v2703_v10 = vadd.f32 %v2699_v63, %v2616_v30 }
 0x355   :  { %v1204_v59 = vld [vmem:[#allocation5 + $0x1578] sm:$0xff]  ;;  %v1891_v35 = vmul.f32 %v1887_v52, %v6700_v44  ;;  %v2873_v47 = vmul.f32 %v2869_v21, %v6702_v8 }
 0x356   :  { %v521_v34 = vld [vmem:[#allocation5 + $0x1878] sm:$0xff]  ;;  %3025 = vadd.xlane.f32.xlu0 %v3018_v7  ;;  %v1208_v26 = vmul.f32 %v1204_v59, %v6655_v38  ;;  %v442_v58 = vadd.f32 %v438_v56, %v355_v13  ;;  %v6705_v56 = vld [vmem:[#allocation73_spill] sm:$0xff] }
 0x357   :  { %v1974_v11 = vld [vmem:[#allocation5 + $0x1298] sm:$0xff]  ;;  %v525_v2 = vmul.f32 %v521_v34, %v6677_v53  ;;  %v1895_v59 = vadd.f32 %v1891_v35, %v1808_v61  ;;  %v5735_v34 = vpop.xlane.xlu0 %3019 }
 0x358   :  { %v1291_v25 = vld [vmem:[#allocation5 + $0x1598] sm:$0xff]  ;;  %v1212_v49 = vadd.f32 %v1208_v26, %v1125_v50 }
 0x359   :  { %v608_v15 = vld [vmem:[#allocation5 + $0x1898] sm:$0xff]  ;;  %v1295_v23 = vmul.f32 %v1291_v25, %v6656_v20 }
 0x35a   :  { %v2061_v4 = vld [vmem:[#allocation5 + $0x12b8] sm:$0xff]  ;;  %v612_v52 = vmul.f32 %v608_v15, %v6678_v45  ;;  %v6704_v45 = vld [vmem:[#allocation105_spill] sm:$0xff]  ;;  %v2790_v15 = vadd.f32 %v2786_v18, %v2703_v10 }
 0x35b   :  { %v1378_v9 = vld [vmem:[#allocation5 + $0x15b8] sm:$0xff]  ;;  %v2960_v25 = vmul.f32 %v2956_v60, %v6704_v45  ;;  %v3167_v45 = vld [vmem:[#allocation13] sm:$0xff] }
 0x35c   :  { %v6701_v51 = vld [vmem:[#allocation71_spill] sm:$0xff]  ;;  %v6703_v53 = vld [vmem:[#allocation72_spill] sm:$0xff]  ;;  %v1382_v12 = vmul.f32 %v1378_v9, %v6657_v27 }
 0x35d   :  { %v1978_v6 = vmul.f32 %v1974_v11, %v6701_v51  ;;  %v695_v62 = vld [vmem:[#allocation5 + $0x18b8] sm:$0xff]  ;;  %v2065_v29 = vmul.f32 %v2061_v4, %v6703_v53  ;;  %v529_v11 = vadd.f32 %v525_v2, %v442_v58  ;;  %v1299_v4 = vadd.f32 %v1295_v23, %v1212_v49  ;;  %v3119_v9 = vld [vmem:[#allocation7 + $0x90] sm:$0xff]  ;;  %v5748_v49 = vpop.xlane.xlu0 %3021 }
 0x35e   :  { %v2148_v7 = vld [vmem:[#allocation5 + $0x12d8] sm:$0xff]  ;;  %v699_v31 = vmul.f32 %v695_v62, %v6680_v17  ;;  %v6706_v2 = vld [vmem:[#allocation74_spill] sm:$0xff]  ;;  %v2877_v62 = vadd.f32 %v2873_v47, %v2790_v15 }
 0x35f   :  { %v1465_v22 = vld [vmem:[#allocation5 + $0x15d8] sm:$0xff]  ;;  %v1982_v40 = vadd.f32 %v1978_v6, %v1895_v59  ;;  %v2152_v33 = vmul.f32 %v2148_v7, %v6705_v56  ;;  %v616_v63 = vadd.f32 %v612_v52, %v529_v11  ;;  %v1386_v7 = vadd.f32 %v1382_v12, %v1299_v4  ;;  %v6710_v15 = vld [vmem:[#allocation78_spill] sm:$0xff] }
 0x360   :  { %v782_v19 = vld [vmem:[#allocation5 + $0x18d8] sm:$0xff]  ;;  %v1469_v16 = vmul.f32 %v1465_v22, %v6659_v28  ;;  %v2964_v47 = vadd.f32 %v2960_v25, %v2877_v62 }
 0x361   :  { %v2235_v3 = vld [vmem:[#allocation5 + $0x12f8] sm:$0xff]  ;;  %v786_v26 = vmul.f32 %v782_v19, %v6682_v14  ;;  %v2069_v13 = vadd.f32 %v2065_v29, %v1982_v40  ;;  %v703_v18 = vadd.f32 %v699_v31, %v616_v63  ;;  %v2990_v31 = vld [vmem:[#allocation10] sm:$0xff] }
 0x362   :  { %v1552_v0 = vld [vmem:[#allocation5 + $0x15f8] sm:$0xff]  ;;  %v2239_v17 = vmul.f32 %v2235_v3, %v6706_v2  ;;  %v3058_v3 = vpop.xlane.xlu1 %3057 }
 0x363   :  { %v869_v35 = vld [vmem:[#allocation5 + $0x18f8] sm:$0xff]  ;;  %v1556_v61 = vmul.f32 %v1552_v0, %v6661_v54  ;;  %v2156_v23 = vadd.f32 %v2152_v33, %v2069_v13  ;;  %v1473_v0 = vadd.f32 %v1469_v16, %v1386_v7  ;;  %v790_v12 = vadd.f32 %v786_v26, %v703_v18  ;;  %v6709_v33 = vld [vmem:[#allocation77_spill] sm:$0xff] }
 0x364   :  { %v2322_v41 = vld [vmem:[#allocation5 + $0x1318] sm:$0xff]  ;;  %v873_v22 = vmul.f32 %v869_v35, %v6685_v37  ;;  %v3168_v37 = vld [vmem:[#allocation13 + $0x8] sm:$0xff]  ;;  %v175_v16 = vld [vmem:[#allocation11] sm:$0xff] }
 0x365   :  { %v2409_v21 = vld [vmem:[#allocation5 + $0x1338] sm:$0xff]  ;;  %v2243_v40 = vadd.f32 %v2239_v17, %v2156_v23  ;;  %3237 = vmatprep.subr.mxu0 %v3168_v37  ;;  %v1560_v63 = vadd.f32 %v1556_v61, %v1473_v0  ;;  %v3066_v26 = vld [vmem:[#allocation10 + $0x40] sm:$0xff] }
 0x366   :  { %v1639_v57 = vld [vmem:[#allocation5 + $0x1618] sm:$0xff]  ;;  %v877_v13 = vadd.f32 %v873_v22, %v790_v12  ;;  %3238 = vmatpush1.msra.mxu0 %v3167_v45  ;;  %v3104_v0 = vld [vmem:[#allocation10 + $0x60] sm:$0xff]  ;;  %v5760_v12 = vpop.xlane.xlu0 %2986 }
 0x367   :  { %v956_v6 = vld [vmem:[#allocation5 + $0x1918] sm:$0xff]  ;;  %v1643_v59 = vmul.f32 %v1639_v57, %v6663_v43  ;;  %v3123_v57 = vadd.f32 %v3119_v9, %v2964_v47  ;;  %v3070_v47 = vmul.f32 %v3066_v26, %v3058_v3 }
 0x368   :  { %v2496_v30 = vld [vmem:[#allocation5 + $0x1358] sm:$0xff]  ;;  %v960_v11 = vmul.f32 %v956_v6, %v6689_v48  ;;  %v3028_v48 = vld [vmem:[#allocation10 + $0x20] sm:$0xff] }
 0x369   :  { %v2583_v60 = vld [vmem:[#allocation5 + $0x1378] sm:$0xff]  ;;  %v2500_v35 = vmul.f32 %v2496_v30, %v6709_v33  ;;  %v3127_v7 = vmax.f32 %v3123_v57, 0.0  ;;  %v1647_v18 = vadd.f32 %v1643_v59, %v1560_v63 }
 0x36a   :  { %v1726_v50 = vld [vmem:[#allocation5 + $0x1638] sm:$0xff]  ;;  %v964_v61 = vadd.f32 %v960_v11, %v877_v13 }
 0x36b   :  { %v6707_v58 = vld [vmem:[#allocation75_spill] sm:$0xff]  ;;  %v6708_v8 = vld [vmem:[#allocation76_spill] sm:$0xff] }
 0x36c   :  { %v2326_v52 = vmul.f32 %v2322_v41, %v6707_v58  ;;  %v2413_v14 = vmul.f32 %v2409_v21, %v6708_v8  ;;  %v1813_v29 = vld [vmem:[#allocation5 + $0x1658] sm:$0xff]  ;;  %v2587_v41 = vmul.f32 %v2583_v60, %v6710_v15  ;;  %v1730_v21 = vmul.f32 %v1726_v50, %v6666_v55 }
 0x36d   :  { %v1900_v19 = vld [vmem:[#allocation5 + $0x1678] sm:$0xff]  ;;  %v1817_v17 = vmul.f32 %v1813_v29, %v6698_v24  ;;  %v2994_v60 = vmul.f32 %v2990_v31, %v5718_v36  ;;  %v3096_v29 = vpop.xlane.xlu1 %3095 }
 0x36e   :  { %v1043_v10 = vld [vmem:[#allocation5 + $0x1938] sm:$0xff]  ;;  %v2330_v6 = vadd.f32 %v2326_v52, %v2243_v40  ;;  %v1904_v62 = vmul.f32 %v1900_v19, %v6700_v44  ;;  %v3032_v52 = vmul.f32 %v3028_v48, %v5735_v34  ;;  %v3131_v19 = vmul.f32 %v5657_v5, %v3127_v7 }
 0x36f   :  { %v1130_v4 = vld [vmem:[#allocation5 + $0x1958] sm:$0xff]  ;;  %v1047_v25 = vmul.f32 %v1043_v10, %v6693_v42  ;;  %v2998_v10 = vadd.f32 %v2994_v60, %v175_v16  ;;  %v1734_v31 = vadd.f32 %v1730_v21, %v1647_v18  ;;  %v3108_v21 = vmul.f32 %v3104_v0, %v3096_v29 }
 0x370   :  { %v1217_v30 = vld [vmem:[#allocation5 + $0x1978] sm:$0xff]  ;;  %v1134_v22 = vmul.f32 %v1130_v4, %v6696_v39  ;;  %v2417_v42 = vadd.f32 %v2413_v14, %v2330_v6  ;;  %3137 = vadd.xlane.f32.xlu1 %v3131_v19  ;;  %v3142_v6 = vld [vmem:[#allocation10 + $0x80] sm:$0xff] }
 0x371   :  { %v2670_v50 = vld [vmem:[#allocation5 + $0x1398] sm:$0xff]  ;;  %v1051_v59 = vadd.f32 %v1047_v25, %v964_v61  ;;  %v1221_v11 = vmul.f32 %v1217_v30, %v6655_v38  ;;  %v3036_v4 = vadd.f32 %v3032_v52, %v2998_v10  ;;  %v1821_v57 = vadd.f32 %v1817_v17, %v1734_v31 }
 0x372   :  { %v1987_v9 = vld [vmem:[#allocation5 + $0x1698] sm:$0xff]  ;;  %v2504_v45 = vadd.f32 %v2500_v35, %v2417_v42  ;;  %v3134_v42 = vpop.xlane.xlu0 %3133 }
 0x373   :  { %v1304_v23 = vld [vmem:[#allocation5 + $0x1998] sm:$0xff]  ;;  %v1991_v40 = vmul.f32 %v1987_v9, %v6701_v51  ;;  %v1138_v13 = vadd.f32 %v1134_v22, %v1051_v59  ;;  %v3074_v35 = vadd.f32 %v3070_v47, %v3036_v4  ;;  %v1908_v60 = vadd.f32 %v1904_v62, %v1821_v57  ;;  %v6713_v9 = vld [vmem:[#allocation81_spill] sm:$0xff] }
 0x374   :  { %v2757_v36 = vld [vmem:[#allocation5 + $0x13b8] sm:$0xff]  ;;  %v1308_v5 = vmul.f32 %v1304_v23, %v6656_v20  ;;  %v2591_v26 = vadd.f32 %v2587_v41, %v2504_v45  ;;  %v3953_v23 = vmov 0.0   ;;  %v3146_v0 = vmul.f32 %v3142_v6, %v3134_v42 }
 0x375   :  { %v2074_v37 = vld [vmem:[#allocation5 + $0x16b8] sm:$0xff]  ;;  %3271 = vmatprep.mubr.f32.mxu0 %v3953_v23  ;;  %v1995_v10 = vadd.f32 %v1991_v40, %v1908_v60  ;;  %v3112_v62 = vadd.f32 %v3108_v21, %v3074_v35 }
 0x376   :  { %v6711_v39 = vld [vmem:[#allocation79_spill] sm:$0xff]  ;;  %v6712_v25 = vld [vmem:[#allocation80_spill] sm:$0xff]  ;;  %v2078_v38 = vmul.f32 %v2074_v37, %v6703_v53 }
 0x377   :  { %v2674_v14 = vmul.f32 %v2670_v50, %v6711_v39  ;;  %v1391_v3 = vld [vmem:[#allocation5 + $0x19b8] sm:$0xff]  ;;  %v2761_v48 = vmul.f32 %v2757_v36, %v6712_v25  ;;  %v1225_v50 = vadd.f32 %v1221_v11, %v1138_v13  ;;  %v3150_v59 = vadd.f32 %v3146_v0, %v3112_v62 }
 0x378   :  { %v2844_v34 = vld [vmem:[#allocation5 + $0x13d8] sm:$0xff]  ;;  %v1395_v18 = vmul.f32 %v1391_v3, %v6657_v27  ;;  %v2082_v31 = vadd.f32 %v2078_v38, %v1995_v10 }
 0x379   :  { %v2161_v63 = vld [vmem:[#allocation5 + $0x16d8] sm:$0xff]  ;;  %v2678_v17 = vadd.f32 %v2674_v14, %v2591_v26  ;;  %v2848_v61 = vmul.f32 %v2844_v34, %v6713_v9  ;;  %v1312_v52 = vadd.f32 %v1308_v5, %v1225_v50 }
 0x37a   :  { %v1478_v16 = vld [vmem:[#allocation5 + $0x19d8] sm:$0xff]  ;;  %v2165_v20 = vmul.f32 %v2161_v63, %v6705_v56  ;;  %v3154_v63 = vmax.f32 %v3150_v59, 0.0 }
 0x37b   :  { %v2931_v30 = vld [vmem:[#allocation5 + $0x13f8] sm:$0xff]  ;;  %v1482_v22 = vmul.f32 %v1478_v16, %v6659_v28  ;;  %v2765_v29 = vadd.f32 %v2761_v48, %v2678_v17  ;;  %v1399_v37 = vadd.f32 %v1395_v18, %v1312_v52 }
 0x37c   :  { %v2248_v7 = vld [vmem:[#allocation5 + $0x16f8] sm:$0xff]  ;;  %v2935_v27 = vmul.f32 %v2931_v30, %v6697_v32  ;;  %v2169_v4 = vadd.f32 %v2165_v20, %v2082_v31  ;;  %3159 = vst.msk [vmem:[#allocation2] sm:$0xff] %vm3158_vm0, %v3154_v63 }
 0x37d   :  { %v1565_v41 = vld [vmem:[#allocation5 + $0x19f8] sm:$0xff]  ;;  %v2252_v19 = vmul.f32 %v2248_v7, %v6706_v2  ;;  %v2852_v11 = vadd.f32 %v2848_v61, %v2765_v29  ;;  %v1486_v34 = vadd.f32 %v1482_v22, %v1399_v37 }
 0x37e   :  { %v2335_v47 = vld [vmem:[#allocation5 + $0x1718] sm:$0xff]  ;;  %v1569_v28 = vmul.f32 %v1565_v41, %v6661_v54 }
 0x37f   :  { %v1652_v36 = vld [vmem:[#allocation5 + $0x1a18] sm:$0xff]  ;;  %v2339_v45 = vmul.f32 %v2335_v47, %v6707_v58  ;;  %v2939_v13 = vadd.f32 %v2935_v27, %v2852_v11  ;;  %v2256_v21 = vadd.f32 %v2252_v19, %v2169_v4 }
 0x380   :  { %v2422_v14 = vld [vmem:[#allocation5 + $0x1738] sm:$0xff]  ;;  %v1656_v57 = vmul.f32 %v1652_v36, %v6663_v43  ;;  %v1573_v54 = vadd.f32 %v1569_v28, %v1486_v34 }
 0x381   :  { %v1739_v40 = vld [vmem:[#allocation5 + $0x1a38] sm:$0xff]  ;;  %v2426_v26 = vmul.f32 %v2422_v14, %v6708_v8  ;;  %v2343_v30 = vadd.f32 %v2339_v45, %v2256_v21 }
 0x382   :  { %v3044_v3 = vld [vmem:[#allocation7 + $0x58] sm:$0xff]  ;;  %v1743_v48 = vmul.f32 %v1739_v40, %v6666_v55  ;;  %v1660_v7 = vadd.f32 %v1656_v57, %v1573_v54 }
 0x383   :  { %v2509_v5 = vld [vmem:[#allocation5 + $0x1758] sm:$0xff]  ;;  %v3048_v38 = vadd.f32 %v3044_v3, %v2939_v13  ;;  %v2430_v61 = vadd.f32 %v2426_v26, %v2343_v30  ;;  %v3163_v27 = vld [vmem:[#allocation2] sm:$0xff] }
 0x384   :  { %v1826_v16 = vld [vmem:[#allocation5 + $0x1a58] sm:$0xff]  ;;  %v2513_v60 = vmul.f32 %v2509_v5, %v6709_v33  ;;  %v1747_v22 = vadd.f32 %v1743_v48, %v1660_v7  ;;  %3603 = vmatmul.mubr.msk.f32.vlgmr.msra.gmra.mxu0 %vm3158_vm0, %v3163_v27 }
 0x385   :  { %v2596_v35 = vld [vmem:[#allocation5 + $0x1778] sm:$0xff]  ;;  %v1830_v43 = vmul.f32 %v1826_v16, %v6698_v24  ;;  %v3052_v50 = vmax.f32 %v3048_v38, 0.0  ;;  %3277 = vmatprep.mubr.f32.mxu0 %v3953_v23 }
 0x386   :  { %v1913_v6 = vld [vmem:[#allocation5 + $0x1a78] sm:$0xff]  ;;  %v2600_v20 = vmul.f32 %v2596_v35, %v6710_v15  ;;  %v2517_v47 = vadd.f32 %v2513_v60, %v2430_v61 }
 0x387   :  { %v2683_v18 = vld [vmem:[#allocation5 + $0x1798] sm:$0xff]  ;;  %v1917_v55 = vmul.f32 %v1913_v6, %v6700_v44  ;;  %v3056_v41 = vmul.f32 %v5711_v1, %v3052_v50  ;;  %v1834_v62 = vadd.f32 %v1830_v43, %v1747_v22 }
 0x388   :  { %v2000_v17 = vld [vmem:[#allocation5 + $0x1a98] sm:$0xff]  ;;  %v2687_v52 = vmul.f32 %v2683_v18, %v6711_v39  ;;  %v2604_v19 = vadd.f32 %v2600_v20, %v2517_v47 }
 0x389   :  { %v2770_v42 = vld [vmem:[#allocation5 + $0x17b8] sm:$0xff]  ;;  %v2004_v0 = vmul.f32 %v2000_v17, %v6701_v51  ;;  %3063 = vadd.xlane.f32.xlu0 %v3056_v41  ;;  %v1921_v31 = vadd.f32 %v1917_v55, %v1834_v62  ;;  %v2991_v62 = vld [vmem:[#allocation10 + $0x8] sm:$0xff] }
 0x38a   :  { %v2087_v10 = vld [vmem:[#allocation5 + $0x1ab8] sm:$0xff]  ;;  %v2774_v36 = vmul.f32 %v2770_v42, %v6712_v25  ;;  %v2691_v59 = vadd.f32 %v2687_v52, %v2604_v19  ;;  %v3105_v19 = vld [vmem:[#allocation10 + $0x68] sm:$0xff] }
 0x38b   :  { %v2857_v24 = vld [vmem:[#allocation5 + $0x17d8] sm:$0xff]  ;;  %v2091_v44 = vmul.f32 %v2087_v10, %v6703_v53  ;;  %v2008_v51 = vadd.f32 %v2004_v0, %v1921_v31 }
 0x38c   :  { %v2174_v29 = vld [vmem:[#allocation5 + $0x1ad8] sm:$0xff]  ;;  %v2861_v11 = vmul.f32 %v2857_v24, %v6713_v9  ;;  %v2778_v40 = vadd.f32 %v2774_v36, %v2691_v59  ;;  %v2995_v24 = vmul.f32 %v2991_v62, %v5733_v46  ;;  %v3098_v36 = vpop.xlane.xlu0 %3097 }
 0x38d   :  { %v2944_v37 = vld [vmem:[#allocation5 + $0x17f8] sm:$0xff]  ;;  %v2178_v45 = vmul.f32 %v2174_v29, %v6705_v56  ;;  %v2095_v4 = vadd.f32 %v2091_v44, %v2008_v51  ;;  %v176_v29 = vld [vmem:[#allocation11 + $0x8] sm:$0xff]  ;;  %v3318_v51 = vld [vmem:[%s5980_s8 + $0x70] sm:$0xff] }
 0x38e   :  { %v2261_v28 = vld [vmem:[#allocation5 + $0x1af8] sm:$0xff]  ;;  %v2948_v3 = vmul.f32 %v2944_v37, %v6697_v32  ;;  %v2865_v57 = vadd.f32 %v2861_v11, %v2778_v40  ;;  %v2999_v31 = vadd.f32 %v2995_v24, %v176_v29 }
 0x38f   :  { %v2348_v14 = vld [vmem:[#allocation5 + $0x1b18] sm:$0xff]  ;;  %v2265_v34 = vmul.f32 %v2261_v28, %v6706_v2  ;;  %v2182_v63 = vadd.f32 %v2178_v45, %v2095_v4  ;;  %v3143_v28 = vld [vmem:[#allocation10 + $0x88] sm:$0xff] }
 0x390   :  { %v2435_v53 = vld [vmem:[#allocation5 + $0x1b38] sm:$0xff]  ;;  %v2352_v13 = vmul.f32 %v2348_v14, %v6707_v58  ;;  %v2952_v21 = vadd.f32 %v2948_v3, %v2865_v57  ;;  %v3333_v14 = vld [vmem:[%s5980_s8 + $0xe8] sm:$0xff]  ;;  %v3316_v57 = vld [vmem:[%s5980_s8 + $0x60] sm:$0xff] }
 0x391   :  { %v3082_v5 = vld [vmem:[#allocation7 + $0x78] sm:$0xff]  ;;  %v2269_v26 = vadd.f32 %v2265_v34, %v2182_v63  ;;  %v2439_v54 = vmul.f32 %v2435_v53, %v6708_v8  ;;  %v3317_v4 = vld [vmem:[%s5980_s8 + $0x68] sm:$0xff]  ;;  %v3332_v34 = vld [vmem:[%s5980_s8 + $0xe0] sm:$0xff] }
 0x392   :  { %v2522_v16 = vld [vmem:[#allocation5 + $0x1b58] sm:$0xff]  ;;  %v3086_v56 = vadd.f32 %v3082_v5, %v2952_v21  ;;  %v3314_v21 = vld [vmem:[%s5980_s8 + $0x50] sm:$0xff] }
 0x393   :  { %v2609_v48 = vld [vmem:[#allocation5 + $0x1b78] sm:$0xff]  ;;  %v2356_v38 = vadd.f32 %v2352_v13, %v2269_v26  ;;  %v2526_v35 = vmul.f32 %v2522_v16, %v6709_v33  ;;  %v3330_v16 = vld [vmem:[%s5980_s8 + $0xd0] sm:$0xff]  ;;  %v3329_v26 = vld [vmem:[%s5980_s8 + $0xc8] sm:$0xff] }
 0x394   :  { %v2696_v6 = vld [vmem:[#allocation5 + $0x1b98] sm:$0xff]  ;;  %v3090_v30 = vmax.f32 %v3086_v56, 0.0  ;;  %v2613_v2 = vmul.f32 %v2609_v48, %v6710_v15  ;;  %v3328_v48 = vld [vmem:[%s5980_s8 + $0xc0] sm:$0xff] }
 0x395   :  { %v2443_v60 = vadd.f32 %v2439_v54, %v2356_v38  ;;  %v2783_v7 = vld [vmem:[#allocation5 + $0x1bb8] sm:$0xff]  ;;  %v2700_v50 = vmul.f32 %v2696_v6, %v6711_v39  ;;  %v3060_v39 = vpop.xlane.xlu1 %3059  ;;  %v3313_v54 = vld [vmem:[%s5980_s8 + $0x48] sm:$0xff]  ;;  %v3312_v56 = vld [vmem:[%s5980_s8 + $0x40] sm:$0xff] }
 0x396   :  { %v3094_v43 = vmul.f32 %v5711_v1, %v3090_v30  ;;  %v2870_v18 = vld [vmem:[#allocation5 + $0x1bd8] sm:$0xff]  ;;  %v2787_v8 = vmul.f32 %v2783_v7, %v6712_v25  ;;  %v3029_v25 = vld [vmem:[#allocation10 + $0x28] sm:$0xff]  ;;  %v3326_v30 = vld [vmem:[%s5980_s8 + $0xb0] sm:$0xff] }
 0x397   :  { %v2530_v58 = vadd.f32 %v2526_v35, %v2443_v60  ;;  %v2957_v61 = vld [vmem:[#allocation5 + $0x1bf8] sm:$0xff]  ;;  %v2874_v33 = vmul.f32 %v2870_v18, %v6713_v9  ;;  %v3067_v9 = vld [vmem:[#allocation10 + $0x48] sm:$0xff]  ;;  %v3033_v27 = vmul.f32 %v3029_v25, %v5748_v49  ;;  %v3334_v49 = vld [vmem:[%s5980_s8 + $0xf0] sm:$0xff] }
 0x398   :  { %3101 = vadd.xlane.f32.xlu0 %v3094_v43  ;;  %v2961_v55 = vmul.f32 %v2957_v61, %v6697_v32  ;;  %v3120_v15 = vld [vmem:[#allocation7 + $0x98] sm:$0xff]  ;;  %v3071_v44 = vmul.f32 %v3067_v9, %v3060_v39  ;;  %v3310_v60 = vld [vmem:[%s5980_s8 + $0x30] sm:$0xff]  ;;  %v3309_v7 = vld [vmem:[%s5980_s8 + $0x28] sm:$0xff] }
 0x399   :  { %v2617_v17 = vadd.f32 %v2613_v2, %v2530_v58  ;;  %v5807_v0 = vpop.xlane.xlu1 %3023  ;;  %v3037_v37 = vadd.f32 %v3033_v27, %v2999_v31  ;;  %v3335_v59 = vld [vmem:[%s5980_s8 + $0xf8] sm:$0xff]  ;;  %v3325_v2 = vld [vmem:[%s5980_s8 + $0xa8] sm:$0xff]  ;;  %v3324_v43 = vld [vmem:[%s5980_s8 + $0xa0] sm:$0xff] }
 0x39a   :  { %v3319_v46 = vld [vmem:[%s5980_s8 + $0x78] sm:$0xff]  ;;  %3613 = vmatprep.subr.mxu1 %v3335_v59  ;;  %v3308_v58 = vld [vmem:[%s5980_s8 + $0x20] sm:$0xff]  ;;  %v3321_v61 = vld [vmem:[%s5980_s8 + $0x88] sm:$0xff] }
 0x39b   :  { %v2704_v20 = vadd.f32 %v2700_v50, %v2617_v17  ;;  %v3075_v11 = vadd.f32 %v3071_v44, %v3037_v37  ;;  %3614 = vmatpush3.msra.mxu1 %v3319_v46  ;;  %v3331_v63 = vld [vmem:[%s5980_s8 + $0xd8] sm:$0xff]  ;;  %v3322_v17 = vld [vmem:[%s5980_s8 + $0x90] sm:$0xff] }
 0x39c   :  { %3615 = vmatprep.subr.mxu1 %v3334_v49  ;;  %v3315_v5 = vld [vmem:[%s5980_s8 + $0x58] sm:$0xff]  ;;  %v3106_v39 = vld [vmem:[#allocation10 + $0x70] sm:$0xff] }
 0x39d   :  { %v2791_v22 = vadd.f32 %v2787_v8, %v2704_v20  ;;  %v5811_v32 = vpop.xlane.xlu1 %2988  ;;  %3616 = vmatpush3.msra.mxu1 %v3318_v51  ;;  %v3327_v38 = vld [vmem:[%s5980_s8 + $0xb8] sm:$0xff]  ;;  %v3306_v8 = vld [vmem:[%s5980_s8 + $0x10] sm:$0xff]  ;;  %v3305_v20 = vld [vmem:[%s5980_s8 + $0x8] sm:$0xff] }
 0x39e   :  { %3617 = vmatprep.subr.mxu1 %v3333_v14  ;;  %v3311_v35 = vld [vmem:[%s5980_s8 + $0x38] sm:$0xff]  ;;  %v3144_v27 = vld [vmem:[#allocation10 + $0x90] sm:$0xff] }
 0x39f   :  { %v2878_v41 = vadd.f32 %v2874_v33, %v2791_v22  ;;  %3618 = vmatpush3.msra.mxu1 %v3317_v4  ;;  %v3323_v50 = vld [vmem:[%s5980_s8 + $0x98] sm:$0xff]  ;;  %v3320_v33 = vld [vmem:[%s5980_s8 + $0x80] sm:$0xff] }
 0x3a0   :  { %3619 = vmatprep.subr.mxu1 %v3332_v34  ;;  %v3307_v18 = vld [vmem:[%s5980_s8 + $0x18] sm:$0xff]  ;;  %v3304_v22 = vld [vmem:[%s5980_s8] sm:$0xff] }
 0x3a1   :  { %v2965_v42 = vadd.f32 %v2961_v55, %v2878_v41  ;;  %v3136_v45 = vpop.xlane.xlu1 %3135  ;;  %3620 = vmatpush3.msra.mxu1 %v3316_v57  ;;  %v2992_v55 = vld [vmem:[#allocation10 + $0x10] sm:$0xff]  ;;  %v3031_v46 = vld [vmem:[#allocation10 + $0x38] sm:$0xff] }
 0x3a2   :  { %v3147_v3 = vmul.f32 %v3143_v28, %v3136_v45  ;;  %3621 = vmatprep.subr.mxu1 %v3331_v63  ;;  %v3030_v41 = vld [vmem:[#allocation10 + $0x30] sm:$0xff]  ;;  %v2993_v28 = vld [vmem:[#allocation10 + $0x18] sm:$0xff] }
 0x3a3   :  { %v3124_v10 = vadd.f32 %v3120_v15, %v2965_v42  ;;  %3622 = vmatpush3.msra.mxu1 %v3315_v5  ;;  %v2996_v15 = vmul.f32 %v2992_v55, %v5760_v12  ;;  %v177_v42 = vld [vmem:[#allocation11 + $0x10] sm:$0xff]  ;;  %v2997_v49 = vmul.f32 %v2993_v28, %v5811_v32  ;;  %v3069_v51 = vld [vmem:[#allocation10 + $0x58] sm:$0xff]  ;;  %v3437_v55 = vld [vmem:[%s5982_s10 + $0x28] sm:$0xff] }
 0x3a4   :  { %3623 = vmatprep.subr.mxu1 %v3330_v16  ;;  %v3107_v14 = vld [vmem:[#allocation10 + $0x78] sm:$0xff] }
 0x3a5   :  { %v3128_v47 = vmax.f32 %v3124_v10, 0.0  ;;  %3624 = vmatpush3.msra.mxu1 %v3314_v21  ;;  %v3068_v10 = vld [vmem:[#allocation10 + $0x50] sm:$0xff]  ;;  %v3000_v25 = vadd.f32 %v2996_v15, %v177_v42  ;;  %v3145_v63 = vld [vmem:[#allocation10 + $0x98] sm:$0xff] }
 0x3a6   :  { %3625 = vmatprep.subr.mxu1 %v3329_v26  ;;  %v3185_v26 = vlaneseq }
 0x3a7   :  { %v3132_v52 = vmul.f32 %v5711_v1, %v3128_v47  ;;  %v3109_v1 = vmul.f32 %v3105_v19, %v3098_v36  ;;  %3626 = vmatpush3.msra.mxu1 %v3313_v54 }
 0x3a8   :  { %3627 = vmatprep.subr.mxu1 %v3328_v48  ;;  %v3186_v32 = vshrl.u32 %v3185_v26, 7 }
 0x3a9   :  { %3139 = vadd.xlane.f32.xlu1 %v3132_v52  ;;  %v3113_v40 = vadd.f32 %v3109_v1, %v3075_v11  ;;  %3628 = vmatpush3.msra.mxu1 %v3312_v56  ;;  %v3034_v52 = vmul.f32 %v3030_v41, %v5807_v0  ;;  %v178_v11 = vld [vmem:[#allocation11 + $0x18] sm:$0xff]  ;;  %v3183_v56 = vld [vmem:[#allocation14] sm:$0x3] }
 0x3aa   :  { %3629 = vmatprep.subr.mxu1 %v3327_v38  ;;  %v3187_v48 = vsub.s32 0, %v3186_v32  ;;  %v3191_v38 = vsub.s32 1, %v3186_v32  ;;  %v3436_v41 = vld [vmem:[%s5982_s10 + $0x20] sm:$0xff] }
 0x3ab   :  { %v3151_v53 = vadd.f32 %v3147_v3, %v3113_v40  ;;  %3630 = vmatpush3.msra.mxu1 %v3311_v35  ;;  %v3038_v29 = vadd.f32 %v3034_v52, %v3000_v25  ;;  %v3001_v3 = vadd.f32 %v2997_v49, %v178_v11  ;;  %v3434_v25 = vld [vmem:[%s5982_s10 + $0x10] sm:$0xff] }
 0x3ac   :  { %3631 = vmatprep.subr.mxu1 %v3326_v30  ;;  %v3188_v35 = vrot.slane %v3183_v56, %v3187_v48 }
 0x3ad   :  { %v3155_v13 = vmax.f32 %v3151_v53, 0.0  ;;  %3632 = vmatpush3.msra.mxu1 %v3310_v60 }
 0x3ae   :  { %3633 = vmatprep.subr.mxu1 %v3325_v2 }
 0x3af   :  { %3160 = vst.msk [vmem:[#allocation2 + $0x8] sm:$0xff] %vm3158_vm0, %v3155_v13  ;;  %3634 = vmatpush3.msra.mxu1 %v3309_v7 }
 0x3b0   :  { %3635 = vmatprep.subr.mxu1 %v3324_v43 }
 0x3b1   :  { %3636 = vmatpush3.msra.mxu1 %v3308_v58 }
 0x3b2   :  { %3637 = vmatprep.subr.mxu1 %v3323_v50  ;;  %v3439_v50 = vld [vmem:[%s5982_s10 + $0x38] sm:$0xff] }
 0x3b3   :  { %3638 = vmatpush3.msra.mxu1 %v3307_v18  ;;  %3669 = vmatprep.subr.mxu0 %v3439_v50 }
 0x3b4   :  { %3639 = vmatprep.subr.mxu1 %v3322_v17  ;;  %3670 = vmatpush3.msra.mxu0 %v3439_v50 }
 0x3b5   :  { %3640 = vmatpush3.msra.mxu1 %v3306_v8  ;;  %v3062_v47 = vpop.xlane.xlu0 %3061 }
 0x3b6   :  { %v3164_v6 = vld [vmem:[#allocation2 + $0x8] sm:$0xff]  ;;  %3641 = vmatprep.subr.mxu1 %v3321_v61  ;;  %v3072_v24 = vmul.f32 %v3068_v10, %v3062_v47 }
 0x3b7   :  { %3604 = vmatmul.mubr.msk.f32.gmra.mxu0 %vm3158_vm0, %v3164_v6  ;;  %3642 = vmatpush3.msra.mxu1 %v3305_v20  ;;  %v3192_v6 = vrot.slane %v3183_v56, %v3191_v38 }
 0x3b8   :  { %3283 = vmatprep.mubr.f32.mxu0 %v3953_v23  ;;  %3643 = vmatprep.subr.mxu1 %v3320_v33  ;;  %v3076_v19 = vadd.f32 %v3072_v24, %v3038_v29  ;;  %v3433_v24 = vld [vmem:[%s5982_s10 + $0x8] sm:$0xff]  ;;  %v3432_v29 = vld [vmem:[%s5982_s10] sm:$0xff] }
 0x3b9   :  { %3644 = vmatpush3.msra.mxu1 %v3304_v22  ;;  %v3438_v22 = vld [vmem:[%s5982_s10 + $0x30] sm:$0xff] }
 0x3ba   :  { %3671 = vmatprep.subr.mxu0 %v3438_v22 }
 0x3bb   :  { %3672 = vmatpush3.msra.mxu0 %v3438_v22 }
 0x3bc   :  { %3673 = vmatprep.subr.mxu0 %v3437_v55 }
 0x3bd   :  { %3674 = vmatpush3.msra.mxu0 %v3437_v55 }
 0x3be   :  { %3675 = vmatprep.subr.mxu0 %v3436_v41 }
 0x3bf   :  { %3676 = vmatpush3.msra.mxu0 %v3436_v41 }
 0x3c3   :  { %v3100_v62 = vpop.xlane.xlu1 %3099 }
 0x3c4   :  { %v3110_v9 = vmul.f32 %v3106_v39, %v3100_v62  ;;  %v3435_v62 = vld [vmem:[%s5982_s10 + $0x18] sm:$0xff] }
 0x3c5   :  { %3677 = vmatprep.subr.mxu0 %v3435_v62 }
 0x3c6   :  { %v3114_v31 = vadd.f32 %v3110_v9, %v3076_v19  ;;  %3678 = vmatpush3.msra.mxu0 %v3435_v62 }
 0x3c7   :  { %3679 = vmatprep.subr.mxu0 %v3434_v25 }
 0x3c8   :  { %3680 = vmatpush3.msra.mxu0 %v3434_v25 }
 0x3c9   :  { %3681 = vmatprep.subr.mxu0 %v3433_v24 }
 0x3ca   :  { %3682 = vmatpush3.msra.mxu0 %v3433_v24 }
 0x3cb   :  { %3683 = vmatprep.subr.mxu0 %v3432_v29 }
 0x3cc   :  { %3684 = vmatpush3.msra.mxu0 %v3432_v29 }
 0x3df   :  { %v3026_v0 = vpop.xlane.xlu0 %3025 }
 0x3e0   :  { %v3035_v45 = vmul.f32 %v3031_v46, %v3026_v0 }
 0x3e2   :  { %v3039_v34 = vadd.f32 %v3035_v45, %v3001_v3 }
 0x3f9   :  { %v3138_v36 = vpop.xlane.xlu1 %3137 }
 0x3fa   :  { %v3148_v44 = vmul.f32 %v3144_v27, %v3138_v36 }
 0x3fc   :  { %v3152_v37 = vadd.f32 %v3148_v44, %v3114_v31 }
 0x3fe   :  { %v3156_v1 = vmax.f32 %v3152_v37, 0.0 }
 0x400   :  { %3161 = vst.msk [vmem:[#allocation2 + $0x10] sm:$0xff] %vm3158_vm0, %v3156_v1  ;;  %v3607_v1 = vld [vmem:[#allocation16] ss:$0 sm:$0xff] }
 0x407   :  { %v3165_v12 = vld [vmem:[#allocation2 + $0x10] sm:$0xff] }
 0x408   :  { %3605 = vmatmul.mubr.msk.f32.gmra.mxu0 %vm3158_vm0, %v3165_v12 }
 0x409   :  { %3289 = vmatprep.mubr.f32.mxu0 %v3953_v23 }
 0x412   :  { %v3064_v59 = vpop.xlane.xlu0 %3063 }
 0x413   :  { %v3073_v4 = vmul.f32 %v3069_v51, %v3064_v59 }
 0x415   :  { %v3077_v57 = vadd.f32 %v3073_v4, %v3039_v34 }
 0x421   :  { %v3102_v40 = vpop.xlane.xlu0 %3101 }
 0x422   :  { %v3111_v53 = vmul.f32 %v3107_v14, %v3102_v40 }
 0x424   :  { %v3115_v13 = vadd.f32 %v3111_v53, %v3077_v57 }
 0x432   :  { %v3140_v5 = vpop.xlane.xlu1 %3139 }
 0x433   :  { %v3149_v23 = vmul.f32 %v3145_v63, %v3140_v5 }
 0x435   :  { %v3153_v16 = vadd.f32 %v3149_v23, %v3115_v13  ;;  %v3608_v23 = vld [vmem:[#allocation17] ss:$0 sm:$0xff] }
 0x437   :  { %v3157_v21 = vmax.f32 %v3153_v16, 0.0 }
 0x439   :  { %3162 = vst.msk [vmem:[#allocation2 + $0x18] sm:$0xff] %vm3158_vm0, %v3157_v21 }
 0x440   :  { %v3166_v54 = vld [vmem:[#allocation2 + $0x18] sm:$0xff] }
 0x441   :  { %3606 = vmatmul.mubr.msk.f32.gmra.mxu0 %vm3158_vm0, %v3166_v54 }
 0x444   :  { %v3273_v30 = vpop.f32.mrf.mxu0 }
 0x445   :  { %v3274_v60 = vadd.f32 %v3273_v30, %v3188_v35 }
 0x446   :  { %v3275_v2 = vpop.f32.mrf.mxu0 }
 0x447   :  { %v3276_v7 = vadd.f32 %v3275_v2, %v3192_v6  ;;  %v3296_v58 = vmax.f32 %v3274_v60, 0.0 }
 0x449   :  { %v3297_v43 = vmax.f32 %v3276_v7, 0.0 }
 0x44b   :  { %3407 = vmatprep.mubr.f32.mxu1 %v3297_v43 }
 0x44c   :  { %3408 = vmatmul.mubr.f32.vlgmr.msra.gmra.mxu1 %v3296_v58 }
 0x477   :  { %v3279_v18 = vpop.f32.mrf.mxu0 }
 0x478   :  { %v3280_v17 = vadd.f32 %v3279_v18, %v3188_v35 }
 0x479   :  { %v3281_v8 = vpop.f32.mrf.mxu0 }
 0x47a   :  { %v3282_v61 = vadd.f32 %v3281_v8, %v3192_v6  ;;  %v3298_v33 = vmax.f32 %v3280_v17, 0.0 }
 0x47c   :  { %v3299_v20 = vmax.f32 %v3282_v61, 0.0 }
 0x47e   :  { %3412 = vmatprep.mubr.f32.mxu1 %v3299_v20 }
 0x47f   :  { %3413 = vmatmul.mubr.f32.gmra.mxu1 %v3298_v33 }
 0x4c8   :  { %v3285_v15 = vpop.f32.mrf.mxu0 }
 0x4c9   :  { %v3286_v42 = vadd.f32 %v3285_v15, %v3188_v35 }
 0x4ca   :  { %v3287_v10 = vpop.f32.mrf.mxu0 }
 0x4cb   :  { %v3288_v47 = vadd.f32 %v3287_v10, %v3192_v6  ;;  %v3300_v39 = vmax.f32 %v3286_v42, 0.0 }
 0x4cd   :  { %v3301_v52 = vmax.f32 %v3288_v47, 0.0 }
 0x4cf   :  { %3417 = vmatprep.mubr.f32.mxu1 %v3301_v52 }
 0x4d0   :  { %3418 = vmatmul.mubr.f32.gmra.mxu1 %v3300_v39 }
 0x501   :  { %v3291_v9 = vpop.f32.mrf.mxu0 }
 0x502   :  { %v3292_v27 = vadd.f32 %v3291_v9, %v3188_v35 }
 0x503   :  { %v3293_v19 = vpop.f32.mrf.mxu0 }
 0x504   :  { %v3294_v36 = vadd.f32 %v3293_v19, %v3192_v6  ;;  %v3302_v44 = vmax.f32 %v3292_v27, 0.0 }
 0x506   :  { %v3303_v31 = vmax.f32 %v3294_v36, 0.0 }
 0x508   :  { %3422 = vmatprep.mubr.f32.mxu1 %v3303_v31 }
 0x509   :  { %3423 = vmatmul.mubr.f32.gmra.mxu1 %v3302_v44 }
 0x50c   :  { %v3645_v37 = vpop.f32.mrf.mxu1 }
 0x50e   :  { %v3646_v12 = vpop.f32.mrf.mxu1 }
 0x50f   :  { %v3647_v0 = vadd.f32 %v3646_v12, %v3645_v37 }
 0x511   :  { %v3410_v28 = vadd.f32 %v3647_v0, %v3607_v1 }
 0x513   :  { %v3428_v59 = vmax.f32 %v3410_v28, 0.0 }
 0x515   :  { %3685 = vmatprep.mubr.msk.f32.mxu0 %vm3158_vm0, %v3428_v59 }
 0x53f   :  { %v3648_v46 = vpop.f32.mrf.mxu1 }
 0x541   :  { %v3649_v49 = vpop.f32.mrf.mxu1 }
 0x542   :  { %v3650_v11 = vadd.f32 %v3649_v49, %v3648_v46 }
 0x544   :  { %v3415_v51 = vadd.f32 %v3650_v11, %v3607_v1 }
 0x546   :  { %v3429_v45 = vmax.f32 %v3415_v51, 0.0 }
 0x548   :  { %3686 = vmatmul.mubr.msk.f32.vlgmr.msra.gmra.mxu0 %vm3158_vm0, %v3429_v45 }
 0x590   :  { %v3651_v14 = vpop.f32.mrf.mxu1 }
 0x592   :  { %v3652_v40 = vpop.f32.mrf.mxu1 }
 0x593   :  { %v3653_v3 = vadd.f32 %v3652_v40, %v3651_v14 }
 0x595   :  { %v3420_v4 = vadd.f32 %v3653_v3, %v3607_v1 }
 0x597   :  { %v3430_v34 = vmax.f32 %v3420_v4, 0.0 }
 0x599   :  { %3688 = vmatprep.mubr.msk.f32.mxu0 %vm3158_vm0, %v3430_v34 }
 0x5c9   :  { %v3654_v53 = vpop.f32.mrf.mxu1 }
 0x5cb   :  { %v3655_v57 = vpop.f32.mrf.mxu1 }
 0x5cc   :  { %v3656_v63 = vadd.f32 %v3655_v57, %v3654_v53 }
 0x5ce   :  { %v3425_v13 = vadd.f32 %v3656_v63, %v3607_v1 }
 0x5d0   :  { %v3431_v5 = vmax.f32 %v3425_v13, 0.0 }
 0x5d2   :  { %3689 = vmatmul.mubr.msk.f32.gmra.mxu0 %vm3158_vm0, %v3431_v5 }
 0x608   :  { %v3687_v16 = vpop.f32.mrf.mxu0 }
 0x609   :  { %v3531_v21 = vadd.f32 %v3687_v16, %v3608_v23 }
 0x60a   :  { %v3525_v26 = vpop.f32.mrf.mxu0 }
 0x60b   :  { %v3526_v32 = vadd.f32 %v3608_v23, %v3525_v26  ;;  %v3548_v54 = vsel %vm3544_vm1, %v3531_v21, -inf }
 0x60c   :  { %3549 = vmax.xlane.f32.xlu1 %v3548_v54 }
 0x60d   :  { %v3545_v48 = vsel %vm3544_vm1, %v3526_v32, -inf }
 0x60e   :  { %3546 = vmax.xlane.f32.xlu0 %v3545_v48 }
 0x692   :  { %v3690_v56 = vpop.f32.mrf.mxu0 }
 0x693   :  { %v3541_v38 = vadd.f32 %v3690_v56, %v3608_v23 }
 0x694   :  { %v3535_v35 = vpop.f32.mrf.mxu0 }
 0x695   :  { %v3536_v6 = vadd.f32 %v3608_v23, %v3535_v35  ;;  %v3554_v30 = vsel %vm3544_vm1, %v3541_v38, -inf  ;;  %v3550_v2 = vpop.xlane.xlu1 %3549 }
 0x696   :  { %3555 = vmax.xlane.f32.xlu1 %v3554_v30  ;;  %v3558_v7 = vsub.f32 %v3531_v21, %v3550_v2 }
 0x697   :  { %v3551_v60 = vsel %vm3544_vm1, %v3536_v6, -inf  ;;  %v3547_v43 = vpop.xlane.xlu0 %3546 }
 0x698   :  { %3552 = vmax.xlane.f32.xlu0 %v3551_v60  ;;  %v3563_v58 = vmul.f32 1.442695, %v3558_v7  ;;  %v3557_v50 = vsub.f32 %v3526_v32, %v3547_v43 }
 0x69a   :  { %3706 = vpow2.f32 %v3563_v58  ;;  %v3561_v18 = vmul.f32 1.442695, %v3557_v50 }
 0x69c   :  { %3708 = vpow2.f32 %v3561_v18 }
 0x6a7   :  { %v3707_v17 = vpop.eup %3706 }
 0x6a8   :  { %v3572_v8 = vsel %vm3544_vm1, %v3707_v17, 0.0 }
 0x6a9   :  { %v3709_v61 = vpop.eup %3708  ;;  %3573 = vadd.xlane.f32.xlu1 %v3572_v8 }
 0x6aa   :  { %v3569_v20 = vsel %vm3544_vm1, %v3709_v61, 0.0 }
 0x6ab   :  { %3570 = vadd.xlane.f32.xlu0 %v3569_v20 }
 0x71f   :  { %v3556_v33 = vpop.xlane.xlu1 %3555 }
 0x720   :  { %v3560_v22 = vsub.f32 %v3541_v38, %v3556_v33 }
 0x721   :  { %v3553_v55 = vpop.xlane.xlu0 %3552 }
 0x722   :  { %v3567_v41 = vmul.f32 1.442695, %v3560_v22  ;;  %v3559_v15 = vsub.f32 %v3536_v6, %v3553_v55 }
 0x724   :  { %3710 = vpow2.f32 %v3567_v41  ;;  %v3565_v42 = vmul.f32 1.442695, %v3559_v15 }
 0x726   :  { %3712 = vpow2.f32 %v3565_v42 }
 0x731   :  { %v3711_v10 = vpop.eup %3710 }
 0x732   :  { %v3578_v47 = vsel %vm3544_vm1, %v3711_v10, 0.0  ;;  %v3574_v62 = vpop.xlane.xlu1 %3573 }
 0x733   :  { %v3713_v52 = vpop.eup %3712  ;;  %3579 = vadd.xlane.f32.xlu1 %v3578_v47  ;;  %3714 = vrcp.f32 %v3574_v62 }
 0x734   :  { %v3575_v39 = vsel %vm3544_vm1, %v3713_v52, 0.0  ;;  %v3571_v25 = vpop.xlane.xlu0 %3570 }
 0x735   :  { %3576 = vadd.xlane.f32.xlu0 %v3575_v39  ;;  %3716 = vrcp.f32 %v3571_v25 }
 0x740   :  { %v3715_v24 = vpop.eup %3714 }
 0x741   :  { %v3584_v29 = vmul.f32 %v3715_v24, %v3707_v17 }
 0x742   :  { %v3717_v9 = vpop.eup %3716 }
 0x743   :  { %3590 = vst.msk [vmem:[%s5984_s12 + $0x8] sm:$0xff] %vm3544_vm1, %v3584_v29  ;;  %v3582_v27 = vmul.f32 %v3717_v9, %v3709_v61 }
 0x745   :  { %3589 = vst.msk [vmem:[%s5984_s12] sm:$0xff] %vm3544_vm1, %v3582_v27 }
 0x7bc   :  { %v3580_v19 = vpop.xlane.xlu1 %3579 }
 0x7bd   :  { %3718 = vrcp.f32 %v3580_v19 }
 0x7be   :  { %v3577_v36 = vpop.xlane.xlu0 %3576 }
 0x7bf   :  { %3720 = vrcp.f32 %v3577_v36 }
 0x7ca   :  { %v3719_v31 = vpop.eup %3718 }
 0x7cb   :  { %v3588_v44 = vmul.f32 %v3719_v31, %v3711_v10 }
 0x7cc   :  { %v3721_v37 = vpop.eup %3720 }
 0x7cd   :  { %3592 = vst.msk [vmem:[%s5984_s12 + $0x18] sm:$0xff] %vm3544_vm1, %v3588_v44  ;;  %v3586_v1 = vmul.f32 %v3721_v37, %v3713_v52 }
 0x7cf   :  { %3591 = vst.msk [vmem:[%s5984_s12 + $0x10] sm:$0xff] %vm3544_vm1, %v3586_v1 }
 0x7d0   :  { %3597 = vsyncpa [#allocation4], 1 }
 0x7d1   :  { %3598 = vsyncpa [#allocation6], 1 }
 0x7d2   :  { %3599 = vsyncpa [#allocation9], 1 }
 0x7d3   :  { %3600 = vsyncpa [#allocation12], 1 }
 0x7d4   :  { %3601 = vsyncpa [#allocation15], 1 }
 0x7d5   :  { %3602 = vsyncpa [#allocation18], 1 }

</bundles_post_ra>
